<compile_context>
chip_gen: v5e
topology: v5e:2x2
jax: 0.10.0
libtpu: 0.0.40
codegen_flags: <defaults>
</compile_context>

<pallas_src>
import functools

import jax
import jax.numpy as jnp
from jax.experimental import pallas as pl
from jax.experimental.pallas import tpu as pltpu

_BN_EPS = 1e-5
_SQRT_HALF = 0.7071067811865476
_LANE = 128


def _round_up(x, m):
    return (x + m - 1) // m * m


def _gelu_exact(x):
    # exact (erf-based) GELU, matching torch.nn.GELU(); erf runs on the EUP.
    return 0.5 * x * (1.0 + jax.lax.erf(x * _SQRT_HALF))


# ----------------------------------------------------------------------------
# Kernel 1: implicit-GEMM 3x3x3 conv (+bias) with optional fused BN+GELU of the
#           input and per-plane partial BatchNorm statistics of the output.
# ----------------------------------------------------------------------------
def _conv3x3x3_kernel(xm1_ref, x0_ref, xp1_ref, w_ref, b_ref, sc_ref, sh_ref,
                      y_ref, st_ref, pad_ref, *, H, W, Cpi, Cpo, D,
                      apply_input_act):
    d = pl.program_id(1)

    # (Re)build the zero-padded 3-plane halo slab in VMEM.
    pad_ref[...] = jnp.zeros_like(pad_ref)
    plane_refs = (xm1_ref, x0_ref, xp1_ref)
    for kd in range(3):
        p = plane_refs[kd][0].astype(jnp.float32)                  # (H, W, Cpi)
        if apply_input_act:
            # fused BN (precomputed scale/shift) + exact GELU of the previous
            # conv's raw output -- saves one full HBM round trip of h1.
            p = _gelu_exact(p * sc_ref[...] + sh_ref[...])
        if kd == 0:
            p = p * (d > 0).astype(jnp.float32)                    # depth pad -> 0
        if kd == 2:
            p = p * (d < D - 1).astype(jnp.float32)
        pad_ref[kd, 1:H + 1, 1:W + 1, :] = p

    # Implicit GEMM: 27 shifted taps, bf16 MXU operands, f32 accumulation.
    acc = jnp.zeros((H * W, Cpo), jnp.float32)
    for kd in range(3):
        for kh in range(3):
            for kw in range(3):
                t = kd * 9 + kh * 3 + kw
                a = pad_ref[kd, kh:kh + H, kw:kw + W, :]
                a = a.reshape(H * W, Cpi).astype(jnp.bfloat16)
                acc = acc + jnp.dot(a, w_ref[t],
                                    preferred_element_type=jnp.float32)
    acc = acc + b_ref[...]                                         # conv bias

    y_ref[0] = acc.reshape(H, W, Cpo)

    # per-plane partial BatchNorm statistics: [sum(y), sum(y^2)] per channel
    s1 = jnp.sum(acc, axis=0, keepdims=True)
    s2 = jnp.sum(acc * acc, axis=0, keepdims=True)
    st_ref[0] = jnp.concatenate([s1, s2], axis=0)


def _conv_bn_stats(x, w, b, in_scale, in_shift, *, n_batch, depth,
                   apply_input_act):
    ND, H, W, Cpi = x.shape
    D = depth
    Cpo = w.shape[-1]
    kernel = functools.partial(_conv3x3x3_kernel, H=H, W=W, Cpi=Cpi, Cpo=Cpo,
                               D=D, apply_input_act=apply_input_act)

    flops = 2 * 27 * ND * H * W * Cpi * Cpo
    bytes_accessed = (3 * int(x.size) * 4 + int(w.size) * 2
                      + ND * H * W * Cpo * 4)
    transcendentals = 3 * ND * H * W * Cpi if apply_input_act else 0

    return pl.pallas_call(
        kernel,
        out_shape=(jax.ShapeDtypeStruct((ND, H, W, Cpo), jnp.float32),
                   jax.ShapeDtypeStruct((ND, 2, Cpo), jnp.float32)),
        grid=(n_batch, D),
        in_specs=[
            pl.BlockSpec((1, H, W, Cpi),
                         lambda n, d: (n * D + jnp.maximum(d - 1, 0), 0, 0, 0)),
            pl.BlockSpec((1, H, W, Cpi), lambda n, d: (n * D + d, 0, 0, 0)),
            pl.BlockSpec((1, H, W, Cpi),
                         lambda n, d: (n * D + jnp.minimum(d + 1, D - 1), 0, 0, 0)),
            pl.BlockSpec((27, Cpi, Cpo), lambda n, d: (0, 0, 0)),
            pl.BlockSpec((1, Cpo), lambda n, d: (0, 0)),
            pl.BlockSpec((1, 1, Cpi), lambda n, d: (0, 0, 0)),
            pl.BlockSpec((1, 1, Cpi), lambda n, d: (0, 0, 0)),
        ],
        out_specs=(
            pl.BlockSpec((1, H, W, Cpo), lambda n, d: (n * D + d, 0, 0, 0)),
            pl.BlockSpec((1, 2, Cpo), lambda n, d: (n * D + d, 0, 0)),
        ),
        scratch_shapes=[pltpu.VMEM((3, H + 2, W + 2, Cpi), jnp.float32)],
        compiler_params=pltpu.CompilerParams(
            dimension_semantics=("parallel", "parallel")),
        cost_estimate=pl.CostEstimate(flops=flops,
                                      transcendentals=transcendentals,
                                      bytes_accessed=bytes_accessed),
    )(x, x, x, w, b, in_scale, in_shift)


# ----------------------------------------------------------------------------
# Kernel 2: fused BN + exact GELU + 2x2x2 max pool.
# The (N*D, H, W, C) activation is viewed (free reshape) as
# (N*D, H/2, 2, W/2, 2C); the 8 pooling corners are 4 corner DMA streams x 2
# lane-halves, so the kernel is purely elementwise and the data is read once.
# ----------------------------------------------------------------------------
def _bn_gelu_pool_kernel(c00_ref, c01_ref, c10_ref, c11_ref, sc_ref, sh_ref,
                         o_ref, *, Cpo):
    def act(ref):
        v = ref[0, :, 0, :, :]                        # (Hh, Wh, 2*Cpo)
        return _gelu_exact(v * sc_ref[...] + sh_ref[...])

    g = jnp.maximum(jnp.maximum(act(c00_ref), act(c01_ref)),
                    jnp.maximum(act(c10_ref), act(c11_ref)))
    # the remaining pooling pair (adjacent w voxels) lives in the lane dimension
    o_ref[0] = jnp.maximum(g[:, :, :Cpo], g[:, :, Cpo:])


def _bn_gelu_maxpool(y, scale2, shift2, *, n_batch, depth):
    ND, H, W, Cpo = y.shape
    D = depth
    Dh, Hh, Wh = D // 2, H // 2, W // 2
    yv = y.reshape(ND, Hh, 2, Wh, 2 * Cpo)            # metadata-only view

    def corner(a, b):
        return pl.BlockSpec(
            (1, Hh, 1, Wh, 2 * Cpo),
            lambda n, i, a=a, b=b: (n * D + 2 * i + a, 0, b, 0, 0))

    kernel = functools.partial(_bn_gelu_pool_kernel, Cpo=Cpo)
    out = pl.pallas_call(
        kernel,
        out_shape=jax.ShapeDtypeStruct((n_batch * Dh, Hh, Wh, Cpo), jnp.float32),
        grid=(n_batch, Dh),
        in_specs=[corner(0, 0), corner(0, 1), corner(1, 0), corner(1, 1),
                  pl.BlockSpec((1, 1, 2 * Cpo), lambda n, i: (0, 0, 0)),
                  pl.BlockSpec((1, 1, 2 * Cpo), lambda n, i: (0, 0, 0))],
        out_specs=pl.BlockSpec((1, Hh, Wh, Cpo),
                               lambda n, i: (n * Dh + i, 0, 0, 0)),
        compiler_params=pltpu.CompilerParams(
            dimension_semantics=("parallel", "parallel")),
    )(yv, yv, yv, yv, scale2, shift2)
    return out.reshape(n_batch, Dh, Hh, Wh, Cpo)


# ----------------------------------------------------------------------------
# BatchNorm fold (tiny, plain XLA): training-mode batch mean / biased variance.
# ----------------------------------------------------------------------------
def _bn_affine(stats, gamma, beta, n_rows):
    s = jnp.sum(stats, axis=0)                        # (2, C)
    mean = s[0] / n_rows
    var = jnp.maximum(s[1] / n_rows - mean * mean, 0.0)
    scale = gamma * jax.lax.rsqrt(var + _BN_EPS)
    shift = beta - mean * scale
    return scale, shift


# ----------------------------------------------------------------------------
# Parameters (channel dims zero-padded to 128 lanes, weights in bf16 for the MXU)
# ----------------------------------------------------------------------------
def init_params(key, cin, cout):
    cpi = _round_up(cin, _LANE)
    cpo = _round_up(cout, _LANE)
    k0, k1, k2, k3 = jax.random.split(key, 4)

    def prep_w(w, ci, cp_in):
        wp = jnp.zeros((3, 3, 3, cp_in, cpo), jnp.float32)
        wp = wp.at[:, :, :, :ci, :cout].set(w)
        return wp.reshape(27, cp_in, cpo).astype(jnp.bfloat16)

    def prep_b(b):
        return jnp.pad(b, ((0, 0), (0, cpo - b.shape[1])))

    w1 = jax.random.normal(k0, (3, 3, 3, cin, cout), jnp.float32) * 0.1
    b1 = jax.random.normal(k1, (1, cout), jnp.float32) * 0.05
    w2 = jax.random.normal(k2, (3, 3, 3, cout, cout), jnp.float32) * 0.1
    b2 = jax.random.normal(k3, (1, cout), jnp.float32) * 0.05

    return dict(
        w1=prep_w(w1, cin, cpi), b1=prep_b(b1),
        g1=jnp.ones((cpo,), jnp.float32), be1=jnp.zeros((cpo,), jnp.float32),
        w2=prep_w(w2, cout, cpo), b2=prep_b(b2),
        g2=jnp.ones((cpo,), jnp.float32), be2=jnp.zeros((cpo,), jnp.float32),
    )


# ----------------------------------------------------------------------------
# Forward pass: conv1 -> BN -> GELU -> conv2 -> BN -> GELU -> MaxPool3d(2)
# ----------------------------------------------------------------------------
def unet_down_forward(x_ncdhw, params, *, out_channels):
    N, Cin, D, H, W = x_ncdhw.shape
    assert D % 2 == 0 and H % 2 == 0 and W % 2 == 0
    cpi = params["w1"].shape[1]
    cpo = params["w1"].shape[2]

    # NCDHW -> channels-last planes, channels zero-padded to a 128-lane tile.
    x = jnp.transpose(x_ncdhw, (0, 2, 3, 4, 1)).astype(jnp.float32)
    x = jnp.pad(x, ((0, 0), (0, 0), (0, 0), (0, 0), (0, cpi - Cin)))
    x = x.reshape(N * D, H, W, cpi)

    n_rows = N * D * H * W
    dummy = jnp.zeros((1, 1, cpi), jnp.float32)

    # conv1 (+bias), per-plane BN partial stats
    y1, st1 = _conv_bn_stats(x, params["w1"], params["b1"], dummy, dummy,
                             n_batch=N, depth=D, apply_input_act=False)
    sc1, sh1 = _bn_affine(st1, params["g1"], params["be1"], n_rows)

    # conv2 (+bias); BN1 + GELU of y1 fused into its input path
    y2, st2 = _conv_bn_stats(y1, params["w2"], params["b2"],
                             sc1.reshape(1, 1, cpo), sh1.reshape(1, 1, cpo),
                             n_batch=N, depth=D, apply_input_act=True)
    sc2, sh2 = _bn_affine(st2, params["g2"], params["be2"], n_rows)

    # BN2 + GELU + 2x2x2 max pool (fused); scale/shift tiled across the two
    # w-parity channel groups that share the lane dimension.
    sc2p = jnp.concatenate([sc2, sc2]).reshape(1, 1, 2 * cpo)
    sh2p = jnp.concatenate([sh2, sh2]).reshape(1, 1, 2 * cpo)
    pooled = _bn_gelu_maxpool(y2, sc2p, sh2p, n_batch=N, depth=D)

    out = pooled[..., :out_channels]
    return jnp.transpose(out, (0, 4, 1, 2, 3))        # back to NCDHW


if __name__ == "__main__":
    key = jax.random.PRNGKey(0)
    k_x, k_p = jax.random.split(key)

    in_channels, out_channels = 4, 8
    N, D, H, W = 2, 8, 8, 8
    x = jax.random.normal(k_x, (N, in_channels, D, H, W), jnp.float32)
    params = init_params(k_p, in_channels, out_channels)

    fwd = jax.jit(unet_down_forward, static_argnames=("out_channels",))
    out = fwd(x, params, out_channels=out_channels)
    out = jax.block_until_ready(out)

    expected_shape = (N, out_channels, D // 2, H // 2, W // 2)
    assert out.shape == expected_shape, (out.shape, expected_shape)
    assert bool(jnp.all(jnp.isfinite(out)))
    print("KERNEL_OK")
</pallas_src>

<mosaic_0001>
module attributes {stable_mosaic.version = 11 : i64} {
  func.func @_conv3x3x3_kernel(%arg0: i32, %arg1: i32, %arg2: memref<1x8x8x128xf32, #tpu.memory_space<vmem>>, %arg3: memref<1x8x8x128xf32, #tpu.memory_space<vmem>>, %arg4: memref<1x8x8x128xf32, #tpu.memory_space<vmem>>, %arg5: memref<27x128x128xbf16, #tpu.memory_space<vmem>>, %arg6: memref<1x128xf32, #tpu.memory_space<vmem>>, %arg7: memref<1x1x128xf32, #tpu.memory_space<vmem>>, %arg8: memref<1x1x128xf32, #tpu.memory_space<vmem>>, %arg9: memref<1x8x8x128xf32, #tpu.memory_space<vmem>>, %arg10: memref<1x2x128xf32, #tpu.memory_space<vmem>>, %arg11: memref<3x10x10x128xf32, #tpu.memory_space<vmem>>) attributes {dimension_semantics = [#tpu.dimension_semantics<parallel>, #tpu.dimension_semantics<parallel>], iteration_bounds = array<i64: 2, 8>, scalar_prefetch = 0 : i64, scratch_operands = 1 : i64, tpu.core_type = #tpu.core_type<tc>, window_params = [{transform_indices = @transform_0, window_bounds = array<i64: 1, 8, 8, 128>}, {transform_indices = @transform_1, window_bounds = array<i64: 1, 8, 8, 128>}, {transform_indices = @transform_2, window_bounds = array<i64: 1, 8, 8, 128>}, {pipeline_mode = #tpu.pipeline_mode<synchronous>, transform_indices = @transform_3, window_bounds = array<i64: 27, 128, 128>}, {pipeline_mode = #tpu.pipeline_mode<synchronous>, transform_indices = @transform_4, window_bounds = array<i64: 1, 128>}, {pipeline_mode = #tpu.pipeline_mode<synchronous>, transform_indices = @transform_5, window_bounds = array<i64: 1, 1, 128>}, {pipeline_mode = #tpu.pipeline_mode<synchronous>, transform_indices = @transform_6, window_bounds = array<i64: 1, 1, 128>}, {transform_indices = @transform_7, window_bounds = array<i64: 1, 8, 8, 128>}, {transform_indices = @transform_8, window_bounds = array<i64: 1, 2, 128>}]} {
    %cst = arith.constant 0.000000e+00 : f32
    %0 = vector.broadcast %cst : f32 to vector<3x10x10x128xf32>
    %c0 = arith.constant 0 : index
    %c0_0 = arith.constant 0 : index
    %c0_1 = arith.constant 0 : index
    %c0_2 = arith.constant 0 : index
    %1 = vector.load %arg11[%c0, %c0_0, %c0_1, %c0_2] : memref<3x10x10x128xf32, #tpu.memory_space<vmem>>, vector<3x10x10x128xf32>
    tpu.vector_store %arg11[%c0, %c0_0, %c0_1, %c0_2], %0 {strides = array<i32>} : memref<3x10x10x128xf32, #tpu.memory_space<vmem>>, vector<3x10x10x128xf32>,
    %c0_3 = arith.constant 0 : index
    %c0_4 = arith.constant 0 : index
    %c0_5 = arith.constant 0 : index
    %c0_6 = arith.constant 0 : index
    %2 = vector.load %arg2[%c0_3, %c0_4, %c0_5, %c0_6] : memref<1x8x8x128xf32, #tpu.memory_space<vmem>>, vector<1x8x8x128xf32>
    %3 = vector.shape_cast %2 : vector<1x8x8x128xf32> to vector<8x8x128xf32>
    %c0_i32 = arith.constant 0 : i32
    %4 = arith.cmpi sgt, %arg1, %c0_i32 : i32
    %5 = arith.extui %4 : i1 to i32
    %6 = arith.sitofp %5 : i32 to f32
    %7 = vector.broadcast %6 : f32 to vector<8x8x128xf32>
    %8 = arith.mulf %3, %7 : vector<8x8x128xf32>
    %c0_7 = arith.constant 0 : index
    %c1 = arith.constant 1 : index
    %c1_8 = arith.constant 1 : index
    %c0_9 = arith.constant 0 : index
    %9 = vector.load %arg11[%c0_7, %c1, %c1_8, %c0_9] : memref<3x10x10x128xf32, #tpu.memory_space<vmem>>, vector<1x8x8x128xf32>
    %10 = vector.shape_cast %9 : vector<1x8x8x128xf32> to vector<8x8x128xf32>
    %11 = vector.shape_cast %8 : vector<8x8x128xf32> to vector<1x8x8x128xf32>
    tpu.vector_store %arg11[%c0_7, %c1, %c1_8, %c0_9], %11 {strides = array<i32>} : memref<3x10x10x128xf32, #tpu.memory_space<vmem>>, vector<1x8x8x128xf32>,
    %c0_10 = arith.constant 0 : index
    %c0_11 = arith.constant 0 : index
    %c0_12 = arith.constant 0 : index
    %c0_13 = arith.constant 0 : index
    %12 = vector.load %arg3[%c0_10, %c0_11, %c0_12, %c0_13] : memref<1x8x8x128xf32, #tpu.memory_space<vmem>>, vector<1x8x8x128xf32>
    %13 = vector.shape_cast %12 : vector<1x8x8x128xf32> to vector<8x8x128xf32>
    %c1_14 = arith.constant 1 : index
    %c1_15 = arith.constant 1 : index
    %c1_16 = arith.constant 1 : index
    %c0_17 = arith.constant 0 : index
    %14 = vector.load %arg11[%c1_14, %c1_15, %c1_16, %c0_17] : memref<3x10x10x128xf32, #tpu.memory_space<vmem>>, vector<1x8x8x128xf32>
    %15 = vector.shape_cast %14 : vector<1x8x8x128xf32> to vector<8x8x128xf32>
    %16 = vector.shape_cast %13 : vector<8x8x128xf32> to vector<1x8x8x128xf32>
    tpu.vector_store %arg11[%c1_14, %c1_15, %c1_16, %c0_17], %16 {strides = array<i32>} : memref<3x10x10x128xf32, #tpu.memory_space<vmem>>, vector<1x8x8x128xf32>,
    %c0_18 = arith.constant 0 : index
    %c0_19 = arith.constant 0 : index
    %c0_20 = arith.constant 0 : index
    %c0_21 = arith.constant 0 : index
    %17 = vector.load %arg4[%c0_18, %c0_19, %c0_20, %c0_21] : memref<1x8x8x128xf32, #tpu.memory_space<vmem>>, vector<1x8x8x128xf32>
    %18 = vector.shape_cast %17 : vector<1x8x8x128xf32> to vector<8x8x128xf32>
    %c7_i32 = arith.constant 7 : i32
    %19 = arith.cmpi slt, %arg1, %c7_i32 : i32
    %20 = arith.extui %19 : i1 to i32
    %21 = arith.sitofp %20 : i32 to f32
    %22 = vector.broadcast %21 : f32 to vector<8x8x128xf32>
    %23 = arith.mulf %18, %22 : vector<8x8x128xf32>
    %c2 = arith.constant 2 : index
    %c1_22 = arith.constant 1 : index
    %c1_23 = arith.constant 1 : index
    %c0_24 = arith.constant 0 : index
    %24 = vector.load %arg11[%c2, %c1_22, %c1_23, %c0_24] : memref<3x10x10x128xf32, #tpu.memory_space<vmem>>, vector<1x8x8x128xf32>
    %25 = vector.shape_cast %24 : vector<1x8x8x128xf32> to vector<8x8x128xf32>
    %26 = vector.shape_cast %23 : vector<8x8x128xf32> to vector<1x8x8x128xf32>
    tpu.vector_store %arg11[%c2, %c1_22, %c1_23, %c0_24], %26 {strides = array<i32>} : memref<3x10x10x128xf32, #tpu.memory_space<vmem>>, vector<1x8x8x128xf32>,
    %cst_25 = arith.constant 0.000000e+00 : f32
    %27 = vector.broadcast %cst_25 : f32 to vector<64x128xf32>
    %c0_26 = arith.constant 0 : index
    %c0_27 = arith.constant 0 : index
    %c0_28 = arith.constant 0 : index
    %c0_29 = arith.constant 0 : index
    %28 = vector.load %arg11[%c0_26, %c0_27, %c0_28, %c0_29] : memref<3x10x10x128xf32, #tpu.memory_space<vmem>>, vector<1x8x8x128xf32>
    %29 = vector.shape_cast %28 : vector<1x8x8x128xf32> to vector<8x8x128xf32>
    %30 = vector.shape_cast %29 : vector<8x8x128xf32> to vector<64x128xf32>
    %31 = arith.truncf %30 : vector<64x128xf32> to vector<64x128xbf16>
    %c0_30 = arith.constant 0 : index
    %c0_31 = arith.constant 0 : index
    %c0_32 = arith.constant 0 : index
    %32 = vector.load %arg5[%c0_30, %c0_31, %c0_32] : memref<27x128x128xbf16, #tpu.memory_space<vmem>>, vector<1x128x128xbf16>
    %33 = vector.shape_cast %32 : vector<1x128x128xbf16> to vector<128x128xbf16>
    %cst_33 = arith.constant dense<0.000000e+00> : vector<64x128xf32>
    %34 = tpu.matmul %31, %33, %cst_33 {dimension_numbers = #tpu.dot_dimension_numbers<[1], [0], [0], [1], [0, 0, 1, 1], [], []>} : vector<64x128xbf16>, vector<128x128xbf16>, vector<64x128xf32> -> vector<64x128xf32>
    %35 = arith.addf %27, %34 : vector<64x128xf32>
    %c0_34 = arith.constant 0 : index
    %c0_35 = arith.constant 0 : index
    %c1_36 = arith.constant 1 : index
    %c0_37 = arith.constant 0 : index
    %36 = vector.load %arg11[%c0_34, %c0_35, %c1_36, %c0_37] : memref<3x10x10x128xf32, #tpu.memory_space<vmem>>, vector<1x8x8x128xf32>
    %37 = vector.shape_cast %36 : vector<1x8x8x128xf32> to vector<8x8x128xf32>
    %38 = vector.shape_cast %37 : vector<8x8x128xf32> to vector<64x128xf32>
    %39 = arith.truncf %38 : vector<64x128xf32> to vector<64x128xbf16>
    %c1_38 = arith.constant 1 : index
    %c0_39 = arith.constant 0 : index
    %c0_40 = arith.constant 0 : index
    %40 = vector.load %arg5[%c1_38, %c0_39, %c0_40] : memref<27x128x128xbf16, #tpu.memory_space<vmem>>, vector<1x128x128xbf16>
    %41 = vector.shape_cast %40 : vector<1x128x128xbf16> to vector<128x128xbf16>
    %cst_41 = arith.constant dense<0.000000e+00> : vector<64x128xf32>
    %42 = tpu.matmul %39, %41, %cst_41 {dimension_numbers = #tpu.dot_dimension_numbers<[1], [0], [0], [1], [0, 0, 1, 1], [], []>} : vector<64x128xbf16>, vector<128x128xbf16>, vector<64x128xf32> -> vector<64x128xf32>
    %43 = arith.addf %35, %42 : vector<64x128xf32>
    %c0_42 = arith.constant 0 : index
    %c0_43 = arith.constant 0 : index
    %c2_44 = arith.constant 2 : index
    %c0_45 = arith.constant 0 : index
    %44 = vector.load %arg11[%c0_42, %c0_43, %c2_44, %c0_45] : memref<3x10x10x128xf32, #tpu.memory_space<vmem>>, vector<1x8x8x128xf32>
    %45 = vector.shape_cast %44 : vector<1x8x8x128xf32> to vector<8x8x128xf32>
    %46 = vector.shape_cast %45 : vector<8x8x128xf32> to vector<64x128xf32>
    %47 = arith.truncf %46 : vector<64x128xf32> to vector<64x128xbf16>
    %c2_46 = arith.constant 2 : index
    %c0_47 = arith.constant 0 : index
    %c0_48 = arith.constant 0 : index
    %48 = vector.load %arg5[%c2_46, %c0_47, %c0_48] : memref<27x128x128xbf16, #tpu.memory_space<vmem>>, vector<1x128x128xbf16>
    %49 = vector.shape_cast %48 : vector<1x128x128xbf16> to vector<128x128xbf16>
    %cst_49 = arith.constant dense<0.000000e+00> : vector<64x128xf32>
    %50 = tpu.matmul %47, %49, %cst_49 {dimension_numbers = #tpu.dot_dimension_numbers<[1], [0], [0], [1], [0, 0, 1, 1], [], []>} : vector<64x128xbf16>, vector<128x128xbf16>, vector<64x128xf32> -> vector<64x128xf32>
    %51 = arith.addf %43, %50 : vector<64x128xf32>
    %c0_50 = arith.constant 0 : index
    %c1_51 = arith.constant 1 : index
    %c0_52 = arith.constant 0 : index
    %c0_53 = arith.constant 0 : index
    %52 = vector.load %arg11[%c0_50, %c1_51, %c0_52, %c0_53] : memref<3x10x10x128xf32, #tpu.memory_space<vmem>>, vector<1x8x8x128xf32>
    %53 = vector.shape_cast %52 : vector<1x8x8x128xf32> to vector<8x8x128xf32>
    %54 = vector.shape_cast %53 : vector<8x8x128xf32> to vector<64x128xf32>
    %55 = arith.truncf %54 : vector<64x128xf32> to vector<64x128xbf16>
    %c3 = arith.constant 3 : index
    %c0_54 = arith.constant 0 : index
    %c0_55 = arith.constant 0 : index
    %56 = vector.load %arg5[%c3, %c0_54, %c0_55] : memref<27x128x128xbf16, #tpu.memory_space<vmem>>, vector<1x128x128xbf16>
    %57 = vector.shape_cast %56 : vector<1x128x128xbf16> to vector<128x128xbf16>
    %cst_56 = arith.constant dense<0.000000e+00> : vector<64x128xf32>
    %58 = tpu.matmul %55, %57, %cst_56 {dimension_numbers = #tpu.dot_dimension_numbers<[1], [0], [0], [1], [0, 0, 1, 1], [], []>} : vector<64x128xbf16>, vector<128x128xbf16>, vector<64x128xf32> -> vector<64x128xf32>
    %59 = arith.addf %51, %58 : vector<64x128xf32>
    %c0_57 = arith.constant 0 : index
    %c1_58 = arith.constant 1 : index
    %c1_59 = arith.constant 1 : index
    %c0_60 = arith.constant 0 : index
    %60 = vector.load %arg11[%c0_57, %c1_58, %c1_59, %c0_60] : memref<3x10x10x128xf32, #tpu.memory_space<vmem>>, vector<1x8x8x128xf32>
    %61 = vector.shape_cast %60 : vector<1x8x8x128xf32> to vector<8x8x128xf32>
    %62 = vector.shape_cast %61 : vector<8x8x128xf32> to vector<64x128xf32>
    %63 = arith.truncf %62 : vector<64x128xf32> to vector<64x128xbf16>
    %c4 = arith.constant 4 : index
    %c0_61 = arith.constant 0 : index
    %c0_62 = arith.constant 0 : index
    %64 = vector.load %arg5[%c4, %c0_61, %c0_62] : memref<27x128x128xbf16, #tpu.memory_space<vmem>>, vector<1x128x128xbf16>
    %65 = vector.shape_cast %64 : vector<1x128x128xbf16> to vector<128x128xbf16>
    %cst_63 = arith.constant dense<0.000000e+00> : vector<64x128xf32>
    %66 = tpu.matmul %63, %65, %cst_63 {dimension_numbers = #tpu.dot_dimension_numbers<[1], [0], [0], [1], [0, 0, 1, 1], [], []>} : vector<64x128xbf16>, vector<128x128xbf16>, vector<64x128xf32> -> vector<64x128xf32>
    %67 = arith.addf %59, %66 : vector<64x128xf32>
    %c0_64 = arith.constant 0 : index
    %c1_65 = arith.constant 1 : index
    %c2_66 = arith.constant 2 : index
    %c0_67 = arith.constant 0 : index
    %68 = vector.load %arg11[%c0_64, %c1_65, %c2_66, %c0_67] : memref<3x10x10x128xf32, #tpu.memory_space<vmem>>, vector<1x8x8x128xf32>
    %69 = vector.shape_cast %68 : vector<1x8x8x128xf32> to vector<8x8x128xf32>
    %70 = vector.shape_cast %69 : vector<8x8x128xf32> to vector<64x128xf32>
    %71 = arith.truncf %70 : vector<64x128xf32> to vector<64x128xbf16>
    %c5 = arith.constant 5 : index
    %c0_68 = arith.constant 0 : index
    %c0_69 = arith.constant 0 : index
    %72 = vector.load %arg5[%c5, %c0_68, %c0_69] : memref<27x128x128xbf16, #tpu.memory_space<vmem>>, vector<1x128x128xbf16>
    %73 = vector.shape_cast %72 : vector<1x128x128xbf16> to vector<128x128xbf16>
    %cst_70 = arith.constant dense<0.000000e+00> : vector<64x128xf32>
    %74 = tpu.matmul %71, %73, %cst_70 {dimension_numbers = #tpu.dot_dimension_numbers<[1], [0], [0], [1], [0, 0, 1, 1], [], []>} : vector<64x128xbf16>, vector<128x128xbf16>, vector<64x128xf32> -> vector<64x128xf32>
    %75 = arith.addf %67, %74 : vector<64x128xf32>
    %c0_71 = arith.constant 0 : index
    %c2_72 = arith.constant 2 : index
    %c0_73 = arith.constant 0 : index
    %c0_74 = arith.constant 0 : index
    %76 = vector.load %arg11[%c0_71, %c2_72, %c0_73, %c0_74] : memref<3x10x10x128xf32, #tpu.memory_space<vmem>>, vector<1x8x8x128xf32>
    %77 = vector.shape_cast %76 : vector<1x8x8x128xf32> to vector<8x8x128xf32>
    %78 = vector.shape_cast %77 : vector<8x8x128xf32> to vector<64x128xf32>
    %79 = arith.truncf %78 : vector<64x128xf32> to vector<64x128xbf16>
    %c6 = arith.constant 6 : index
    %c0_75 = arith.constant 0 : index
    %c0_76 = arith.constant 0 : index
    %80 = vector.load %arg5[%c6, %c0_75, %c0_76] : memref<27x128x128xbf16, #tpu.memory_space<vmem>>, vector<1x128x128xbf16>
    %81 = vector.shape_cast %80 : vector<1x128x128xbf16> to vector<128x128xbf16>
    %cst_77 = arith.constant dense<0.000000e+00> : vector<64x128xf32>
    %82 = tpu.matmul %79, %81, %cst_77 {dimension_numbers = #tpu.dot_dimension_numbers<[1], [0], [0], [1], [0, 0, 1, 1], [], []>} : vector<64x128xbf16>, vector<128x128xbf16>, vector<64x128xf32> -> vector<64x128xf32>
    %83 = arith.addf %75, %82 : vector<64x128xf32>
    %c0_78 = arith.constant 0 : index
    %c2_79 = arith.constant 2 : index
    %c1_80 = arith.constant 1 : index
    %c0_81 = arith.constant 0 : index
    %84 = vector.load %arg11[%c0_78, %c2_79, %c1_80, %c0_81] : memref<3x10x10x128xf32, #tpu.memory_space<vmem>>, vector<1x8x8x128xf32>
    %85 = vector.shape_cast %84 : vector<1x8x8x128xf32> to vector<8x8x128xf32>
    %86 = vector.shape_cast %85 : vector<8x8x128xf32> to vector<64x128xf32>
    %87 = arith.truncf %86 : vector<64x128xf32> to vector<64x128xbf16>
    %c7 = arith.constant 7 : index
    %c0_82 = arith.constant 0 : index
    %c0_83 = arith.constant 0 : index
    %88 = vector.load %arg5[%c7, %c0_82, %c0_83] : memref<27x128x128xbf16, #tpu.memory_space<vmem>>, vector<1x128x128xbf16>
    %89 = vector.shape_cast %88 : vector<1x128x128xbf16> to vector<128x128xbf16>
    %cst_84 = arith.constant dense<0.000000e+00> : vector<64x128xf32>
    %90 = tpu.matmul %87, %89, %cst_84 {dimension_numbers = #tpu.dot_dimension_numbers<[1], [0], [0], [1], [0, 0, 1, 1], [], []>} : vector<64x128xbf16>, vector<128x128xbf16>, vector<64x128xf32> -> vector<64x128xf32>
    %91 = arith.addf %83, %90 : vector<64x128xf32>
    %c0_85 = arith.constant 0 : index
    %c2_86 = arith.constant 2 : index
    %c2_87 = arith.constant 2 : index
    %c0_88 = arith.constant 0 : index
    %92 = vector.load %arg11[%c0_85, %c2_86, %c2_87, %c0_88] : memref<3x10x10x128xf32, #tpu.memory_space<vmem>>, vector<1x8x8x128xf32>
    %93 = vector.shape_cast %92 : vector<1x8x8x128xf32> to vector<8x8x128xf32>
    %94 = vector.shape_cast %93 : vector<8x8x128xf32> to vector<64x128xf32>
    %95 = arith.truncf %94 : vector<64x128xf32> to vector<64x128xbf16>
    %c8 = arith.constant 8 : index
    %c0_89 = arith.constant 0 : index
    %c0_90 = arith.constant 0 : index
    %96 = vector.load %arg5[%c8, %c0_89, %c0_90] : memref<27x128x128xbf16, #tpu.memory_space<vmem>>, vector<1x128x128xbf16>
    %97 = vector.shape_cast %96 : vector<1x128x128xbf16> to vector<128x128xbf16>
    %cst_91 = arith.constant dense<0.000000e+00> : vector<64x128xf32>
    %98 = tpu.matmul %95, %97, %cst_91 {dimension_numbers = #tpu.dot_dimension_numbers<[1], [0], [0], [1], [0, 0, 1, 1], [], []>} : vector<64x128xbf16>, vector<128x128xbf16>, vector<64x128xf32> -> vector<64x128xf32>
    %99 = arith.addf %91, %98 : vector<64x128xf32>
    %c1_92 = arith.constant 1 : index
    %c0_93 = arith.constant 0 : index
    %c0_94 = arith.constant 0 : index
    %c0_95 = arith.constant 0 : index
    %100 = vector.load %arg11[%c1_92, %c0_93, %c0_94, %c0_95] : memref<3x10x10x128xf32, #tpu.memory_space<vmem>>, vector<1x8x8x128xf32>
    %101 = vector.shape_cast %100 : vector<1x8x8x128xf32> to vector<8x8x128xf32>
    %102 = vector.shape_cast %101 : vector<8x8x128xf32> to vector<64x128xf32>
    %103 = arith.truncf %102 : vector<64x128xf32> to vector<64x128xbf16>
    %c9 = arith.constant 9 : index
    %c0_96 = arith.constant 0 : index
    %c0_97 = arith.constant 0 : index
    %104 = vector.load %arg5[%c9, %c0_96, %c0_97] : memref<27x128x128xbf16, #tpu.memory_space<vmem>>, vector<1x128x128xbf16>
    %105 = vector.shape_cast %104 : vector<1x128x128xbf16> to vector<128x128xbf16>
    %cst_98 = arith.constant dense<0.000000e+00> : vector<64x128xf32>
    %106 = tpu.matmul %103, %105, %cst_98 {dimension_numbers = #tpu.dot_dimension_numbers<[1], [0], [0], [1], [0, 0, 1, 1], [], []>} : vector<64x128xbf16>, vector<128x128xbf16>, vector<64x128xf32> -> vector<64x128xf32>
    %107 = arith.addf %99, %106 : vector<64x128xf32>
    %c1_99 = arith.constant 1 : index
    %c0_100 = arith.constant 0 : index
    %c1_101 = arith.constant 1 : index
    %c0_102 = arith.constant 0 : index
    %108 = vector.load %arg11[%c1_99, %c0_100, %c1_101, %c0_102] : memref<3x10x10x128xf32, #tpu.memory_space<vmem>>, vector<1x8x8x128xf32>
    %109 = vector.shape_cast %108 : vector<1x8x8x128xf32> to vector<8x8x128xf32>
    %110 = vector.shape_cast %109 : vector<8x8x128xf32> to vector<64x128xf32>
    %111 = arith.truncf %110 : vector<64x128xf32> to vector<64x128xbf16>
    %c10 = arith.constant 10 : index
    %c0_103 = arith.constant 0 : index
    %c0_104 = arith.constant 0 : index
    %112 = vector.load %arg5[%c10, %c0_103, %c0_104] : memref<27x128x128xbf16, #tpu.memory_space<vmem>>, vector<1x128x128xbf16>
    %113 = vector.shape_cast %112 : vector<1x128x128xbf16> to vector<128x128xbf16>
    %cst_105 = arith.constant dense<0.000000e+00> : vector<64x128xf32>
    %114 = tpu.matmul %111, %113, %cst_105 {dimension_numbers = #tpu.dot_dimension_numbers<[1], [0], [0], [1], [0, 0, 1, 1], [], []>} : vector<64x128xbf16>, vector<128x128xbf16>, vector<64x128xf32> -> vector<64x128xf32>
    %115 = arith.addf %107, %114 : vector<64x128xf32>
    %c1_106 = arith.constant 1 : index
    %c0_107 = arith.constant 0 : index
    %c2_108 = arith.constant 2 : index
    %c0_109 = arith.constant 0 : index
    %116 = vector.load %arg11[%c1_106, %c0_107, %c2_108, %c0_109] : memref<3x10x10x128xf32, #tpu.memory_space<vmem>>, vector<1x8x8x128xf32>
    %117 = vector.shape_cast %116 : vector<1x8x8x128xf32> to vector<8x8x128xf32>
    %118 = vector.shape_cast %117 : vector<8x8x128xf32> to vector<64x128xf32>
    %119 = arith.truncf %118 : vector<64x128xf32> to vector<64x128xbf16>
    %c11 = arith.constant 11 : index
    %c0_110 = arith.constant 0 : index
    %c0_111 = arith.constant 0 : index
    %120 = vector.load %arg5[%c11, %c0_110, %c0_111] : memref<27x128x128xbf16, #tpu.memory_space<vmem>>, vector<1x128x128xbf16>
    %121 = vector.shape_cast %120 : vector<1x128x128xbf16> to vector<128x128xbf16>
    %cst_112 = arith.constant dense<0.000000e+00> : vector<64x128xf32>
    %122 = tpu.matmul %119, %121, %cst_112 {dimension_numbers = #tpu.dot_dimension_numbers<[1], [0], [0], [1], [0, 0, 1, 1], [], []>} : vector<64x128xbf16>, vector<128x128xbf16>, vector<64x128xf32> -> vector<64x128xf32>
    %123 = arith.addf %115, %122 : vector<64x128xf32>
    %c1_113 = arith.constant 1 : index
    %c1_114 = arith.constant 1 : index
    %c0_115 = arith.constant 0 : index
    %c0_116 = arith.constant 0 : index
    %124 = vector.load %arg11[%c1_113, %c1_114, %c0_115, %c0_116] : memref<3x10x10x128xf32, #tpu.memory_space<vmem>>, vector<1x8x8x128xf32>
    %125 = vector.shape_cast %124 : vector<1x8x8x128xf32> to vector<8x8x128xf32>
    %126 = vector.shape_cast %125 : vector<8x8x128xf32> to vector<64x128xf32>
    %127 = arith.truncf %126 : vector<64x128xf32> to vector<64x128xbf16>
    %c12 = arith.constant 12 : index
    %c0_117 = arith.constant 0 : index
    %c0_118 = arith.constant 0 : index
    %128 = vector.load %arg5[%c12, %c0_117, %c0_118] : memref<27x128x128xbf16, #tpu.memory_space<vmem>>, vector<1x128x128xbf16>
    %129 = vector.shape_cast %128 : vector<1x128x128xbf16> to vector<128x128xbf16>
    %cst_119 = arith.constant dense<0.000000e+00> : vector<64x128xf32>
    %130 = tpu.matmul %127, %129, %cst_119 {dimension_numbers = #tpu.dot_dimension_numbers<[1], [0], [0], [1], [0, 0, 1, 1], [], []>} : vector<64x128xbf16>, vector<128x128xbf16>, vector<64x128xf32> -> vector<64x128xf32>
    %131 = arith.addf %123, %130 : vector<64x128xf32>
    %c1_120 = arith.constant 1 : index
    %c1_121 = arith.constant 1 : index
    %c1_122 = arith.constant 1 : index
    %c0_123 = arith.constant 0 : index
    %132 = vector.load %arg11[%c1_120, %c1_121, %c1_122, %c0_123] : memref<3x10x10x128xf32, #tpu.memory_space<vmem>>, vector<1x8x8x128xf32>
    %133 = vector.shape_cast %132 : vector<1x8x8x128xf32> to vector<8x8x128xf32>
    %134 = vector.shape_cast %133 : vector<8x8x128xf32> to vector<64x128xf32>
    %135 = arith.truncf %134 : vector<64x128xf32> to vector<64x128xbf16>
    %c13 = arith.constant 13 : index
    %c0_124 = arith.constant 0 : index
    %c0_125 = arith.constant 0 : index
    %136 = vector.load %arg5[%c13, %c0_124, %c0_125] : memref<27x128x128xbf16, #tpu.memory_space<vmem>>, vector<1x128x128xbf16>
    %137 = vector.shape_cast %136 : vector<1x128x128xbf16> to vector<128x128xbf16>
    %cst_126 = arith.constant dense<0.000000e+00> : vector<64x128xf32>
    %138 = tpu.matmul %135, %137, %cst_126 {dimension_numbers = #tpu.dot_dimension_numbers<[1], [0], [0], [1], [0, 0, 1, 1], [], []>} : vector<64x128xbf16>, vector<128x128xbf16>, vector<64x128xf32> -> vector<64x128xf32>
    %139 = arith.addf %131, %138 : vector<64x128xf32>
    %c1_127 = arith.constant 1 : index
    %c1_128 = arith.constant 1 : index
    %c2_129 = arith.constant 2 : index
    %c0_130 = arith.constant 0 : index
    %140 = vector.load %arg11[%c1_127, %c1_128, %c2_129, %c0_130] : memref<3x10x10x128xf32, #tpu.memory_space<vmem>>, vector<1x8x8x128xf32>
    %141 = vector.shape_cast %140 : vector<1x8x8x128xf32> to vector<8x8x128xf32>
    %142 = vector.shape_cast %141 : vector<8x8x128xf32> to vector<64x128xf32>
    %143 = arith.truncf %142 : vector<64x128xf32> to vector<64x128xbf16>
    %c14 = arith.constant 14 : index
    %c0_131 = arith.constant 0 : index
    %c0_132 = arith.constant 0 : index
    %144 = vector.load %arg5[%c14, %c0_131, %c0_132] : memref<27x128x128xbf16, #tpu.memory_space<vmem>>, vector<1x128x128xbf16>
    %145 = vector.shape_cast %144 : vector<1x128x128xbf16> to vector<128x128xbf16>
    %cst_133 = arith.constant dense<0.000000e+00> : vector<64x128xf32>
    %146 = tpu.matmul %143, %145, %cst_133 {dimension_numbers = #tpu.dot_dimension_numbers<[1], [0], [0], [1], [0, 0, 1, 1], [], []>} : vector<64x128xbf16>, vector<128x128xbf16>, vector<64x128xf32> -> vector<64x128xf32>
    %147 = arith.addf %139, %146 : vector<64x128xf32>
    %c1_134 = arith.constant 1 : index
    %c2_135 = arith.constant 2 : index
    %c0_136 = arith.constant 0 : index
    %c0_137 = arith.constant 0 : index
    %148 = vector.load %arg11[%c1_134, %c2_135, %c0_136, %c0_137] : memref<3x10x10x128xf32, #tpu.memory_space<vmem>>, vector<1x8x8x128xf32>
    %149 = vector.shape_cast %148 : vector<1x8x8x128xf32> to vector<8x8x128xf32>
    %150 = vector.shape_cast %149 : vector<8x8x128xf32> to vector<64x128xf32>
    %151 = arith.truncf %150 : vector<64x128xf32> to vector<64x128xbf16>
    %c15 = arith.constant 15 : index
    %c0_138 = arith.constant 0 : index
    %c0_139 = arith.constant 0 : index
    %152 = vector.load %arg5[%c15, %c0_138, %c0_139] : memref<27x128x128xbf16, #tpu.memory_space<vmem>>, vector<1x128x128xbf16>
    %153 = vector.shape_cast %152 : vector<1x128x128xbf16> to vector<128x128xbf16>
    %cst_140 = arith.constant dense<0.000000e+00> : vector<64x128xf32>
    %154 = tpu.matmul %151, %153, %cst_140 {dimension_numbers = #tpu.dot_dimension_numbers<[1], [0], [0], [1], [0, 0, 1, 1], [], []>} : vector<64x128xbf16>, vector<128x128xbf16>, vector<64x128xf32> -> vector<64x128xf32>
    %155 = arith.addf %147, %154 : vector<64x128xf32>
    %c1_141 = arith.constant 1 : index
    %c2_142 = arith.constant 2 : index
    %c1_143 = arith.constant 1 : index
    %c0_144 = arith.constant 0 : index
    %156 = vector.load %arg11[%c1_141, %c2_142, %c1_143, %c0_144] : memref<3x10x10x128xf32, #tpu.memory_space<vmem>>, vector<1x8x8x128xf32>
    %157 = vector.shape_cast %156 : vector<1x8x8x128xf32> to vector<8x8x128xf32>
    %158 = vector.shape_cast %157 : vector<8x8x128xf32> to vector<64x128xf32>
    %159 = arith.truncf %158 : vector<64x128xf32> to vector<64x128xbf16>
    %c16 = arith.constant 16 : index
    %c0_145 = arith.constant 0 : index
    %c0_146 = arith.constant 0 : index
    %160 = vector.load %arg5[%c16, %c0_145, %c0_146] : memref<27x128x128xbf16, #tpu.memory_space<vmem>>, vector<1x128x128xbf16>
    %161 = vector.shape_cast %160 : vector<1x128x128xbf16> to vector<128x128xbf16>
    %cst_147 = arith.constant dense<0.000000e+00> : vector<64x128xf32>
    %162 = tpu.matmul %159, %161, %cst_147 {dimension_numbers = #tpu.dot_dimension_numbers<[1], [0], [0], [1], [0, 0, 1, 1], [], []>} : vector<64x128xbf16>, vector<128x128xbf16>, vector<64x128xf32> -> vector<64x128xf32>
    %163 = arith.addf %155, %162 : vector<64x128xf32>
    %c1_148 = arith.constant 1 : index
    %c2_149 = arith.constant 2 : index
    %c2_150 = arith.constant 2 : index
    %c0_151 = arith.constant 0 : index
    %164 = vector.load %arg11[%c1_148, %c2_149, %c2_150, %c0_151] : memref<3x10x10x128xf32, #tpu.memory_space<vmem>>, vector<1x8x8x128xf32>
    %165 = vector.shape_cast %164 : vector<1x8x8x128xf32> to vector<8x8x128xf32>
    %166 = vector.shape_cast %165 : vector<8x8x128xf32> to vector<64x128xf32>
    %167 = arith.truncf %166 : vector<64x128xf32> to vector<64x128xbf16>
    %c17 = arith.constant 17 : index
    %c0_152 = arith.constant 0 : index
    %c0_153 = arith.constant 0 : index
    %168 = vector.load %arg5[%c17, %c0_152, %c0_153] : memref<27x128x128xbf16, #tpu.memory_space<vmem>>, vector<1x128x128xbf16>
    %169 = vector.shape_cast %168 : vector<1x128x128xbf16> to vector<128x128xbf16>
    %cst_154 = arith.constant dense<0.000000e+00> : vector<64x128xf32>
    %170 = tpu.matmul %167, %169, %cst_154 {dimension_numbers = #tpu.dot_dimension_numbers<[1], [0], [0], [1], [0, 0, 1, 1], [], []>} : vector<64x128xbf16>, vector<128x128xbf16>, vector<64x128xf32> -> vector<64x128xf32>
    %171 = arith.addf %163, %170 : vector<64x128xf32>
    %c2_155 = arith.constant 2 : index
    %c0_156 = arith.constant 0 : index
    %c0_157 = arith.constant 0 : index
    %c0_158 = arith.constant 0 : index
    %172 = vector.load %arg11[%c2_155, %c0_156, %c0_157, %c0_158] : memref<3x10x10x128xf32, #tpu.memory_space<vmem>>, vector<1x8x8x128xf32>
    %173 = vector.shape_cast %172 : vector<1x8x8x128xf32> to vector<8x8x128xf32>
    %174 = vector.shape_cast %173 : vector<8x8x128xf32> to vector<64x128xf32>
    %175 = arith.truncf %174 : vector<64x128xf32> to vector<64x128xbf16>
    %c18 = arith.constant 18 : index
    %c0_159 = arith.constant 0 : index
    %c0_160 = arith.constant 0 : index
    %176 = vector.load %arg5[%c18, %c0_159, %c0_160] : memref<27x128x128xbf16, #tpu.memory_space<vmem>>, vector<1x128x128xbf16>
    %177 = vector.shape_cast %176 : vector<1x128x128xbf16> to vector<128x128xbf16>
    %cst_161 = arith.constant dense<0.000000e+00> : vector<64x128xf32>
    %178 = tpu.matmul %175, %177, %cst_161 {dimension_numbers = #tpu.dot_dimension_numbers<[1], [0], [0], [1], [0, 0, 1, 1], [], []>} : vector<64x128xbf16>, vector<128x128xbf16>, vector<64x128xf32> -> vector<64x128xf32>
    %179 = arith.addf %171, %178 : vector<64x128xf32>
    %c2_162 = arith.constant 2 : index
    %c0_163 = arith.constant 0 : index
    %c1_164 = arith.constant 1 : index
    %c0_165 = arith.constant 0 : index
    %180 = vector.load %arg11[%c2_162, %c0_163, %c1_164, %c0_165] : memref<3x10x10x128xf32, #tpu.memory_space<vmem>>, vector<1x8x8x128xf32>
    %181 = vector.shape_cast %180 : vector<1x8x8x128xf32> to vector<8x8x128xf32>
    %182 = vector.shape_cast %181 : vector<8x8x128xf32> to vector<64x128xf32>
    %183 = arith.truncf %182 : vector<64x128xf32> to vector<64x128xbf16>
    %c19 = arith.constant 19 : index
    %c0_166 = arith.constant 0 : index
    %c0_167 = arith.constant 0 : index
    %184 = vector.load %arg5[%c19, %c0_166, %c0_167] : memref<27x128x128xbf16, #tpu.memory_space<vmem>>, vector<1x128x128xbf16>
    %185 = vector.shape_cast %184 : vector<1x128x128xbf16> to vector<128x128xbf16>
    %cst_168 = arith.constant dense<0.000000e+00> : vector<64x128xf32>
    %186 = tpu.matmul %183, %185, %cst_168 {dimension_numbers = #tpu.dot_dimension_numbers<[1], [0], [0], [1], [0, 0, 1, 1], [], []>} : vector<64x128xbf16>, vector<128x128xbf16>, vector<64x128xf32> -> vector<64x128xf32>
    %187 = arith.addf %179, %186 : vector<64x128xf32>
    %c2_169 = arith.constant 2 : index
    %c0_170 = arith.constant 0 : index
    %c2_171 = arith.constant 2 : index
    %c0_172 = arith.constant 0 : index
    %188 = vector.load %arg11[%c2_169, %c0_170, %c2_171, %c0_172] : memref<3x10x10x128xf32, #tpu.memory_space<vmem>>, vector<1x8x8x128xf32>
    %189 = vector.shape_cast %188 : vector<1x8x8x128xf32> to vector<8x8x128xf32>
    %190 = vector.shape_cast %189 : vector<8x8x128xf32> to vector<64x128xf32>
    %191 = arith.truncf %190 : vector<64x128xf32> to vector<64x128xbf16>
    %c20 = arith.constant 20 : index
    %c0_173 = arith.constant 0 : index
    %c0_174 = arith.constant 0 : index
    %192 = vector.load %arg5[%c20, %c0_173, %c0_174] : memref<27x128x128xbf16, #tpu.memory_space<vmem>>, vector<1x128x128xbf16>
    %193 = vector.shape_cast %192 : vector<1x128x128xbf16> to vector<128x128xbf16>
    %cst_175 = arith.constant dense<0.000000e+00> : vector<64x128xf32>
    %194 = tpu.matmul %191, %193, %cst_175 {dimension_numbers = #tpu.dot_dimension_numbers<[1], [0], [0], [1], [0, 0, 1, 1], [], []>} : vector<64x128xbf16>, vector<128x128xbf16>, vector<64x128xf32> -> vector<64x128xf32>
    %195 = arith.addf %187, %194 : vector<64x128xf32>
    %c2_176 = arith.constant 2 : index
    %c1_177 = arith.constant 1 : index
    %c0_178 = arith.constant 0 : index
    %c0_179 = arith.constant 0 : index
    %196 = vector.load %arg11[%c2_176, %c1_177, %c0_178, %c0_179] : memref<3x10x10x128xf32, #tpu.memory_space<vmem>>, vector<1x8x8x128xf32>
    %197 = vector.shape_cast %196 : vector<1x8x8x128xf32> to vector<8x8x128xf32>
    %198 = vector.shape_cast %197 : vector<8x8x128xf32> to vector<64x128xf32>
    %199 = arith.truncf %198 : vector<64x128xf32> to vector<64x128xbf16>
    %c21 = arith.constant 21 : index
    %c0_180 = arith.constant 0 : index
    %c0_181 = arith.constant 0 : index
    %200 = vector.load %arg5[%c21, %c0_180, %c0_181] : memref<27x128x128xbf16, #tpu.memory_space<vmem>>, vector<1x128x128xbf16>
    %201 = vector.shape_cast %200 : vector<1x128x128xbf16> to vector<128x128xbf16>
    %cst_182 = arith.constant dense<0.000000e+00> : vector<64x128xf32>
    %202 = tpu.matmul %199, %201, %cst_182 {dimension_numbers = #tpu.dot_dimension_numbers<[1], [0], [0], [1], [0, 0, 1, 1], [], []>} : vector<64x128xbf16>, vector<128x128xbf16>, vector<64x128xf32> -> vector<64x128xf32>
    %203 = arith.addf %195, %202 : vector<64x128xf32>
    %c2_183 = arith.constant 2 : index
    %c1_184 = arith.constant 1 : index
    %c1_185 = arith.constant 1 : index
    %c0_186 = arith.constant 0 : index
    %204 = vector.load %arg11[%c2_183, %c1_184, %c1_185, %c0_186] : memref<3x10x10x128xf32, #tpu.memory_space<vmem>>, vector<1x8x8x128xf32>
    %205 = vector.shape_cast %204 : vector<1x8x8x128xf32> to vector<8x8x128xf32>
    %206 = vector.shape_cast %205 : vector<8x8x128xf32> to vector<64x128xf32>
    %207 = arith.truncf %206 : vector<64x128xf32> to vector<64x128xbf16>
    %c22 = arith.constant 22 : index
    %c0_187 = arith.constant 0 : index
    %c0_188 = arith.constant 0 : index
    %208 = vector.load %arg5[%c22, %c0_187, %c0_188] : memref<27x128x128xbf16, #tpu.memory_space<vmem>>, vector<1x128x128xbf16>
    %209 = vector.shape_cast %208 : vector<1x128x128xbf16> to vector<128x128xbf16>
    %cst_189 = arith.constant dense<0.000000e+00> : vector<64x128xf32>
    %210 = tpu.matmul %207, %209, %cst_189 {dimension_numbers = #tpu.dot_dimension_numbers<[1], [0], [0], [1], [0, 0, 1, 1], [], []>} : vector<64x128xbf16>, vector<128x128xbf16>, vector<64x128xf32> -> vector<64x128xf32>
    %211 = arith.addf %203, %210 : vector<64x128xf32>
    %c2_190 = arith.constant 2 : index
    %c1_191 = arith.constant 1 : index
    %c2_192 = arith.constant 2 : index
    %c0_193 = arith.constant 0 : index
    %212 = vector.load %arg11[%c2_190, %c1_191, %c2_192, %c0_193] : memref<3x10x10x128xf32, #tpu.memory_space<vmem>>, vector<1x8x8x128xf32>
    %213 = vector.shape_cast %212 : vector<1x8x8x128xf32> to vector<8x8x128xf32>
    %214 = vector.shape_cast %213 : vector<8x8x128xf32> to vector<64x128xf32>
    %215 = arith.truncf %214 : vector<64x128xf32> to vector<64x128xbf16>
    %c23 = arith.constant 23 : index
    %c0_194 = arith.constant 0 : index
    %c0_195 = arith.constant 0 : index
    %216 = vector.load %arg5[%c23, %c0_194, %c0_195] : memref<27x128x128xbf16, #tpu.memory_space<vmem>>, vector<1x128x128xbf16>
    %217 = vector.shape_cast %216 : vector<1x128x128xbf16> to vector<128x128xbf16>
    %cst_196 = arith.constant dense<0.000000e+00> : vector<64x128xf32>
    %218 = tpu.matmul %215, %217, %cst_196 {dimension_numbers = #tpu.dot_dimension_numbers<[1], [0], [0], [1], [0, 0, 1, 1], [], []>} : vector<64x128xbf16>, vector<128x128xbf16>, vector<64x128xf32> -> vector<64x128xf32>
    %219 = arith.addf %211, %218 : vector<64x128xf32>
    %c2_197 = arith.constant 2 : index
    %c2_198 = arith.constant 2 : index
    %c0_199 = arith.constant 0 : index
    %c0_200 = arith.constant 0 : index
    %220 = vector.load %arg11[%c2_197, %c2_198, %c0_199, %c0_200] : memref<3x10x10x128xf32, #tpu.memory_space<vmem>>, vector<1x8x8x128xf32>
    %221 = vector.shape_cast %220 : vector<1x8x8x128xf32> to vector<8x8x128xf32>
    %222 = vector.shape_cast %221 : vector<8x8x128xf32> to vector<64x128xf32>
    %223 = arith.truncf %222 : vector<64x128xf32> to vector<64x128xbf16>
    %c24 = arith.constant 24 : index
    %c0_201 = arith.constant 0 : index
    %c0_202 = arith.constant 0 : index
    %224 = vector.load %arg5[%c24, %c0_201, %c0_202] : memref<27x128x128xbf16, #tpu.memory_space<vmem>>, vector<1x128x128xbf16>
    %225 = vector.shape_cast %224 : vector<1x128x128xbf16> to vector<128x128xbf16>
    %cst_203 = arith.constant dense<0.000000e+00> : vector<64x128xf32>
    %226 = tpu.matmul %223, %225, %cst_203 {dimension_numbers = #tpu.dot_dimension_numbers<[1], [0], [0], [1], [0, 0, 1, 1], [], []>} : vector<64x128xbf16>, vector<128x128xbf16>, vector<64x128xf32> -> vector<64x128xf32>
    %227 = arith.addf %219, %226 : vector<64x128xf32>
    %c2_204 = arith.constant 2 : index
    %c2_205 = arith.constant 2 : index
    %c1_206 = arith.constant 1 : index
    %c0_207 = arith.constant 0 : index
    %228 = vector.load %arg11[%c2_204, %c2_205, %c1_206, %c0_207] : memref<3x10x10x128xf32, #tpu.memory_space<vmem>>, vector<1x8x8x128xf32>
    %229 = vector.shape_cast %228 : vector<1x8x8x128xf32> to vector<8x8x128xf32>
    %230 = vector.shape_cast %229 : vector<8x8x128xf32> to vector<64x128xf32>
    %231 = arith.truncf %230 : vector<64x128xf32> to vector<64x128xbf16>
    %c25 = arith.constant 25 : index
    %c0_208 = arith.constant 0 : index
    %c0_209 = arith.constant 0 : index
    %232 = vector.load %arg5[%c25, %c0_208, %c0_209] : memref<27x128x128xbf16, #tpu.memory_space<vmem>>, vector<1x128x128xbf16>
    %233 = vector.shape_cast %232 : vector<1x128x128xbf16> to vector<128x128xbf16>
    %cst_210 = arith.constant dense<0.000000e+00> : vector<64x128xf32>
    %234 = tpu.matmul %231, %233, %cst_210 {dimension_numbers = #tpu.dot_dimension_numbers<[1], [0], [0], [1], [0, 0, 1, 1], [], []>} : vector<64x128xbf16>, vector<128x128xbf16>, vector<64x128xf32> -> vector<64x128xf32>
    %235 = arith.addf %227, %234 : vector<64x128xf32>
    %c2_211 = arith.constant 2 : index
    %c2_212 = arith.constant 2 : index
    %c2_213 = arith.constant 2 : index
    %c0_214 = arith.constant 0 : index
    %236 = vector.load %arg11[%c2_211, %c2_212, %c2_213, %c0_214] : memref<3x10x10x128xf32, #tpu.memory_space<vmem>>, vector<1x8x8x128xf32>
    %237 = vector.shape_cast %236 : vector<1x8x8x128xf32> to vector<8x8x128xf32>
    %238 = vector.shape_cast %237 : vector<8x8x128xf32> to vector<64x128xf32>
    %239 = arith.truncf %238 : vector<64x128xf32> to vector<64x128xbf16>
    %c26 = arith.constant 26 : index
    %c0_215 = arith.constant 0 : index
    %c0_216 = arith.constant 0 : index
    %240 = vector.load %arg5[%c26, %c0_215, %c0_216] : memref<27x128x128xbf16, #tpu.memory_space<vmem>>, vector<1x128x128xbf16>
    %241 = vector.shape_cast %240 : vector<1x128x128xbf16> to vector<128x128xbf16>
    %cst_217 = arith.constant dense<0.000000e+00> : vector<64x128xf32>
    %242 = tpu.matmul %239, %241, %cst_217 {dimension_numbers = #tpu.dot_dimension_numbers<[1], [0], [0], [1], [0, 0, 1, 1], [], []>} : vector<64x128xbf16>, vector<128x128xbf16>, vector<64x128xf32> -> vector<64x128xf32>
    %243 = arith.addf %235, %242 : vector<64x128xf32>
    %c0_218 = arith.constant 0 : index
    %c0_219 = arith.constant 0 : index
    %244 = vector.load %arg6[%c0_218, %c0_219] : memref<1x128xf32, #tpu.memory_space<vmem>>, vector<1x128xf32>
    %245 = vector.broadcast %244 : vector<1x128xf32> to vector<64x128xf32>
    %246 = arith.addf %243, %245 : vector<64x128xf32>
    %247 = vector.shape_cast %246 : vector<64x128xf32> to vector<8x8x128xf32>
    %c0_220 = arith.constant 0 : index
    %c0_221 = arith.constant 0 : index
    %c0_222 = arith.constant 0 : index
    %c0_223 = arith.constant 0 : index
    %248 = vector.load %arg9[%c0_220, %c0_221, %c0_222, %c0_223] : memref<1x8x8x128xf32, #tpu.memory_space<vmem>>, vector<1x8x8x128xf32>
    %249 = vector.shape_cast %248 : vector<1x8x8x128xf32> to vector<8x8x128xf32>
    %250 = vector.shape_cast %247 : vector<8x8x128xf32> to vector<1x8x8x128xf32>
    tpu.vector_store %arg9[%c0_220, %c0_221, %c0_222, %c0_223], %250 {strides = array<i32>} : memref<1x8x8x128xf32, #tpu.memory_space<vmem>>, vector<1x8x8x128xf32>,
    %cst_224 = arith.constant dense<0.000000e+00> : vector<128xf32>
    %251 = vector.multi_reduction <add>, %246, %cst_224 [0] : vector<64x128xf32> to vector<128xf32>
    %252 = vector.shape_cast %251 : vector<128xf32> to vector<1x128xf32>
    %253 = arith.mulf %246, %246 : vector<64x128xf32>
    %cst_225 = arith.constant dense<0.000000e+00> : vector<128xf32>
    %254 = vector.multi_reduction <add>, %253, %cst_225 [0] : vector<64x128xf32> to vector<128xf32>
    %255 = vector.shape_cast %254 : vector<128xf32> to vector<1x128xf32>
    %256 = tpu.concatenate %252, %255 in 0 : vector<1x128xf32>, vector<1x128xf32> -> vector<2x128xf32>
    %c0_226 = arith.constant 0 : index
    %c0_227 = arith.constant 0 : index
    %c0_228 = arith.constant 0 : index
    %257 = vector.load %arg10[%c0_226, %c0_227, %c0_228] : memref<1x2x128xf32, #tpu.memory_space<vmem>>, vector<1x2x128xf32>
    %258 = vector.shape_cast %257 : vector<1x2x128xf32> to vector<2x128xf32>
    %259 = vector.shape_cast %256 : vector<2x128xf32> to vector<1x2x128xf32>
    tpu.vector_store %arg10[%c0_226, %c0_227, %c0_228], %259 {strides = array<i32>} : memref<1x2x128xf32, #tpu.memory_space<vmem>>, vector<1x2x128xf32>,
    return
  }
  func.func @transform_0(%arg0: i32, %arg1: i32) -> (i32, i32, i32, i32) {
    %c8_i32 = arith.constant 8 : i32
    %0 = arith.muli %arg0, %c8_i32 : i32
    %c1_i32 = arith.constant 1 : i32
    %1 = arith.subi %arg1, %c1_i32 : i32
    %c0_i32 = arith.constant 0 : i32
    %2 = arith.maxsi %1, %c0_i32 : i32
    %3 = arith.addi %0, %2 : i32
    %c0_i32_0 = arith.constant 0 : i32
    %c0_i32_1 = arith.constant 0 : i32
    %c0_i32_2 = arith.constant 0 : i32
    %c0_i32_3 = arith.constant 0 : i32
    return %3, %c0_i32_0, %c0_i32_1, %c0_i32_2 : i32, i32, i32, i32
  }
  func.func @transform_1(%arg0: i32, %arg1: i32) -> (i32, i32, i32, i32) {
    %c8_i32 = arith.constant 8 : i32
    %0 = arith.muli %arg0, %c8_i32 : i32
    %1 = arith.addi %0, %arg1 : i32
    %c0_i32 = arith.constant 0 : i32
    %c0_i32_0 = arith.constant 0 : i32
    %c0_i32_1 = arith.constant 0 : i32
    %c0_i32_2 = arith.constant 0 : i32
    return %1, %c0_i32, %c0_i32_0, %c0_i32_1 : i32, i32, i32, i32
  }
  func.func @transform_2(%arg0: i32, %arg1: i32) -> (i32, i32, i32, i32) {
    %c8_i32 = arith.constant 8 : i32
    %0 = arith.muli %arg0, %c8_i32 : i32
    %c1_i32 = arith.constant 1 : i32
    %1 = arith.addi %arg1, %c1_i32 : i32
    %c7_i32 = arith.constant 7 : i32
    %2 = arith.minsi %1, %c7_i32 : i32
    %3 = arith.addi %0, %2 : i32
    %c0_i32 = arith.constant 0 : i32
    %c0_i32_0 = arith.constant 0 : i32
    %c0_i32_1 = arith.constant 0 : i32
    %c0_i32_2 = arith.constant 0 : i32
    return %3, %c0_i32, %c0_i32_0, %c0_i32_1 : i32, i32, i32, i32
  }
  func.func @transform_3(%arg0: i32, %arg1: i32) -> (i32, i32, i32) {
    %c0_i32 = arith.constant 0 : i32
    %c0_i32_0 = arith.constant 0 : i32
    %c0_i32_1 = arith.constant 0 : i32
    %c0_i32_2 = arith.constant 0 : i32
    return %c0_i32, %c0_i32_0, %c0_i32_1 : i32, i32, i32
  }
  func.func @transform_4(%arg0: i32, %arg1: i32) -> (i32, i32) {
    %c0_i32 = arith.constant 0 : i32
    %c0_i32_0 = arith.constant 0 : i32
    %c0_i32_1 = arith.constant 0 : i32
    return %c0_i32, %c0_i32_0 : i32, i32
  }
  func.func @transform_5(%arg0: i32, %arg1: i32) -> (i32, i32, i32) {
    %c0_i32 = arith.constant 0 : i32
    %c0_i32_0 = arith.constant 0 : i32
    %c0_i32_1 = arith.constant 0 : i32
    %c0_i32_2 = arith.constant 0 : i32
    return %c0_i32, %c0_i32_0, %c0_i32_1 : i32, i32, i32
  }
  func.func @transform_6(%arg0: i32, %arg1: i32) -> (i32, i32, i32) {
    %c0_i32 = arith.constant 0 : i32
    %c0_i32_0 = arith.constant 0 : i32
    %c0_i32_1 = arith.constant 0 : i32
    %c0_i32_2 = arith.constant 0 : i32
    return %c0_i32, %c0_i32_0, %c0_i32_1 : i32, i32, i32
  }
  func.func @transform_7(%arg0: i32, %arg1: i32) -> (i32, i32, i32, i32) {
    %c8_i32 = arith.constant 8 : i32
    %0 = arith.muli %arg0, %c8_i32 : i32
    %1 = arith.addi %0, %arg1 : i32
    %c0_i32 = arith.constant 0 : i32
    %c0_i32_0 = arith.constant 0 : i32
    %c0_i32_1 = arith.constant 0 : i32
    %c0_i32_2 = arith.constant 0 : i32
    return %1, %c0_i32, %c0_i32_0, %c0_i32_1 : i32, i32, i32, i32
  }
  func.func @transform_8(%arg0: i32, %arg1: i32) -> (i32, i32, i32) {
    %c8_i32 = arith.constant 8 : i32
    %0 = arith.muli %arg0, %c8_i32 : i32
    %1 = arith.addi %0, %arg1 : i32
    %c0_i32 = arith.constant 0 : i32
    %c0_i32_0 = arith.constant 0 : i32
    %c0_i32_1 = arith.constant 0 : i32
    return %1, %c0_i32, %c0_i32_0 : i32, i32, i32
  }
}

module attributes {stable_mosaic.version = 11 : i64} {
  func.func @_conv3x3x3_kernel(%arg0: i32, %arg1: i32, %arg2: memref<1x8x8x128xf32, #tpu.memory_space<vmem>>, %arg3: memref<1x8x8x128xf32, #tpu.memory_space<vmem>>, %arg4: memref<1x8x8x128xf32, #tpu.memory_space<vmem>>, %arg5: memref<27x128x128xbf16, #tpu.memory_space<vmem>>, %arg6: memref<1x128xf32, #tpu.memory_space<vmem>>, %arg7: memref<1x1x128xf32, #tpu.memory_space<vmem>>, %arg8: memref<1x1x128xf32, #tpu.memory_space<vmem>>, %arg9: memref<1x8x8x128xf32, #tpu.memory_space<vmem>>, %arg10: memref<1x2x128xf32, #tpu.memory_space<vmem>>, %arg11: memref<3x10x10x128xf32, #tpu.memory_space<vmem>>) attributes {dimension_semantics = [#tpu.dimension_semantics<parallel>, #tpu.dimension_semantics<parallel>], iteration_bounds = array<i64: 2, 8>, scalar_prefetch = 0 : i64, scratch_operands = 1 : i64, tpu.core_type = #tpu.core_type<tc>, window_params = [{transform_indices = @transform_0, window_bounds = array<i64: 1, 8, 8, 128>}, {transform_indices = @transform_1, window_bounds = array<i64: 1, 8, 8, 128>}, {transform_indices = @transform_2, window_bounds = array<i64: 1, 8, 8, 128>}, {pipeline_mode = #tpu.pipeline_mode<synchronous>, transform_indices = @transform_3, window_bounds = array<i64: 27, 128, 128>}, {pipeline_mode = #tpu.pipeline_mode<synchronous>, transform_indices = @transform_4, window_bounds = array<i64: 1, 128>}, {pipeline_mode = #tpu.pipeline_mode<synchronous>, transform_indices = @transform_5, window_bounds = array<i64: 1, 1, 128>}, {pipeline_mode = #tpu.pipeline_mode<synchronous>, transform_indices = @transform_6, window_bounds = array<i64: 1, 1, 128>}, {transform_indices = @transform_7, window_bounds = array<i64: 1, 8, 8, 128>}, {transform_indices = @transform_8, window_bounds = array<i64: 1, 2, 128>}]} {
    %cst = arith.constant 0.000000e+00 : f32
    %0 = vector.broadcast %cst : f32 to vector<3x10x10x128xf32>
    %c0 = arith.constant 0 : index
    %c0_0 = arith.constant 0 : index
    %c0_1 = arith.constant 0 : index
    %c0_2 = arith.constant 0 : index
    %1 = vector.load %arg11[%c0, %c0_0, %c0_1, %c0_2] : memref<3x10x10x128xf32, #tpu.memory_space<vmem>>, vector<3x10x10x128xf32>
    tpu.vector_store %arg11[%c0, %c0_0, %c0_1, %c0_2], %0 {strides = array<i32>} : memref<3x10x10x128xf32, #tpu.memory_space<vmem>>, vector<3x10x10x128xf32>,
    %c0_3 = arith.constant 0 : index
    %c0_4 = arith.constant 0 : index
    %c0_5 = arith.constant 0 : index
    %c0_6 = arith.constant 0 : index
    %2 = vector.load %arg2[%c0_3, %c0_4, %c0_5, %c0_6] : memref<1x8x8x128xf32, #tpu.memory_space<vmem>>, vector<1x8x8x128xf32>
    %3 = vector.shape_cast %2 : vector<1x8x8x128xf32> to vector<8x8x128xf32>
    %c0_7 = arith.constant 0 : index
    %c0_8 = arith.constant 0 : index
    %c0_9 = arith.constant 0 : index
    %4 = vector.load %arg7[%c0_7, %c0_8, %c0_9] : memref<1x1x128xf32, #tpu.memory_space<vmem>>, vector<1x1x128xf32>
    %5 = vector.broadcast %4 : vector<1x1x128xf32> to vector<8x8x128xf32>
    %6 = arith.mulf %3, %5 : vector<8x8x128xf32>
    %c0_10 = arith.constant 0 : index
    %c0_11 = arith.constant 0 : index
    %c0_12 = arith.constant 0 : index
    %7 = vector.load %arg8[%c0_10, %c0_11, %c0_12] : memref<1x1x128xf32, #tpu.memory_space<vmem>>, vector<1x1x128xf32>
    %8 = vector.broadcast %7 : vector<1x1x128xf32> to vector<8x8x128xf32>
    %9 = arith.addf %6, %8 : vector<8x8x128xf32>
    %cst_13 = arith.constant 5.000000e-01 : f32
    %10 = vector.broadcast %cst_13 : f32 to vector<8x8x128xf32>
    %11 = arith.mulf %10, %9 : vector<8x8x128xf32>
    %cst_14 = arith.constant 0.707106769 : f32
    %12 = vector.broadcast %cst_14 : f32 to vector<8x8x128xf32>
    %13 = arith.mulf %9, %12 : vector<8x8x128xf32>
    %14 = math.erf %13 : vector<8x8x128xf32>
    %cst_15 = arith.constant 1.000000e+00 : f32
    %15 = vector.broadcast %cst_15 : f32 to vector<8x8x128xf32>
    %16 = arith.addf %15, %14 : vector<8x8x128xf32>
    %17 = arith.mulf %11, %16 : vector<8x8x128xf32>
    %c0_i32 = arith.constant 0 : i32
    %18 = arith.cmpi sgt, %arg1, %c0_i32 : i32
    %19 = arith.extui %18 : i1 to i32
    %20 = arith.sitofp %19 : i32 to f32
    %21 = vector.broadcast %20 : f32 to vector<8x8x128xf32>
    %22 = arith.mulf %17, %21 : vector<8x8x128xf32>
    %c0_16 = arith.constant 0 : index
    %c1 = arith.constant 1 : index
    %c1_17 = arith.constant 1 : index
    %c0_18 = arith.constant 0 : index
    %23 = vector.load %arg11[%c0_16, %c1, %c1_17, %c0_18] : memref<3x10x10x128xf32, #tpu.memory_space<vmem>>, vector<1x8x8x128xf32>
    %24 = vector.shape_cast %23 : vector<1x8x8x128xf32> to vector<8x8x128xf32>
    %25 = vector.shape_cast %22 : vector<8x8x128xf32> to vector<1x8x8x128xf32>
    tpu.vector_store %arg11[%c0_16, %c1, %c1_17, %c0_18], %25 {strides = array<i32>} : memref<3x10x10x128xf32, #tpu.memory_space<vmem>>, vector<1x8x8x128xf32>,
    %c0_19 = arith.constant 0 : index
    %c0_20 = arith.constant 0 : index
    %c0_21 = arith.constant 0 : index
    %c0_22 = arith.constant 0 : index
    %26 = vector.load %arg3[%c0_19, %c0_20, %c0_21, %c0_22] : memref<1x8x8x128xf32, #tpu.memory_space<vmem>>, vector<1x8x8x128xf32>
    %27 = vector.shape_cast %26 : vector<1x8x8x128xf32> to vector<8x8x128xf32>
    %c0_23 = arith.constant 0 : index
    %c0_24 = arith.constant 0 : index
    %c0_25 = arith.constant 0 : index
    %28 = vector.load %arg7[%c0_23, %c0_24, %c0_25] : memref<1x1x128xf32, #tpu.memory_space<vmem>>, vector<1x1x128xf32>
    %29 = vector.broadcast %28 : vector<1x1x128xf32> to vector<8x8x128xf32>
    %30 = arith.mulf %27, %29 : vector<8x8x128xf32>
    %c0_26 = arith.constant 0 : index
    %c0_27 = arith.constant 0 : index
    %c0_28 = arith.constant 0 : index
    %31 = vector.load %arg8[%c0_26, %c0_27, %c0_28] : memref<1x1x128xf32, #tpu.memory_space<vmem>>, vector<1x1x128xf32>
    %32 = vector.broadcast %31 : vector<1x1x128xf32> to vector<8x8x128xf32>
    %33 = arith.addf %30, %32 : vector<8x8x128xf32>
    %cst_29 = arith.constant 5.000000e-01 : f32
    %34 = vector.broadcast %cst_29 : f32 to vector<8x8x128xf32>
    %35 = arith.mulf %34, %33 : vector<8x8x128xf32>
    %cst_30 = arith.constant 0.707106769 : f32
    %36 = vector.broadcast %cst_30 : f32 to vector<8x8x128xf32>
    %37 = arith.mulf %33, %36 : vector<8x8x128xf32>
    %38 = math.erf %37 : vector<8x8x128xf32>
    %cst_31 = arith.constant 1.000000e+00 : f32
    %39 = vector.broadcast %cst_31 : f32 to vector<8x8x128xf32>
    %40 = arith.addf %39, %38 : vector<8x8x128xf32>
    %41 = arith.mulf %35, %40 : vector<8x8x128xf32>
    %c1_32 = arith.constant 1 : index
    %c1_33 = arith.constant 1 : index
    %c1_34 = arith.constant 1 : index
    %c0_35 = arith.constant 0 : index
    %42 = vector.load %arg11[%c1_32, %c1_33, %c1_34, %c0_35] : memref<3x10x10x128xf32, #tpu.memory_space<vmem>>, vector<1x8x8x128xf32>
    %43 = vector.shape_cast %42 : vector<1x8x8x128xf32> to vector<8x8x128xf32>
    %44 = vector.shape_cast %41 : vector<8x8x128xf32> to vector<1x8x8x128xf32>
    tpu.vector_store %arg11[%c1_32, %c1_33, %c1_34, %c0_35], %44 {strides = array<i32>} : memref<3x10x10x128xf32, #tpu.memory_space<vmem>>, vector<1x8x8x128xf32>,
    %c0_36 = arith.constant 0 : index
    %c0_37 = arith.constant 0 : index
    %c0_38 = arith.constant 0 : index
    %c0_39 = arith.constant 0 : index
    %45 = vector.load %arg4[%c0_36, %c0_37, %c0_38, %c0_39] : memref<1x8x8x128xf32, #tpu.memory_space<vmem>>, vector<1x8x8x128xf32>
    %46 = vector.shape_cast %45 : vector<1x8x8x128xf32> to vector<8x8x128xf32>
    %c0_40 = arith.constant 0 : index
    %c0_41 = arith.constant 0 : index
    %c0_42 = arith.constant 0 : index
    %47 = vector.load %arg7[%c0_40, %c0_41, %c0_42] : memref<1x1x128xf32, #tpu.memory_space<vmem>>, vector<1x1x128xf32>
    %48 = vector.broadcast %47 : vector<1x1x128xf32> to vector<8x8x128xf32>
    %49 = arith.mulf %46, %48 : vector<8x8x128xf32>
    %c0_43 = arith.constant 0 : index
    %c0_44 = arith.constant 0 : index
    %c0_45 = arith.constant 0 : index
    %50 = vector.load %arg8[%c0_43, %c0_44, %c0_45] : memref<1x1x128xf32, #tpu.memory_space<vmem>>, vector<1x1x128xf32>
    %51 = vector.broadcast %50 : vector<1x1x128xf32> to vector<8x8x128xf32>
    %52 = arith.addf %49, %51 : vector<8x8x128xf32>
    %cst_46 = arith.constant 5.000000e-01 : f32
    %53 = vector.broadcast %cst_46 : f32 to vector<8x8x128xf32>
    %54 = arith.mulf %53, %52 : vector<8x8x128xf32>
    %cst_47 = arith.constant 0.707106769 : f32
    %55 = vector.broadcast %cst_47 : f32 to vector<8x8x128xf32>
    %56 = arith.mulf %52, %55 : vector<8x8x128xf32>
    %57 = math.erf %56 : vector<8x8x128xf32>
    %cst_48 = arith.constant 1.000000e+00 : f32
    %58 = vector.broadcast %cst_48 : f32 to vector<8x8x128xf32>
    %59 = arith.addf %58, %57 : vector<8x8x128xf32>
    %60 = arith.mulf %54, %59 : vector<8x8x128xf32>
    %c7_i32 = arith.constant 7 : i32
    %61 = arith.cmpi slt, %arg1, %c7_i32 : i32
    %62 = arith.extui %61 : i1 to i32
    %63 = arith.sitofp %62 : i32 to f32
    %64 = vector.broadcast %63 : f32 to vector<8x8x128xf32>
    %65 = arith.mulf %60, %64 : vector<8x8x128xf32>
    %c2 = arith.constant 2 : index
    %c1_49 = arith.constant 1 : index
    %c1_50 = arith.constant 1 : index
    %c0_51 = arith.constant 0 : index
    %66 = vector.load %arg11[%c2, %c1_49, %c1_50, %c0_51] : memref<3x10x10x128xf32, #tpu.memory_space<vmem>>, vector<1x8x8x128xf32>
    %67 = vector.shape_cast %66 : vector<1x8x8x128xf32> to vector<8x8x128xf32>
    %68 = vector.shape_cast %65 : vector<8x8x128xf32> to vector<1x8x8x128xf32>
    tpu.vector_store %arg11[%c2, %c1_49, %c1_50, %c0_51], %68 {strides = array<i32>} : memref<3x10x10x128xf32, #tpu.memory_space<vmem>>, vector<1x8x8x128xf32>,
    %cst_52 = arith.constant 0.000000e+00 : f32
    %69 = vector.broadcast %cst_52 : f32 to vector<64x128xf32>
    %c0_53 = arith.constant 0 : index
    %c0_54 = arith.constant 0 : index
    %c0_55 = arith.constant 0 : index
    %c0_56 = arith.constant 0 : index
    %70 = vector.load %arg11[%c0_53, %c0_54, %c0_55, %c0_56] : memref<3x10x10x128xf32, #tpu.memory_space<vmem>>, vector<1x8x8x128xf32>
    %71 = vector.shape_cast %70 : vector<1x8x8x128xf32> to vector<8x8x128xf32>
    %72 = vector.shape_cast %71 : vector<8x8x128xf32> to vector<64x128xf32>
    %73 = arith.truncf %72 : vector<64x128xf32> to vector<64x128xbf16>
    %c0_57 = arith.constant 0 : index
    %c0_58 = arith.constant 0 : index
    %c0_59 = arith.constant 0 : index
    %74 = vector.load %arg5[%c0_57, %c0_58, %c0_59] : memref<27x128x128xbf16, #tpu.memory_space<vmem>>, vector<1x128x128xbf16>
    %75 = vector.shape_cast %74 : vector<1x128x128xbf16> to vector<128x128xbf16>
    %cst_60 = arith.constant dense<0.000000e+00> : vector<64x128xf32>
    %76 = tpu.matmul %73, %75, %cst_60 {dimension_numbers = #tpu.dot_dimension_numbers<[1], [0], [0], [1], [0, 0, 1, 1], [], []>} : vector<64x128xbf16>, vector<128x128xbf16>, vector<64x128xf32> -> vector<64x128xf32>
    %77 = arith.addf %69, %76 : vector<64x128xf32>
    %c0_61 = arith.constant 0 : index
    %c0_62 = arith.constant 0 : index
    %c1_63 = arith.constant 1 : index
    %c0_64 = arith.constant 0 : index
    %78 = vector.load %arg11[%c0_61, %c0_62, %c1_63, %c0_64] : memref<3x10x10x128xf32, #tpu.memory_space<vmem>>, vector<1x8x8x128xf32>
    %79 = vector.shape_cast %78 : vector<1x8x8x128xf32> to vector<8x8x128xf32>
    %80 = vector.shape_cast %79 : vector<8x8x128xf32> to vector<64x128xf32>
    %81 = arith.truncf %80 : vector<64x128xf32> to vector<64x128xbf16>
    %c1_65 = arith.constant 1 : index
    %c0_66 = arith.constant 0 : index
    %c0_67 = arith.constant 0 : index
    %82 = vector.load %arg5[%c1_65, %c0_66, %c0_67] : memref<27x128x128xbf16, #tpu.memory_space<vmem>>, vector<1x128x128xbf16>
    %83 = vector.shape_cast %82 : vector<1x128x128xbf16> to vector<128x128xbf16>
    %cst_68 = arith.constant dense<0.000000e+00> : vector<64x128xf32>
    %84 = tpu.matmul %81, %83, %cst_68 {dimension_numbers = #tpu.dot_dimension_numbers<[1], [0], [0], [1], [0, 0, 1, 1], [], []>} : vector<64x128xbf16>, vector<128x128xbf16>, vector<64x128xf32> -> vector<64x128xf32>
    %85 = arith.addf %77, %84 : vector<64x128xf32>
    %c0_69 = arith.constant 0 : index
    %c0_70 = arith.constant 0 : index
    %c2_71 = arith.constant 2 : index
    %c0_72 = arith.constant 0 : index
    %86 = vector.load %arg11[%c0_69, %c0_70, %c2_71, %c0_72] : memref<3x10x10x128xf32, #tpu.memory_space<vmem>>, vector<1x8x8x128xf32>
    %87 = vector.shape_cast %86 : vector<1x8x8x128xf32> to vector<8x8x128xf32>
    %88 = vector.shape_cast %87 : vector<8x8x128xf32> to vector<64x128xf32>
    %89 = arith.truncf %88 : vector<64x128xf32> to vector<64x128xbf16>
    %c2_73 = arith.constant 2 : index
    %c0_74 = arith.constant 0 : index
    %c0_75 = arith.constant 0 : index
    %90 = vector.load %arg5[%c2_73, %c0_74, %c0_75] : memref<27x128x128xbf16, #tpu.memory_space<vmem>>, vector<1x128x128xbf16>
    %91 = vector.shape_cast %90 : vector<1x128x128xbf16> to vector<128x128xbf16>
    %cst_76 = arith.constant dense<0.000000e+00> : vector<64x128xf32>
    %92 = tpu.matmul %89, %91, %cst_76 {dimension_numbers = #tpu.dot_dimension_numbers<[1], [0], [0], [1], [0, 0, 1, 1], [], []>} : vector<64x128xbf16>, vector<128x128xbf16>, vector<64x128xf32> -> vector<64x128xf32>
    %93 = arith.addf %85, %92 : vector<64x128xf32>
    %c0_77 = arith.constant 0 : index
    %c1_78 = arith.constant 1 : index
    %c0_79 = arith.constant 0 : index
    %c0_80 = arith.constant 0 : index
    %94 = vector.load %arg11[%c0_77, %c1_78, %c0_79, %c0_80] : memref<3x10x10x128xf32, #tpu.memory_space<vmem>>, vector<1x8x8x128xf32>
    %95 = vector.shape_cast %94 : vector<1x8x8x128xf32> to vector<8x8x128xf32>
    %96 = vector.shape_cast %95 : vector<8x8x128xf32> to vector<64x128xf32>
    %97 = arith.truncf %96 : vector<64x128xf32> to vector<64x128xbf16>
    %c3 = arith.constant 3 : index
    %c0_81 = arith.constant 0 : index
    %c0_82 = arith.constant 0 : index
    %98 = vector.load %arg5[%c3, %c0_81, %c0_82] : memref<27x128x128xbf16, #tpu.memory_space<vmem>>, vector<1x128x128xbf16>
    %99 = vector.shape_cast %98 : vector<1x128x128xbf16> to vector<128x128xbf16>
    %cst_83 = arith.constant dense<0.000000e+00> : vector<64x128xf32>
    %100 = tpu.matmul %97, %99, %cst_83 {dimension_numbers = #tpu.dot_dimension_numbers<[1], [0], [0], [1], [0, 0, 1, 1], [], []>} : vector<64x128xbf16>, vector<128x128xbf16>, vector<64x128xf32> -> vector<64x128xf32>
    %101 = arith.addf %93, %100 : vector<64x128xf32>
    %c0_84 = arith.constant 0 : index
    %c1_85 = arith.constant 1 : index
    %c1_86 = arith.constant 1 : index
    %c0_87 = arith.constant 0 : index
    %102 = vector.load %arg11[%c0_84, %c1_85, %c1_86, %c0_87] : memref<3x10x10x128xf32, #tpu.memory_space<vmem>>, vector<1x8x8x128xf32>
    %103 = vector.shape_cast %102 : vector<1x8x8x128xf32> to vector<8x8x128xf32>
    %104 = vector.shape_cast %103 : vector<8x8x128xf32> to vector<64x128xf32>
    %105 = arith.truncf %104 : vector<64x128xf32> to vector<64x128xbf16>
    %c4 = arith.constant 4 : index
    %c0_88 = arith.constant 0 : index
    %c0_89 = arith.constant 0 : index
    %106 = vector.load %arg5[%c4, %c0_88, %c0_89] : memref<27x128x128xbf16, #tpu.memory_space<vmem>>, vector<1x128x128xbf16>
    %107 = vector.shape_cast %106 : vector<1x128x128xbf16> to vector<128x128xbf16>
    %cst_90 = arith.constant dense<0.000000e+00> : vector<64x128xf32>
    %108 = tpu.matmul %105, %107, %cst_90 {dimension_numbers = #tpu.dot_dimension_numbers<[1], [0], [0], [1], [0, 0, 1, 1], [], []>} : vector<64x128xbf16>, vector<128x128xbf16>, vector<64x128xf32> -> vector<64x128xf32>
    %109 = arith.addf %101, %108 : vector<64x128xf32>
    %c0_91 = arith.constant 0 : index
    %c1_92 = arith.constant 1 : index
    %c2_93 = arith.constant 2 : index
    %c0_94 = arith.constant 0 : index
    %110 = vector.load %arg11[%c0_91, %c1_92, %c2_93, %c0_94] : memref<3x10x10x128xf32, #tpu.memory_space<vmem>>, vector<1x8x8x128xf32>
    %111 = vector.shape_cast %110 : vector<1x8x8x128xf32> to vector<8x8x128xf32>
    %112 = vector.shape_cast %111 : vector<8x8x128xf32> to vector<64x128xf32>
    %113 = arith.truncf %112 : vector<64x128xf32> to vector<64x128xbf16>
    %c5 = arith.constant 5 : index
    %c0_95 = arith.constant 0 : index
    %c0_96 = arith.constant 0 : index
    %114 = vector.load %arg5[%c5, %c0_95, %c0_96] : memref<27x128x128xbf16, #tpu.memory_space<vmem>>, vector<1x128x128xbf16>
    %115 = vector.shape_cast %114 : vector<1x128x128xbf16> to vector<128x128xbf16>
    %cst_97 = arith.constant dense<0.000000e+00> : vector<64x128xf32>
    %116 = tpu.matmul %113, %115, %cst_97 {dimension_numbers = #tpu.dot_dimension_numbers<[1], [0], [0], [1], [0, 0, 1, 1], [], []>} : vector<64x128xbf16>, vector<128x128xbf16>, vector<64x128xf32> -> vector<64x128xf32>
    %117 = arith.addf %109, %116 : vector<64x128xf32>
    %c0_98 = arith.constant 0 : index
    %c2_99 = arith.constant 2 : index
    %c0_100 = arith.constant 0 : index
    %c0_101 = arith.constant 0 : index
    %118 = vector.load %arg11[%c0_98, %c2_99, %c0_100, %c0_101] : memref<3x10x10x128xf32, #tpu.memory_space<vmem>>, vector<1x8x8x128xf32>
    %119 = vector.shape_cast %118 : vector<1x8x8x128xf32> to vector<8x8x128xf32>
    %120 = vector.shape_cast %119 : vector<8x8x128xf32> to vector<64x128xf32>
    %121 = arith.truncf %120 : vector<64x128xf32> to vector<64x128xbf16>
    %c6 = arith.constant 6 : index
    %c0_102 = arith.constant 0 : index
    %c0_103 = arith.constant 0 : index
    %122 = vector.load %arg5[%c6, %c0_102, %c0_103] : memref<27x128x128xbf16, #tpu.memory_space<vmem>>, vector<1x128x128xbf16>
    %123 = vector.shape_cast %122 : vector<1x128x128xbf16> to vector<128x128xbf16>
    %cst_104 = arith.constant dense<0.000000e+00> : vector<64x128xf32>
    %124 = tpu.matmul %121, %123, %cst_104 {dimension_numbers = #tpu.dot_dimension_numbers<[1], [0], [0], [1], [0, 0, 1, 1], [], []>} : vector<64x128xbf16>, vector<128x128xbf16>, vector<64x128xf32> -> vector<64x128xf32>
    %125 = arith.addf %117, %124 : vector<64x128xf32>
    %c0_105 = arith.constant 0 : index
    %c2_106 = arith.constant 2 : index
    %c1_107 = arith.constant 1 : index
    %c0_108 = arith.constant 0 : index
    %126 = vector.load %arg11[%c0_105, %c2_106, %c1_107, %c0_108] : memref<3x10x10x128xf32, #tpu.memory_space<vmem>>, vector<1x8x8x128xf32>
    %127 = vector.shape_cast %126 : vector<1x8x8x128xf32> to vector<8x8x128xf32>
    %128 = vector.shape_cast %127 : vector<8x8x128xf32> to vector<64x128xf32>
    %129 = arith.truncf %128 : vector<64x128xf32> to vector<64x128xbf16>
    %c7 = arith.constant 7 : index
    %c0_109 = arith.constant 0 : index
    %c0_110 = arith.constant 0 : index
    %130 = vector.load %arg5[%c7, %c0_109, %c0_110] : memref<27x128x128xbf16, #tpu.memory_space<vmem>>, vector<1x128x128xbf16>
    %131 = vector.shape_cast %130 : vector<1x128x128xbf16> to vector<128x128xbf16>
    %cst_111 = arith.constant dense<0.000000e+00> : vector<64x128xf32>
    %132 = tpu.matmul %129, %131, %cst_111 {dimension_numbers = #tpu.dot_dimension_numbers<[1], [0], [0], [1], [0, 0, 1, 1], [], []>} : vector<64x128xbf16>, vector<128x128xbf16>, vector<64x128xf32> -> vector<64x128xf32>
    %133 = arith.addf %125, %132 : vector<64x128xf32>
    %c0_112 = arith.constant 0 : index
    %c2_113 = arith.constant 2 : index
    %c2_114 = arith.constant 2 : index
    %c0_115 = arith.constant 0 : index
    %134 = vector.load %arg11[%c0_112, %c2_113, %c2_114, %c0_115] : memref<3x10x10x128xf32, #tpu.memory_space<vmem>>, vector<1x8x8x128xf32>
    %135 = vector.shape_cast %134 : vector<1x8x8x128xf32> to vector<8x8x128xf32>
    %136 = vector.shape_cast %135 : vector<8x8x128xf32> to vector<64x128xf32>
    %137 = arith.truncf %136 : vector<64x128xf32> to vector<64x128xbf16>
    %c8 = arith.constant 8 : index
    %c0_116 = arith.constant 0 : index
    %c0_117 = arith.constant 0 : index
    %138 = vector.load %arg5[%c8, %c0_116, %c0_117] : memref<27x128x128xbf16, #tpu.memory_space<vmem>>, vector<1x128x128xbf16>
    %139 = vector.shape_cast %138 : vector<1x128x128xbf16> to vector<128x128xbf16>
    %cst_118 = arith.constant dense<0.000000e+00> : vector<64x128xf32>
    %140 = tpu.matmul %137, %139, %cst_118 {dimension_numbers = #tpu.dot_dimension_numbers<[1], [0], [0], [1], [0, 0, 1, 1], [], []>} : vector<64x128xbf16>, vector<128x128xbf16>, vector<64x128xf32> -> vector<64x128xf32>
    %141 = arith.addf %133, %140 : vector<64x128xf32>
    %c1_119 = arith.constant 1 : index
    %c0_120 = arith.constant 0 : index
    %c0_121 = arith.constant 0 : index
    %c0_122 = arith.constant 0 : index
    %142 = vector.load %arg11[%c1_119, %c0_120, %c0_121, %c0_122] : memref<3x10x10x128xf32, #tpu.memory_space<vmem>>, vector<1x8x8x128xf32>
    %143 = vector.shape_cast %142 : vector<1x8x8x128xf32> to vector<8x8x128xf32>
    %144 = vector.shape_cast %143 : vector<8x8x128xf32> to vector<64x128xf32>
    %145 = arith.truncf %144 : vector<64x128xf32> to vector<64x128xbf16>
    %c9 = arith.constant 9 : index
    %c0_123 = arith.constant 0 : index
    %c0_124 = arith.constant 0 : index
    %146 = vector.load %arg5[%c9, %c0_123, %c0_124] : memref<27x128x128xbf16, #tpu.memory_space<vmem>>, vector<1x128x128xbf16>
    %147 = vector.shape_cast %146 : vector<1x128x128xbf16> to vector<128x128xbf16>
    %cst_125 = arith.constant dense<0.000000e+00> : vector<64x128xf32>
    %148 = tpu.matmul %145, %147, %cst_125 {dimension_numbers = #tpu.dot_dimension_numbers<[1], [0], [0], [1], [0, 0, 1, 1], [], []>} : vector<64x128xbf16>, vector<128x128xbf16>, vector<64x128xf32> -> vector<64x128xf32>
    %149 = arith.addf %141, %148 : vector<64x128xf32>
    %c1_126 = arith.constant 1 : index
    %c0_127 = arith.constant 0 : index
    %c1_128 = arith.constant 1 : index
    %c0_129 = arith.constant 0 : index
    %150 = vector.load %arg11[%c1_126, %c0_127, %c1_128, %c0_129] : memref<3x10x10x128xf32, #tpu.memory_space<vmem>>, vector<1x8x8x128xf32>
    %151 = vector.shape_cast %150 : vector<1x8x8x128xf32> to vector<8x8x128xf32>
    %152 = vector.shape_cast %151 : vector<8x8x128xf32> to vector<64x128xf32>
    %153 = arith.truncf %152 : vector<64x128xf32> to vector<64x128xbf16>
    %c10 = arith.constant 10 : index
    %c0_130 = arith.constant 0 : index
    %c0_131 = arith.constant 0 : index
    %154 = vector.load %arg5[%c10, %c0_130, %c0_131] : memref<27x128x128xbf16, #tpu.memory_space<vmem>>, vector<1x128x128xbf16>
    %155 = vector.shape_cast %154 : vector<1x128x128xbf16> to vector<128x128xbf16>
    %cst_132 = arith.constant dense<0.000000e+00> : vector<64x128xf32>
    %156 = tpu.matmul %153, %155, %cst_132 {dimension_numbers = #tpu.dot_dimension_numbers<[1], [0], [0], [1], [0, 0, 1, 1], [], []>} : vector<64x128xbf16>, vector<128x128xbf16>, vector<64x128xf32> -> vector<64x128xf32>
    %157 = arith.addf %149, %156 : vector<64x128xf32>
    %c1_133 = arith.constant 1 : index
    %c0_134 = arith.constant 0 : index
    %c2_135 = arith.constant 2 : index
    %c0_136 = arith.constant 0 : index
    %158 = vector.load %arg11[%c1_133, %c0_134, %c2_135, %c0_136] : memref<3x10x10x128xf32, #tpu.memory_space<vmem>>, vector<1x8x8x128xf32>
    %159 = vector.shape_cast %158 : vector<1x8x8x128xf32> to vector<8x8x128xf32>
    %160 = vector.shape_cast %159 : vector<8x8x128xf32> to vector<64x128xf32>
    %161 = arith.truncf %160 : vector<64x128xf32> to vector<64x128xbf16>
    %c11 = arith.constant 11 : index
    %c0_137 = arith.constant 0 : index
    %c0_138 = arith.constant 0 : index
    %162 = vector.load %arg5[%c11, %c0_137, %c0_138] : memref<27x128x128xbf16, #tpu.memory_space<vmem>>, vector<1x128x128xbf16>
    %163 = vector.shape_cast %162 : vector<1x128x128xbf16> to vector<128x128xbf16>
    %cst_139 = arith.constant dense<0.000000e+00> : vector<64x128xf32>
    %164 = tpu.matmul %161, %163, %cst_139 {dimension_numbers = #tpu.dot_dimension_numbers<[1], [0], [0], [1], [0, 0, 1, 1], [], []>} : vector<64x128xbf16>, vector<128x128xbf16>, vector<64x128xf32> -> vector<64x128xf32>
    %165 = arith.addf %157, %164 : vector<64x128xf32>
    %c1_140 = arith.constant 1 : index
    %c1_141 = arith.constant 1 : index
    %c0_142 = arith.constant 0 : index
    %c0_143 = arith.constant 0 : index
    %166 = vector.load %arg11[%c1_140, %c1_141, %c0_142, %c0_143] : memref<3x10x10x128xf32, #tpu.memory_space<vmem>>, vector<1x8x8x128xf32>
    %167 = vector.shape_cast %166 : vector<1x8x8x128xf32> to vector<8x8x128xf32>
    %168 = vector.shape_cast %167 : vector<8x8x128xf32> to vector<64x128xf32>
    %169 = arith.truncf %168 : vector<64x128xf32> to vector<64x128xbf16>
    %c12 = arith.constant 12 : index
    %c0_144 = arith.constant 0 : index
    %c0_145 = arith.constant 0 : index
    %170 = vector.load %arg5[%c12, %c0_144, %c0_145] : memref<27x128x128xbf16, #tpu.memory_space<vmem>>, vector<1x128x128xbf16>
    %171 = vector.shape_cast %170 : vector<1x128x128xbf16> to vector<128x128xbf16>
    %cst_146 = arith.constant dense<0.000000e+00> : vector<64x128xf32>
    %172 = tpu.matmul %169, %171, %cst_146 {dimension_numbers = #tpu.dot_dimension_numbers<[1], [0], [0], [1], [0, 0, 1, 1], [], []>} : vector<64x128xbf16>, vector<128x128xbf16>, vector<64x128xf32> -> vector<64x128xf32>
    %173 = arith.addf %165, %172 : vector<64x128xf32>
    %c1_147 = arith.constant 1 : index
    %c1_148 = arith.constant 1 : index
    %c1_149 = arith.constant 1 : index
    %c0_150 = arith.constant 0 : index
    %174 = vector.load %arg11[%c1_147, %c1_148, %c1_149, %c0_150] : memref<3x10x10x128xf32, #tpu.memory_space<vmem>>, vector<1x8x8x128xf32>
    %175 = vector.shape_cast %174 : vector<1x8x8x128xf32> to vector<8x8x128xf32>
    %176 = vector.shape_cast %175 : vector<8x8x128xf32> to vector<64x128xf32>
    %177 = arith.truncf %176 : vector<64x128xf32> to vector<64x128xbf16>
    %c13 = arith.constant 13 : index
    %c0_151 = arith.constant 0 : index
    %c0_152 = arith.constant 0 : index
    %178 = vector.load %arg5[%c13, %c0_151, %c0_152] : memref<27x128x128xbf16, #tpu.memory_space<vmem>>, vector<1x128x128xbf16>
    %179 = vector.shape_cast %178 : vector<1x128x128xbf16> to vector<128x128xbf16>
    %cst_153 = arith.constant dense<0.000000e+00> : vector<64x128xf32>
    %180 = tpu.matmul %177, %179, %cst_153 {dimension_numbers = #tpu.dot_dimension_numbers<[1], [0], [0], [1], [0, 0, 1, 1], [], []>} : vector<64x128xbf16>, vector<128x128xbf16>, vector<64x128xf32> -> vector<64x128xf32>
    %181 = arith.addf %173, %180 : vector<64x128xf32>
    %c1_154 = arith.constant 1 : index
    %c1_155 = arith.constant 1 : index
    %c2_156 = arith.constant 2 : index
    %c0_157 = arith.constant 0 : index
    %182 = vector.load %arg11[%c1_154, %c1_155, %c2_156, %c0_157] : memref<3x10x10x128xf32, #tpu.memory_space<vmem>>, vector<1x8x8x128xf32>
    %183 = vector.shape_cast %182 : vector<1x8x8x128xf32> to vector<8x8x128xf32>
    %184 = vector.shape_cast %183 : vector<8x8x128xf32> to vector<64x128xf32>
    %185 = arith.truncf %184 : vector<64x128xf32> to vector<64x128xbf16>
    %c14 = arith.constant 14 : index
    %c0_158 = arith.constant 0 : index
    %c0_159 = arith.constant 0 : index
    %186 = vector.load %arg5[%c14, %c0_158, %c0_159] : memref<27x128x128xbf16, #tpu.memory_space<vmem>>, vector<1x128x128xbf16>
    %187 = vector.shape_cast %186 : vector<1x128x128xbf16> to vector<128x128xbf16>
    %cst_160 = arith.constant dense<0.000000e+00> : vector<64x128xf32>
    %188 = tpu.matmul %185, %187, %cst_160 {dimension_numbers = #tpu.dot_dimension_numbers<[1], [0], [0], [1], [0, 0, 1, 1], [], []>} : vector<64x128xbf16>, vector<128x128xbf16>, vector<64x128xf32> -> vector<64x128xf32>
    %189 = arith.addf %181, %188 : vector<64x128xf32>
    %c1_161 = arith.constant 1 : index
    %c2_162 = arith.constant 2 : index
    %c0_163 = arith.constant 0 : index
    %c0_164 = arith.constant 0 : index
    %190 = vector.load %arg11[%c1_161, %c2_162, %c0_163, %c0_164] : memref<3x10x10x128xf32, #tpu.memory_space<vmem>>, vector<1x8x8x128xf32>
    %191 = vector.shape_cast %190 : vector<1x8x8x128xf32> to vector<8x8x128xf32>
    %192 = vector.shape_cast %191 : vector<8x8x128xf32> to vector<64x128xf32>
    %193 = arith.truncf %192 : vector<64x128xf32> to vector<64x128xbf16>
    %c15 = arith.constant 15 : index
    %c0_165 = arith.constant 0 : index
    %c0_166 = arith.constant 0 : index
    %194 = vector.load %arg5[%c15, %c0_165, %c0_166] : memref<27x128x128xbf16, #tpu.memory_space<vmem>>, vector<1x128x128xbf16>
    %195 = vector.shape_cast %194 : vector<1x128x128xbf16> to vector<128x128xbf16>
    %cst_167 = arith.constant dense<0.000000e+00> : vector<64x128xf32>
    %196 = tpu.matmul %193, %195, %cst_167 {dimension_numbers = #tpu.dot_dimension_numbers<[1], [0], [0], [1], [0, 0, 1, 1], [], []>} : vector<64x128xbf16>, vector<128x128xbf16>, vector<64x128xf32> -> vector<64x128xf32>
    %197 = arith.addf %189, %196 : vector<64x128xf32>
    %c1_168 = arith.constant 1 : index
    %c2_169 = arith.constant 2 : index
    %c1_170 = arith.constant 1 : index
    %c0_171 = arith.constant 0 : index
    %198 = vector.load %arg11[%c1_168, %c2_169, %c1_170, %c0_171] : memref<3x10x10x128xf32, #tpu.memory_space<vmem>>, vector<1x8x8x128xf32>
    %199 = vector.shape_cast %198 : vector<1x8x8x128xf32> to vector<8x8x128xf32>
    %200 = vector.shape_cast %199 : vector<8x8x128xf32> to vector<64x128xf32>
    %201 = arith.truncf %200 : vector<64x128xf32> to vector<64x128xbf16>
    %c16 = arith.constant 16 : index
    %c0_172 = arith.constant 0 : index
    %c0_173 = arith.constant 0 : index
    %202 = vector.load %arg5[%c16, %c0_172, %c0_173] : memref<27x128x128xbf16, #tpu.memory_space<vmem>>, vector<1x128x128xbf16>
    %203 = vector.shape_cast %202 : vector<1x128x128xbf16> to vector<128x128xbf16>
    %cst_174 = arith.constant dense<0.000000e+00> : vector<64x128xf32>
    %204 = tpu.matmul %201, %203, %cst_174 {dimension_numbers = #tpu.dot_dimension_numbers<[1], [0], [0], [1], [0, 0, 1, 1], [], []>} : vector<64x128xbf16>, vector<128x128xbf16>, vector<64x128xf32> -> vector<64x128xf32>
    %205 = arith.addf %197, %204 : vector<64x128xf32>
    %c1_175 = arith.constant 1 : index
    %c2_176 = arith.constant 2 : index
    %c2_177 = arith.constant 2 : index
    %c0_178 = arith.constant 0 : index
    %206 = vector.load %arg11[%c1_175, %c2_176, %c2_177, %c0_178] : memref<3x10x10x128xf32, #tpu.memory_space<vmem>>, vector<1x8x8x128xf32>
    %207 = vector.shape_cast %206 : vector<1x8x8x128xf32> to vector<8x8x128xf32>
    %208 = vector.shape_cast %207 : vector<8x8x128xf32> to vector<64x128xf32>
    %209 = arith.truncf %208 : vector<64x128xf32> to vector<64x128xbf16>
    %c17 = arith.constant 17 : index
    %c0_179 = arith.constant 0 : index
    %c0_180 = arith.constant 0 : index
    %210 = vector.load %arg5[%c17, %c0_179, %c0_180] : memref<27x128x128xbf16, #tpu.memory_space<vmem>>, vector<1x128x128xbf16>
    %211 = vector.shape_cast %210 : vector<1x128x128xbf16> to vector<128x128xbf16>
    %cst_181 = arith.constant dense<0.000000e+00> : vector<64x128xf32>
    %212 = tpu.matmul %209, %211, %cst_181 {dimension_numbers = #tpu.dot_dimension_numbers<[1], [0], [0], [1], [0, 0, 1, 1], [], []>} : vector<64x128xbf16>, vector<128x128xbf16>, vector<64x128xf32> -> vector<64x128xf32>
    %213 = arith.addf %205, %212 : vector<64x128xf32>
    %c2_182 = arith.constant 2 : index
    %c0_183 = arith.constant 0 : index
    %c0_184 = arith.constant 0 : index
    %c0_185 = arith.constant 0 : index
    %214 = vector.load %arg11[%c2_182, %c0_183, %c0_184, %c0_185] : memref<3x10x10x128xf32, #tpu.memory_space<vmem>>, vector<1x8x8x128xf32>
    %215 = vector.shape_cast %214 : vector<1x8x8x128xf32> to vector<8x8x128xf32>
    %216 = vector.shape_cast %215 : vector<8x8x128xf32> to vector<64x128xf32>
    %217 = arith.truncf %216 : vector<64x128xf32> to vector<64x128xbf16>
    %c18 = arith.constant 18 : index
    %c0_186 = arith.constant 0 : index
    %c0_187 = arith.constant 0 : index
    %218 = vector.load %arg5[%c18, %c0_186, %c0_187] : memref<27x128x128xbf16, #tpu.memory_space<vmem>>, vector<1x128x128xbf16>
    %219 = vector.shape_cast %218 : vector<1x128x128xbf16> to vector<128x128xbf16>
    %cst_188 = arith.constant dense<0.000000e+00> : vector<64x128xf32>
    %220 = tpu.matmul %217, %219, %cst_188 {dimension_numbers = #tpu.dot_dimension_numbers<[1], [0], [0], [1], [0, 0, 1, 1], [], []>} : vector<64x128xbf16>, vector<128x128xbf16>, vector<64x128xf32> -> vector<64x128xf32>
    %221 = arith.addf %213, %220 : vector<64x128xf32>
    %c2_189 = arith.constant 2 : index
    %c0_190 = arith.constant 0 : index
    %c1_191 = arith.constant 1 : index
    %c0_192 = arith.constant 0 : index
    %222 = vector.load %arg11[%c2_189, %c0_190, %c1_191, %c0_192] : memref<3x10x10x128xf32, #tpu.memory_space<vmem>>, vector<1x8x8x128xf32>
    %223 = vector.shape_cast %222 : vector<1x8x8x128xf32> to vector<8x8x128xf32>
    %224 = vector.shape_cast %223 : vector<8x8x128xf32> to vector<64x128xf32>
    %225 = arith.truncf %224 : vector<64x128xf32> to vector<64x128xbf16>
    %c19 = arith.constant 19 : index
    %c0_193 = arith.constant 0 : index
    %c0_194 = arith.constant 0 : index
    %226 = vector.load %arg5[%c19, %c0_193, %c0_194] : memref<27x128x128xbf16, #tpu.memory_space<vmem>>, vector<1x128x128xbf16>
    %227 = vector.shape_cast %226 : vector<1x128x128xbf16> to vector<128x128xbf16>
    %cst_195 = arith.constant dense<0.000000e+00> : vector<64x128xf32>
    %228 = tpu.matmul %225, %227, %cst_195 {dimension_numbers = #tpu.dot_dimension_numbers<[1], [0], [0], [1], [0, 0, 1, 1], [], []>} : vector<64x128xbf16>, vector<128x128xbf16>, vector<64x128xf32> -> vector<64x128xf32>
    %229 = arith.addf %221, %228 : vector<64x128xf32>
    %c2_196 = arith.constant 2 : index
    %c0_197 = arith.constant 0 : index
    %c2_198 = arith.constant 2 : index
    %c0_199 = arith.constant 0 : index
    %230 = vector.load %arg11[%c2_196, %c0_197, %c2_198, %c0_199] : memref<3x10x10x128xf32, #tpu.memory_space<vmem>>, vector<1x8x8x128xf32>
    %231 = vector.shape_cast %230 : vector<1x8x8x128xf32> to vector<8x8x128xf32>
    %232 = vector.shape_cast %231 : vector<8x8x128xf32> to vector<64x128xf32>
    %233 = arith.truncf %232 : vector<64x128xf32> to vector<64x128xbf16>
    %c20 = arith.constant 20 : index
    %c0_200 = arith.constant 0 : index
    %c0_201 = arith.constant 0 : index
    %234 = vector.load %arg5[%c20, %c0_200, %c0_201] : memref<27x128x128xbf16, #tpu.memory_space<vmem>>, vector<1x128x128xbf16>
    %235 = vector.shape_cast %234 : vector<1x128x128xbf16> to vector<128x128xbf16>
    %cst_202 = arith.constant dense<0.000000e+00> : vector<64x128xf32>
    %236 = tpu.matmul %233, %235, %cst_202 {dimension_numbers = #tpu.dot_dimension_numbers<[1], [0], [0], [1], [0, 0, 1, 1], [], []>} : vector<64x128xbf16>, vector<128x128xbf16>, vector<64x128xf32> -> vector<64x128xf32>
    %237 = arith.addf %229, %236 : vector<64x128xf32>
    %c2_203 = arith.constant 2 : index
    %c1_204 = arith.constant 1 : index
    %c0_205 = arith.constant 0 : index
    %c0_206 = arith.constant 0 : index
    %238 = vector.load %arg11[%c2_203, %c1_204, %c0_205, %c0_206] : memref<3x10x10x128xf32, #tpu.memory_space<vmem>>, vector<1x8x8x128xf32>
    %239 = vector.shape_cast %238 : vector<1x8x8x128xf32> to vector<8x8x128xf32>
    %240 = vector.shape_cast %239 : vector<8x8x128xf32> to vector<64x128xf32>
    %241 = arith.truncf %240 : vector<64x128xf32> to vector<64x128xbf16>
    %c21 = arith.constant 21 : index
    %c0_207 = arith.constant 0 : index
    %c0_208 = arith.constant 0 : index
    %242 = vector.load %arg5[%c21, %c0_207, %c0_208] : memref<27x128x128xbf16, #tpu.memory_space<vmem>>, vector<1x128x128xbf16>
    %243 = vector.shape_cast %242 : vector<1x128x128xbf16> to vector<128x128xbf16>
    %cst_209 = arith.constant dense<0.000000e+00> : vector<64x128xf32>
    %244 = tpu.matmul %241, %243, %cst_209 {dimension_numbers = #tpu.dot_dimension_numbers<[1], [0], [0], [1], [0, 0, 1, 1], [], []>} : vector<64x128xbf16>, vector<128x128xbf16>, vector<64x128xf32> -> vector<64x128xf32>
    %245 = arith.addf %237, %244 : vector<64x128xf32>
    %c2_210 = arith.constant 2 : index
    %c1_211 = arith.constant 1 : index
    %c1_212 = arith.constant 1 : index
    %c0_213 = arith.constant 0 : index
    %246 = vector.load %arg11[%c2_210, %c1_211, %c1_212, %c0_213] : memref<3x10x10x128xf32, #tpu.memory_space<vmem>>, vector<1x8x8x128xf32>
    %247 = vector.shape_cast %246 : vector<1x8x8x128xf32> to vector<8x8x128xf32>
    %248 = vector.shape_cast %247 : vector<8x8x128xf32> to vector<64x128xf32>
    %249 = arith.truncf %248 : vector<64x128xf32> to vector<64x128xbf16>
    %c22 = arith.constant 22 : index
    %c0_214 = arith.constant 0 : index
    %c0_215 = arith.constant 0 : index
    %250 = vector.load %arg5[%c22, %c0_214, %c0_215] : memref<27x128x128xbf16, #tpu.memory_space<vmem>>, vector<1x128x128xbf16>
    %251 = vector.shape_cast %250 : vector<1x128x128xbf16> to vector<128x128xbf16>
    %cst_216 = arith.constant dense<0.000000e+00> : vector<64x128xf32>
    %252 = tpu.matmul %249, %251, %cst_216 {dimension_numbers = #tpu.dot_dimension_numbers<[1], [0], [0], [1], [0, 0, 1, 1], [], []>} : vector<64x128xbf16>, vector<128x128xbf16>, vector<64x128xf32> -> vector<64x128xf32>
    %253 = arith.addf %245, %252 : vector<64x128xf32>
    %c2_217 = arith.constant 2 : index
    %c1_218 = arith.constant 1 : index
    %c2_219 = arith.constant 2 : index
    %c0_220 = arith.constant 0 : index
    %254 = vector.load %arg11[%c2_217, %c1_218, %c2_219, %c0_220] : memref<3x10x10x128xf32, #tpu.memory_space<vmem>>, vector<1x8x8x128xf32>
    %255 = vector.shape_cast %254 : vector<1x8x8x128xf32> to vector<8x8x128xf32>
    %256 = vector.shape_cast %255 : vector<8x8x128xf32> to vector<64x128xf32>
    %257 = arith.truncf %256 : vector<64x128xf32> to vector<64x128xbf16>
    %c23 = arith.constant 23 : index
    %c0_221 = arith.constant 0 : index
    %c0_222 = arith.constant 0 : index
    %258 = vector.load %arg5[%c23, %c0_221, %c0_222] : memref<27x128x128xbf16, #tpu.memory_space<vmem>>, vector<1x128x128xbf16>
    %259 = vector.shape_cast %258 : vector<1x128x128xbf16> to vector<128x128xbf16>
    %cst_223 = arith.constant dense<0.000000e+00> : vector<64x128xf32>
    %260 = tpu.matmul %257, %259, %cst_223 {dimension_numbers = #tpu.dot_dimension_numbers<[1], [0], [0], [1], [0, 0, 1, 1], [], []>} : vector<64x128xbf16>, vector<128x128xbf16>, vector<64x128xf32> -> vector<64x128xf32>
    %261 = arith.addf %253, %260 : vector<64x128xf32>
    %c2_224 = arith.constant 2 : index
    %c2_225 = arith.constant 2 : index
    %c0_226 = arith.constant 0 : index
    %c0_227 = arith.constant 0 : index
    %262 = vector.load %arg11[%c2_224, %c2_225, %c0_226, %c0_227] : memref<3x10x10x128xf32, #tpu.memory_space<vmem>>, vector<1x8x8x128xf32>
    %263 = vector.shape_cast %262 : vector<1x8x8x128xf32> to vector<8x8x128xf32>
    %264 = vector.shape_cast %263 : vector<8x8x128xf32> to vector<64x128xf32>
    %265 = arith.truncf %264 : vector<64x128xf32> to vector<64x128xbf16>
    %c24 = arith.constant 24 : index
    %c0_228 = arith.constant 0 : index
    %c0_229 = arith.constant 0 : index
    %266 = vector.load %arg5[%c24, %c0_228, %c0_229] : memref<27x128x128xbf16, #tpu.memory_space<vmem>>, vector<1x128x128xbf16>
    %267 = vector.shape_cast %266 : vector<1x128x128xbf16> to vector<128x128xbf16>
    %cst_230 = arith.constant dense<0.000000e+00> : vector<64x128xf32>
    %268 = tpu.matmul %265, %267, %cst_230 {dimension_numbers = #tpu.dot_dimension_numbers<[1], [0], [0], [1], [0, 0, 1, 1], [], []>} : vector<64x128xbf16>, vector<128x128xbf16>, vector<64x128xf32> -> vector<64x128xf32>
    %269 = arith.addf %261, %268 : vector<64x128xf32>
    %c2_231 = arith.constant 2 : index
    %c2_232 = arith.constant 2 : index
    %c1_233 = arith.constant 1 : index
    %c0_234 = arith.constant 0 : index
    %270 = vector.load %arg11[%c2_231, %c2_232, %c1_233, %c0_234] : memref<3x10x10x128xf32, #tpu.memory_space<vmem>>, vector<1x8x8x128xf32>
    %271 = vector.shape_cast %270 : vector<1x8x8x128xf32> to vector<8x8x128xf32>
    %272 = vector.shape_cast %271 : vector<8x8x128xf32> to vector<64x128xf32>
    %273 = arith.truncf %272 : vector<64x128xf32> to vector<64x128xbf16>
    %c25 = arith.constant 25 : index
    %c0_235 = arith.constant 0 : index
    %c0_236 = arith.constant 0 : index
    %274 = vector.load %arg5[%c25, %c0_235, %c0_236] : memref<27x128x128xbf16, #tpu.memory_space<vmem>>, vector<1x128x128xbf16>
    %275 = vector.shape_cast %274 : vector<1x128x128xbf16> to vector<128x128xbf16>
    %cst_237 = arith.constant dense<0.000000e+00> : vector<64x128xf32>
    %276 = tpu.matmul %273, %275, %cst_237 {dimension_numbers = #tpu.dot_dimension_numbers<[1], [0], [0], [1], [0, 0, 1, 1], [], []>} : vector<64x128xbf16>, vector<128x128xbf16>, vector<64x128xf32> -> vector<64x128xf32>
    %277 = arith.addf %269, %276 : vector<64x128xf32>
    %c2_238 = arith.constant 2 : index
    %c2_239 = arith.constant 2 : index
    %c2_240 = arith.constant 2 : index
    %c0_241 = arith.constant 0 : index
    %278 = vector.load %arg11[%c2_238, %c2_239, %c2_240, %c0_241] : memref<3x10x10x128xf32, #tpu.memory_space<vmem>>, vector<1x8x8x128xf32>
    %279 = vector.shape_cast %278 : vector<1x8x8x128xf32> to vector<8x8x128xf32>
    %280 = vector.shape_cast %279 : vector<8x8x128xf32> to vector<64x128xf32>
    %281 = arith.truncf %280 : vector<64x128xf32> to vector<64x128xbf16>
    %c26 = arith.constant 26 : index
    %c0_242 = arith.constant 0 : index
    %c0_243 = arith.constant 0 : index
    %282 = vector.load %arg5[%c26, %c0_242, %c0_243] : memref<27x128x128xbf16, #tpu.memory_space<vmem>>, vector<1x128x128xbf16>
    %283 = vector.shape_cast %282 : vector<1x128x128xbf16> to vector<128x128xbf16>
    %cst_244 = arith.constant dense<0.000000e+00> : vector<64x128xf32>
    %284 = tpu.matmul %281, %283, %cst_244 {dimension_numbers = #tpu.dot_dimension_numbers<[1], [0], [0], [1], [0, 0, 1, 1], [], []>} : vector<64x128xbf16>, vector<128x128xbf16>, vector<64x128xf32> -> vector<64x128xf32>
    %285 = arith.addf %277, %284 : vector<64x128xf32>
    %c0_245 = arith.constant 0 : index
    %c0_246 = arith.constant 0 : index
    %286 = vector.load %arg6[%c0_245, %c0_246] : memref<1x128xf32, #tpu.memory_space<vmem>>, vector<1x128xf32>
    %287 = vector.broadcast %286 : vector<1x128xf32> to vector<64x128xf32>
    %288 = arith.addf %285, %287 : vector<64x128xf32>
    %289 = vector.shape_cast %288 : vector<64x128xf32> to vector<8x8x128xf32>
    %c0_247 = arith.constant 0 : index
    %c0_248 = arith.constant 0 : index
    %c0_249 = arith.constant 0 : index
    %c0_250 = arith.constant 0 : index
    %290 = vector.load %arg9[%c0_247, %c0_248, %c0_249, %c0_250] : memref<1x8x8x128xf32, #tpu.memory_space<vmem>>, vector<1x8x8x128xf32>
    %291 = vector.shape_cast %290 : vector<1x8x8x128xf32> to vector<8x8x128xf32>
    %292 = vector.shape_cast %289 : vector<8x8x128xf32> to vector<1x8x8x128xf32>
    tpu.vector_store %arg9[%c0_247, %c0_248, %c0_249, %c0_250], %292 {strides = array<i32>} : memref<1x8x8x128xf32, #tpu.memory_space<vmem>>, vector<1x8x8x128xf32>,
    %cst_251 = arith.constant dense<0.000000e+00> : vector<128xf32>
    %293 = vector.multi_reduction <add>, %288, %cst_251 [0] : vector<64x128xf32> to vector<128xf32>
    %294 = vector.shape_cast %293 : vector<128xf32> to vector<1x128xf32>
    %295 = arith.mulf %288, %288 : vector<64x128xf32>
    %cst_252 = arith.constant dense<0.000000e+00> : vector<128xf32>
    %296 = vector.multi_reduction <add>, %295, %cst_252 [0] : vector<64x128xf32> to vector<128xf32>
    %297 = vector.shape_cast %296 : vector<128xf32> to vector<1x128xf32>
    %298 = tpu.concatenate %294, %297 in 0 : vector<1x128xf32>, vector<1x128xf32> -> vector<2x128xf32>
    %c0_253 = arith.constant 0 : index
    %c0_254 = arith.constant 0 : index
    %c0_255 = arith.constant 0 : index
    %299 = vector.load %arg10[%c0_253, %c0_254, %c0_255] : memref<1x2x128xf32, #tpu.memory_space<vmem>>, vector<1x2x128xf32>
    %300 = vector.shape_cast %299 : vector<1x2x128xf32> to vector<2x128xf32>
    %301 = vector.shape_cast %298 : vector<2x128xf32> to vector<1x2x128xf32>
    tpu.vector_store %arg10[%c0_253, %c0_254, %c0_255], %301 {strides = array<i32>} : memref<1x2x128xf32, #tpu.memory_space<vmem>>, vector<1x2x128xf32>,
    return
  }
  func.func @transform_0(%arg0: i32, %arg1: i32) -> (i32, i32, i32, i32) {
    %c8_i32 = arith.constant 8 : i32
    %0 = arith.muli %arg0, %c8_i32 : i32
    %c1_i32 = arith.constant 1 : i32
    %1 = arith.subi %arg1, %c1_i32 : i32
    %c0_i32 = arith.constant 0 : i32
    %2 = arith.maxsi %1, %c0_i32 : i32
    %3 = arith.addi %0, %2 : i32
    %c0_i32_0 = arith.constant 0 : i32
    %c0_i32_1 = arith.constant 0 : i32
    %c0_i32_2 = arith.constant 0 : i32
    %c0_i32_3 = arith.constant 0 : i32
    return %3, %c0_i32_0, %c0_i32_1, %c0_i32_2 : i32, i32, i32, i32
  }
  func.func @transform_1(%arg0: i32, %arg1: i32) -> (i32, i32, i32, i32) {
    %c8_i32 = arith.constant 8 : i32
    %0 = arith.muli %arg0, %c8_i32 : i32
    %1 = arith.addi %0, %arg1 : i32
    %c0_i32 = arith.constant 0 : i32
    %c0_i32_0 = arith.constant 0 : i32
    %c0_i32_1 = arith.constant 0 : i32
    %c0_i32_2 = arith.constant 0 : i32
    return %1, %c0_i32, %c0_i32_0, %c0_i32_1 : i32, i32, i32, i32
  }
  func.func @transform_2(%arg0: i32, %arg1: i32) -> (i32, i32, i32, i32) {
    %c8_i32 = arith.constant 8 : i32
    %0 = arith.muli %arg0, %c8_i32 : i32
    %c1_i32 = arith.constant 1 : i32
    %1 = arith.addi %arg1, %c1_i32 : i32
    %c7_i32 = arith.constant 7 : i32
    %2 = arith.minsi %1, %c7_i32 : i32
    %3 = arith.addi %0, %2 : i32
    %c0_i32 = arith.constant 0 : i32
    %c0_i32_0 = arith.constant 0 : i32
    %c0_i32_1 = arith.constant 0 : i32
    %c0_i32_2 = arith.constant 0 : i32
    return %3, %c0_i32, %c0_i32_0, %c0_i32_1 : i32, i32, i32, i32
  }
  func.func @transform_3(%arg0: i32, %arg1: i32) -> (i32, i32, i32) {
    %c0_i32 = arith.constant 0 : i32
    %c0_i32_0 = arith.constant 0 : i32
    %c0_i32_1 = arith.constant 0 : i32
    %c0_i32_2 = arith.constant 0 : i32
    return %c0_i32, %c0_i32_0, %c0_i32_1 : i32, i32, i32
  }
  func.func @transform_4(%arg0: i32, %arg1: i32) -> (i32, i32) {
    %c0_i32 = arith.constant 0 : i32
    %c0_i32_0 = arith.constant 0 : i32
    %c0_i32_1 = arith.constant 0 : i32
    return %c0_i32, %c0_i32_0 : i32, i32
  }
  func.func @transform_5(%arg0: i32, %arg1: i32) -> (i32, i32, i32) {
    %c0_i32 = arith.constant 0 : i32
    %c0_i32_0 = arith.constant 0 : i32
    %c0_i32_1 = arith.constant 0 : i32
    %c0_i32_2 = arith.constant 0 : i32
    return %c0_i32, %c0_i32_0, %c0_i32_1 : i32, i32, i32
  }
  func.func @transform_6(%arg0: i32, %arg1: i32) -> (i32, i32, i32) {
    %c0_i32 = arith.constant 0 : i32
    %c0_i32_0 = arith.constant 0 : i32
    %c0_i32_1 = arith.constant 0 : i32
    %c0_i32_2 = arith.constant 0 : i32
    return %c0_i32, %c0_i32_0, %c0_i32_1 : i32, i32, i32
  }
  func.func @transform_7(%arg0: i32, %arg1: i32) -> (i32, i32, i32, i32) {
    %c8_i32 = arith.constant 8 : i32
    %0 = arith.muli %arg0, %c8_i32 : i32
    %1 = arith.addi %0, %arg1 : i32
    %c0_i32 = arith.constant 0 : i32
    %c0_i32_0 = arith.constant 0 : i32
    %c0_i32_1 = arith.constant 0 : i32
    %c0_i32_2 = arith.constant 0 : i32
    return %1, %c0_i32, %c0_i32_0, %c0_i32_1 : i32, i32, i32, i32
  }
  func.func @transform_8(%arg0: i32, %arg1: i32) -> (i32, i32, i32) {
    %c8_i32 = arith.constant 8 : i32
    %0 = arith.muli %arg0, %c8_i32 : i32
    %1 = arith.addi %0, %arg1 : i32
    %c0_i32 = arith.constant 0 : i32
    %c0_i32_0 = arith.constant 0 : i32
    %c0_i32_1 = arith.constant 0 : i32
    return %1, %c0_i32, %c0_i32_0 : i32, i32, i32
  }
}

module attributes {stable_mosaic.version = 11 : i64} {
  func.func @_bn_gelu_pool_kernel(%arg0: i32, %arg1: i32, %arg2: memref<1x4x1x4x256xf32, #tpu.memory_space<vmem>>, %arg3: memref<1x4x1x4x256xf32, #tpu.memory_space<vmem>>, %arg4: memref<1x4x1x4x256xf32, #tpu.memory_space<vmem>>, %arg5: memref<1x4x1x4x256xf32, #tpu.memory_space<vmem>>, %arg6: memref<1x1x256xf32, #tpu.memory_space<vmem>>, %arg7: memref<1x1x256xf32, #tpu.memory_space<vmem>>, %arg8: memref<1x4x4x128xf32, #tpu.memory_space<vmem>>) attributes {dimension_semantics = [#tpu.dimension_semantics<parallel>, #tpu.dimension_semantics<parallel>], iteration_bounds = array<i64: 2, 4>, scalar_prefetch = 0 : i64, scratch_operands = 0 : i64, tpu.core_type = #tpu.core_type<tc>, window_params = [{transform_indices = @transform_0, window_bounds = array<i64: 1, 4, 1, 4, 256>}, {transform_indices = @transform_1, window_bounds = array<i64: 1, 4, 1, 4, 256>}, {transform_indices = @transform_2, window_bounds = array<i64: 1, 4, 1, 4, 256>}, {transform_indices = @transform_3, window_bounds = array<i64: 1, 4, 1, 4, 256>}, {pipeline_mode = #tpu.pipeline_mode<synchronous>, transform_indices = @transform_4, window_bounds = array<i64: 1, 1, 256>}, {pipeline_mode = #tpu.pipeline_mode<synchronous>, transform_indices = @transform_5, window_bounds = array<i64: 1, 1, 256>}, {transform_indices = @transform_6, window_bounds = array<i64: 1, 4, 4, 128>}]} {
    %c0 = arith.constant 0 : index
    %c0_0 = arith.constant 0 : index
    %c0_1 = arith.constant 0 : index
    %c0_2 = arith.constant 0 : index
    %c0_3 = arith.constant 0 : index
    %0 = vector.load %arg2[%c0, %c0_0, %c0_1, %c0_2, %c0_3] : memref<1x4x1x4x256xf32, #tpu.memory_space<vmem>>, vector<1x4x1x4x256xf32>
    %1 = vector.shape_cast %0 : vector<1x4x1x4x256xf32> to vector<4x4x256xf32>
    %c0_4 = arith.constant 0 : index
    %c0_5 = arith.constant 0 : index
    %c0_6 = arith.constant 0 : index
    %2 = vector.load %arg6[%c0_4, %c0_5, %c0_6] : memref<1x1x256xf32, #tpu.memory_space<vmem>>, vector<1x1x256xf32>
    %3 = vector.broadcast %2 : vector<1x1x256xf32> to vector<4x4x256xf32>
    %4 = arith.mulf %1, %3 : vector<4x4x256xf32>
    %c0_7 = arith.constant 0 : index
    %c0_8 = arith.constant 0 : index
    %c0_9 = arith.constant 0 : index
    %5 = vector.load %arg7[%c0_7, %c0_8, %c0_9] : memref<1x1x256xf32, #tpu.memory_space<vmem>>, vector<1x1x256xf32>
    %6 = vector.broadcast %5 : vector<1x1x256xf32> to vector<4x4x256xf32>
    %7 = arith.addf %4, %6 : vector<4x4x256xf32>
    %cst = arith.constant 5.000000e-01 : f32
    %8 = vector.broadcast %cst : f32 to vector<4x4x256xf32>
    %9 = arith.mulf %8, %7 : vector<4x4x256xf32>
    %cst_10 = arith.constant 0.707106769 : f32
    %10 = vector.broadcast %cst_10 : f32 to vector<4x4x256xf32>
    %11 = arith.mulf %7, %10 : vector<4x4x256xf32>
    %12 = math.erf %11 : vector<4x4x256xf32>
    %cst_11 = arith.constant 1.000000e+00 : f32
    %13 = vector.broadcast %cst_11 : f32 to vector<4x4x256xf32>
    %14 = arith.addf %13, %12 : vector<4x4x256xf32>
    %15 = arith.mulf %9, %14 : vector<4x4x256xf32>
    %c0_12 = arith.constant 0 : index
    %c0_13 = arith.constant 0 : index
    %c0_14 = arith.constant 0 : index
    %c0_15 = arith.constant 0 : index
    %c0_16 = arith.constant 0 : index
    %16 = vector.load %arg3[%c0_12, %c0_13, %c0_14, %c0_15, %c0_16] : memref<1x4x1x4x256xf32, #tpu.memory_space<vmem>>, vector<1x4x1x4x256xf32>
    %17 = vector.shape_cast %16 : vector<1x4x1x4x256xf32> to vector<4x4x256xf32>
    %c0_17 = arith.constant 0 : index
    %c0_18 = arith.constant 0 : index
    %c0_19 = arith.constant 0 : index
    %18 = vector.load %arg6[%c0_17, %c0_18, %c0_19] : memref<1x1x256xf32, #tpu.memory_space<vmem>>, vector<1x1x256xf32>
    %19 = vector.broadcast %18 : vector<1x1x256xf32> to vector<4x4x256xf32>
    %20 = arith.mulf %17, %19 : vector<4x4x256xf32>
    %c0_20 = arith.constant 0 : index
    %c0_21 = arith.constant 0 : index
    %c0_22 = arith.constant 0 : index
    %21 = vector.load %arg7[%c0_20, %c0_21, %c0_22] : memref<1x1x256xf32, #tpu.memory_space<vmem>>, vector<1x1x256xf32>
    %22 = vector.broadcast %21 : vector<1x1x256xf32> to vector<4x4x256xf32>
    %23 = arith.addf %20, %22 : vector<4x4x256xf32>
    %cst_23 = arith.constant 5.000000e-01 : f32
    %24 = vector.broadcast %cst_23 : f32 to vector<4x4x256xf32>
    %25 = arith.mulf %24, %23 : vector<4x4x256xf32>
    %cst_24 = arith.constant 0.707106769 : f32
    %26 = vector.broadcast %cst_24 : f32 to vector<4x4x256xf32>
    %27 = arith.mulf %23, %26 : vector<4x4x256xf32>
    %28 = math.erf %27 : vector<4x4x256xf32>
    %cst_25 = arith.constant 1.000000e+00 : f32
    %29 = vector.broadcast %cst_25 : f32 to vector<4x4x256xf32>
    %30 = arith.addf %29, %28 : vector<4x4x256xf32>
    %31 = arith.mulf %25, %30 : vector<4x4x256xf32>
    %32 = arith.maximumf %15, %31 : vector<4x4x256xf32>
    %c0_26 = arith.constant 0 : index
    %c0_27 = arith.constant 0 : index
    %c0_28 = arith.constant 0 : index
    %c0_29 = arith.constant 0 : index
    %c0_30 = arith.constant 0 : index
    %33 = vector.load %arg4[%c0_26, %c0_27, %c0_28, %c0_29, %c0_30] : memref<1x4x1x4x256xf32, #tpu.memory_space<vmem>>, vector<1x4x1x4x256xf32>
    %34 = vector.shape_cast %33 : vector<1x4x1x4x256xf32> to vector<4x4x256xf32>
    %c0_31 = arith.constant 0 : index
    %c0_32 = arith.constant 0 : index
    %c0_33 = arith.constant 0 : index
    %35 = vector.load %arg6[%c0_31, %c0_32, %c0_33] : memref<1x1x256xf32, #tpu.memory_space<vmem>>, vector<1x1x256xf32>
    %36 = vector.broadcast %35 : vector<1x1x256xf32> to vector<4x4x256xf32>
    %37 = arith.mulf %34, %36 : vector<4x4x256xf32>
    %c0_34 = arith.constant 0 : index
    %c0_35 = arith.constant 0 : index
    %c0_36 = arith.constant 0 : index
    %38 = vector.load %arg7[%c0_34, %c0_35, %c0_36] : memref<1x1x256xf32, #tpu.memory_space<vmem>>, vector<1x1x256xf32>
    %39 = vector.broadcast %38 : vector<1x1x256xf32> to vector<4x4x256xf32>
    %40 = arith.addf %37, %39 : vector<4x4x256xf32>
    %cst_37 = arith.constant 5.000000e-01 : f32
    %41 = vector.broadcast %cst_37 : f32 to vector<4x4x256xf32>
    %42 = arith.mulf %41, %40 : vector<4x4x256xf32>
    %cst_38 = arith.constant 0.707106769 : f32
    %43 = vector.broadcast %cst_38 : f32 to vector<4x4x256xf32>
    %44 = arith.mulf %40, %43 : vector<4x4x256xf32>
    %45 = math.erf %44 : vector<4x4x256xf32>
    %cst_39 = arith.constant 1.000000e+00 : f32
    %46 = vector.broadcast %cst_39 : f32 to vector<4x4x256xf32>
    %47 = arith.addf %46, %45 : vector<4x4x256xf32>
    %48 = arith.mulf %42, %47 : vector<4x4x256xf32>
    %c0_40 = arith.constant 0 : index
    %c0_41 = arith.constant 0 : index
    %c0_42 = arith.constant 0 : index
    %c0_43 = arith.constant 0 : index
    %c0_44 = arith.constant 0 : index
    %49 = vector.load %arg5[%c0_40, %c0_41, %c0_42, %c0_43, %c0_44] : memref<1x4x1x4x256xf32, #tpu.memory_space<vmem>>, vector<1x4x1x4x256xf32>
    %50 = vector.shape_cast %49 : vector<1x4x1x4x256xf32> to vector<4x4x256xf32>
    %c0_45 = arith.constant 0 : index
    %c0_46 = arith.constant 0 : index
    %c0_47 = arith.constant 0 : index
    %51 = vector.load %arg6[%c0_45, %c0_46, %c0_47] : memref<1x1x256xf32, #tpu.memory_space<vmem>>, vector<1x1x256xf32>
    %52 = vector.broadcast %51 : vector<1x1x256xf32> to vector<4x4x256xf32>
    %53 = arith.mulf %50, %52 : vector<4x4x256xf32>
    %c0_48 = arith.constant 0 : index
    %c0_49 = arith.constant 0 : index
    %c0_50 = arith.constant 0 : index
    %54 = vector.load %arg7[%c0_48, %c0_49, %c0_50] : memref<1x1x256xf32, #tpu.memory_space<vmem>>, vector<1x1x256xf32>
    %55 = vector.broadcast %54 : vector<1x1x256xf32> to vector<4x4x256xf32>
    %56 = arith.addf %53, %55 : vector<4x4x256xf32>
    %cst_51 = arith.constant 5.000000e-01 : f32
    %57 = vector.broadcast %cst_51 : f32 to vector<4x4x256xf32>
    %58 = arith.mulf %57, %56 : vector<4x4x256xf32>
    %cst_52 = arith.constant 0.707106769 : f32
    %59 = vector.broadcast %cst_52 : f32 to vector<4x4x256xf32>
    %60 = arith.mulf %56, %59 : vector<4x4x256xf32>
    %61 = math.erf %60 : vector<4x4x256xf32>
    %cst_53 = arith.constant 1.000000e+00 : f32
    %62 = vector.broadcast %cst_53 : f32 to vector<4x4x256xf32>
    %63 = arith.addf %62, %61 : vector<4x4x256xf32>
    %64 = arith.mulf %58, %63 : vector<4x4x256xf32>
    %65 = arith.maximumf %48, %64 : vector<4x4x256xf32>
    %66 = arith.maximumf %32, %65 : vector<4x4x256xf32>
    %67 = vector.extract_strided_slice %66 {offsets = [0, 0, 0], sizes = [4, 4, 128], strides = [1, 1, 1]} : vector<4x4x256xf32> to vector<4x4x128xf32>
    %68 = vector.extract_strided_slice %66 {offsets = [0, 0, 128], sizes = [4, 4, 128], strides = [1, 1, 1]} : vector<4x4x256xf32> to vector<4x4x128xf32>
    %69 = arith.maximumf %67, %68 : vector<4x4x128xf32>
    %c0_54 = arith.constant 0 : index
    %c0_55 = arith.constant 0 : index
    %c0_56 = arith.constant 0 : index
    %c0_57 = arith.constant 0 : index
    %70 = vector.load %arg8[%c0_54, %c0_55, %c0_56, %c0_57] : memref<1x4x4x128xf32, #tpu.memory_space<vmem>>, vector<1x4x4x128xf32>
    %71 = vector.shape_cast %70 : vector<1x4x4x128xf32> to vector<4x4x128xf32>
    %72 = vector.shape_cast %69 : vector<4x4x128xf32> to vector<1x4x4x128xf32>
    tpu.vector_store %arg8[%c0_54, %c0_55, %c0_56, %c0_57], %72 {strides = array<i32>} : memref<1x4x4x128xf32, #tpu.memory_space<vmem>>, vector<1x4x4x128xf32>,
    return
  }
  func.func @transform_0(%arg0: i32, %arg1: i32) -> (i32, i32, i32, i32, i32) {
    %c8_i32 = arith.constant 8 : i32
    %0 = arith.muli %arg0, %c8_i32 : i32
    %c2_i32 = arith.constant 2 : i32
    %1 = arith.muli %c2_i32, %arg1 : i32
    %2 = arith.addi %0, %1 : i32
    %c0_i32 = arith.constant 0 : i32
    %3 = arith.addi %2, %c0_i32 : i32
    %c0_i32_0 = arith.constant 0 : i32
    %c0_i32_1 = arith.constant 0 : i32
    %c0_i32_2 = arith.constant 0 : i32
    %c0_i32_3 = arith.constant 0 : i32
    %c0_i32_4 = arith.constant 0 : i32
    return %3, %c0_i32_0, %c0_i32_1, %c0_i32_2, %c0_i32_3 : i32, i32, i32, i32, i32
  }
  func.func @transform_1(%arg0: i32, %arg1: i32) -> (i32, i32, i32, i32, i32) {
    %c8_i32 = arith.constant 8 : i32
    %0 = arith.muli %arg0, %c8_i32 : i32
    %c2_i32 = arith.constant 2 : i32
    %1 = arith.muli %c2_i32, %arg1 : i32
    %2 = arith.addi %0, %1 : i32
    %c0_i32 = arith.constant 0 : i32
    %3 = arith.addi %2, %c0_i32 : i32
    %c0_i32_0 = arith.constant 0 : i32
    %c1_i32 = arith.constant 1 : i32
    %c0_i32_1 = arith.constant 0 : i32
    %c0_i32_2 = arith.constant 0 : i32
    %c0_i32_3 = arith.constant 0 : i32
    return %3, %c0_i32_0, %c1_i32, %c0_i32_1, %c0_i32_2 : i32, i32, i32, i32, i32
  }
  func.func @transform_2(%arg0: i32, %arg1: i32) -> (i32, i32, i32, i32, i32) {
    %c8_i32 = arith.constant 8 : i32
    %0 = arith.muli %arg0, %c8_i32 : i32
    %c2_i32 = arith.constant 2 : i32
    %1 = arith.muli %c2_i32, %arg1 : i32
    %2 = arith.addi %0, %1 : i32
    %c1_i32 = arith.constant 1 : i32
    %3 = arith.addi %2, %c1_i32 : i32
    %c0_i32 = arith.constant 0 : i32
    %c0_i32_0 = arith.constant 0 : i32
    %c0_i32_1 = arith.constant 0 : i32
    %c0_i32_2 = arith.constant 0 : i32
    %c0_i32_3 = arith.constant 0 : i32
    return %3, %c0_i32, %c0_i32_0, %c0_i32_1, %c0_i32_2 : i32, i32, i32, i32, i32
  }
  func.func @transform_3(%arg0: i32, %arg1: i32) -> (i32, i32, i32, i32, i32) {
    %c8_i32 = arith.constant 8 : i32
    %0 = arith.muli %arg0, %c8_i32 : i32
    %c2_i32 = arith.constant 2 : i32
    %1 = arith.muli %c2_i32, %arg1 : i32
    %2 = arith.addi %0, %1 : i32
    %c1_i32 = arith.constant 1 : i32
    %3 = arith.addi %2, %c1_i32 : i32
    %c0_i32 = arith.constant 0 : i32
    %c1_i32_0 = arith.constant 1 : i32
    %c0_i32_1 = arith.constant 0 : i32
    %c0_i32_2 = arith.constant 0 : i32
    %c0_i32_3 = arith.constant 0 : i32
    return %3, %c0_i32, %c1_i32_0, %c0_i32_1, %c0_i32_2 : i32, i32, i32, i32, i32
  }
  func.func @transform_4(%arg0: i32, %arg1: i32) -> (i32, i32, i32) {
    %c0_i32 = arith.constant 0 : i32
    %c0_i32_0 = arith.constant 0 : i32
    %c0_i32_1 = arith.constant 0 : i32
    %c0_i32_2 = arith.constant 0 : i32
    return %c0_i32, %c0_i32_0, %c0_i32_1 : i32, i32, i32
  }
  func.func @transform_5(%arg0: i32, %arg1: i32) -> (i32, i32, i32) {
    %c0_i32 = arith.constant 0 : i32
    %c0_i32_0 = arith.constant 0 : i32
    %c0_i32_1 = arith.constant 0 : i32
    %c0_i32_2 = arith.constant 0 : i32
    return %c0_i32, %c0_i32_0, %c0_i32_1 : i32, i32, i32
  }
  func.func @transform_6(%arg0: i32, %arg1: i32) -> (i32, i32, i32, i32) {
    %c4_i32 = arith.constant 4 : i32
    %0 = arith.muli %arg0, %c4_i32 : i32
    %1 = arith.addi %0, %arg1 : i32
    %c0_i32 = arith.constant 0 : i32
    %c0_i32_0 = arith.constant 0 : i32
    %c0_i32_1 = arith.constant 0 : i32
    %c0_i32_2 = arith.constant 0 : i32
    return %1, %c0_i32, %c0_i32_0, %c0_i32_1 : i32, i32, i32, i32
  }
}

</mosaic_0001>

<bundles_post_ra>
// kernel: unet_down_forward.5
= control target key start
LH: loop header
LB: loop body
LE: loop exit
PB: predicated region body
PF: predicated region fallthrough
CT: control target
= control target key end

     0   :  { %s1827_s21 = smov 0   ;;  %s1829_s22 = smov 0   ;;  %s2925_s0 = inlined_call_operand.vmem [shape: f32[16,4,2,4,256], index: 0, kind: input, shape index: {}, may-alias: {0,1,2,3}]   ;;  %s2926_s1 = inlined_call_operand.vmem [shape: f32[16,4,2,4,256], index: 1, kind: input, shape index: {}, may-alias: {0,1,2,3}]   ;;  %s2927_s2 = inlined_call_operand.vmem [shape: f32[16,4,2,4,256], index: 2, kind: input, shape index: {}, may-alias: {0,1,2,3}]   ;;  %s2928_s3 = inlined_call_operand.vmem [shape: f32[16,4,2,4,256], index: 3, kind: input, shape index: {}, may-alias: {0,1,2,3}]   ;;  %s2929_s4 = inlined_call_operand.vmem [shape: f32[1,1,256], index: 4, kind: input, shape index: {}]   ;;  %s2930_s5 = inlined_call_operand.vmem [shape: f32[1,1,256], index: 5, kind: input, shape index: {}]   ;;  %s2931_s6 = inlined_call_operand.vmem [shape: f32[8,4,4,128], index: 6, kind: output, shape index: {}]  }
   0x1   :  { %s1831_s23 = smov 0   ;;  %s1833_s24 = smov 0  }
   0x2   :  { %s1835_s25 = smov 0   ;;  %s1837_s26 = smov 0  }
   0x3   :  { %s1839_s27 = smov 0   ;;  %s1841_s28 = smov 0  }
   0x4   :  { %s1843_s29 = smov 0  }
   0x5 LB: > { %s25_s30 = sadd.s32 1, %s1782_s27  ;;  %s28_s7 = sadd.s32 1, %s1786_s28  ;;  %s1790_s29 = sphi %s1843_s29, %s16_s29   ;;  %s1786_s28 = sphi %s1841_s28, %s3015_s28   ;;  %s1782_s27 = sphi %s1839_s27, %s3014_s27   ;;  %s1778_s26 = sphi %s1837_s26, %s3013_s26   ;;  %s1774_s25 = sphi %s1835_s25, %s3012_s25   ;;  %s1770_s24 = sphi %s1833_s24, %s3011_s24   ;;  %s1766_s23 = sphi %s1831_s23, %s3010_s23   ;;  %s1762_s22 = sphi %s1829_s22, %s3009_s22   ;;  %s1758_s21 = sphi %s1827_s21, %s3008_s21  }
   0x6   : > { %p26_p0 = scmp.ge.s32.totalorder %s25_s30, 4  ;;  %s1535_s8 = sshll.u32 %s1786_s28, 3 }
   0x7   : > { %s1536_s9 = sshll.u32 %s1782_s27, 1  ;;  %s41_s11 = sadd.s32 1, %s1770_s24 }
   0x8   : > { %s3017_s30 = smov (%p26_p0, %s25_s30), 0  ;;  %s3019_s7 = smov (!%p26_p0, %s28_s7), %s1786_s28 }
   0x9   : > { %2937 = sst [smem:[#allocation6_spill]] %s3017_s30  ;;  %s1879_s10 = sadd.s32 %s1536_s9, %s1535_s8 }
   0xa   : > { %p30_p1 = scmp.ge.s32.totalorder %s3019_s7, 2  ;;  %p48_p2 = scmp.ne.s32.totalorder %s1770_s24, %s1766_s23 }
   0xb   : > { %s1538_s12 = sshll.u32 %s3017_s30, 1  ;;  %p49_p3 = scmp.eq.s32.totalorder %s1790_s29, 0 }
   0xc   : > { %s3021_s7 = smov (%p30_p1, %s3019_s7), 0  ;;  %s99_s14 = sadd.s32 1, %s1879_s10 }
   0xd   : > { %p1890_p4 = por %p49_p3, %p48_p2  ;;  %s1537_s15 = sshll.u32 %s3021_s7, 3 }
   0xe   : > { %p114_p5 = scmp.ne.s32.totalorder %s1762_s22, %s1758_s21  ;;  %s37_s16 = sadd.s32 %s1538_s12, %s1537_s15 }
   0xf   : > { %s107_s17 = sadd.s32 1, %s1762_s22  ;;  %s38_s18 = ssub.s32 %s1879_s10, %s37_s16 }
  0x10   : > { %s103_s19 = sadd.s32 1, %s37_s16  ;;  %p39_p6 = scmp.eq.s32.totalorder %s38_s18, 0 }
  0x11   : > { %s104_s20 = ssub.s32 %s99_s14, %s103_s19  ;;  %p1902_p8 = por %p114_p5, %p49_p3 }
  0x12   : > { %p105_p7 = scmp.eq.s32.totalorder %s104_s20, 0  ;;  %p1554_p9 = scmp.ge.s32.totalorder %s1790_s29, 8 }
  0x13   : > { %s1907_s9 = scalar_select %p39_p6, %s1770_s24, %s41_s11  }
  0x14   : > { %s1910_s30 = scalar_select %p105_p7, %s1762_s22, %s107_s17  }
  0x15   : > { %252 = sbr.rel (%p1554_p9) target bundleno = 58 (0x3a), region = 24 }
  0x1a   : > { %255 = sbr.rel (!%p1890_p4) target bundleno = 34 (0x22), region = 28  ;;  %s257_s12 = sand.u32 (%p1890_p4), 1, %s1770_s24  }
  0x1b   : > { %s1612_s14 = sshll.u32 (%p1890_p4), %s1879_s10, 6  ;;  %s1555_s15 = sshll.u32 (%p1890_p4), %s257_s12, 5 }
  0x1c   : > { %s265_s19 = scalar_lea.vmem (%p1890_p4), %s2925_s0, %s1612_s14  ;;  %s259_s11 = scalar_lea.vmem (%p1890_p4), [#allocation2], %s1555_s15 }
  0x1d   : > { %v300_v0 = vld [vmem:[%s265_s19] sm:$0xff] (%p1890_p4)  ;;  %v302_v1 = vld [vmem:[%s265_s19 + $0x10] sm:$0xff] (%p1890_p4) }
  0x1e   : > { %v304_v2 = vld [vmem:[%s265_s19 + $0x20] sm:$0xff] (%p1890_p4)  ;;  %301 = vst [vmem:[%s259_s11] sm:$0xff] (%p1890_p4), %v300_v0  ;;  %v306_v3 = vld [vmem:[%s265_s19 + $0x30] sm:$0xff] (%p1890_p4) }
  0x1f   : > { %303 = vst [vmem:[%s259_s11 + $0x8] sm:$0xff] %v302_v1 }
  0x20   : > { %305 = vst [vmem:[%s259_s11 + $0x10] sm:$0xff] %v304_v2 }
  0x21   : > { %307 = vst [vmem:[%s259_s11 + $0x18] sm:$0xff] %v306_v3 }
  0x22 PF: > { %313 = sbr.rel (!%p1890_p4) target bundleno = 42 (0x2a), region = 66  ;;  %s315_s17 = sand.u32 (%p1890_p4), 1, %s1770_s24  }
  0x23   : > { %s1613_s20 = sshll.u32 (%p1890_p4), %s1879_s10, 6  ;;  %s1560_s12 = sshll.u32 (%p1890_p4), %s315_s17, 5 }
  0x24   : > { %s1424_s18 = scalar_lea.vmem (%p1890_p4), %s2926_s1, %s1613_s20  ;;  %s317_s15 = scalar_lea.vmem (%p1890_p4), [#allocation3], %s1560_s12 }
  0x25   : > { %v1565_v4 = vld [vmem:[%s1424_s18 + $0x8] sm:$0xff] (%p1890_p4)  ;;  %v1566_v5 = vld [vmem:[%s1424_s18 + $0x18] sm:$0xff] (%p1890_p4) }
  0x26   : > { %v1567_v6 = vld [vmem:[%s1424_s18 + $0x28] sm:$0xff] (%p1890_p4)  ;;  %360 = vst [vmem:[%s317_s15] sm:$0xff] (%p1890_p4), %v1565_v4  ;;  %v1568_v7 = vld [vmem:[%s1424_s18 + $0x38] sm:$0xff] (%p1890_p4) }
  0x27   : > { %362 = vst [vmem:[%s317_s15 + $0x8] sm:$0xff] %v1566_v5 }
  0x28   : > { %364 = vst [vmem:[%s317_s15 + $0x10] sm:$0xff] %v1567_v6 }
  0x29   : > { %366 = vst [vmem:[%s317_s15 + $0x18] sm:$0xff] %v1568_v7 }
  0x2a PF: > { %372 = sbr.rel (!%p1902_p8) target bundleno = 50 (0x32), region = 104  ;;  %s374_s13 = sand.u32 (%p1902_p8), 1, %s1762_s22  }
  0x2b   : > { %s1572_s19 = sshll.u32 (%p1902_p8), %s1879_s10, 6  ;;  %s1569_s11 = sshll.u32 (%p1902_p8), %s374_s13, 5 }
  0x2c   : > { %s1432_s16 = scalar_lea.vmem (%p1902_p8), %s2927_s2, %s1572_s19  ;;  %s376_s12 = scalar_lea.vmem (%p1902_p8), [#allocation4], %s1569_s11 }
  0x2d   : > { %v1573_v8 = vld [vmem:[%s1432_s16 + $0x40] sm:$0xff] (%p1902_p8)  ;;  %v1574_v9 = vld [vmem:[%s1432_s16 + $0x50] sm:$0xff] (%p1902_p8) }
  0x2e   : > { %v1575_v10 = vld [vmem:[%s1432_s16 + $0x60] sm:$0xff] (%p1902_p8)  ;;  %419 = vst [vmem:[%s376_s12] sm:$0xff] (%p1902_p8), %v1573_v8  ;;  %v1576_v11 = vld [vmem:[%s1432_s16 + $0x70] sm:$0xff] (%p1902_p8) }
  0x2f   : > { %421 = vst [vmem:[%s376_s12 + $0x8] sm:$0xff] %v1574_v9 }
  0x30   : > { %423 = vst [vmem:[%s376_s12 + $0x10] sm:$0xff] %v1575_v10 }
  0x31   : > { %425 = vst [vmem:[%s376_s12 + $0x18] sm:$0xff] %v1576_v11 }
  0x32 PF: > { %431 = sbr.rel (!%p1902_p8) target bundleno = 58 (0x3a), region = 142  ;;  %s433_s14 = sand.u32 (%p1902_p8), 1, %s1762_s22  }
  0x33   : > { %s1614_s18 = sshll.u32 (%p1902_p8), %s1879_s10, 6  ;;  %s1577_s15 = sshll.u32 (%p1902_p8), %s433_s14, 5 }
  0x34   : > { %s1441_s17 = scalar_lea.vmem (%p1902_p8), %s2928_s3, %s1614_s18  ;;  %s435_s11 = scalar_lea.vmem (%p1902_p8), [#allocation5], %s1577_s15 }
  0x35   : > { %v1582_v12 = vld [vmem:[%s1441_s17 + $0x48] sm:$0xff] (%p1902_p8)  ;;  %v1583_v13 = vld [vmem:[%s1441_s17 + $0x58] sm:$0xff] (%p1902_p8) }
  0x36   : > { %v1584_v14 = vld [vmem:[%s1441_s17 + $0x68] sm:$0xff] (%p1902_p8)  ;;  %479 = vst [vmem:[%s435_s11] sm:$0xff] (%p1902_p8), %v1582_v12  ;;  %v1585_v15 = vld [vmem:[%s1441_s17 + $0x78] sm:$0xff] (%p1902_p8) }
  0x37   : > { %481 = vst [vmem:[%s435_s11 + $0x8] sm:$0xff] %v1583_v13 }
  0x38   : > { %483 = vst [vmem:[%s435_s11 + $0x10] sm:$0xff] %v1584_v14 }
  0x39   : > { %485 = vst [vmem:[%s435_s11 + $0x18] sm:$0xff] %v1585_v15 }
  0x3a PF: > { %p1586_p10 = scmp.ge.s32.totalorder %s1790_s29, 1  ;;  %p490_p11 = scmp.lt.s32.totalorder %s1790_s29, 9 }
  0x3c   : > { %p491_p12 = pnand %p1586_p10, %p490_p11 }
  0x3e   : > { %494 = sbr.rel (%p491_p12) target bundleno = 275 (0x113), region = 180 }
  0x43   : > { %s497_s10 = sand.u32 1, %s1766_s23   ;;  %v588_v16 = vld [vmem:[%s2929_s4] sm:$0x3]  ;;  %vm593_vm0 = vcmask 1043456   ;;  %s511_s15 = sand.u32 1, %s1758_s21  }
  0x44   : > { %s1947_s16 = sshll.u32 %s497_s10, 5  ;;  %v590_v17 = vperm.slane %v588_v16, 0  ;;  %v591_v18 = vperm.slane %v588_v16, 1  ;;  %v600_v19 = vld [vmem:[%s2930_s5] sm:$0x3]  ;;  %s2150_s21 = sshll.u32 %s511_s15, 5 }
  0x45   : > { %v603_v20 = vperm.slane %v600_v19, 1  ;;  %s499_s18 = scalar_lea.vmem [#allocation2], %s1947_s16  ;;  %v602_v25 = vperm.slane %v600_v19, 0  ;;  %s2011_s23 = scalar_lea.vmem [#allocation3], %s1947_s16 }
  0x46   : > { %v584_v21 = vld [vmem:[%s499_s18] sm:$0xff]  ;;  %v585_v22 = vld [vmem:[%s499_s18 + $0x8] sm:$0xff]  ;;  %v586_v23 = vld [vmem:[%s499_s18 + $0x10] sm:$0xff]  ;;  %v592_v24 = vrot.slane %v591_v18, 4  ;;  %s2195_s13 = scalar_lea.vmem [#allocation4], %s2150_s21  ;;  %s2502_s19 = scalar_lea.vmem [#allocation5], %s2150_s21 }
  0x47   : > { %v587_v26 = vld [vmem:[%s499_s18 + $0x18] sm:$0xff]  ;;  %v604_v27 = vrot.slane %v603_v20, 4  ;;  %v787_v1 = vld [vmem:[%s2011_s23] sm:$0xff]  ;;  %s1591_s17 = sshll.u32 %s1778_s26, 2 }
  0x48   : > { %v1953_v28 = vsel %vm593_vm0, %v590_v17, %v592_v24  ;;  %s2800_s26 = sadd.s32 %s1774_s25, %s1591_s17 }
  0x49   : > { %v596_v29 = vmul.f32 %v1953_v28, %v584_v21  ;;  %v597_v30 = vmul.f32 %v1953_v28, %v585_v22  ;;  %v598_v31 = vmul.f32 %v1953_v28, %v586_v23  ;;  %v599_v32 = vmul.f32 %v1953_v28, %v587_v26  ;;  %v788_v21 = vld [vmem:[%s2011_s23 + $0x8] sm:$0xff]  ;;  %p577_p13 = scmp.lt.s32.totalorder %s2800_s26, 7 }
  0x4a   : > { %v1959_v33 = vsel %vm593_vm0, %v602_v25, %v604_v27  ;;  %v791_v10 = vmul.f32 %v787_v1, %v1953_v28 }
  0x4b   : > { %v1962_v34 = vadd.f32 %v1959_v33, %v596_v29  ;;  %v1965_v35 = vadd.f32 %v1959_v33, %v597_v30  ;;  %v1968_v36 = vadd.f32 %v1959_v33, %v598_v31  ;;  %v1971_v37 = vadd.f32 %v1959_v33, %v599_v32  ;;  %s3023_s26 = smov (!%p577_p13, %s2800_s26), 7 }
  0x4c   : > { %v2024_v19 = vadd.f32 %v791_v10, %v1959_v33  ;;  %v792_v30 = vmul.f32 %v788_v21, %v1953_v28  ;;  %s1615_s25 = sshll.u32 %s3023_s26, 4 }
  0x4d   : > { %2940 = vst [vmem:[#allocation7_spill] sm:$0xff] %v1971_v37  ;;  %v1974_v38 = vmul.f32 0.70710677, %v1962_v34  ;;  %v1977_v39 = vmul.f32 0.70710677, %v1965_v35  ;;  %s2877_s8 = scalar_lea.vmem %s2931_s6, %s1615_s25 }
  0x4e   : > { %v1980_v40 = vmul.f32 0.70710677, %v1968_v36  ;;  %v1989_v44 = vmul.f32 0.70710677, %v1971_v37  ;;  %v2034_v31 = vmul.f32 0.70710677, %v2024_v19 }
  0x4f   : > { %v619_v41 = vmul.f32 %v1974_v38, %v1974_v38  ;;  %v659_v42 = vmul.f32 %v1977_v39, %v1977_v39 }
  0x50   : > { %v699_v43 = vmul.f32 %v1980_v40, %v1980_v40  ;;  %v739_v52 = vmul.f32 %v1989_v44, %v1989_v44 }
  0x51   : > { %v1991_v45 = vmin.f32 %v619_v41, 16.0  ;;  %v1993_v46 = vmin.f32 %v659_v42, 16.0 }
  0x52   : > { %v1995_v47 = vmin.f32 %v699_v43, 16.0  ;;  %v2008_v62 = vmin.f32 %v739_v52, 16.0  ;;  %v2040_v52 = vadd.f32 %v792_v30, %v1959_v33 }
  0x53   : > { %v621_v48 = vmul.f32 2.1237322e-06, %v1991_v45  ;;  %v632_v49 = vmul.f32 3.8918573e-05, %v1991_v45  ;;  %v672_v50 = vmul.f32 3.8918573e-05, %v1993_v46 }
  0x54   : > { %v712_v51 = vmul.f32 3.8918573e-05, %v1995_v47  ;;  %v661_v54 = vmul.f32 2.1237322e-06, %v1993_v46  ;;  %v701_v56 = vmul.f32 2.1237322e-06, %v1995_v47 }
  0x55   : > { %v633_v53 = vadd.f32 0.001143296, %v632_v49  ;;  %v673_v55 = vadd.f32 0.001143296, %v672_v50  ;;  %v622_v58 = vadd.f32 0.00028619796, %v621_v48 }
  0x56   : > { %v713_v57 = vadd.f32 0.001143296, %v712_v51  ;;  %v662_v0 = vadd.f32 0.00028619796, %v661_v54  ;;  %v702_v3 = vadd.f32 0.00028619796, %v701_v56 }
  0x57   : > { %v634_v59 = vmul.f32 %v633_v53, %v1991_v45  ;;  %v674_v60 = vmul.f32 %v673_v55, %v1993_v46  ;;  %v623_v5 = vmul.f32 %v622_v58, %v1991_v45  ;;  %v752_v9 = vmul.f32 3.8918573e-05, %v2008_v62  ;;  %v789_v58 = vld [vmem:[%s2011_s23 + $0x10] sm:$0xff] }
  0x58   : > { %v714_v61 = vmul.f32 %v713_v57, %v1995_v47  ;;  %v663_v12 = vmul.f32 %v662_v0, %v1993_v46  ;;  %v703_v13 = vmul.f32 %v702_v3, %v1995_v47  ;;  %v741_v24 = vmul.f32 2.1237322e-06, %v2008_v62 }
  0x59   : > { %v635_v63 = vadd.f32 0.014752088, %v634_v59  ;;  %v675_v2 = vadd.f32 0.014752088, %v674_v60  ;;  %v624_v14 = vadd.f32 0.0036580483, %v623_v5  ;;  %v807_v53 = vmul.f32 %v2034_v31, %v2034_v31 }
  0x5a   : > { %v715_v4 = vadd.f32 0.014752088, %v714_v61  ;;  %v753_v18 = vadd.f32 0.001143296, %v752_v9  ;;  %v664_v20 = vadd.f32 0.0036580483, %v663_v12  ;;  %v793_v3 = vmul.f32 %v789_v58, %v1953_v28 }
  0x5b   : > { %v636_v6 = vmul.f32 %v635_v63, %v1991_v45  ;;  %v676_v7 = vmul.f32 %v675_v2, %v1993_v46  ;;  %v704_v23 = vadd.f32 0.0036580483, %v703_v13  ;;  %v625_v25 = vmul.f32 %v624_v14, %v1991_v45 }
  0x5c   : > { %v716_v8 = vmul.f32 %v715_v4, %v1995_v47  ;;  %v754_v29 = vmul.f32 %v753_v18, %v2008_v62  ;;  %v665_v32 = vmul.f32 %v664_v20, %v1993_v46  ;;  %v742_v43 = vadd.f32 0.00028619796, %v741_v24 }
  0x5d   : > { %v637_v11 = vadd.f32 0.112945676, %v636_v6  ;;  %v677_v16 = vadd.f32 0.112945676, %v676_v7  ;;  %v705_v42 = vmul.f32 %v704_v23, %v1995_v47  ;;  %v626_v48 = vadd.f32 0.05243302, %v625_v25 }
  0x5e   : > { %v717_v17 = vadd.f32 0.112945676, %v716_v8  ;;  %v755_v51 = vadd.f32 0.014752088, %v754_v29  ;;  %v666_v54 = vadd.f32 0.05243302, %v665_v32  ;;  %v743_v57 = vmul.f32 %v742_v43, %v2008_v62 }
  0x5f   : > { %v638_v15 = vmul.f32 %v637_v11, %v1991_v45  ;;  %v678_v26 = vmul.f32 %v677_v16, %v1993_v46  ;;  %v706_v56 = vadd.f32 0.05243302, %v705_v42  ;;  %v627_v59 = vmul.f32 %v626_v48, %v1991_v45  ;;  %v790_v6 = vld [vmem:[%s2011_s23 + $0x18] sm:$0xff] }
  0x60   : > { %v718_v27 = vmul.f32 %v717_v17, %v1995_v47  ;;  %v756_v63 = vmul.f32 %v755_v51, %v2008_v62  ;;  %v2053_v0 = vmul.f32 0.70710677, %v2040_v52  ;;  %v2055_v1 = vmin.f32 %v807_v53, 16.0 }
  0x61   : > { %v639_v22 = vadd.f32 0.4994258, %v638_v15  ;;  %v679_v49 = vadd.f32 0.4994258, %v678_v26  ;;  %v667_v2 = vmul.f32 %v666_v54, %v1993_v46  ;;  %v707_v4 = vmul.f32 %v706_v56, %v1995_v47 }
  0x62   : > { %v719_v50 = vadd.f32 0.4994258, %v718_v27  ;;  %v744_v5 = vadd.f32 0.0036580483, %v743_v57  ;;  %v628_v7 = vadd.f32 0.18741608, %v627_v59  ;;  %v847_v12 = vmul.f32 %v2053_v0, %v2053_v0 }
  0x63   : > { %v640_v41 = vmul.f32 %v639_v22, %v1991_v45  ;;  %v680_v60 = vmul.f32 %v679_v49, %v1993_v46  ;;  %v757_v10 = vadd.f32 0.112945676, %v756_v63  ;;  %v820_v11 = vmul.f32 3.8918573e-05, %v2055_v1 }
  0x64   : > { %v720_v61 = vmul.f32 %v719_v50, %v1995_v47  ;;  %v668_v13 = vadd.f32 0.18741608, %v667_v2  ;;  %v794_v14 = vmul.f32 %v790_v6, %v1953_v28  ;;  %v2071_v15 = vadd.f32 %v793_v3, %v1959_v33 }
  0x65   : > { %v2044_v55 = vadd.f32 1.0, %v640_v41  ;;  %v2062_v8 = vadd.f32 1.0, %v680_v60  ;;  %v708_v16 = vadd.f32 0.18741608, %v707_v4  ;;  %v745_v17 = vmul.f32 %v744_v5, %v2008_v62 }
  0x66   : > { %v2064_v9 = vadd.f32 1.0, %v720_v61  ;;  %v629_v18 = vmul.f32 %v628_v7, %v1991_v45  ;;  %v758_v21 = vmul.f32 %v757_v10, %v2008_v62  ;;  %v821_v22 = vadd.f32 0.001143296, %v820_v11 }
  0x67   : > { %1688 = vrcp.f32 %v2044_v55  ;;  %v2080_v23 = vmin.f32 %v847_v12, 16.0  ;;  %v2083_v24 = vmul.f32 0.5, %v1962_v34  ;;  %v669_v25 = vmul.f32 %v668_v13, %v1993_v46 }
  0x68   : > { %1690 = vrcp.f32 %v2062_v8  ;;  %v2087_v26 = vadd.f32 %v794_v14, %v1959_v33  ;;  %v2090_v45 = vmul.f32 0.70710677, %v2071_v15  ;;  %v709_v27 = vmul.f32 %v708_v16, %v1995_v47 }
  0x69   : > { %1692 = vrcp.f32 %v2064_v9  ;;  %v746_v29 = vadd.f32 0.05243302, %v745_v17  ;;  %v809_v30 = vmul.f32 2.1237322e-06, %v2055_v1  ;;  %v822_v32 = vmul.f32 %v821_v22, %v2055_v1 }
  0x6a   : > { %2941 = vst [vmem:[#allocation8_spill] sm:$0xff] %v2087_v26  ;;  %v2096_v41 = vmul.f32 0.5, %v1965_v35  ;;  %v630_v34 = vadd.f32 1.1283791, %v629_v18  ;;  %v849_v42 = vmul.f32 2.1237322e-06, %v2080_v23  ;;  %v887_v35 = vmul.f32 %v2090_v45, %v2090_v45 }
  0x6b   : > { %v759_v43 = vadd.f32 0.4994258, %v758_v21  ;;  %v823_v48 = vadd.f32 0.014752088, %v822_v32  ;;  %v860_v49 = vmul.f32 3.8918573e-05, %v2080_v23  ;;  %v747_v57 = vmul.f32 %v746_v29, %v2008_v62 }
  0x6c   : > { %v2105_v47 = vmul.f32 0.5, %v1968_v36  ;;  %v670_v51 = vadd.f32 1.1283791, %v669_v25  ;;  %v2108_v53 = vmul.f32 0.70710677, %v2087_v26  ;;  %v2117_v60 = vmul.f32 %v630_v34, %v1974_v38 }
  0x6d   : > { %v2076_v20 = vpop.eup %1688  ;;  %v710_v56 = vadd.f32 1.1283791, %v709_v27  ;;  %v810_v58 = vadd.f32 0.00028619796, %v809_v30  ;;  %v824_v59 = vmul.f32 %v823_v48, %v2055_v1  ;;  %v651_v61 = vand.u32 2147483647, %v2044_v55 }
  0x6e   : > { %v643_v46 = vmul.f32 %v2076_v20, %v2044_v55  ;;  %v2102_v50 = vpop.eup %1690  ;;  %v850_v63 = vadd.f32 0.00028619796, %v849_v42  ;;  %v760_v3 = vmul.f32 %v759_v43, %v2008_v62  ;;  %v861_v5 = vadd.f32 0.001143296, %v860_v49 }
  0x6f   : > { %v2112_v54 = vpop.eup %1692  ;;  %v683_v2 = vmul.f32 %v2102_v50, %v2062_v8  ;;  %v825_v4 = vadd.f32 0.112945676, %v824_v59  ;;  %vm647_vm1 = vweird.f32 %v2044_v55  ;;  %v653_v6 = vand.u32 2147483648, %v2044_v55 }
  0x70   : > { %v644_v36 = vsub.f32 1.0, %v643_v46  ;;  %v2126_v7 = vmul.f32 %v670_v51, %v1977_v39  ;;  %v723_v38 = vmul.f32 %v2112_v54, %v2064_v9  ;;  %vm687_vm2 = vweird.f32 %v2062_v8 }
  0x71   : > { %v691_v10 = vand.u32 2147483647, %v2062_v8  ;;  %v811_v11 = vmul.f32 %v810_v58, %v2055_v1  ;;  %v826_v12 = vmul.f32 %v825_v4, %v2055_v1  ;;  %v862_v13 = vmul.f32 %v861_v5, %v2080_v23 }
  0x72   : > { %v645_v14 = vmul.f32 %v2076_v20, %v644_v36  ;;  %vm2137_vm3 = vcmp.eq.f32.partialorder %v651_v61, 8.507059e+37  ;;  %v693_v39 = vand.u32 2147483648, %v2062_v8  ;;  %v2143_v17 = vmul.f32 %v710_v56, %v1980_v40 }
  0x73   : > { %v851_v18 = vmul.f32 %v850_v63, %v2080_v23  ;;  %v684_v21 = vsub.f32 1.0, %v683_v2  ;;  %v2146_v22 = vadd.f32 1.0, %v760_v3  ;;  %v863_v25 = vadd.f32 0.014752088, %v862_v13  ;;  %v979_v13 = vld [vmem:[%s2195_s13] sm:$0xff] }
  0x74   : > { %v2148_v27 = vmin.f32 %v887_v35, 16.0  ;;  %vm648_vm4 = vweird.f32 %v2076_v20  ;;  %v654_v29 = vor.u32 1.1754944e-38, %v653_v6  ;;  %v724_v30 = vsub.f32 1.0, %v723_v38 }
  0x75   : > { %v927_v32 = vmul.f32 %v2108_v53, %v2108_v53  ;;  %v731_v40 = vand.u32 2147483647, %v2064_v9  ;;  %v812_v34 = vadd.f32 0.0036580483, %v811_v11  ;;  %v827_v46 = vadd.f32 0.4994258, %v826_v12  ;;  %vm2161_vm6 = vmor %vm647_vm1, %vm648_vm4 }
  0x76   : > { %v864_v42 = vmul.f32 %v863_v25, %v2080_v23  ;;  %v646_v43 = vadd.f32 %v2076_v20, %v645_v14  ;;  %vm727_vm5 = vweird.f32 %v2064_v9  ;;  %v748_v48 = vadd.f32 0.18741608, %v747_v57 }
  0x77   : > { %v852_v49 = vadd.f32 0.0036580483, %v851_v18  ;;  %v685_v35 = vmul.f32 %v2102_v50, %v684_v21  ;;  %vm2166_vm7 = vcmp.eq.f32.partialorder %v691_v10, 8.507059e+37  ;;  %1694 = vrcp.f32 %v2146_v22 }
  0x78   : > { %v865_v58 = vadd.f32 0.112945676, %v864_v42  ;;  %v900_v59 = vmul.f32 3.8918573e-05, %v2148_v27  ;;  %v694_v36 = vor.u32 1.1754944e-38, %v693_v39  ;;  %v725_v57 = vmul.f32 %v2112_v54, %v724_v30 }
  0x79   : > { %v733_v55 = vand.u32 2147483648, %v2064_v9  ;;  %v2174_v61 = vmin.f32 %v927_v32, 16.0  ;;  %vm688_vm8 = vweird.f32 %v2102_v50  ;;  %vm2177_vm9 = vcmp.eq.f32.partialorder %v731_v40, 8.507059e+37 }
  0x7a   : > { %v813_v2 = vmul.f32 %v812_v34, %v2055_v1  ;;  %v828_v3 = vmul.f32 %v827_v46, %v2055_v1  ;;  %v650_v4 = vsel %vm2161_vm6, %v2076_v20, %v646_v43  ;;  %vm728_vm10 = vweird.f32 %v2112_v54  ;;  %vm2200_vm11 = vmor %vm687_vm2, %vm688_vm8 }
  0x7b   : > { %v853_v5 = vmul.f32 %v852_v49, %v2080_v23  ;;  %v866_v6 = vmul.f32 %v865_v58, %v2080_v23  ;;  %v686_v38 = vadd.f32 %v2102_v50, %v685_v35  ;;  %v749_v10 = vmul.f32 %v748_v48, %v2008_v62  ;;  %vm2215_vm12 = vmor %vm727_vm5, %vm728_vm10  ;;  %v980_v58 = vld [vmem:[%s2195_s13 + $0x8] sm:$0xff] }
  0x7c   : > { %v2192_v11 = vmul.f32 0.5, %v2024_v19  ;;  %v901_v12 = vadd.f32 0.001143296, %v900_v59  ;;  %v726_v14 = vadd.f32 %v2112_v54, %v725_v57  ;;  %v889_v18 = vmul.f32 2.1237322e-06, %v2148_v27 }
  0x7d   : > { %v867_v39 = vadd.f32 0.4994258, %v866_v6  ;;  %v940_v62 = vmul.f32 3.8918573e-05, %v2174_v61  ;;  %v2207_v19 = vpop.eup %1694  ;;  %v655_v21 = vsel %vm2137_vm3, %v654_v29, %v650_v4  ;;  %v814_v25 = vadd.f32 0.05243302, %v813_v2 }
  0x7e   : > { %v2219_v30 = vadd.f32 1.0, %v828_v3  ;;  %v902_v32 = vmul.f32 %v901_v12, %v2148_v27  ;;  %v854_v40 = vadd.f32 0.05243302, %v853_v5  ;;  %v983_v16 = vmul.f32 %v979_v13, %v1953_v28 }
  0x7f   : > { %v868_v34 = vmul.f32 %v867_v39, %v2080_v23  ;;  %v941_v46 = vadd.f32 0.001143296, %v940_v62  ;;  %v690_v9 = vsel %vm2200_vm11, %v2102_v50, %v686_v38  ;;  %v734_v29 = vor.u32 1.1754944e-38, %v733_v55 }
  0x80   : > { %v750_v42 = vadd.f32 1.1283791, %v749_v10  ;;  %v903_v43 = vadd.f32 0.014752088, %v902_v32  ;;  %v656_v48 = vmul.f32 %v655_v21, %v2117_v60  ;;  %v730_v49 = vsel %vm2215_vm12, %v2112_v54, %v726_v14 }
  0x81   : > { %v763_v51 = vmul.f32 %v2207_v19, %v2146_v22  ;;  %v890_v35 = vadd.f32 0.00028619796, %v889_v18  ;;  %v815_v59 = vmul.f32 %v814_v25, %v2055_v1  ;;  %1696 = vrcp.f32 %v2219_v30  ;;  %v981_v25 = vld [vmem:[%s2195_s13 + $0x10] sm:$0xff] }
  0x82   : > { %v904_v50 = vmul.f32 %v903_v43, %v2148_v27  ;;  %v942_v57 = vmul.f32 %v941_v46, %v2174_v61  ;;  %v695_v60 = vsel %vm2166_vm7, %v694_v36, %v690_v9  ;;  %v855_v55 = vmul.f32 %v854_v40, %v2080_v23 }
  0x83   : > { %v2241_v2 = vadd.f32 1.0, %v868_v34  ;;  %v2244_v54 = vadd.f32 %v983_v16, %v1959_v33  ;;  %v2247_v3 = vmul.f32 0.5, %v2040_v52  ;;  %v2250_v4 = vmul.f32 0.5, %v2071_v15 }
  0x84   : > { %v905_v5 = vadd.f32 0.112945676, %v904_v50  ;;  %v984_v6 = vmul.f32 %v980_v58, %v1953_v28  ;;  %v735_v56 = vsel %vm2177_vm9, %v734_v29, %v730_v49  ;;  %v2256_v36 = vmul.f32 %v750_v42, %v1989_v44 }
  0x85   : > { %v764_v38 = vsub.f32 1.0, %v763_v51  ;;  %v891_v10 = vmul.f32 %v890_v35, %v2148_v27  ;;  %v1594_v12 = vclamps-f32 %v656_v48, 1.0  ;;  %v696_v13 = vmul.f32 %v695_v60, %v2126_v7 }
  0x86   : > { %v816_v52 = vadd.f32 0.18741608, %v815_v59  ;;  %v943_v20 = vadd.f32 0.014752088, %v942_v57  ;;  %v856_v15 = vadd.f32 0.18741608, %v855_v55  ;;  %1698 = vrcp.f32 %v2241_v2 }
  0x87   : > { %v906_v14 = vmul.f32 %v905_v5, %v2148_v27  ;;  %v2263_v63 = vmul.f32 0.70710677, %v2244_v54  ;;  %v2265_v39 = vpop.eup %1696  ;;  %v736_v44 = vmul.f32 %v735_v56, %v2143_v17  ;;  %vm767_vm13 = vweird.f32 %v2146_v22 }
  0x88   : > { %v773_v18 = vand.u32 2147483648, %v2146_v22  ;;  %v2271_v7 = vadd.f32 %v984_v6, %v1959_v33  ;;  %v765_v62 = vmul.f32 %v2207_v19, %v764_v38  ;;  %vm768_vm14 = vweird.f32 %v2207_v19 }
  0x89   : > { %v892_v21 = vadd.f32 0.0036580483, %v891_v10  ;;  %v929_v8 = vmul.f32 2.1237322e-06, %v2174_v61  ;;  %v1595_v32 = vclamps-f32 %v696_v13, 1.0  ;;  %v779_v40 = vadd.f32 1.0, %v1594_v12  ;;  %vm2301_vm15 = vmor %vm767_vm13, %vm768_vm14 }
  0x8a   : > { %v817_v34 = vmul.f32 %v816_v52, %v2055_v1  ;;  %v944_v17 = vmul.f32 %v943_v20, %v2174_v61  ;;  %v831_v46 = vmul.f32 %v2265_v39, %v2219_v30  ;;  %v857_v16 = vmul.f32 %v856_v15, %v2080_v23 }
  0x8b   : > { %v907_v9 = vadd.f32 0.4994258, %v906_v14  ;;  %v999_v29 = vmul.f32 %v2263_v63, %v2263_v63  ;;  %v1596_v42 = vclamps-f32 %v736_v44, 1.0  ;;  %v771_v43 = vand.u32 2147483647, %v2146_v22 }
  0x8c   : > { %v985_v48 = vmul.f32 %v981_v25, %v1953_v28  ;;  %v2287_v49 = vmul.f32 0.70710677, %v2271_v7  ;;  %v2289_v1 = vpop.eup %1698  ;;  %v2292_v51 = vadd.f32 %v2207_v19, %v765_v62  ;;  %v2294_v35 = vor.u32 1.1754944e-38, %v773_v18 }
  0x8d   : > { %v893_v23 = vmul.f32 %v892_v21, %v2148_v27  ;;  %v930_v58 = vadd.f32 0.00028619796, %v929_v8  ;;  %v2305_v50 = vadd.f32 1.0, %v1595_v32  ;;  %v2308_v57 = vmul.f32 %v779_v40, %v2083_v24 }
  0x8e   : > { %v818_v60 = vadd.f32 1.1283791, %v817_v34  ;;  %v945_v55 = vadd.f32 0.112945676, %v944_v17  ;;  %v832_v5 = vsub.f32 1.0, %v831_v46  ;;  %v908_v56 = vmul.f32 %v907_v9, %v2148_v27 }
  0x8f   : > { %v858_v6 = vadd.f32 1.1283791, %v857_v16  ;;  %v2311_v38 = vmin.f32 %v999_v29, 16.0  ;;  %v2313_v10 = vadd.f32 1.0, %v1596_v42  ;;  %v871_v22 = vmul.f32 %v2289_v1, %v2241_v2 }
  0x90   : > { %v2318_v12 = vadd.f32 %v985_v48, %v1959_v33  ;;  %v1039_v24 = vmul.f32 %v2287_v49, %v2287_v49  ;;  %v770_v13 = vsel %vm2301_vm15, %v2207_v19, %v2292_v51  ;;  %v839_v52 = vand.u32 2147483647, %v2219_v30 }
  0x91   : > { %v894_v20 = vadd.f32 0.05243302, %v893_v23  ;;  %v931_v15 = vmul.f32 %v930_v58, %v2174_v61  ;;  %v2329_v14 = vmul.f32 %v818_v60, %v2034_v31  ;;  %vm835_vm0 = vweird.f32 %v2219_v30  ;;  %v982_v60 = vld [vmem:[%s2195_s13 + $0x18] sm:$0xff] }
  0x92   : > { %v841_v44 = vand.u32 2147483648, %v2219_v30  ;;  %v946_v18 = vmul.f32 %v945_v55, %v2174_v61  ;;  %v833_v62 = vmul.f32 %v2265_v39, %v832_v5  ;;  %v2336_v21 = vmul.f32 %v858_v6, %v2053_v0 }
  0x93   : > { %v2338_v8 = vadd.f32 1.0, %v908_v56  ;;  %v1012_v25 = vmul.f32 3.8918573e-05, %v2311_v38  ;;  %v872_v32 = vsub.f32 1.0, %v871_v22  ;;  %v2342_v40 = vmul.f32 0.70710677, %v2318_v12 }
  0x94   : > { %v1001_v31 = vmul.f32 2.1237322e-06, %v2311_v38  ;;  %v2345_v34 = vmin.f32 %v1039_v24, 16.0  ;;  %vm2347_vm1 = vcmp.eq.f32.partialorder %v839_v52, 8.507059e+37  ;;  %v895_v0 = vmul.f32 %v894_v20, %v2148_v27 }
  0x95   : > { %v932_v46 = vadd.f32 0.0036580483, %v931_v15  ;;  %v1013_v16 = vadd.f32 0.001143296, %v1012_v25  ;;  %vm836_vm2 = vweird.f32 %v2265_v39  ;;  %vm875_vm3 = vweird.f32 %v2241_v2 }
  0x96   : > { %v879_v9 = vand.u32 2147483647, %v2241_v2  ;;  %v947_v29 = vadd.f32 0.4994258, %v946_v18  ;;  %v834_v42 = vadd.f32 %v2265_v39, %v833_v62  ;;  %1700 = vrcp.f32 %v2338_v8  ;;  %vm2366_vm4 = vmor %vm835_vm0, %vm836_vm2 }
  0x97   : > { %v1014_v48 = vmul.f32 %v1013_v16, %v2311_v38  ;;  %v1041_v23 = vmul.f32 2.1237322e-06, %v2345_v34  ;;  %v873_v58 = vmul.f32 %v2289_v1, %v872_v32  ;;  %v1002_v55 = vadd.f32 0.00028619796, %v1001_v31 }
  0x98   : > { %v1052_v5 = vmul.f32 3.8918573e-05, %v2345_v34  ;;  %v1079_v6 = vmul.f32 %v2342_v40, %v2342_v40  ;;  %vm876_vm5 = vweird.f32 %v2289_v1  ;;  %v896_v22 = vadd.f32 0.18741608, %v895_v0 }
  0x99   : > { %v933_v24 = vmul.f32 %v932_v46, %v2174_v61  ;;  %v1015_v52 = vadd.f32 0.014752088, %v1014_v48  ;;  %vm2372_vm6 = vcmp.eq.f32.partialorder %v771_v43, 8.507059e+37  ;;  %v948_v15 = vmul.f32 %v947_v29, %v2174_v61  ;;  %vm2394_vm7 = vmor %vm875_vm3, %vm876_vm5 }
  0x9a   : > { %v1042_v18 = vadd.f32 0.00028619796, %v1041_v23  ;;  %v1053_v62 = vadd.f32 0.001143296, %v1052_v5  ;;  %v2377_v25 = vmin.f32 %v1079_v6, 16.0  ;;  %v842_v30 = vor.u32 1.1754944e-38, %v841_v44 }
  0x9b   : > { %v881_v32 = vand.u32 2147483648, %v2241_v2  ;;  %v986_v31 = vmul.f32 %v982_v60, %v1953_v28  ;;  %v1016_v0 = vmul.f32 %v1015_v52, %v2311_v38  ;;  %v838_v43 = vsel %vm2366_vm4, %v2265_v39, %v834_v42 }
  0x9c   : > { %v874_v46 = vadd.f32 %v2289_v1, %v873_v58  ;;  %v1003_v16 = vmul.f32 %v1002_v55, %v2311_v38  ;;  %v1054_v29 = vmul.f32 %v1053_v62, %v2345_v34  ;;  %v2388_v48 = vpop.eup %1700  ;;  %vm2398_vm8 = vcmp.eq.f32.partialorder %v879_v9, 8.507059e+37 }
  0x9d   : > { %v897_v39 = vmul.f32 %v896_v22, %v2148_v27  ;;  %v934_v42 = vadd.f32 0.05243302, %v933_v24  ;;  %v1017_v58 = vadd.f32 0.112945676, %v1016_v0  ;;  %v2403_v60 = vadd.f32 1.0, %v948_v15 }
  0x9e   : > { %v1043_v55 = vmul.f32 %v1042_v18, %v2345_v34  ;;  %v1055_v5 = vadd.f32 0.014752088, %v1054_v29  ;;  %v1092_v6 = vmul.f32 3.8918573e-05, %v2377_v25  ;;  %v843_v2 = vsel %vm2347_vm1, %v842_v30, %v838_v43 }
  0x9f   : > { %v882_v56 = vor.u32 1.1754944e-38, %v881_v32  ;;  %v2410_v9 = vadd.f32 %v986_v31, %v1959_v33  ;;  %v1018_v52 = vmul.f32 %v1017_v58, %v2311_v38  ;;  %v878_v27 = vsel %vm2394_vm7, %v2289_v1, %v874_v46 }
  0xa0   : > { %v911_v22 = vmul.f32 %v2388_v48, %v2338_v8  ;;  %v1004_v24 = vadd.f32 0.0036580483, %v1003_v16  ;;  %v1056_v15 = vmul.f32 %v1055_v5, %v2345_v34  ;;  %v898_v18 = vadd.f32 1.1283791, %v897_v39 }
  0xa1   : > { %2966 = vst [vmem:[#allocation9_spill] sm:$0xff] %v2410_v9  ;;  %v935_v17 = vmul.f32 %v934_v42, %v2174_v61  ;;  %v1019_v62 = vadd.f32 0.4994258, %v1018_v52  ;;  %v1093_v30 = vadd.f32 0.001143296, %v1092_v6  ;;  %v844_v32 = vmul.f32 %v843_v2, %v2329_v14 }
  0xa2   : > { %1702 = vrcp.f32 %v2403_v60  ;;  %v1044_v31 = vadd.f32 0.0036580483, %v1043_v55  ;;  %v1057_v0 = vadd.f32 0.112945676, %v1056_v15  ;;  %v883_v1 = vsel %vm2398_vm8, %v882_v56, %v878_v27 }
  0xa3   : > { %v1020_v43 = vmul.f32 %v1019_v62, %v2311_v38  ;;  %v1081_v46 = vmul.f32 2.1237322e-06, %v2377_v25  ;;  %v1094_v16 = vmul.f32 %v1093_v30, %v2377_v25  ;;  %v912_v29 = vsub.f32 1.0, %v911_v22 }
  0xa4   : > { %v2428_v44 = vmul.f32 0.70710677, %v2410_v9  ;;  %v1005_v39 = vmul.f32 %v1004_v24, %v2311_v38  ;;  %v1058_v14 = vmul.f32 %v1057_v0, %v2345_v34  ;;  %v2440_v23 = vsel %vm2372_vm6, %v2294_v35, %v770_v13 }
  0xa5   : > { %v2444_v42 = vmul.f32 %v2305_v50, %v2096_v41  ;;  %v2448_v58 = vmul.f32 %v2313_v10, %v2105_v47  ;;  %v936_v55 = vadd.f32 0.18741608, %v935_v17  ;;  %v884_v5 = vmul.f32 %v883_v1, %v2336_v21 }
  0xa6   : > { %v1045_v59 = vmul.f32 %v1044_v31, %v2345_v34  ;;  %v1059_v6 = vadd.f32 0.4994258, %v1058_v14  ;;  %v1095_v19 = vadd.f32 0.014752088, %v1094_v16  ;;  %v1598_v51 = vclamps-f32 %v844_v32, 1.0 }
  0xa7   : > { %v2453_v20 = vmul.f32 %v898_v18, %v2090_v45  ;;  %v2455_v35 = vadd.f32 1.0, %v1020_v43  ;;  %v1082_v13 = vadd.f32 0.00028619796, %v1081_v46  ;;  %v913_v50 = vmul.f32 %v2388_v48, %v912_v29 }
  0xa8   : > { %v2457_v41 = vpop.eup %1702  ;;  %v1006_v47 = vadd.f32 0.05243302, %v1005_v39  ;;  %v1060_v10 = vmul.f32 %v1059_v6, %v2345_v34  ;;  %v1119_v21 = vmul.f32 %v2428_v44, %v2428_v44  ;;  %vm915_vm9 = vweird.f32 %v2338_v8  ;;  %v1168_v39 = vld [vmem:[%s2502_s19 + $0x8] sm:$0xff] }
  0xa9   : > { %v919_v2 = vand.u32 2147483647, %v2338_v8  ;;  %v937_v45 = vmul.f32 %v936_v55, %v2174_v61  ;;  %v1096_v56 = vmul.f32 %v1095_v19, %v2377_v25  ;;  %v1599_v52 = vclamps-f32 %v884_v5, 1.0 }
  0xaa   : > { %vm916_vm10 = vweird.f32 %v2388_v48  ;;  %v921_v27 = vand.u32 2147483648, %v2338_v8  ;;  %v1046_v22 = vadd.f32 0.05243302, %v1045_v59  ;;  %v951_v24 = vmul.f32 %v2457_v41, %v2403_v60 }
  0xab   : > { %1704 = vrcp.f32 %v2455_v35  ;;  %v1083_v15 = vmul.f32 %v1082_v13, %v2377_v25  ;;  %v1097_v18 = vadd.f32 0.112945676, %v1096_v56  ;;  %v914_v17 = vadd.f32 %v2388_v48, %v913_v50  ;;  %vm2481_vm11 = vmor %vm915_vm9, %vm916_vm10 }
  0xac   : > { %v1007_v61 = vmul.f32 %v1006_v47, %v2311_v38  ;;  %v2475_v62 = vadd.f32 1.0, %v1060_v10  ;;  %v2477_v30 = vmin.f32 %v1119_v21, 16.0  ;;  %v967_v31 = vadd.f32 1.0, %v1598_v51 }
  0xad   : > { %v2486_v0 = vmul.f32 0.5, %v2244_v54  ;;  %v2489_v1 = vmul.f32 0.5, %v2271_v7  ;;  %v2492_v43 = vmul.f32 0.5, %v2318_v12  ;;  %vm2494_vm12 = vcmp.eq.f32.partialorder %v919_v2, 8.507059e+37  ;;  %v1167_v54 = vld [vmem:[%s2502_s19] sm:$0xff] }
  0xae   : > { %v922_v16 = vor.u32 1.1754944e-38, %v921_v27  ;;  %v2498_v8 = vadd.f32 1.1283791, %v937_v45  ;;  %v1047_v29 = vmul.f32 %v1046_v22, %v2345_v34  ;;  %v952_v7 = vsub.f32 1.0, %v951_v24 }
  0xaf   : > { %v968_v14 = vadd.f32 1.0, %v1599_v52  ;;  %v1084_v55 = vadd.f32 0.0036580483, %v1083_v15  ;;  %v1098_v12 = vmul.f32 %v1097_v18, %v2377_v25  ;;  %v918_v5 = vsel %vm2481_vm11, %v2388_v48, %v914_v17  ;;  %v1169_v52 = vld [vmem:[%s2502_s19 + $0x10] sm:$0xff] }
  0xb0   : > { %v1008_v59 = vadd.f32 0.18741608, %v1007_v61  ;;  %1706 = vrcp.f32 %v2475_v62  ;;  %v1132_v6 = vmul.f32 3.8918573e-05, %v2477_v30  ;;  %v961_v51 = vand.u32 2147483648, %v2403_v60 }
  0xb1   : > { %v2512_v19 = vpop.eup %1704  ;;  %v2516_v13 = vmul.f32 %v967_v31, %v2192_v11  ;;  %v1171_v50 = vmul.f32 %v1167_v54, %v1953_v28  ;;  %v1172_v47 = vmul.f32 %v1168_v39, %v1953_v28  ;;  %vm955_vm13 = vweird.f32 %v2403_v60 }
  0xb2   : > { %v1048_v10 = vadd.f32 0.18741608, %v1047_v29  ;;  %v1133_v21 = vadd.f32 0.001143296, %v1132_v6  ;;  %v923_v2 = vsel %vm2494_vm12, %v922_v16, %v918_v5  ;;  %v2525_v45 = vmul.f32 %v968_v14, %v2247_v3 }
  0xb3   : > { %v1085_v56 = vmul.f32 %v1084_v55, %v2377_v25  ;;  %v1099_v11 = vadd.f32 0.4994258, %v1098_v12  ;;  %v953_v27 = vmul.f32 %v2457_v41, %v952_v7  ;;  %v1009_v22 = vmul.f32 %v1008_v59, %v2311_v38 }
  0xb4   : > { %v1023_v24 = vmul.f32 %v2512_v19, %v2455_v35  ;;  %v1134_v15 = vmul.f32 %v1133_v21, %v2477_v30  ;;  %v2534_v18 = vor.u32 1.1754944e-38, %v961_v51  ;;  %v2539_v3 = vadd.f32 %v1171_v50, %v1959_v33 }
  0xb5   : > { %v2542_v61 = vadd.f32 %v1172_v47, %v1959_v33  ;;  %v2547_v38 = vmul.f32 %v923_v2, %v2453_v20  ;;  %vm956_vm14 = vweird.f32 %v2457_v41  ;;  %v1049_v31 = vmul.f32 %v1048_v10, %v2345_v34 }
  0xb6   : > { %v2544_v32 = vpop.eup %1706  ;;  %v1173_v46 = vmul.f32 %v1169_v52, %v1953_v28  ;;  %v1086_v16 = vadd.f32 0.05243302, %v1085_v56  ;;  %v1100_v29 = vmul.f32 %v1099_v11, %v2377_v25  ;;  %v1121_v54 = vmul.f32 2.1237322e-06, %v2477_v30  ;;  %vm2561_vm15 = vmor %vm955_vm13, %vm956_vm14  ;;  %v1170_v52 = vld [vmem:[%s2502_s19 + $0x18] sm:$0xff] }
  0xb7   : > { %v1135_v39 = vadd.f32 0.014752088, %v1134_v15  ;;  %v2555_v7 = vadd.f32 %v2457_v41, %v953_v27  ;;  %v1010_v20 = vadd.f32 1.1283791, %v1009_v22  ;;  %v1024_v55 = vsub.f32 1.0, %v1023_v24 }
  0xb8   : > { %v1063_v12 = vmul.f32 %v2544_v32, %v2475_v62  ;;  %v2569_v59 = vmul.f32 0.70710677, %v2539_v3  ;;  %v2572_v6 = vmul.f32 0.70710677, %v2542_v61  ;;  %v1031_v51 = vand.u32 2147483647, %v2455_v35 }
  0xb9   : > { %v1136_v5 = vmul.f32 %v1135_v39, %v2477_v30  ;;  %v1033_v50 = vand.u32 2147483648, %v2455_v35  ;;  %v1050_v47 = vadd.f32 1.1283791, %v1049_v31  ;;  %v2577_v10 = vadd.f32 %v1173_v46, %v1959_v33 }
  0xba   : > { %v1087_v2 = vmul.f32 %v1086_v16, %v2377_v25  ;;  %v2581_v56 = vadd.f32 1.0, %v1100_v29  ;;  %v1122_v11 = vadd.f32 0.00028619796, %v1121_v54  ;;  %v1187_v24 = vmul.f32 %v2569_v59, %v2569_v59 }
  0xbb   : > { %v1137_v22 = vadd.f32 0.112945676, %v1136_v5  ;;  %v1227_v15 = vmul.f32 %v2572_v6, %v2572_v6  ;;  %v2593_v31 = vmul.f32 %v1010_v20, %v2263_v63  ;;  %v1025_v46 = vmul.f32 %v2512_v19, %v1024_v55 }
  0xbc   : > { %vm1027_vm0 = vweird.f32 %v2455_v35  ;;  %v1064_v16 = vsub.f32 1.0, %v1063_v12  ;;  %vm2597_vm1 = vcmp.eq.f32.partialorder %v1031_v51, 8.507059e+37  ;;  %v1034_v54 = vor.u32 1.1754944e-38, %v1033_v50 }
  0xbd   : > { %v2602_v39 = vmul.f32 %v1050_v47, %v2287_v49  ;;  %v1174_v5 = vmul.f32 %v1170_v52, %v1953_v28  ;;  %v2606_v14 = vmul.f32 0.70710677, %v2577_v10  ;;  %vm1028_vm2 = vweird.f32 %v2512_v19 }
  0xbe   : > { %v1088_v63 = vadd.f32 0.18741608, %v1087_v2  ;;  %1708 = vrcp.f32 %v2581_v56  ;;  %v1123_v20 = vmul.f32 %v1122_v11, %v2477_v30  ;;  %vm1067_vm3 = vweird.f32 %v2475_v62  ;;  %vm2623_vm4 = vmor %vm1027_vm0, %vm1028_vm2 }
  0xbf   : > { %v1138_v55 = vmul.f32 %v1137_v22, %v2477_v30  ;;  %v2613_v12 = vmin.f32 %v1187_v24, 16.0  ;;  %v2615_v49 = vmin.f32 %v1227_v15, 16.0  ;;  %v1026_v28 = vadd.f32 %v2512_v19, %v1025_v46 }
  0xc0   : > { %v1065_v51 = vmul.f32 %v2544_v32, %v1064_v16  ;;  %v1071_v50 = vand.u32 2147483647, %v2475_v62  ;;  %v1073_v47 = vand.u32 2147483648, %v2475_v62  ;;  %v2628_v11 = vadd.f32 %v1174_v5, %v1959_v33 }
  0xc1   : > { %v1189_v52 = vmul.f32 2.1237322e-06, %v2613_v12  ;;  %v1200_v22 = vmul.f32 3.8918573e-05, %v2613_v12  ;;  %v1267_v24 = vmul.f32 %v2606_v14, %v2606_v14  ;;  %v1089_v15 = vmul.f32 %v1088_v63, %v2377_v25 }
  0xc2   : > { %2977 = vst [vmem:[#allocation10_spill] sm:$0xff] %v2628_v11  ;;  %v1124_v46 = vadd.f32 0.0036580483, %v1123_v20  ;;  %v1229_v16 = vmul.f32 2.1237322e-06, %v2615_v49  ;;  %vm1068_vm5 = vweird.f32 %v2544_v32  ;;  %v1030_v48 = vsel %vm2623_vm4, %v2512_v19, %v1026_v28 }
  0xc3   : > { %v1240_v35 = vmul.f32 3.8918573e-05, %v2615_v49  ;;  %v1139_v27 = vadd.f32 0.4994258, %v1138_v55  ;;  %v1190_v17 = vadd.f32 0.00028619796, %v1189_v52  ;;  %v1066_v21 = vadd.f32 %v2544_v32, %v1065_v51  ;;  %vm2657_vm7 = vmor %vm1067_vm3, %vm1068_vm5 }
  0xc4   : > { %v1201_v33 = vadd.f32 0.001143296, %v1200_v22  ;;  %v2638_v5 = vpop.eup %1708  ;;  %vm2644_vm6 = vcmp.eq.f32.partialorder %v1071_v50, 8.507059e+37  ;;  %v1074_v63 = vor.u32 1.1754944e-38, %v1073_v47  ;;  %v2649_v20 = vmul.f32 0.70710677, %v2628_v11 }
  0xc5   : > { %v1191_v55 = vmul.f32 %v1190_v17, %v2613_v12  ;;  %v2653_v22 = vmin.f32 %v1267_v24, 16.0  ;;  %v1090_v28 = vadd.f32 1.1283791, %v1089_v15  ;;  %v1125_v51 = vmul.f32 %v1124_v46, %v2477_v30 }
  0xc6   : > { %v1202_v52 = vmul.f32 %v1201_v33, %v2613_v12  ;;  %v1230_v50 = vadd.f32 0.00028619796, %v1229_v16  ;;  %v1241_v47 = vadd.f32 0.001143296, %v1240_v35  ;;  %v1103_v2 = vmul.f32 %v2638_v5, %v2581_v56 }
  0xc7   : > { %v1140_v17 = vmul.f32 %v1139_v27, %v2477_v30  ;;  %v1192_v11 = vadd.f32 0.0036580483, %v1191_v55  ;;  %v1035_v24 = vsel %vm2597_vm1, %v1034_v54, %v1030_v48  ;;  %v1269_v15 = vmul.f32 2.1237322e-06, %v2653_v22 }
  0xc8   : > { %v1203_v33 = vadd.f32 0.014752088, %v1202_v52  ;;  %v1231_v62 = vmul.f32 %v1230_v50, %v2615_v49  ;;  %v1242_v9 = vmul.f32 %v1241_v47, %v2615_v49  ;;  %v1070_v46 = vsel %vm2657_vm7, %v2544_v32, %v1066_v21 }
  0xc9   : > { %v1280_v35 = vmul.f32 3.8918573e-05, %v2653_v22  ;;  %v1307_v27 = vmul.f32 %v2649_v20, %v2649_v20  ;;  %v1193_v29 = vmul.f32 %v1192_v11, %v2613_v12  ;;  %v1270_v55 = vadd.f32 0.00028619796, %v1269_v15 }
  0xca   : > { %v1204_v16 = vmul.f32 %v1203_v33, %v2613_v12  ;;  %v1232_v48 = vadd.f32 0.0036580483, %v1231_v62  ;;  %v1243_v54 = vadd.f32 0.014752088, %v1242_v9  ;;  %v1104_v52 = vsub.f32 1.0, %v1103_v2 }
  0xcb   : > { %vm1107_vm8 = vweird.f32 %v2581_v56  ;;  %v1111_v50 = vand.u32 2147483647, %v2581_v56  ;;  %v2680_v47 = vadd.f32 1.0, %v1140_v17  ;;  %v1271_v33 = vmul.f32 %v1270_v55, %v2653_v22 }
  0xcc   : > { %v1205_v32 = vadd.f32 0.112945676, %v1204_v16  ;;  %v1233_v21 = vmul.f32 %v1232_v48, %v2615_v49  ;;  %v1244_v19 = vmul.f32 %v1243_v54, %v2615_v49  ;;  %v1036_v26 = vmul.f32 %v1035_v24, %v2593_v31 }
  0xcd   : > { %v1075_v9 = vsel %vm2644_vm6, %v1074_v63, %v1070_v46  ;;  %v1126_v11 = vadd.f32 0.05243302, %v1125_v51  ;;  %v1281_v2 = vadd.f32 0.001143296, %v1280_v35  ;;  %v1194_v62 = vadd.f32 0.05243302, %v1193_v29 }
  0xce   : > { %v1206_v15 = vmul.f32 %v1205_v32, %v2613_v12  ;;  %v1245_v37 = vadd.f32 0.112945676, %v1244_v19  ;;  %v2689_v17 = vmin.f32 %v1307_v27, 16.0  ;;  %v1105_v16 = vmul.f32 %v2638_v5, %v1104_v52 }
  0xcf   : > { %1710 = vrcp.f32 %v2680_v47  ;;  %v1272_v48 = vadd.f32 0.0036580483, %v1271_v33  ;;  %v1282_v54 = vmul.f32 %v1281_v2, %v2653_v22  ;;  %v1234_v31 = vadd.f32 0.05243302, %v1233_v21 }
  0xd0   : > { %v1207_v55 = vadd.f32 0.4994258, %v1206_v15  ;;  %v1246_v25 = vmul.f32 %v1245_v37, %v2615_v49  ;;  %v1309_v63 = vmul.f32 2.1237322e-06, %v2689_v17  ;;  %v1602_v51 = vclamps-f32 %v1036_v26, 1.0 }
  0xd1   : > { %v1113_v24 = vand.u32 2147483648, %v2581_v56  ;;  %v1127_v46 = vmul.f32 %v1126_v11, %v2477_v30  ;;  %v1283_v35 = vadd.f32 0.014752088, %v1282_v54  ;;  %vm1108_vm9 = vweird.f32 %v2638_v5 }
  0xd2   : > { %v1195_v27 = vmul.f32 %v1194_v62, %v2613_v12  ;;  %v1208_v29 = vmul.f32 %v1207_v55, %v2613_v12  ;;  %v1247_v52 = vadd.f32 0.4994258, %v1246_v25  ;;  %v1076_v32 = vmul.f32 %v1075_v9, %v2602_v39  ;;  %vm2722_vm10 = vmor %vm1107_vm8, %vm1108_vm9 }
  0xd3   : > { %v1106_v21 = vadd.f32 %v2638_v5, %v1105_v16  ;;  %v1273_v37 = vmul.f32 %v1272_v48, %v2653_v22  ;;  %v1284_v26 = vmul.f32 %v1283_v35, %v2653_v22  ;;  %v1235_v33 = vmul.f32 %v1234_v31, %v2615_v49 }
  0xd4   : > { %v2705_v19 = vadd.f32 1.0, %v1208_v29  ;;  %v1248_v11 = vmul.f32 %v1247_v52, %v2615_v49  ;;  %v1310_v2 = vadd.f32 0.00028619796, %v1309_v63  ;;  %v2982_v62 = vclamps-f32 %v2547_v38, 1.0 }
  0xd5   : > { %v2709_v15 = vpop.eup %1710  ;;  %v2716_v39 = vmul.f32 %v1090_v28, %v2342_v40  ;;  %v1128_v16 = vadd.f32 0.18741608, %v1127_v46  ;;  %v1285_v48 = vadd.f32 0.112945676, %v1284_v26  ;;  %vm2726_vm11 = vcmp.eq.f32.partialorder %v1111_v50, 8.507059e+37 }
  0xd6   : > { %v2713_v54 = vadd.f32 1.0, %v2982_v62  ;;  %v1159_v38 = vadd.f32 1.0, %v1602_v51  ;;  %v1196_v31 = vadd.f32 0.18741608, %v1195_v27  ;;  %1712 = vrcp.f32 %v2705_v19 }
  0xd7   : > { %v1603_v40 = vclamps-f32 %v1076_v32, 1.0  ;;  %v1114_v28 = vor.u32 1.1754944e-38, %v1113_v24  ;;  %v2731_v25 = vadd.f32 1.0, %v1248_v11  ;;  %v1274_v63 = vadd.f32 0.05243302, %v1273_v37 }
  0xd8   : > { %v1110_v56 = vsel %vm2722_vm10, %v2638_v5, %v1106_v21  ;;  %v1236_v35 = vadd.f32 0.18741608, %v1235_v33  ;;  %v1286_v46 = vmul.f32 %v1285_v48, %v2653_v22  ;;  %v1311_v50 = vmul.f32 %v1310_v2, %v2689_v17 }
  0xd9   : > { %v2739_v29 = vmul.f32 %v1128_v16, %v2477_v30  ;;  %v1143_v51 = vmul.f32 %v2709_v15, %v2680_v47  ;;  %v2744_v24 = vmul.f32 0.5, %v2539_v3  ;;  %1714 = vrcp.f32 %v2731_v25 }
  0xda   : > { %v2748_v27 = vmul.f32 %v1159_v38, %v2486_v0  ;;  %v2751_v5 = vmul.f32 0.5, %v2542_v61  ;;  %v1197_v52 = vmul.f32 %v1196_v31, %v2613_v12  ;;  %v1287_v32 = vadd.f32 0.4994258, %v1286_v46 }
  0xdb   : > { %v1115_v30 = vsel %vm2726_vm11, %v1114_v28, %v1110_v56  ;;  %v2756_v21 = vadd.f32 1.0, %v1603_v40  ;;  %v1275_v37 = vmul.f32 %v1274_v63, %v2653_v22  ;;  %v1320_v3 = vmul.f32 3.8918573e-05, %v2689_v17 }
  0xdc   : > { %v1713_v26 = vpop.eup %1712  ;;  %v1151_v33 = vand.u32 2147483647, %v2680_v47  ;;  %v1237_v0 = vmul.f32 %v1236_v35, %v2615_v49  ;;  %v1288_v61 = vmul.f32 %v1287_v32, %v2653_v22  ;;  %v1312_v11 = vadd.f32 0.0036580483, %v1311_v50 }
  0xdd   : > { %v1144_v2 = vsub.f32 1.0, %v1143_v51  ;;  %v1211_v12 = vmul.f32 %v1713_v26, %v2705_v19  ;;  %v1221_v62 = vand.u32 2147483648, %v2705_v19  ;;  %v1321_v9 = vadd.f32 0.001143296, %v1320_v3 }
  0xde   : > { %v1198_v16 = vadd.f32 1.1283791, %v1197_v52  ;;  %vm1215_vm12 = vweird.f32 %v2705_v19  ;;  %v1219_v48 = vand.u32 2147483647, %v2705_v19  ;;  %v2767_v55 = vadd.f32 1.0, %v1288_v61 }
  0xdf   : > { %v1715_v38 = vpop.eup %1714  ;;  %v1212_v31 = vsub.f32 1.0, %v1211_v12  ;;  %vm1216_vm13 = vweird.f32 %v1713_v26  ;;  %v1276_v49 = vadd.f32 0.18741608, %v1275_v37  ;;  %v1322_v40 = vmul.f32 %v1321_v9, %v2689_v17 }
  0xe0   : > { %v1238_v28 = vadd.f32 1.1283791, %v1237_v0  ;;  %v1251_v63 = vmul.f32 %v1715_v38, %v2731_v25  ;;  %1716 = vrcp.f32 %v2767_v55  ;;  %v1313_v56 = vmul.f32 %v1312_v11, %v2689_v17  ;;  %vm2777_vm0 = vmor %vm1215_vm12, %vm1216_vm13 }
  0xe1   : > { %v1213_v35 = vmul.f32 %v1713_v26, %v1212_v31  ;;  %v1222_v46 = vor.u32 1.1754944e-38, %v1221_v62  ;;  %vm1255_vm14 = vweird.f32 %v2731_v25  ;;  %v1261_v50 = vand.u32 2147483648, %v2731_v25 }
  0xe2   : > { %v1252_v52 = vsub.f32 1.0, %v1251_v63  ;;  %vm1256_vm1 = vweird.f32 %v1715_v38  ;;  %v1259_v32 = vand.u32 2147483647, %v2731_v25  ;;  %v1323_v37 = vadd.f32 0.014752088, %v1322_v40 }
  0xe3   : > { %vm1147_vm2 = vweird.f32 %v2680_v47  ;;  %v1199_v3 = vmul.f32 %v1198_v16, %v2569_v59  ;;  %v1214_v0 = vadd.f32 %v1713_v26, %v1213_v35  ;;  %vm1220_vm3 = vcmp.eq.f32.partialorder %v1219_v48, 8.507059e+37  ;;  %vm2795_vm4 = vmor %vm1255_vm14, %vm1256_vm1 }
  0xe4   : > { %v1277_v61 = vmul.f32 %v1276_v49, %v2653_v22  ;;  %v1116_v19 = vmul.f32 %v1115_v30, %v2716_v39  ;;  %v1145_v11 = vmul.f32 %v2709_v15, %v1144_v2  ;;  %v1253_v12 = vmul.f32 %v1715_v38, %v1252_v52 }
  0xe5   : > { %v1324_v62 = vmul.f32 %v1323_v37, %v2689_v17  ;;  %v1218_v9 = vsel %vm2777_vm0, %v1713_v26, %v1214_v0  ;;  %v1239_v31 = vmul.f32 %v1238_v28, %v2572_v6  ;;  %v1262_v22 = vor.u32 1.1754944e-38, %v1261_v50 }
  0xe6   : > { %v1314_v16 = vadd.f32 0.05243302, %v1313_v56  ;;  %v1717_v39 = vpop.eup %1716  ;;  %v1223_v30 = vsel %vm1220_vm3, %v1222_v46, %v1218_v9  ;;  %v1254_v2 = vadd.f32 %v1715_v38, %v1253_v12  ;;  %vm1260_vm5 = vcmp.eq.f32.partialorder %v1259_v32, 8.507059e+37  ;;  %v3003_v12 = vld [vmem:[#allocation7_spill] sm:$0xff] }
  0xe7   : > { %v1325_v48 = vadd.f32 0.112945676, %v1324_v62  ;;  %v2991_v26 = vand.u32 2147483647, %v2403_v60  ;;  %v1224_v25 = vmul.f32 %v1223_v30, %v1199_v3  ;;  %v1278_v49 = vadd.f32 1.1283791, %v1277_v61 }
  0xe8   : > { %v1291_v40 = vmul.f32 %v1717_v39, %v2767_v55  ;;  %vm1295_vm7 = vweird.f32 %v2767_v55  ;;  %v1258_v28 = vsel %vm2795_vm4, %v1715_v38, %v1254_v2  ;;  %v1299_v63 = vand.u32 2147483647, %v2767_v55 }
  0xe9   : > { %vm2804_vm6 = vcmp.eq.f32.partialorder %v2991_v26, 8.507059e+37  ;;  %v1301_v56 = vand.u32 2147483648, %v2767_v55  ;;  %v1326_v35 = vmul.f32 %v1325_v48, %v2689_v17  ;;  %v1606_v60 = vclamps-f32 %v1224_v25, 1.0 }
  0xea   : > { %v1263_v46 = vsel %vm1260_vm5, %v1262_v22, %v1258_v28  ;;  %v1292_v50 = vsub.f32 1.0, %v1291_v40  ;;  %vm1296_vm8 = vweird.f32 %v1717_v39  ;;  %v1604_v51 = vclamps-f32 %v1116_v19, 1.0 }
  0xeb   : > { %v1153_v52 = vand.u32 2147483648, %v2680_v47  ;;  %v1264_v32 = vmul.f32 %v1263_v46, %v1239_v31  ;;  %v1327_v37 = vadd.f32 0.4994258, %v1326_v35  ;;  %v1146_v38 = vadd.f32 %v2709_v15, %v1145_v11  ;;  %vm2821_vm10 = vmor %vm1295_vm7, %vm1296_vm8 }
  0xec   : > { %vm1148_vm9 = vweird.f32 %v2709_v15  ;;  %v1293_v3 = vmul.f32 %v1717_v39, %v1292_v50  ;;  %v1347_v0 = vadd.f32 1.0, %v1606_v60  ;;  %v1302_v62 = vor.u32 1.1754944e-38, %v1301_v56 }
  0xed   : > { %v1607_v61 = vclamps-f32 %v1264_v32, 1.0  ;;  %v1315_v19 = vmul.f32 %v1314_v16, %v2689_v17  ;;  %v1328_v9 = vmul.f32 %v1327_v37, %v2689_v17  ;;  %v1279_v11 = vmul.f32 %v1278_v49, %v2606_v14  ;;  %vm2837_vm12 = vmor %vm1147_vm2, %vm1148_vm9 }
  0xee   : > { %v1294_v31 = vadd.f32 %v1717_v39, %v1293_v3  ;;  %vm1300_vm11 = vcmp.eq.f32.partialorder %v1299_v63, 8.507059e+37  ;;  %v1351_v59 = vmul.f32 %v1347_v0, %v2744_v24  ;;  %v1130_v55 = vadd.f32 1.1283791, %v2739_v29 }
  0xef   : > { %v1164_v16 = vmul.f32 %v2756_v21, %v2489_v1  ;;  %v1329_v30 = vadd.f32 1.0, %v1328_v9  ;;  %v1348_v2 = vadd.f32 1.0, %v1607_v61  ;;  %vm2845_vm13 = vcmp.eq.f32.partialorder %v1151_v33, 8.507059e+37 }
  0xf0   : > { %v1154_v24 = vor.u32 1.1754944e-38, %v1153_v52  ;;  %v1298_v29 = vsel %vm2821_vm10, %v1717_v39, %v1294_v31  ;;  %v1355_v48 = vmax.f32 %v2748_v27, %v1351_v59  ;;  %v1161_v26 = vadd.f32 1.0, %v1604_v51 }
  0xf1   : > { %v1303_v25 = vsel %vm1300_vm11, %v1302_v62, %v1298_v29  ;;  %v1316_v49 = vadd.f32 0.18741608, %v1315_v19  ;;  %1718 = vrcp.f32 %v1329_v30  ;;  %v1150_v1 = vsel %vm2837_vm12, %v2709_v15, %v1146_v38  ;;  %v3004_v19 = vld [vmem:[#allocation8_spill] sm:$0xff]  ;;  %v3006_v29 = vld [vmem:[#allocation10_spill] sm:$0xff] }
  0xf2   : > { %v1304_v47 = vmul.f32 %v1303_v25, %v1279_v11  ;;  %v1352_v21 = vmul.f32 %v1348_v2, %v2751_v5  ;;  %v3000_v33 = vmax.f32 %v2308_v57, %v2516_v13  ;;  %v939_v39 = vmul.f32 %v2498_v8, %v2108_v53 }
  0xf3   : > { %v3001_v27 = vsel %vm2561_vm15, %v2457_v41, %v2555_v7  ;;  %v973_v15 = vmul.f32 %v2713_v54, %v2250_v4  ;;  %v1181_v5 = vmul.f32 0.5, %v2577_v10  ;;  %v1131_v57 = vmul.f32 %v1130_v55, %v2428_v44 }
  0xf4   : > { %v1359_v40 = vmax.f32 %v3000_v33, %v1355_v48  ;;  %v963_v28 = vsel %vm2804_vm6, %v2534_v18, %v3001_v27  ;;  %v1608_v13 = vclamps-f32 %v1304_v47, 1.0  ;;  %v1356_v63 = vmax.f32 %v1164_v16, %v1352_v21  ;;  %v3005_v16 = vld [vmem:[#allocation9_spill] sm:$0xff] }
  0xf5   : > { %v1155_v53 = vsel %vm2845_vm13, %v1154_v24, %v1150_v1  ;;  %v1317_v41 = vmul.f32 %v1316_v49, %v2689_v17  ;;  %v1165_v4 = vmul.f32 %v1161_v26, %v2492_v43  ;;  %v3002_v44 = vmax.f32 %v2444_v42, %v2525_v45 }
  0xf6   : > { %v1367_v56 = vrot.slane %v1359_v40, 4  ;;  %v1349_v8 = vadd.f32 1.0, %v1608_v13  ;;  %v776_v10 = vmul.f32 %v2440_v23, %v2256_v36  ;;  %v964_v54 = vmul.f32 %v963_v28, %v939_v39 }
  0xf7   : > { %v1360_v18 = vmax.f32 %v3002_v44, %v1356_v63  ;;  %v1719_v34 = vpop.eup %1718  ;;  %v977_v6 = vmax.f32 %v2448_v58, %v973_v15  ;;  %v1156_v35 = vmul.f32 %v1155_v53, %v1131_v57  ;;  %v1318_v43 = vadd.f32 1.1283791, %v1317_v41 }
  0xf8   : > { %v1375_v7 = vmax.f32 %v1359_v40, %v1367_v56  ;;  %v1331_v60 = vmul.f32 %v1719_v34, %v1329_v30  ;;  %v1353_v46 = vmul.f32 %v1349_v8, %v1181_v5  ;;  %vm1335_vm15 = vweird.f32 %v1329_v30 }
  0xf9   : > { %v1368_v17 = vrot.slane %v1360_v18, 4  ;;  %v1339_v50 = vand.u32 2147483647, %v1329_v30  ;;  %v1341_v51 = vand.u32 2147483648, %v1329_v30  ;;  %vm1336_vm14 = vweird.f32 %v1719_v34 }
  0xfa   : > { %1379 = vst [vmem:[%s2877_s8] sm:$0xf] %v1375_v7  ;;  %v1332_v42 = vsub.f32 1.0, %v1331_v60  ;;  %v1357_v45 = vmax.f32 %v1165_v4, %v1353_v46  ;;  %v1597_v32 = vclamps-f32 %v776_v10, 1.0  ;;  %v1601_v37 = vclamps-f32 %v964_v54, 1.0  ;;  %vm1337_vm0 = vmor %vm1335_vm15, %vm1336_vm14 }
  0xfb   : > { %v1376_v52 = vmax.f32 %v1360_v18, %v1368_v17  ;;  %v1605_v58 = vclamps-f32 %v1156_v35, 1.0  ;;  %v1342_v38 = vor.u32 1.1754944e-38, %v1341_v51  ;;  %v1319_v3 = vmul.f32 %v1318_v43, %v2649_v20 }
  0xfc   : > { %v1333_v36 = vmul.f32 %v1719_v34, %v1332_v42  ;;  %v1361_v23 = vmax.f32 %v977_v6, %v1357_v45  ;;  %vm1340_vm1 = vcmp.eq.f32.partialorder %v1339_v50, 8.507059e+37  ;;  %v614_v62 = vmul.f32 0.5, %v3003_v12 }
  0xfd   : > { %1380 = vst [vmem:[%s2877_s8 + $0x4] sm:$0xf] %v1376_v52  ;;  %v802_v9 = vmul.f32 0.5, %v3004_v19  ;;  %v782_v11 = vadd.f32 1.0, %v1597_v32  ;;  %v970_v31 = vadd.f32 1.0, %v1601_v37  ;;  %v994_v30 = vmul.f32 0.5, %v3005_v16 }
  0xfe   : > { %v1334_v0 = vadd.f32 %v1719_v34, %v1333_v36  ;;  %v1369_v61 = vrot.slane %v1361_v23, 4  ;;  %v1162_v2 = vadd.f32 1.0, %v1605_v58  ;;  %v1182_v48 = vmul.f32 0.5, %v3006_v29 }
  0xff   : > { %v786_v24 = vmul.f32 %v782_v11, %v614_v62  ;;  %v974_v20 = vmul.f32 %v970_v31, %v802_v9 }
 0x100   : > { %v1338_v59 = vsel %vm1337_vm0, %v1719_v34, %v1334_v0  ;;  %v1377_v55 = vmax.f32 %v1361_v23, %v1369_v61  ;;  %v1166_v25 = vmul.f32 %v1162_v2, %v994_v30 }
 0x101   : > { %v1343_v22 = vsel %vm1340_vm1, %v1342_v38, %v1338_v59  ;;  %v978_v1 = vmax.f32 %v786_v24, %v974_v20 }
 0x102   : > { %v1344_v14 = vmul.f32 %v1343_v22, %v1319_v3  ;;  %1381 = vst [vmem:[%s2877_s8 + $0x8] sm:$0xf] %v1377_v55 }
 0x104   : > { %v1609_v26 = vclamps-f32 %v1344_v14, 1.0 }
 0x106   : > { %v1350_v49 = vadd.f32 1.0, %v1609_v26 }
 0x108   : > { %v1354_v47 = vmul.f32 %v1350_v49, %v1182_v48 }
 0x10a   : > { %v1358_v21 = vmax.f32 %v1166_v25, %v1354_v47 }
 0x10c   : > { %v1362_v33 = vmax.f32 %v978_v1, %v1358_v21 }
 0x10e   : > { %v1370_v40 = vrot.slane %v1362_v33, 4 }
 0x110   : > { %v1378_v39 = vmax.f32 %v1362_v33, %v1370_v40 }
 0x112   : > { %1382 = vst [vmem:[%s2877_s8 + $0xc] sm:$0xf] %v1378_v39 }
 0x113 PF: > { %s16_s29 = sadd.s32 1, %s1790_s29   ;;  %s3007_s20 = sld [smem:[#allocation6_spill]] }
 0x114   : > { %p13_p0 = scmp.ge.s32.totalorder %s16_s29, 10   ;;  %s3008_s21 = smov %s1762_s22 }
 0x115   : > { %s3009_s22 = smov %s1910_s30  ;;  %s3010_s23 = smov %s1770_s24 }
 0x116   : > { %s3011_s24 = smov %s1907_s9  ;;  %s3012_s25 = smov %s1782_s27 }
 0x117   : > { %s3013_s26 = smov %s1786_s28  ;;  %s3015_s28 = smov %s3021_s7 }
 0x118   :  { %15 = sbr.rel (!%p13_p0) target bundleno = 5 (0x5), region = 255 }
 0x119   : > { %s3014_s27 = smov %s3007_s20 }

// kernel: unet_down_forward.4
= control target key start
LH: loop header
LB: loop body
LE: loop exit
PB: predicated region body
PF: predicated region fallthrough
CT: control target
= control target key end

     0   :  { %s6761_s27 = smov 0   ;;  %s6763_s28 = smov 0   ;;  %s9427_s0 = inlined_call_operand.vmem [shape: f32[16,8,8,128], index: 0, kind: input, shape index: {}, may-alias: {0,1,2}]   ;;  %s9428_s1 = inlined_call_operand.vmem [shape: f32[16,8,8,128], index: 1, kind: input, shape index: {}, may-alias: {0,1,2}]   ;;  %s9429_s2 = inlined_call_operand.vmem [shape: f32[16,8,8,128], index: 2, kind: input, shape index: {}, may-alias: {0,1,2}]   ;;  %s9430_s3 = inlined_call_operand.vmem [shape: bf16[27,128,128], index: 3, kind: input, shape index: {}]   ;;  %s9431_s4 = inlined_call_operand.vmem [shape: f32[1,128], index: 4, kind: input, shape index: {}]   ;;  %s9432_s5 = inlined_call_operand.vmem [shape: f32[1,1,128], index: 5, kind: input, shape index: {}]   ;;  %s9433_s6 = inlined_call_operand.vmem [shape: f32[1,1,128], index: 6, kind: input, shape index: {}]   ;;  %s9434_s7 = inlined_call_operand.vmem [shape: f32[16,8,8,128], index: 7, kind: output, shape index: {0}]   ;;  %s9435_s8 = inlined_call_operand.vmem [shape: f32[16,2,128], index: 8, kind: output, shape index: {1}]  }
   0x1   :  { %s6765_s29 = smov 0   ;;  %s6767_s30 = smov 0  }
   0x2   :  { %s6769_s9 = smov 0  }
   0x3 LB: > { %s28_s10 = sadd.s32 1, %s6705_s29  ;;  %s31_s11 = sadd.s32 1, %s6709_s30  ;;  %s6713_s9 = sphi %s6769_s9, %s19_s9   ;;  %s6709_s30 = sphi %s6767_s30, %s9523_s30   ;;  %s6705_s29 = sphi %s6765_s29, %s9522_s29   ;;  %s6701_s28 = sphi %s6763_s28, %s9521_s28   ;;  %s6697_s27 = sphi %s6761_s27, %s9520_s27  }
   0x4   : > { %p29_p0 = scmp.ge.s32.totalorder %s28_s10, 8  ;;  %p5009_p1 = scmp.ge.s32.totalorder %s6713_s9, 1 }
   0x5   : > { %p353_p2 = scmp.lt.s32.totalorder %s6713_s9, 17 }
   0x6   : > { %s9525_s10 = smov (%p29_p0, %s28_s10), 0  ;;  %s9527_s11 = smov (!%p29_p0, %s31_s11), %s6709_s30 }
   0x7   : > { %p354_p3 = pnand %p5009_p1, %p353_p2  ;;  %p33_p4 = scmp.ge.s32.totalorder %s9527_s11, 2 }
   0x9   : > { %s9529_s11 = smov (%p33_p4, %s9527_s11), 0  ;;  %357 = sbr.rel (%p354_p3) target bundleno = 713 (0x2c9), region = 48 }
   0xe   : > { %v6350_v0 = vld [vmem:[%s9430_s3 + $0x78] sm:$0xff]  ;;  %s5011_s18 = sadd.s32 4294967295, %s6697_s27  ;;  %v6715_v3 = vmov 0.0   ;;  %v6349_v4 = vld [vmem:[%s9430_s3 + $0x70] sm:$0xff]  ;;  %s6807_s21 = sshll.u32 %s6701_s28, 3  ;;  %v6348_v7 = vld [vmem:[%s9430_s3 + $0x68] sm:$0xff] }
   0xf   : > { %v6342_v1 = vld [vmem:[%s9430_s3 + $0x38] sm:$0xff]  ;;  %p419_p5 = scmp.gt.s32.totalorder %s5011_s18, 0  ;;  %473 = vst [vmem:[#allocation2] sm:$0xff] %v6715_v3  ;;  %1841 = vmatpush.bf16.msra.mxu0 %v6350_v0  ;;  %6551 = vmatpush.bf16.msra.mxu3 %v6350_v0  ;;  %v6341_v5 = vld [vmem:[%s9430_s3 + $0x30] sm:$0xff]  ;;  %v6340_v8 = vld [vmem:[%s9430_s3 + $0x28] sm:$0xff]  ;;  %p917_p7 = scmp.gt.s32.totalorder %s6697_s27, 0 }
  0x10   : > { %v6358_v2 = vld [vmem:[%s9430_s3 + $0xb8] sm:$0xff]  ;;  %475 = vst [vmem:[#allocation2 + $0x10] sm:$0xff] %v6715_v3  ;;  %1918 = vmatpush.bf16.msra.mxu1 %v6342_v1  ;;  %v6357_v6 = vld [vmem:[%s9430_s3 + $0xb0] sm:$0xff]  ;;  %v6356_v9 = vld [vmem:[%s9430_s3 + $0xa8] sm:$0xff]  ;;  %s442_s22 = sadd.s32 1, %s6697_s27  ;;  %p1715_p11 = scmp.lt.s32.totalorder %s6697_s27, 7 }
  0x11   : > { %2024 = vmatpush.bf16.msra.mxu2 %v6358_v2  ;;  %s9531_s18 = smov (!%p419_p5, %s5011_s18), 0  ;;  %474 = vst [vmem:[#allocation2 + $0x8] sm:$0x3] %v6715_v3  ;;  %v6347_v10 = vld [vmem:[%s9430_s3 + $0x60] sm:$0xff]  ;;  %v6346_v22 = vld [vmem:[%s9430_s3 + $0x58] sm:$0xff]  ;;  %v6345_v33 = vld [vmem:[%s9430_s3 + $0x50] sm:$0xff] }
  0x12   : > { %476 = vst [vmem:[#allocation2 + $0x18] sm:$0x3] %v6715_v3  ;;  %s421_s26 = sadd.s32 %s6807_s21, %s9531_s18  ;;  %v6837_v11 = vld [vmem:[%s9432_s5] ss:$0 sm:$0xff]  ;;  %v6338_v24 = vld [vmem:[%s9430_s3 + $0x18] sm:$0xff]  ;;  %v6337_v35 = vld [vmem:[%s9430_s3 + $0x10] sm:$0xff] }
  0x13   : > { %477 = vst [vmem:[#allocation2 + $0x20] sm:$0xff] %v6715_v3  ;;  %1842 = vmatpush.bf16.msra.mxu0 %v6349_v4  ;;  %6552 = vmatpush.bf16.msra.mxu3 %v6349_v4  ;;  %p422_p6 = scmp.lt.s32.totalorder %s421_s26, 15  ;;  %v6843_v12 = vld [vmem:[%s9433_s6] ss:$0 sm:$0xff]  ;;  %v6354_v25 = vld [vmem:[%s9430_s3 + $0x98] sm:$0xff]  ;;  %v6353_v36 = vld [vmem:[%s9430_s3 + $0x90] sm:$0xff] }
  0x14   : > { %478 = vst [vmem:[#allocation2 + $0x28] sm:$0x3] %v6715_v3  ;;  %1919 = vmatpush.bf16.msra.mxu1 %v6341_v5  ;;  %v6339_v13 = vld [vmem:[%s9430_s3 + $0x20] sm:$0xff]  ;;  %v6344_v44 = vld [vmem:[%s9430_s3 + $0x48] sm:$0xff]  ;;  %s7039_s12 = scalar_select %p917_p7, 1, 0 }
  0x15   : > { %2025 = vmatpush.bf16.msra.mxu2 %v6357_v6  ;;  %479 = vst [vmem:[#allocation2 + $0x30] sm:$0xff] %v6715_v3  ;;  %s9533_s26 = smov (!%p422_p6, %s421_s26), 15  ;;  %v6355_v14 = vld [vmem:[%s9430_s3 + $0xa0] sm:$0xff]  ;;  %v6336_v45 = vld [vmem:[%s9430_s3 + $0x8] sm:$0xff]  ;;  %p8084_p9 = scmp.lt.s32.totalorder %s442_s22, 7 }
  0x16   : > { %481 = vst [vmem:[#allocation2 + $0x40] sm:$0xff] %v6715_v3  ;;  %s6331_s28 = sshll.u32 %s9533_s26, 6  ;;  %v6352_v46 = vld [vmem:[%s9430_s3 + $0x88] sm:$0xff]  ;;  %v6343_v50 = vld [vmem:[%s9430_s3 + $0x40] sm:$0xff]  ;;  %s919_s17 = scvt.s32.f32 %s7039_s12 }
  0x17   : > { %480 = vst [vmem:[#allocation2 + $0x38] sm:$0x3] %v6715_v3  ;;  %1843 = vmatpush.bf16.msra.mxu0 %v6348_v7  ;;  %6553 = vmatpush.bf16.msra.mxu3 %v6348_v7  ;;  %s6856_s16 = scalar_lea.vmem %s9427_s0, %s6331_s28  ;;  %v6335_v55 = vld [vmem:[%s9430_s3] sm:$0xff]  ;;  %s433_s26 = sadd.s32 %s6697_s27, %s6807_s21 }
  0x18   : > { %482 = vst [vmem:[#allocation2 + $0x48] sm:$0x3] %v6715_v3  ;;  %1920 = vmatpush.bf16.msra.mxu1 %v6340_v8  ;;  %v533_v15 = vld [vmem:[%s6856_s16] sm:$0xff]  ;;  %v536_v16 = vld [vmem:[%s6856_s16 + $0x18] sm:$0xff]  ;;  %v534_v21 = vld [vmem:[%s6856_s16 + $0x8] sm:$0xff]  ;;  %p434_p8 = scmp.lt.s32.totalorder %s433_s26, 15 }
  0x19   : > { %2026 = vmatpush.bf16.msra.mxu2 %v6356_v9  ;;  %483 = vst [vmem:[#allocation2 + $0x50] sm:$0xff] %v6715_v3  ;;  %v537_v17 = vld [vmem:[%s6856_s16 + $0x20] sm:$0xff]  ;;  %v545_v18 = vmul.f32 %v6837_v11, %v533_v15  ;;  %v548_v19 = vmul.f32 %v6837_v11, %v536_v16  ;;  %v546_v23 = vmul.f32 %v6837_v11, %v534_v21  ;;  %v535_v32 = vld [vmem:[%s6856_s16 + $0x10] sm:$0xff]  ;;  %v538_v16 = vld [vmem:[%s6856_s16 + $0x28] sm:$0xff]  ;;  %s9537_s22 = smov (!%p8084_p9, %s442_s22), 7 }
  0x1a   : > { %484 = vst [vmem:[#allocation2 + $0x58] sm:$0x3] %v6715_v3  ;;  %v549_v20 = vmul.f32 %v6837_v11, %v537_v17  ;;  %v547_v40 = vmul.f32 %v6837_v11, %v535_v32  ;;  %v6351_v60 = vld [vmem:[%s9430_s3 + $0x80] sm:$0xff]  ;;  %s9535_s26 = smov (!%p434_p8, %s433_s26), 15  ;;  %s8124_s13 = sadd.s32 %s6807_s21, %s9537_s22 }
  0x1b   : > { %485 = vst [vmem:[#allocation2 + $0x60] sm:$0xff] %v6715_v3  ;;  %1844 = vmatpush.bf16.msra.mxu0 %v6347_v10  ;;  %6554 = vmatpush.bf16.msra.mxu3 %v6347_v10  ;;  %v6880_v26 = vadd.f32 %v6843_v12, %v545_v18  ;;  %v6884_v27 = vadd.f32 %v6843_v12, %v548_v19  ;;  %s6332_s28 = sshll.u32 %s9535_s26, 6  ;;  %p446_p10 = scmp.lt.s32.totalorder %s8124_s13, 15 }
  0x1c   : > { %486 = vst [vmem:[#allocation2 + $0x68] sm:$0x3] %v6715_v3  ;;  %1921 = vmatpush.bf16.msra.mxu1 %v6339_v13  ;;  %v6887_v28 = vadd.f32 %v6843_v12, %v549_v20  ;;  %v6891_v29 = vadd.f32 %v6843_v12, %v546_v23  ;;  %v6953_v53 = vadd.f32 %v6843_v12, %v547_v40  ;;  %s7554_s20 = scalar_lea.vmem %s9428_s1, %s6332_s28 }
  0x1d   : > { %2027 = vmatpush.bf16.msra.mxu2 %v6355_v14  ;;  %487 = vst [vmem:[#allocation2 + $0x70] sm:$0xff] %v6715_v3  ;;  %v6894_v30 = vmul.f32 0.70710677, %v6880_v26  ;;  %v6898_v31 = vmul.f32 0.70710677, %v6884_v27  ;;  %s9539_s13 = smov (!%p446_p10, %s8124_s13), 15 }
  0x1e   : > { %488 = vst [vmem:[#allocation2 + $0x78] sm:$0x3] %v6715_v3  ;;  %v6906_v34 = vmul.f32 0.70710677, %v6887_v28  ;;  %v6924_v41 = vmul.f32 0.70710677, %v6891_v29 }
  0x1f   : > { %489 = vst [vmem:[#allocation2 + $0x80] sm:$0xff] %v6715_v3  ;;  %1845 = vmatpush.bf16.msra.mxu0 %v6346_v22  ;;  %6555 = vmatpush.bf16.msra.mxu3 %v6346_v22  ;;  %v581_v37 = vmul.f32 %v6894_v30, %v6894_v30  ;;  %v701_v38 = vmul.f32 %v6898_v31, %v6898_v31  ;;  %v6974_v4 = vmul.f32 0.70710677, %v6953_v53 }
  0x20   : > { %490 = vst [vmem:[#allocation2 + $0x88] sm:$0x3] %v6715_v3  ;;  %1922 = vmatpush.bf16.msra.mxu1 %v6338_v24  ;;  %v741_v39 = vmul.f32 %v6906_v34, %v6906_v34  ;;  %v621_v54 = vmul.f32 %v6924_v41, %v6924_v41 }
  0x21   : > { %2028 = vmatpush.bf16.msra.mxu2 %v6354_v25  ;;  %491 = vst [vmem:[#allocation2 + $0x90] sm:$0xff] %v6715_v3  ;;  %v6926_v42 = vmin.f32 %v581_v37, 16.0  ;;  %v6929_v43 = vmin.f32 %v701_v38, 16.0  ;;  %v661_v32 = vmul.f32 %v6974_v4, %v6974_v4 }
  0x22   : > { %492 = vst [vmem:[#allocation2 + $0x98] sm:$0x3] %v6715_v3  ;;  %v6944_v49 = vmin.f32 %v741_v39, 16.0  ;;  %v6976_v5 = vmin.f32 %v621_v54, 16.0 }
  0x23   : > { %493 = vst [vmem:[#allocation2 + $0xa0] sm:$0xff] %v6715_v3  ;;  %1846 = vmatpush.bf16.msra.mxu0 %v6345_v33  ;;  %6556 = vmatpush.bf16.msra.mxu3 %v6345_v33  ;;  %v583_v47 = vmul.f32 2.1237322e-06, %v6926_v42  ;;  %v594_v48 = vmul.f32 3.8918573e-05, %v6926_v42  ;;  %v550_v33 = vmul.f32 %v6837_v11, %v538_v16  ;;  %v7051_v16 = vmul.f32 0.5, %v6880_v26 }
  0x24   : > { %494 = vst [vmem:[#allocation2 + $0xa8] sm:$0x3] %v6715_v3  ;;  %1923 = vmatpush.bf16.msra.mxu1 %v6337_v35  ;;  %v703_v51 = vmul.f32 2.1237322e-06, %v6929_v43  ;;  %v714_v52 = vmul.f32 3.8918573e-05, %v6929_v43 }
  0x25   : > { %2029 = vmatpush.bf16.msra.mxu2 %v6353_v36  ;;  %495 = vst [vmem:[#allocation2 + $0xb0] sm:$0xff] %v6715_v3  ;;  %v584_v56 = vadd.f32 0.00028619796, %v583_v47  ;;  %v595_v57 = vadd.f32 0.001143296, %v594_v48 }
  0x26   : > { %496 = vst [vmem:[#allocation2 + $0xb8] sm:$0x3] %v6715_v3  ;;  %v704_v58 = vadd.f32 0.00028619796, %v703_v51  ;;  %v715_v59 = vadd.f32 0.001143296, %v714_v52 }
  0x27   : > { %497 = vst [vmem:[#allocation2 + $0xc0] sm:$0xff] %v6715_v3  ;;  %1847 = vmatpush.bf16.msra.mxu0 %v6344_v44  ;;  %6557 = vmatpush.bf16.msra.mxu3 %v6344_v44  ;;  %v585_v61 = vmul.f32 %v584_v56, %v6926_v42  ;;  %v596_v62 = vmul.f32 %v595_v57, %v6926_v42  ;;  %v743_v63 = vmul.f32 2.1237322e-06, %v6944_v49  ;;  %v754_v0 = vmul.f32 3.8918573e-05, %v6944_v49 }
  0x28   : > { %498 = vst [vmem:[#allocation2 + $0xc8] sm:$0x3] %v6715_v3  ;;  %1924 = vmatpush.bf16.msra.mxu1 %v6336_v45  ;;  %v705_v1 = vmul.f32 %v704_v58, %v6929_v43  ;;  %v716_v2 = vmul.f32 %v715_v59, %v6929_v43  ;;  %v634_v19 = vmul.f32 3.8918573e-05, %v6976_v5  ;;  %v623_v44 = vmul.f32 2.1237322e-06, %v6976_v5 }
  0x29   : > { %2030 = vmatpush.bf16.msra.mxu2 %v6352_v46  ;;  %499 = vst [vmem:[#allocation2 + $0xd0] sm:$0xff] %v6715_v3  ;;  %v586_v6 = vadd.f32 0.0036580483, %v585_v61  ;;  %v597_v7 = vadd.f32 0.014752088, %v596_v62  ;;  %v7013_v59 = vmin.f32 %v661_v32, 16.0 }
  0x2a   : > { %500 = vst [vmem:[#allocation2 + $0xd8] sm:$0x3] %v6715_v3  ;;  %v706_v8 = vadd.f32 0.0036580483, %v705_v1  ;;  %v717_v9 = vadd.f32 0.014752088, %v716_v2 }
  0x2b   : > { %501 = vst [vmem:[#allocation2 + $0xe0] sm:$0xff] %v6715_v3  ;;  %1848 = vmatpush.bf16.msra.mxu0 %v6343_v50  ;;  %6558 = vmatpush.bf16.msra.mxu3 %v6343_v50  ;;  %v587_v10 = vmul.f32 %v586_v6, %v6926_v42  ;;  %v598_v13 = vmul.f32 %v597_v7, %v6926_v42  ;;  %v744_v14 = vadd.f32 0.00028619796, %v743_v63  ;;  %v755_v15 = vadd.f32 0.001143296, %v754_v0 }
  0x2c   : > { %502 = vst [vmem:[#allocation2 + $0xe8] sm:$0x3] %v6715_v3  ;;  %1925 = vmatpush.bf16.msra.mxu1 %v6335_v55  ;;  %v707_v17 = vmul.f32 %v706_v8, %v6929_v43  ;;  %v718_v18 = vmul.f32 %v717_v9, %v6929_v43  ;;  %v635_v45 = vadd.f32 0.001143296, %v634_v19  ;;  %v7009_v55 = vadd.f32 %v6843_v12, %v550_v33 }
  0x2d   : > { %2031 = vmatpush.bf16.msra.mxu2 %v6351_v60  ;;  %503 = vst [vmem:[#allocation2 + $0xf0] sm:$0xff] %v6715_v3  ;;  %v588_v20 = vadd.f32 0.05243302, %v587_v10  ;;  %v599_v21 = vadd.f32 0.112945676, %v598_v13  ;;  %v745_v22 = vmul.f32 %v744_v14, %v6944_v49  ;;  %v756_v23 = vmul.f32 %v755_v15, %v6944_v49  ;;  %v539_v15 = vld [vmem:[%s6856_s16 + $0x30] sm:$0xff] }
  0x2e   : > { %504 = vst [vmem:[#allocation2 + $0xf8] sm:$0x3] %v6715_v3  ;;  %v708_v24 = vadd.f32 0.05243302, %v707_v17  ;;  %v719_v25 = vadd.f32 0.112945676, %v718_v18  ;;  %v636_v54 = vmul.f32 %v635_v45, %v6976_v5 }
  0x2f   : > { %505 = vst [vmem:[#allocation2 + $0x100] sm:$0xff] %v6715_v3  ;;  %v589_v35 = vmul.f32 %v588_v20, %v6926_v42  ;;  %v600_v36 = vmul.f32 %v599_v21, %v6926_v42  ;;  %v746_v37 = vadd.f32 0.0036580483, %v745_v22  ;;  %v757_v38 = vadd.f32 0.014752088, %v756_v23 }
  0x30   : > { %506 = vst [vmem:[#allocation2 + $0x108] sm:$0x3] %v6715_v3  ;;  %v709_v39 = vmul.f32 %v708_v24, %v6929_v43  ;;  %v720_v40 = vmul.f32 %v719_v25, %v6929_v43  ;;  %v624_v62 = vadd.f32 0.00028619796, %v623_v44  ;;  %v637_v63 = vadd.f32 0.014752088, %v636_v54 }
  0x31   : > { %507 = vst [vmem:[#allocation2 + $0x110] sm:$0xff] %v6715_v3  ;;  %v590_v46 = vadd.f32 0.18741608, %v589_v35  ;;  %v601_v47 = vadd.f32 0.4994258, %v600_v36  ;;  %v747_v48 = vmul.f32 %v746_v37, %v6944_v49  ;;  %v758_v50 = vmul.f32 %v757_v38, %v6944_v49  ;;  %v6374_v35 = vld [vmem:[%s9430_s3 + $0x138] sm:$0xff] }
  0x32   : > { %508 = vst [vmem:[#allocation2 + $0x118] sm:$0x3] %v6715_v3  ;;  %v710_v51 = vadd.f32 0.18741608, %v709_v39  ;;  %v721_v52 = vadd.f32 0.4994258, %v720_v40  ;;  %v625_v9 = vmul.f32 %v624_v62, %v6976_v5  ;;  %v638_v10 = vmul.f32 %v637_v63, %v6976_v5  ;;  %2252 = vmatpush.bf16.msrb.mxu0 %v6374_v35 }
  0x33   : > { %509 = vst [vmem:[#allocation2 + $0x120] sm:$0xff] %v6715_v3  ;;  %v602_v56 = vmul.f32 %v601_v47, %v6926_v42  ;;  %v748_v57 = vadd.f32 0.05243302, %v747_v48  ;;  %v759_v58 = vadd.f32 0.112945676, %v758_v50  ;;  %v591_v60 = vmul.f32 %v590_v46, %v6926_v42  ;;  %v6366_v36 = vld [vmem:[%s9430_s3 + $0xf8] sm:$0xff] }
  0x34   : > { %510 = vst [vmem:[#allocation2 + $0x128] sm:$0x3] %v6715_v3  ;;  %v722_v61 = vmul.f32 %v721_v52, %v6929_v43  ;;  %v711_v1 = vmul.f32 %v710_v51, %v6929_v43  ;;  %v7027_v6 = vmul.f32 0.70710677, %v7009_v55  ;;  %v7033_v8 = vmul.f32 3.8918573e-05, %v7013_v59  ;;  %2138 = vmatpush.bf16.msrb.mxu3 %v6366_v36 }
  0x35   : > { %511 = vst [vmem:[#allocation2 + $0x130] sm:$0xff] %v6715_v3  ;;  %v7018_v0 = vadd.f32 1.0, %v602_v56  ;;  %v749_v42 = vmul.f32 %v748_v57, %v6944_v49  ;;  %v760_v7 = vmul.f32 %v759_v58, %v6944_v49  ;;  %v7035_v43 = vadd.f32 1.1283791, %v591_v60  ;;  %v6373_v48 = vld [vmem:[%s9430_s3 + $0x130] sm:$0xff]  ;;  %v6382_v60 = vld [vmem:[%s9430_s3 + $0x178] sm:$0xff] }
  0x36   : > { %512 = vst [vmem:[#allocation2 + $0x138] sm:$0x3] %v6715_v3  ;;  %v7023_v2 = vadd.f32 1.0, %v722_v61  ;;  %v7047_v14 = vadd.f32 1.1283791, %v711_v1  ;;  %v781_v19 = vmul.f32 %v7027_v6, %v7027_v6  ;;  %v7059_v20 = vmul.f32 0.5, %v6884_v27  ;;  %2253 = vmatpush.bf16.msrb.mxu0 %v6373_v48  ;;  %2366 = vmatpush.bf16.msrb.mxu1 %v6382_v60 }
  0x37   : > { %513 = vst [vmem:[#allocation2 + $0x140] sm:$0xff] %v6715_v3  ;;  %6623 = vrcp.f32 %v7018_v0  ;;  %v613_v13 = vand.u32 2147483647, %v7018_v0  ;;  %v615_v17 = vand.u32 2147483648, %v7018_v0  ;;  %v750_v18 = vadd.f32 0.18741608, %v749_v42 }
  0x38   : > { %514 = vst [vmem:[#allocation2 + $0x148] sm:$0x3] %v6715_v3  ;;  %6625 = vrcp.f32 %v7023_v2  ;;  %v733_v21 = vand.u32 2147483647, %v7023_v2  ;;  %v761_v22 = vadd.f32 0.4994258, %v760_v7  ;;  %vm609_vm0 = vweird.f32 %v7018_v0 }
  0x39   : > { %515 = vst [vmem:[#allocation2 + $0x150] sm:$0xff] %v6715_v3  ;;  %v626_v26 = vadd.f32 0.0036580483, %v625_v9  ;;  %v639_v23 = vadd.f32 0.112945676, %v638_v10  ;;  %v551_v24 = vmul.f32 %v6837_v11, %v539_v15  ;;  %vm7067_vm1 = vcmp.eq.f32.partialorder %v613_v13, 8.507059e+37 }
  0x3a   : > { %516 = vst [vmem:[#allocation2 + $0x158] sm:$0x3] %v6715_v3  ;;  %vm729_vm2 = vweird.f32 %v7023_v2  ;;  %v735_v27 = vand.u32 2147483648, %v7023_v2  ;;  %v762_v33 = vmul.f32 %v761_v22, %v6944_v49  ;;  %v7085_v39 = vor.u32 1.1754944e-38, %v615_v17  ;;  %v6365_v50 = vld [vmem:[%s9430_s3 + $0xf0] sm:$0xff]  ;;  %v6372_v1 = vld [vmem:[%s9430_s3 + $0x128] sm:$0xff] }
  0x3b   : > { %517 = vst [vmem:[#allocation2 + $0x160] sm:$0xff] %v6715_v3  ;;  %v751_v40 = vmul.f32 %v750_v18, %v6944_v49  ;;  %v7090_v44 = vmin.f32 %v781_v19, 16.0  ;;  %vm7095_vm3 = vcmp.eq.f32.partialorder %v733_v21, 8.507059e+37  ;;  %v6390_v49 = vld [vmem:[%s9430_s3 + $0x1b8] sm:$0xff]  ;;  %v627_v51 = vmul.f32 %v626_v26, %v6976_v5  ;;  %v6389_v42 = vld [vmem:[%s9430_s3 + $0x1b0] sm:$0xff]  ;;  %2139 = vmatpush.bf16.msrb.mxu3 %v6365_v50  ;;  %v6364_v15 = vld [vmem:[%s9430_s3 + $0xe8] sm:$0xff]  ;;  %2254 = vmatpush.bf16.msrb.mxu0 %v6372_v1 }
  0x3c   : > { %518 = vst [vmem:[#allocation2 + $0x168] sm:$0x3] %v6715_v3  ;;  %v7099_v47 = vadd.f32 1.0, %v762_v33  ;;  %v640_v54 = vmul.f32 %v639_v23, %v6976_v5  ;;  %v663_v56 = vmul.f32 2.1237322e-06, %v7013_v59  ;;  %v736_v58 = vor.u32 1.1754944e-38, %v735_v27  ;;  %2481 = vmatpush.bf16.msrb.mxu2 %v6390_v49 }
  0x3d   : > { %519 = vst [vmem:[#allocation2 + $0x170] sm:$0xff] %v6715_v3  ;;  %v7065_v25 = vpop.eup %6623  ;;  %v7122_v62 = vstv %s919_s17  ;;  %v752_v63 = vadd.f32 1.1283791, %v751_v40  ;;  %v7132_v7 = vadd.f32 %v6843_v12, %v551_v24  ;;  %v593_v9 = vmul.f32 %v7035_v43, %v6894_v30  ;;  %s6333_s17 = sshll.u32 %s9539_s13, 6 }
  0x3e   : > { %520 = vst [vmem:[#allocation2 + $0x178] sm:$0x3] %v6715_v3  ;;  %v7081_v37 = vpop.eup %6625  ;;  %v605_v38 = vmul.f32 %v7065_v25, %v7018_v0  ;;  %vm610_vm4 = vweird.f32 %v7065_v25  ;;  %6627 = vrcp.f32 %v7099_v47  ;;  %v628_v17 = vadd.f32 0.05243302, %v627_v51  ;;  %s8224_s22 = scalar_lea.vmem %s9429_s2, %s6333_s17  ;;  %s9381_s17 = scalar_lea.vmem %s9434_s7, %s6332_s28 }
  0x3f   : > { %521 = vst [vmem:[#allocation2 + $0x180] sm:$0xff] %v6715_v3  ;;  %v725_v45 = vmul.f32 %v7081_v37, %v7023_v2  ;;  %vm730_vm5 = vweird.f32 %v7081_v37  ;;  %vm7140_vm6 = vmor %vm609_vm0, %vm610_vm4  ;;  %v641_v30 = vadd.f32 0.4994258, %v640_v54  ;;  %v713_v0 = vmul.f32 %v7047_v14, %v6898_v31  ;;  %2140 = vmatpush.bf16.msrb.mxu3 %v6364_v15  ;;  %s8551_s13 = scalar_select %p1715_p11, 1, 0 }
  0x40   : > { %522 = vst [vmem:[#allocation2 + $0x188] sm:$0x3] %v6715_v3  ;;  %v606_v52 = vsub.f32 1.0, %v605_v38  ;;  %vm7157_vm7 = vmor %vm729_vm2, %vm730_vm5  ;;  %v773_v19 = vand.u32 2147483647, %v7099_v47  ;;  %v775_v26 = vand.u32 2147483648, %v7099_v47  ;;  %2482 = vmatpush.bf16.msrb.mxu2 %v6389_v42  ;;  %v629_v31 = vmul.f32 %v628_v17, %v6976_v5 }
  0x41   : > { %523 = vst [vmem:[#allocation2 + $0x190] sm:$0xff] %v6715_v3  ;;  %v726_v57 = vsub.f32 1.0, %v725_v45  ;;  %v664_v21 = vadd.f32 0.00028619796, %v663_v56  ;;  %v642_v14 = vmul.f32 %v641_v30, %v6976_v5  ;;  %v753_v23 = vmul.f32 %v752_v63, %v6906_v34  ;;  %v6371_v34 = vld [vmem:[%s9430_s3 + $0x120] sm:$0xff]  ;;  %s1717_s27 = scvt.s32.f32 %s8551_s13  ;;  %s5024_s28 = sshll.u32 %s9535_s26, 1 }
  0x42   : > { %524 = vst [vmem:[#allocation2 + $0x198] sm:$0x3] %v6715_v3  ;;  %v607_v61 = vmul.f32 %v7065_v25, %v606_v52  ;;  %vm769_vm8 = vweird.f32 %v7099_v47  ;;  %v675_v32 = vadd.f32 0.001143296, %v7033_v8  ;;  %v630_v40 = vadd.f32 0.18741608, %v629_v31  ;;  %2255 = vmatpush.bf16.msrb.mxu0 %v6371_v34  ;;  %s470_s18 = scalar_lea.vmem %s9435_s8, %s5024_s28 }
  0x43   : > { %525 = vst [vmem:[#allocation2 + $0x1a0] sm:$0xff] %v6715_v3  ;;  %v727_v13 = vmul.f32 %v7081_v37, %v726_v57  ;;  %v665_v24 = vmul.f32 %v664_v21, %v7013_v59  ;;  %v7187_v36 = vadd.f32 1.0, %v642_v14  ;;  %vm7194_vm9 = vcmp.eq.f32.partialorder %v773_v19, 8.507059e+37  ;;  %v1764_v30 = vld [vmem:[#allocation2 + $0x1] sm:$0xff] }
  0x44   : > { %526 = vst [vmem:[#allocation2 + $0x1a8] sm:$0x3] %v6715_v3  ;;  %v608_v43 = vadd.f32 %v7065_v25, %v607_v61  ;;  %v6628_v27 = vpop.eup %6627  ;;  %v776_v49 = vor.u32 1.1754944e-38, %v775_v26  ;;  %v783_v8 = vmul.f32 2.1237322e-06, %v7090_v44  ;;  %v676_v54 = vmul.f32 %v675_v32, %v7013_v59 }
  0x45   : > { %527 = vst [vmem:[#allocation2 + $0x1b0] sm:$0xff] %v6715_v3  ;;  %v728_v22 = vadd.f32 %v7081_v37, %v727_v13  ;;  %6629 = vrcp.f32 %v7187_v36  ;;  %vm770_vm10 = vweird.f32 %v6628_v27  ;;  %v666_v46 = vadd.f32 0.0036580483, %v665_v24 }
  0x46   : > { %528 = vst [vmem:[#allocation2 + $0x1b8] sm:$0x3] %v6715_v3  ;;  %v612_v2 = vsel %vm7140_vm6, %v7065_v25, %v608_v43  ;;  %v6363_v25 = vld [vmem:[%s9430_s3 + $0xe0] sm:$0xff]  ;;  %v7202_v56 = vmul.f32 0.70710677, %v7132_v7  ;;  %v631_v60 = vmul.f32 %v630_v40, %v6976_v5  ;;  %vm649_vm11 = vweird.f32 %v7187_v36  ;;  %vm7208_vm12 = vmor %vm769_vm8, %vm770_vm10 }
  0x47   : > { %529 = vst [vmem:[#allocation2 + $0x1c0] sm:$0xff] %v6715_v3  ;;  %v617_v33 = vsel %vm7067_vm1, %v7085_v39, %v612_v2  ;;  %v732_v35 = vsel %vm7157_vm7, %v7081_v37, %v728_v22  ;;  %v765_v39 = vmul.f32 %v6628_v27, %v7099_v47  ;;  %2141 = vmatpush.bf16.msrb.mxu3 %v6363_v25  ;;  %v653_v1 = vand.u32 2147483647, %v7187_v36 }
  0x48   : > { %530 = vst [vmem:[#allocation2 + $0x1c8] sm:$0x3] %v6715_v3  ;;  %v618_v38 = vmul.f32 %v617_v33, %v593_v9  ;;  %v737_v37 = vsel %vm7095_vm3, %v736_v58, %v732_v35  ;;  %v667_v42 = vmul.f32 %v666_v46, %v7013_v59  ;;  %v677_v9 = vadd.f32 0.014752088, %v676_v54 }
  0x49   : > { %531 = vst [vmem:[#allocation2 + $0x1d0] sm:$0xff] %v6715_v3  ;;  %v738_v45 = vmul.f32 %v737_v37, %v713_v0  ;;  %v766_v51 = vsub.f32 1.0, %v765_v39  ;;  %v655_v15 = vand.u32 2147483648, %v7187_v36  ;;  %v784_v5 = vadd.f32 0.00028619796, %v783_v8 }
  0x4a   : > { %532 = vst [vmem:[#allocation2 + $0x1d8] sm:$0x3] %v6715_v3  ;;  %v5025_v50 = vclamps-f32 %v618_v38, 1.0  ;;  %v668_v43 = vadd.f32 0.05243302, %v667_v42  ;;  %v678_v0 = vmul.f32 %v677_v9, %v7013_v59  ;;  %v821_v22 = vmul.f32 %v7202_v56, %v7202_v56 }
  0x4b   : > { %v5028_v52 = vclamps-f32 %v738_v45, 1.0  ;;  %v767_v58 = vmul.f32 %v6628_v27, %v766_v51  ;;  %v6630_v17 = vpop.eup %6629  ;;  %v794_v18 = vmul.f32 3.8918573e-05, %v7090_v44  ;;  %v632_v31 = vadd.f32 1.1283791, %v631_v60 }
  0x4c   : > { %v901_v57 = vadd.f32 1.0, %v5025_v50  ;;  %v679_v14 = vadd.f32 0.112945676, %v678_v0  ;;  %vm650_vm13 = vweird.f32 %v6630_v17  ;;  %v669_v35 = vmul.f32 %v668_v43, %v7013_v59 }
  0x4d   : > { %v904_v63 = vadd.f32 1.0, %v5028_v52  ;;  %v768_v13 = vadd.f32 %v6628_v27, %v767_v58  ;;  %v785_v25 = vmul.f32 %v784_v5, %v7090_v44  ;;  %v795_v37 = vadd.f32 0.001143296, %v794_v18  ;;  %vm7244_vm14 = vmor %vm649_vm11, %vm650_vm13  ;;  %v1947_v52 = vld [vmem:[#allocation2 + $0x2] sm:$0xff] }
  0x4e   : > { %v909_v10 = vmul.f32 %v901_v57, %v7051_v16  ;;  %v645_v16 = vmul.f32 %v6630_v17, %v7187_v36  ;;  %v680_v34 = vmul.f32 %v679_v14, %v7013_v59  ;;  %v7239_v39 = vmin.f32 %v821_v22, 16.0 }
  0x4f   : > { %v912_v47 = vmul.f32 %v904_v63, %v7059_v20  ;;  %v772_v21 = vsel %vm7208_vm12, %v6628_v27, %v768_v13  ;;  %v569_v27 = vmul.f32 0.5, %v6887_v28  ;;  %vm7248_vm15 = vcmp.eq.f32.partialorder %v653_v1, 8.507059e+37 }
  0x50   : > { %v7220_v19 = vmul.f32 %v7122_v62, %v909_v10  ;;  %v777_v26 = vsel %vm7194_vm9, %v776_v49, %v772_v21  ;;  %v646_v33 = vsub.f32 1.0, %v645_v16  ;;  %v656_v45 = vor.u32 1.1754944e-38, %v655_v15 }
  0x51   : > { %v7230_v20 = vmul.f32 %v7122_v62, %v912_v47  ;;  %v778_v24 = vmul.f32 %v777_v26, %v753_v23  ;;  %v633_v23 = vmul.f32 %v632_v31, %v6924_v41  ;;  %v681_v48 = vadd.f32 0.4994258, %v680_v34 }
  0x52   : > { %930 = vst [vmem:[#allocation2 + $0x11] sm:$0xff] %v7220_v19  ;;  %v1772_v2 = vpack.c.bf16 %v7220_v19, %v1764_v30  ;;  %v647_v38 = vmul.f32 %v6630_v17, %v646_v33  ;;  %v796_v51 = vmul.f32 %v795_v37, %v7090_v44  ;;  %v823_v8 = vmul.f32 2.1237322e-06, %v7239_v39 }
  0x53   : > { %933 = vst [vmem:[#allocation2 + $0x41] sm:$0xff] %v7230_v20  ;;  %v5029_v32 = vclamps-f32 %v778_v24, 1.0  ;;  %v670_v41 = vadd.f32 0.18741608, %v669_v35  ;;  %v682_v36 = vmul.f32 %v681_v48, %v7013_v59  ;;  %v786_v46 = vadd.f32 0.0036580483, %v785_v25 }
  0x54   : > { %1849 = vmatmul.bf16.vlgmr.msra.gmra.mxu0 %v1772_v2  ;;  %v648_v50 = vadd.f32 %v6630_v17, %v647_v38  ;;  %v797_v58 = vadd.f32 0.014752088, %v796_v51  ;;  %v834_v60 = vmul.f32 3.8918573e-05, %v7239_v39  ;;  %v824_v9 = vadd.f32 0.00028619796, %v823_v8 }
  0x55   : > { %v905_v49 = vadd.f32 1.0, %v5029_v32  ;;  %v683_v42 = vadd.f32 1.0, %v682_v36  ;;  %v566_v30 = vmul.f32 0.5, %v6891_v29  ;;  %v787_v0 = vmul.f32 %v786_v46, %v7090_v44  ;;  %v540_v46 = vld [vmem:[%s6856_s16 + $0x38] sm:$0xff] }
  0x56   : > { %v652_v57 = vsel %vm7244_vm14, %v6630_v17, %v648_v50  ;;  %v835_v43 = vadd.f32 0.001143296, %v834_v60  ;;  %v798_v18 = vmul.f32 %v797_v58, %v7090_v44  ;;  %v671_v21 = vmul.f32 %v670_v41, %v7013_v59 }
  0x57   : > { %v913_v54 = vmul.f32 %v905_v49, %v569_v27  ;;  %v657_v1 = vsel %vm7248_vm15, %v656_v45, %v652_v57  ;;  %6631 = vrcp.f32 %v683_v42  ;;  %v788_v29 = vadd.f32 0.05243302, %v787_v0 }
  0x58   : > { %v658_v5 = vmul.f32 %v657_v1, %v633_v23  ;;  %v836_v22 = vmul.f32 %v835_v43, %v7239_v39  ;;  %v799_v26 = vadd.f32 0.112945676, %v798_v18  ;;  %v672_v27 = vadd.f32 1.1283791, %v671_v21  ;;  %v6381_v43 = vld [vmem:[%s9430_s3 + $0x170] sm:$0xff] }
  0x59   : > { %v7258_v61 = vld [vmem:[#allocation2 + $0x10] sm:$0xff]  ;;  %v7265_v10 = vmul.f32 %v7122_v62, %v913_v54  ;;  %v695_v25 = vand.u32 2147483648, %v683_v42  ;;  %vm689_vm0 = vweird.f32 %v683_v42  ;;  %v693_v23 = vand.u32 2147483647, %v683_v42  ;;  %2367 = vmatpush.bf16.msrb.mxu1 %v6381_v43 }
  0x5a   : > { %v7260_v63 = vld [vmem:[#allocation2 + $0x12] sm:$0xff]  ;;  %v1744_v13 = vpack.c.bf16 %v7258_v61, %v6715_v3  ;;  %v5026_v47 = vclamps-f32 %v658_v5, 1.0  ;;  %v825_v3 = vmul.f32 %v824_v9, %v7239_v39  ;;  %v837_v2 = vadd.f32 0.014752088, %v836_v22  ;;  %v6387_v22 = vld [vmem:[%s9430_s3 + $0x1a0] sm:$0xff] }
  0x5b   : > { %v1955_v15 = vpack.c.bf16 %v7260_v63, %v1947_v52  ;;  %934 = vst [vmem:[#allocation2 + $0x51] sm:$0xff] %v7265_v10  ;;  %v1774_v17 = vpack.c.bf16 %v7265_v10, %v7230_v20  ;;  %v800_v33 = vmul.f32 %v799_v26, %v7090_v44  ;;  %v789_v28 = vmul.f32 %v788_v29, %v7090_v44  ;;  %v6368_v29 = vld [vmem:[%s9430_s3 + $0x108] sm:$0xff] }
  0x5c   : > { %1926 = vmatmul.bf16.vlgmr.msra.gmra.mxu1 %v1744_v13  ;;  %v902_v16 = vadd.f32 1.0, %v5026_v47  ;;  %v826_v31 = vadd.f32 0.0036580483, %v825_v3  ;;  %v838_v38 = vmul.f32 %v837_v2, %v7239_v39  ;;  %v696_v49 = vor.u32 1.1754944e-38, %v695_v25  ;;  %v6362_v13 = vld [vmem:[%s9430_s3 + $0xd8] sm:$0xff] }
  0x5d   : > { %2032 = vmatmul.bf16.vlgmr.msra.gmra.mxu2 %v1955_v15  ;;  %1859 = vmatmul.bf16.vlgmr.msra.gmra.mxu3 %v1774_v17  ;;  %v6632_v24 = vpop.eup %6631  ;;  %v801_v32 = vadd.f32 0.4994258, %v800_v33  ;;  %v673_v52 = vmul.f32 %v672_v27, %v6974_v4  ;;  %vm694_vm3 = vcmp.eq.f32.partialorder %v693_v23, 8.507059e+37  ;;  %v790_v36 = vadd.f32 0.18741608, %v789_v28  ;;  %v6370_v4 = vld [vmem:[%s9430_s3 + $0x118] sm:$0xff] }
  0x5e   : > { %v910_v14 = vmul.f32 %v902_v16, %v566_v30  ;;  %v685_v35 = vmul.f32 %v6632_v24, %v683_v42  ;;  %v827_v59 = vmul.f32 %v826_v31, %v7239_v39  ;;  %vm690_vm1 = vweird.f32 %v6632_v24  ;;  %2256 = vmatpush.bf16.msrb.mxu0 %v6370_v4  ;;  %2142 = vmatpush.bf16.msrb.mxu3 %v6362_v13  ;;  %v6380_v16 = vld [vmem:[%s9430_s3 + $0x168] sm:$0xff]  ;;  %v6403_v4 = vld [vmem:[%s9430_s3 + $0x220] sm:$0xff] }
  0x5f   : > { %v802_v40 = vmul.f32 %v801_v32, %v7090_v44  ;;  %v839_v45 = vadd.f32 0.112945676, %v838_v38  ;;  %vm691_vm2 = vmor %vm689_vm0, %vm690_vm1  ;;  %v552_v58 = vmul.f32 %v6837_v11, %v540_v46  ;;  %v791_v5 = vmul.f32 %v790_v36, %v7090_v44  ;;  %v6369_v11 = vld [vmem:[%s9430_s3 + $0x110] sm:$0xff]  ;;  %v6360_v33 = vld [vmem:[%s9430_s3 + $0xc8] sm:$0xff]  ;;  %2368 = vmatpush.bf16.msrb.mxu1 %v6380_v16 }
  0x60   : > { %v7281_v34 = vmul.f32 %v7122_v62, %v910_v14  ;;  %v686_v37 = vsub.f32 1.0, %v685_v35  ;;  %v828_v51 = vadd.f32 0.05243302, %v827_v59  ;;  %v567_v17 = vmul.f32 0.5, %v6953_v53  ;;  %v6361_v44 = vld [vmem:[%s9430_s3 + $0xd0] sm:$0xff] }
  0x61   : > { %v7288_v50 = vadd.f32 1.0, %v802_v40  ;;  %v840_v8 = vmul.f32 %v839_v45, %v7239_v39  ;;  %v7304_v15 = vadd.f32 %v6843_v12, %v552_v58  ;;  %v6388_v12 = vld [vmem:[%s9430_s3 + $0x1a8] sm:$0xff]  ;;  %v792_v26 = vadd.f32 1.1283791, %v791_v5  ;;  %v6359_v45 = vld [vmem:[%s9430_s3 + $0xc0] sm:$0xff]  ;;  %v6405_v16 = vld [vmem:[%s9430_s3 + $0x230] sm:$0xff] }
  0x62   : > { %931 = vst [vmem:[#allocation2 + $0x21] sm:$0xff] %v7281_v34  ;;  %v687_v48 = vmul.f32 %v6632_v24, %v686_v37  ;;  %v829_v1 = vmul.f32 %v828_v51, %v7239_v39  ;;  %2483 = vmatpush.bf16.msrb.mxu2 %v6388_v12  ;;  %2257 = vmatpush.bf16.msrb.mxu0 %v6369_v11 }
  0x63   : > { %6633 = vrcp.f32 %v7288_v50  ;;  %v841_v57 = vadd.f32 0.4994258, %v840_v8  ;;  %v7323_v53 = vmul.f32 0.70710677, %v7304_v15  ;;  %vm809_vm4 = vweird.f32 %v7288_v50  ;;  %2143 = vmatpush.bf16.msrb.mxu3 %v6361_v44 }
  0x64   : > { %v688_v41 = vadd.f32 %v6632_v24, %v687_v48  ;;  %v830_v18 = vadd.f32 0.18741608, %v829_v1  ;;  %v813_v31 = vand.u32 2147483647, %v7288_v50  ;;  %v815_v14 = vand.u32 2147483648, %v7288_v50 }
  0x65   : > { %v842_v9 = vmul.f32 %v841_v57, %v7239_v39  ;;  %v861_v27 = vmul.f32 %v7323_v53, %v7323_v53  ;;  %v793_v38 = vmul.f32 %v792_v26, %v7027_v6  ;;  %v6367_v6 = vld [vmem:[%s9430_s3 + $0x100] sm:$0xff] }
  0x66   : > { %v692_v54 = vsel %vm691_vm2, %v6632_v24, %v688_v41  ;;  %v831_v35 = vmul.f32 %v830_v18, %v7239_v39  ;;  %2484 = vmatpush.bf16.msrb.mxu2 %v6387_v22  ;;  %v816_v23 = vor.u32 1.1754944e-38, %v815_v14  ;;  %vm814_vm7 = vcmp.eq.f32.partialorder %v813_v31, 8.507059e+37  ;;  %2258 = vmatpush.bf16.msrb.mxu0 %v6368_v29  ;;  %v6398_v18 = vld [vmem:[%s9430_s3 + $0x1f8] sm:$0xff] }
  0x67   : > { %v697_v60 = vsel %vm694_vm3, %v696_v49, %v692_v54  ;;  %v7311_v47 = vadd.f32 1.0, %v842_v9  ;;  %v7348_v59 = vmin.f32 %v861_v27, 16.0  ;;  %2144 = vmatpush.bf16.msrb.mxu3 %v6360_v33  ;;  %v571_v27 = vmul.f32 0.5, %v7132_v7  ;;  %v7438_v7 = vld [vmem:[#allocation2 + $0x40] sm:$0xff] }
  0x68   : > { %v698_v42 = vmul.f32 %v697_v60, %v673_v52  ;;  %v832_v49 = vadd.f32 1.1283791, %v831_v35 }
  0x69   : > { %v6634_v0 = vpop.eup %6633  ;;  %6635 = vrcp.f32 %v7311_v47  ;;  %v874_v48 = vmul.f32 3.8918573e-05, %v7348_v59  ;;  %vm849_vm8 = vweird.f32 %v7311_v47  ;;  %v855_v8 = vand.u32 2147483648, %v7311_v47  ;;  %v7377_v60 = vld [vmem:[#allocation2 + $0x20] sm:$0xff] }
  0x6a   : > { %v5027_v30 = vclamps-f32 %v698_v42, 1.0  ;;  %v805_v21 = vmul.f32 %v6634_v0, %v7288_v50  ;;  %vm810_vm5 = vweird.f32 %v6634_v0  ;;  %v853_v46 = vand.u32 2147483647, %v7311_v47  ;;  %2259 = vmatpush.bf16.msrb.mxu0 %v6367_v6  ;;  %v7379_v1 = vld [vmem:[#allocation2 + $0x22] sm:$0xff] }
  0x6b   : > { %vm7353_vm6 = vmor %vm809_vm4, %vm810_vm5  ;;  %v875_v52 = vadd.f32 0.001143296, %v874_v48  ;;  %2145 = vmatpush.bf16.msrb.mxu3 %v6359_v45  ;;  %v570_v42 = vmul.f32 0.5, %v7009_v55  ;;  %v856_v13 = vor.u32 1.1754944e-38, %v855_v8  ;;  %v833_v11 = vmul.f32 %v832_v49, %v7202_v56  ;;  %v6406_v55 = vld [vmem:[%s9430_s3 + $0x238] sm:$0xff]  ;;  %v6379_v56 = vld [vmem:[%s9430_s3 + $0x160] sm:$0xff] }
  0x6c   : > { %v903_v3 = vadd.f32 1.0, %v5027_v30  ;;  %v806_v24 = vsub.f32 1.0, %v805_v21  ;;  %vm854_vm11 = vcmp.eq.f32.partialorder %v853_v46, 8.507059e+37  ;;  %2369 = vmatpush.bf16.msrb.mxu1 %v6379_v56  ;;  %v6397_v46 = vld [vmem:[%s9430_s3 + $0x1f0] sm:$0xff] }
  0x6d   : > { %v876_v57 = vmul.f32 %v875_v52, %v7348_v59 }
  0x6e   : > { %v911_v2 = vmul.f32 %v903_v3, %v567_v17  ;;  %v807_v32 = vmul.f32 %v6634_v0, %v806_v24  ;;  %2709 = vmatpush.bf16.msra.mxu0 %v6406_v55  ;;  %v6385_v24 = vld [vmem:[%s9430_s3 + $0x190] sm:$0xff] }
  0x6f   : > { %v6636_v28 = vpop.eup %6635  ;;  %v877_v5 = vadd.f32 0.014752088, %v876_v57  ;;  %2595 = vmatpush.bf16.msra.mxu3 %v6398_v18  ;;  %v6377_v57 = vld [vmem:[%s9430_s3 + $0x150] sm:$0xff] }
  0x70   : > { %v7346_v25 = vmul.f32 %v7122_v62, %v911_v2  ;;  %v808_v40 = vadd.f32 %v6634_v0, %v807_v32  ;;  %v845_v50 = vmul.f32 %v6636_v28, %v7311_v47  ;;  %vm850_vm9 = vweird.f32 %v6636_v28  ;;  %v6378_v2 = vld [vmem:[%s9430_s3 + $0x158] sm:$0xff] }
  0x71   : > { %vm7384_vm10 = vmor %vm849_vm8, %vm850_vm9  ;;  %v878_v3 = vmul.f32 %v877_v5, %v7348_v59  ;;  %v863_v32 = vmul.f32 2.1237322e-06, %v7348_v59  ;;  %2370 = vmatpush.bf16.msrb.mxu1 %v6378_v2  ;;  %v2069_v2 = vpack.c.bf16 %v7377_v60, %v7258_v61 }
  0x72   : > { %932 = vst [vmem:[#allocation2 + $0x31] sm:$0xff] %v7346_v25  ;;  %v7360_v39 = vpack.c.bf16 %v7346_v25, %v7281_v34  ;;  %v812_v51 = vsel %vm7353_vm6, %v6634_v0, %v808_v40  ;;  %v846_v36 = vsub.f32 1.0, %v845_v50  ;;  %v6386_v0 = vld [vmem:[%s9430_s3 + $0x198] sm:$0xff]  ;;  %2710 = vmatpush.bf16.msra.mxu0 %v6405_v16  ;;  %v7443_v50 = vld [vmem:[#allocation2 + $0x50] sm:$0xff]  ;;  %v2184_v18 = vpack.c.bf16 %v7230_v20, %v7346_v25 }
  0x73   : > { %v817_v41 = vsel %vm814_vm7, %v816_v23, %v812_v51  ;;  %v879_v31 = vadd.f32 0.112945676, %v878_v3  ;;  %2485 = vmatpush.bf16.msrb.mxu2 %v6386_v0  ;;  %2596 = vmatpush.bf16.msra.mxu3 %v6397_v46  ;;  %v7562_v46 = vld [vmem:[%s9432_s5] ss:$0 sm:$0xff] }
  0x74   : > { %1854 = vmatmul.bf16.gmra.mxu0 %v7360_v39  ;;  %v818_v54 = vmul.f32 %v817_v41, %v793_v38  ;;  %v847_v58 = vmul.f32 %v6636_v28, %v846_v36  ;;  %v2183_v38 = vpack.c.bf16 %v7281_v34, %v7220_v19  ;;  %v7445_v19 = vld [vmem:[#allocation2 + $0x42] sm:$0xff]  ;;  %v7447_v34 = vld [vmem:[#allocation2 + $0x52] sm:$0xff]  ;;  %v7457_v41 = vpack.c.bf16 %v7443_v50, %v7438_v7 }
  0x75   : > { %v880_v33 = vmul.f32 %v879_v31, %v7348_v59  ;;  %v7461_v36 = vpack.c.bf16 %v7447_v34, %v7445_v19  ;;  %2371 = vmatpush.bf16.msrb.mxu1 %v6377_v57  ;;  %v938_v57 = vld [vmem:[%s7554_s20] sm:$0xff] }
  0x76   : > { %v5030_v9 = vclamps-f32 %v818_v54, 1.0  ;;  %v848_v17 = vadd.f32 %v6636_v28, %v847_v58  ;;  %v6404_v54 = vld [vmem:[%s9430_s3 + $0x228] sm:$0xff] }
  0x77   : > { %v881_v37 = vadd.f32 0.4994258, %v880_v33  ;;  %2486 = vmatpush.bf16.msrb.mxu2 %v6385_v24  ;;  %2711 = vmatpush.bf16.msra.mxu0 %v6404_v54 }
  0x78   : > { %v906_v12 = vadd.f32 1.0, %v5030_v9  ;;  %v852_v21 = vsel %vm7384_vm10, %v6636_v28, %v848_v17  ;;  %v864_v28 = vadd.f32 0.00028619796, %v863_v32  ;;  %v6396_v9 = vld [vmem:[%s9430_s3 + $0x1e8] sm:$0xff]  ;;  %v6383_v17 = vld [vmem:[%s9430_s3 + $0x180] sm:$0xff] }
  0x79   : > { %v7389_v30 = vld [vmem:[#allocation2 + $0x30] sm:$0xff]  ;;  %v857_v22 = vsel %vm854_vm11, %v856_v13, %v852_v21  ;;  %v882_v40 = vmul.f32 %v881_v37, %v7348_v59  ;;  %2597 = vmatpush.bf16.msra.mxu3 %v6396_v9  ;;  %v6375_v21 = vld [vmem:[%s9430_s3 + $0x140] sm:$0xff]  ;;  %v6402_v37 = vld [vmem:[%s9430_s3 + $0x218] sm:$0xff] }
  0x7a   : > { %v7391_v43 = vld [vmem:[#allocation2 + $0x32] sm:$0xff]  ;;  %v7398_v47 = vpack.c.bf16 %v7389_v30, %v7377_v60  ;;  %v914_v26 = vmul.f32 %v906_v12, %v570_v42  ;;  %v858_v14 = vmul.f32 %v857_v22, %v833_v11  ;;  %v865_v45 = vmul.f32 %v864_v28, %v7348_v59  ;;  %v6384_v42 = vld [vmem:[%s9430_s3 + $0x188] sm:$0xff]  ;;  %v6395_v60 = vld [vmem:[%s9430_s3 + $0x1e0] sm:$0xff] }
  0x7b   : > { %v7402_v44 = vpack.c.bf16 %v7391_v43, %v7379_v1  ;;  %v883_v48 = vadd.f32 1.0, %v882_v40  ;;  %2487 = vmatpush.bf16.msrb.mxu2 %v6384_v42  ;;  %v6376_v11 = vld [vmem:[%s9430_s3 + $0x148] sm:$0xff]  ;;  %2712 = vmatpush.bf16.msra.mxu0 %v6403_v4  ;;  %v572_v28 = vmul.f32 0.5, %v7304_v15  ;;  %v6421_v15 = vld [vmem:[%s9430_s3 + $0x2b0] sm:$0xff]  ;;  %v950_v42 = vmul.f32 %v7562_v46, %v938_v57  ;;  %v7574_v9 = vld [vmem:[%s9433_s6] ss:$0 sm:$0xff] }
  0x7c   : > { %1931 = vmatmul.bf16.gmra.mxu1 %v7398_v47  ;;  %v7428_v29 = vmul.f32 %v7122_v62, %v914_v26  ;;  %v5031_v35 = vclamps-f32 %v858_v14, 1.0  ;;  %v866_v51 = vadd.f32 0.0036580483, %v865_v45  ;;  %v6394_v45 = vld [vmem:[%s9430_s3 + $0x1d8] sm:$0xff] }
  0x7d   : > { %2037 = vmatmul.bf16.gmra.mxu2 %v7402_v44  ;;  %6637 = vrcp.f32 %v883_v48  ;;  %v895_v3 = vand.u32 2147483648, %v883_v48  ;;  %2372 = vmatpush.bf16.msrb.mxu1 %v6376_v11  ;;  %vm889_vm12 = vweird.f32 %v883_v48  ;;  %v7578_v4 = vadd.f32 %v7574_v9, %v950_v42  ;;  %v6393_v11 = vld [vmem:[%s9430_s3 + $0x1d0] sm:$0xff] }
  0x7e   : > { %935 = vst [vmem:[#allocation2 + $0x61] sm:$0xff] %v7428_v29  ;;  %v907_v23 = vadd.f32 1.0, %v5031_v35  ;;  %v867_v52 = vmul.f32 %v866_v51, %v7348_v59  ;;  %2598 = vmatpush.bf16.msra.mxu3 %v6395_v60 }
  0x7f   : > { %2488 = vmatpush.bf16.msrb.mxu2 %v6383_v17  ;;  %v896_v31 = vor.u32 1.1754944e-38, %v895_v3  ;;  %2713 = vmatpush.bf16.msra.mxu0 %v6402_v37  ;;  %v6400_v17 = vld [vmem:[%s9430_s3 + $0x208] sm:$0xff]  ;;  %v6391_v3 = vld [vmem:[%s9430_s3 + $0x1c0] sm:$0xff] }
  0x80   : > { %v915_v6 = vmul.f32 %v907_v23, %v571_v27  ;;  %v868_v58 = vadd.f32 0.05243302, %v867_v52  ;;  %v6422_v23 = vld [vmem:[%s9430_s3 + $0x2b8] sm:$0xff] }
  0x81   : > { %2373 = vmatpush.bf16.msrb.mxu1 %v6375_v21  ;;  %v940_v21 = vld [vmem:[%s7554_s20 + $0x10] sm:$0xff] }
  0x82   : > { %v7441_v49 = vmul.f32 %v7122_v62, %v915_v6  ;;  %v869_v13 = vmul.f32 %v868_v58, %v7348_v59  ;;  %v6414_v6 = vld [vmem:[%s9430_s3 + $0x278] sm:$0xff]  ;;  %2599 = vmatpush.bf16.msra.mxu3 %v6394_v45  ;;  %v2185_v58 = vpack.c.bf16 %v7428_v29, %v7265_v10  ;;  %v2070_v10 = vpack.c.bf16 %v7438_v7, %v7389_v30  ;;  %v6413_v30 = vld [vmem:[%s9430_s3 + $0x270] sm:$0xff]  ;;  %v6420_v7 = vld [vmem:[%s9430_s3 + $0x2a8] sm:$0xff] }
  0x83   : > { %v6638_v5 = vpop.eup %6637  ;;  %2938 = vmatpush.bf16.msra.mxu2 %v6422_v23  ;;  %v2298_v23 = vpack.c.bf16 %v7445_v19, %v7391_v43  ;;  %v6418_v45 = vld [vmem:[%s9430_s3 + $0x298] sm:$0xff] }
  0x84   : > { %2260 = vmatmul.bf16.vlgmr.msrb.gmra.mxu0 %v2183_v38  ;;  %936 = vst [vmem:[#allocation2 + $0x71] sm:$0xff] %v7441_v49  ;;  %v7452_v8 = vpack.c.bf16 %v7441_v49, %v7428_v29  ;;  %v870_v55 = vadd.f32 0.18741608, %v869_v13  ;;  %v885_v12 = vmul.f32 %v6638_v5, %v883_v48  ;;  %vm890_vm13 = vweird.f32 %v6638_v5  ;;  %v6430_v19 = vld [vmem:[%s9430_s3 + $0x2f8] sm:$0xff] }
  0x85   : > { %vm7499_vm14 = vmor %vm889_vm12, %vm890_vm13  ;;  %v7504_v14 = vld [vmem:[#allocation2 + $0x60] sm:$0xff]  ;;  %2824 = vmatpush.bf16.msra.mxu1 %v6414_v6  ;;  %v2297_v13 = vpack.c.bf16 %v7379_v1, %v7260_v63  ;;  %v6392_v1 = vld [vmem:[%s9430_s3 + $0x1c8] sm:$0xff] }
  0x86   : > { %1864 = vmatmul.bf16.gmra.mxu3 %v7452_v8  ;;  %v871_v56 = vmul.f32 %v870_v55, %v7348_v59  ;;  %v886_v0 = vsub.f32 1.0, %v885_v12  ;;  %v893_v59 = vand.u32 2147483647, %v883_v48  ;;  %v7510_v33 = vld [vmem:[#allocation2 + $0x62] sm:$0xff]  ;;  %v6401_v48 = vld [vmem:[%s9430_s3 + $0x210] sm:$0xff] }
  0x87   : > { %2714 = vmatpush.bf16.msra.mxu0 %v6401_v48  ;;  %2939 = vmatpush.bf16.msra.mxu2 %v6421_v15  ;;  %v6399_v55 = vld [vmem:[%s9430_s3 + $0x200] sm:$0xff]  ;;  %v6437_v15 = vld [vmem:[%s9430_s3 + $0x330] sm:$0xff] }
  0x88   : > { %v872_v16 = vadd.f32 1.1283791, %v871_v56  ;;  %v887_v22 = vmul.f32 %v6638_v5, %v886_v0  ;;  %vm894_vm15 = vcmp.eq.f32.partialorder %v893_v59, 8.507059e+37  ;;  %2600 = vmatpush.bf16.msra.mxu3 %v6393_v11  ;;  %v6412_v56 = vld [vmem:[%s9430_s3 + $0x268] sm:$0xff]  ;;  %v6419_v0 = vld [vmem:[%s9430_s3 + $0x2a0] sm:$0xff]  ;;  %v952_v59 = vmul.f32 %v7562_v46, %v940_v21 }
  0x89   : > { %2825 = vmatpush.bf16.msra.mxu1 %v6413_v30 }
  0x8a   : > { %v873_v20 = vmul.f32 %v872_v16, %v7323_v53  ;;  %v888_v25 = vadd.f32 %v6638_v5, %v887_v22 }
  0x8b   : > { %v7508_v24 = vld [vmem:[#allocation2 + $0x70] sm:$0xff]  ;;  %2715 = vmatpush.bf16.msra.mxu0 %v6400_v17  ;;  %2940 = vmatpush.bf16.msra.mxu2 %v6420_v7  ;;  %v941_v7 = vld [vmem:[%s7554_s20 + $0x18] sm:$0xff] }
  0x8c   : > { %1936 = vmatmul.bf16.gmra.mxu1 %v7457_v41  ;;  %v7512_v27 = vld [vmem:[#allocation2 + $0x72] sm:$0xff]  ;;  %v892_v35 = vsel %vm7499_vm14, %v6638_v5, %v888_v25  ;;  %v7521_v38 = vpack.c.bf16 %v7508_v24, %v7504_v14  ;;  %2601 = vmatpush.bf16.msra.mxu3 %v6392_v1  ;;  %v7632_v25 = vadd.f32 %v7574_v9, %v952_v59 }
  0x8d   : > { %2042 = vmatmul.bf16.gmra.mxu2 %v7461_v36  ;;  %v897_v53 = vsel %vm894_vm15, %v896_v31, %v892_v35  ;;  %v7525_v61 = vpack.c.bf16 %v7512_v27, %v7510_v33  ;;  %2826 = vmatpush.bf16.msra.mxu1 %v6412_v56 }
  0x8e   : > { %v898_v32 = vmul.f32 %v897_v53, %v873_v20  ;;  %v7638_v35 = vmul.f32 0.70710677, %v7632_v25  ;;  %v2071_v53 = vpack.c.bf16 %v7504_v14, %v7443_v50  ;;  %v6438_v50 = vld [vmem:[%s9430_s3 + $0x338] sm:$0xff]  ;;  %v6411_v14 = vld [vmem:[%s9430_s3 + $0x260] sm:$0xff] }
  0x8f   : > { %2716 = vmatpush.bf16.msra.mxu0 %v6399_v55  ;;  %2941 = vmatpush.bf16.msra.mxu2 %v6419_v0  ;;  %v953_v55 = vmul.f32 %v7562_v46, %v941_v7 }
  0x90   : > { %v5032_v40 = vclamps-f32 %v898_v32, 1.0  ;;  %2602 = vmatpush.bf16.msra.mxu3 %v6391_v3  ;;  %v1066_v37 = vmul.f32 %v7638_v35, %v7638_v35 }
  0x91   : > { %2827 = vmatpush.bf16.msra.mxu1 %v6411_v14 }
  0x92   : > { %v908_v51 = vadd.f32 1.0, %v5032_v40  ;;  %v7651_v6 = vmin.f32 %v1066_v37, 16.0 }
  0x93   : > { %3166 = vmatpush.bf16.msrb.mxu0 %v6438_v50  ;;  %2942 = vmatpush.bf16.msra.mxu2 %v6418_v45  ;;  %v2299_v45 = vpack.c.bf16 %v7510_v33, %v7447_v34 }
  0x94   : > { %2265 = vmatmul.bf16.gmra.mxu0 %v2184_v18  ;;  %v916_v52 = vmul.f32 %v908_v51, %v572_v28 }
  0x96   : > { %2146 = vmatmul.bf16.vlgmr.msrb.gmra.mxu3 %v2069_v2  ;;  %v7565_v54 = vmul.f32 %v7122_v62, %v916_v52  ;;  %v7581_v62 = vmul.f32 0.70710677, %v7578_v4  ;;  %v6410_v52 = vld [vmem:[%s9430_s3 + $0x258] sm:$0xff] }
  0x97   : > { %3052 = vmatpush.bf16.msrb.mxu3 %v6430_v19  ;;  %3167 = vmatpush.bf16.msrb.mxu0 %v6437_v15  ;;  %v6429_v19 = vld [vmem:[%s9430_s3 + $0x2f0] sm:$0xff] }
  0x98   : > { %937 = vst [vmem:[#allocation2 + $0x81] sm:$0xff] %v7565_v54  ;;  %v986_v29 = vmul.f32 %v7581_v62, %v7581_v62  ;;  %v2186_v16 = vpack.c.bf16 %v7565_v54, %v7441_v49  ;;  %2828 = vmatpush.bf16.msra.mxu1 %v6410_v52 }
  0x9a   : > { %v7589_v5 = vmin.f32 %v986_v29, 16.0  ;;  %v6417_v29 = vld [vmem:[%s9430_s3 + $0x290] sm:$0xff] }
  0x9b   : > { %2943 = vmatpush.bf16.msra.mxu2 %v6417_v29  ;;  %v1068_v29 = vmul.f32 2.1237322e-06, %v7651_v6  ;;  %3053 = vmatpush.bf16.msrb.mxu3 %v6429_v19  ;;  %v944_v19 = vld [vmem:[%s7554_s20 + $0x30] sm:$0xff] }
  0x9c   : > { %1941 = vmatmul.bf16.gmra.mxu1 %v7521_v38  ;;  %v999_v63 = vmul.f32 3.8918573e-05, %v7589_v5  ;;  %v988_v43 = vmul.f32 2.1237322e-06, %v7589_v5 }
  0x9d   : > { %2047 = vmatmul.bf16.gmra.mxu2 %v7525_v61 }
  0x9e   : > { %v1000_v12 = vadd.f32 0.001143296, %v999_v63  ;;  %v989_v57 = vadd.f32 0.00028619796, %v988_v43  ;;  %v942_v63 = vld [vmem:[%s7554_s20 + $0x20] sm:$0xff] }
  0xa0   : > { %v1001_v18 = vmul.f32 %v1000_v12, %v7589_v5  ;;  %v954_v12 = vmul.f32 %v7562_v46, %v942_v63 }
  0xa2   : > { %v1002_v22 = vadd.f32 0.014752088, %v1001_v18  ;;  %v7690_v18 = vld [vmem:[#allocation2 + $0x80] sm:$0xff]  ;;  %v7697_v21 = vadd.f32 %v7574_v9, %v954_v12  ;;  %v6408_v12 = vld [vmem:[%s9430_s3 + $0x248] sm:$0xff] }
  0xa4   : > { %2270 = vmatmul.bf16.gmra.mxu0 %v2185_v58  ;;  %v1003_v31 = vmul.f32 %v1002_v22, %v7589_v5  ;;  %v1079_v58 = vmul.f32 3.8918573e-05, %v7651_v6 }
  0xa6   : > { %2151 = vmatmul.bf16.gmra.mxu3 %v2070_v10  ;;  %v1004_v2 = vadd.f32 0.112945676, %v1003_v31  ;;  %v1080_v11 = vadd.f32 0.001143296, %v1079_v58 }
  0xa8   : > { %v1005_v32 = vmul.f32 %v1004_v2, %v7589_v5  ;;  %v7705_v2 = vmul.f32 0.70710677, %v7697_v21 }
  0xaa   : > { %v1006_v28 = vadd.f32 0.4994258, %v1005_v32 }
  0xac   : > { %2374 = vmatmul.bf16.vlgmr.msrb.gmra.mxu1 %v2297_v13  ;;  %v1007_v48 = vmul.f32 %v1006_v28, %v7589_v5  ;;  %v990_v13 = vmul.f32 %v989_v57, %v7589_v5  ;;  %v1146_v28 = vmul.f32 %v7705_v2, %v7705_v2  ;;  %v6416_v57 = vld [vmem:[%s9430_s3 + $0x288] sm:$0xff] }
  0xad   : > { %2489 = vmatmul.bf16.vlgmr.msrb.gmra.mxu2 %v7398_v47  ;;  %v939_v47 = vld [vmem:[%s7554_s20 + $0x8] sm:$0xff] }
  0xae   : > { %v951_v26 = vmul.f32 %v7562_v46, %v939_v47  ;;  %v7676_v42 = vadd.f32 1.0, %v1007_v48  ;;  %v991_v30 = vadd.f32 0.0036580483, %v990_v13  ;;  %v7694_v47 = vadd.f32 %v7574_v9, %v953_v55  ;;  %v6436_v48 = vld [vmem:[%s9430_s3 + $0x328] sm:$0xff]  ;;  %2944 = vmatpush.bf16.msra.mxu2 %v6416_v57 }
  0xaf   : > { %v7738_v13 = vmin.f32 %v1146_v28, 16.0  ;;  %3168 = vmatpush.bf16.msrb.mxu0 %v6436_v48  ;;  %v970_v48 = vmul.f32 0.5, %v7578_v4 }
  0xb0   : > { %v7629_v20 = vadd.f32 %v7574_v9, %v951_v26  ;;  %6639 = vrcp.f32 %v7676_v42  ;;  %v992_v56 = vmul.f32 %v991_v30, %v7589_v5  ;;  %v7702_v31 = vmul.f32 0.70710677, %v7694_v47 }
  0xb1   : > { %v1020_v58 = vand.u32 2147483648, %v7676_v42  ;;  %vm1014_vm0 = vweird.f32 %v7676_v42  ;;  %v1018_v7 = vand.u32 2147483647, %v7676_v42 }
  0xb2   : > { %v7635_v49 = vmul.f32 0.70710677, %v7629_v20 }
  0xb3   : > { %v1021_v63 = vor.u32 1.1754944e-38, %v1020_v58  ;;  %vm1019_vm3 = vcmp.eq.f32.partialorder %v1018_v7, 8.507059e+37 }
  0xb4   : > { %2275 = vmatmul.bf16.gmra.mxu0 %v2186_v16  ;;  %v1026_v60 = vmul.f32 %v7635_v49, %v7635_v49  ;;  %v993_v16 = vadd.f32 0.05243302, %v992_v56 }
  0xb6   : > { %v7649_v40 = vmin.f32 %v1026_v60, 16.0  ;;  %2156 = vmatmul.bf16.gmra.mxu3 %v2071_v53  ;;  %v6640_v26 = vpop.eup %6639  ;;  %v2072_v53 = vpack.c.bf16 %v7690_v18, %v7508_v24  ;;  %v994_v32 = vmul.f32 %v993_v16, %v7589_v5 }
  0xb7   : > { %v1010_v60 = vmul.f32 %v6640_v26, %v7676_v42  ;;  %vm1015_vm1 = vweird.f32 %v6640_v26  ;;  %v1069_v42 = vadd.f32 0.00028619796, %v1068_v29  ;;  %v7789_v29 = vld [vmem:[#allocation2 + $0x51] sm:$0xff] }
  0xb8   : > { %v1039_v51 = vmul.f32 3.8918573e-05, %v7649_v40  ;;  %v995_v50 = vadd.f32 0.18741608, %v994_v32  ;;  %v1028_v34 = vmul.f32 2.1237322e-06, %v7649_v40  ;;  %vm7748_vm2 = vmor %vm1014_vm0, %vm1015_vm1 }
  0xb9   : > { %v1011_v14 = vsub.f32 1.0, %v1010_v60 }
  0xba   : > { %v1040_v10 = vadd.f32 0.001143296, %v1039_v51  ;;  %v6409_v51 = vld [vmem:[%s9430_s3 + $0x250] sm:$0xff]  ;;  %v996_v15 = vmul.f32 %v995_v50, %v7589_v5  ;;  %v6428_v5 = vld [vmem:[%s9430_s3 + $0x2e8] sm:$0xff] }
  0xbb   : > { %v1012_v52 = vmul.f32 %v6640_v26, %v1011_v14  ;;  %2829 = vmatpush.bf16.msra.mxu1 %v6409_v51  ;;  %3054 = vmatpush.bf16.msrb.mxu3 %v6428_v5 }
  0xbc   : > { %2379 = vmatmul.bf16.gmra.mxu1 %v2298_v23  ;;  %v1041_v17 = vmul.f32 %v1040_v10, %v7649_v40 }
  0xbd   : > { %2494 = vmatmul.bf16.gmra.mxu2 %v7457_v41  ;;  %v1081_v41 = vmul.f32 %v1080_v11, %v7651_v6  ;;  %v6435_v11 = vld [vmem:[%s9430_s3 + $0x320] sm:$0xff]  ;;  %v1013_v30 = vadd.f32 %v6640_v26, %v1012_v52 }
  0xbe   : > { %v1042_v1 = vadd.f32 0.014752088, %v1041_v17  ;;  %v997_v17 = vadd.f32 1.1283791, %v996_v15  ;;  %3169 = vmatpush.bf16.msrb.mxu0 %v6435_v11  ;;  %v7784_v52 = vld [vmem:[#allocation2 + $0x82] sm:$0xff] }
  0xbf   : > { %v1082_v0 = vadd.f32 0.014752088, %v1081_v41  ;;  %2830 = vmatpush.bf16.msra.mxu1 %v6408_v12  ;;  %v956_v41 = vmul.f32 %v7562_v46, %v944_v19  ;;  %v2300_v12 = vpack.c.bf16 %v7784_v52, %v7512_v27  ;;  %v6427_v27 = vld [vmem:[%s9430_s3 + $0x2e0] sm:$0xff] }
  0xc0   : > { %v1043_v3 = vmul.f32 %v1042_v1, %v7649_v40  ;;  %v1029_v1 = vadd.f32 0.00028619796, %v1028_v34  ;;  %v998_v56 = vmul.f32 %v997_v17, %v7581_v62  ;;  %3055 = vmatpush.bf16.msrb.mxu3 %v6427_v27  ;;  %v1148_v27 = vmul.f32 2.1237322e-06, %v7738_v13 }
  0xc1   : > { %v1083_v22 = vmul.f32 %v1082_v0, %v7651_v6  ;;  %v1017_v0 = vsel %vm7748_vm2, %v6640_v26, %v1013_v30  ;;  %v1159_v26 = vmul.f32 3.8918573e-05, %v7738_v13 }
  0xc2   : > { %v1044_v59 = vadd.f32 0.112945676, %v1043_v3  ;;  %v1030_v16 = vmul.f32 %v1029_v1, %v7649_v40 }
  0xc3   : > { %v1084_v37 = vadd.f32 0.112945676, %v1083_v22 }
  0xc4   : > { %2717 = vmatmul.bf16.vlgmr.msra.gmra.mxu0 %v7402_v44  ;;  %v1045_v23 = vmul.f32 %v1044_v59, %v7649_v40  ;;  %v1106_v44 = vmul.f32 %v7702_v31, %v7702_v31  ;;  %v1022_v59 = vsel %vm1019_vm3, %v1021_v63, %v1017_v0  ;;  %v1031_v60 = vadd.f32 0.0036580483, %v1030_v16  ;;  %v7802_v0 = vld [vmem:[#allocation2] sm:$0xff] }
  0xc5   : > { %v1085_v24 = vmul.f32 %v1084_v37, %v7651_v6  ;;  %v1023_v32 = vmul.f32 %v1022_v59, %v998_v56 }
  0xc6   : > { %v1046_v43 = vadd.f32 0.4994258, %v1045_v23  ;;  %2161 = vmatmul.bf16.gmra.mxu3 %v2072_v53  ;;  %v7730_v33 = vmin.f32 %v1106_v44, 16.0  ;;  %v1070_v53 = vmul.f32 %v1069_v42, %v7651_v6  ;;  %v6407_v23 = vld [vmem:[%s9430_s3 + $0x240] sm:$0xff]  ;;  %v1032_v14 = vmul.f32 %v1031_v60, %v7649_v40 }
  0xc7   : > { %v1086_v3 = vadd.f32 0.4994258, %v1085_v24  ;;  %v5033_v50 = vclamps-f32 %v1023_v32, 1.0  ;;  %v943_v24 = vld [vmem:[%s7554_s20 + $0x28] sm:$0xff]  ;;  %2831 = vmatpush.bf16.msra.mxu1 %v6407_v23  ;;  %v2415_v42 = vpack.c.bf16 %v7802_v0, %v7690_v18  ;;  %v6434_v18 = vld [vmem:[%s9430_s3 + $0x318] sm:$0xff]  ;;  %v7824_v32 = vadd.f32 %v7574_v9, %v956_v41 }
  0xc8   : > { %v1047_v10 = vmul.f32 %v1046_v43, %v7649_v40  ;;  %v1119_v22 = vmul.f32 3.8918573e-05, %v7730_v33  ;;  %v1071_v44 = vadd.f32 0.0036580483, %v1070_v53  ;;  %v1160_v43 = vadd.f32 0.001143296, %v1159_v26  ;;  %3170 = vmatpush.bf16.msrb.mxu0 %v6434_v18 }
  0xc9   : > { %v1087_v62 = vmul.f32 %v1086_v3, %v7651_v6  ;;  %v1306_v34 = vadd.f32 1.0, %v5033_v50  ;;  %v1033_v57 = vadd.f32 0.05243302, %v1032_v14  ;;  %v955_v30 = vmul.f32 %v7562_v46, %v943_v24  ;;  %v6426_v14 = vld [vmem:[%s9430_s3 + $0x2d8] sm:$0xff] }
  0xca   : > { %v7753_v55 = vadd.f32 1.0, %v1047_v10  ;;  %v1120_v37 = vadd.f32 0.001143296, %v1119_v22  ;;  %v1072_v51 = vmul.f32 %v1071_v44, %v7651_v6  ;;  %v7787_v10 = vld [vmem:[#allocation2 + $0x41] sm:$0xff]  ;;  %v1161_v1 = vmul.f32 %v1160_v43, %v7738_v13  ;;  %3056 = vmatpush.bf16.msrb.mxu3 %v6426_v14 }
  0xcb   : > { %v7773_v28 = vadd.f32 1.0, %v1087_v62  ;;  %v1034_v63 = vmul.f32 %v1033_v57, %v7649_v40  ;;  %v2527_v3 = vpack.c.bf16 %v7789_v29, %v7787_v10  ;;  %v7821_v26 = vadd.f32 %v7574_v9, %v955_v30  ;;  %v6453_v57 = vld [vmem:[%s9430_s3 + $0x3b0] sm:$0xff] }
  0xcc   : > { %2384 = vmatmul.bf16.gmra.mxu1 %v2299_v45  ;;  %6641 = vrcp.f32 %v7753_v55  ;;  %v1121_v45 = vmul.f32 %v1120_v37, %v7730_v33  ;;  %v1073_v17 = vadd.f32 0.05243302, %v1072_v51  ;;  %v1060_v37 = vand.u32 2147483648, %v7753_v55 }
  0xcd   : > { %2499 = vmatmul.bf16.gmra.mxu2 %v7521_v38  ;;  %v6415_v38 = vld [vmem:[%s9430_s3 + $0x280] sm:$0xff]  ;;  %6643 = vrcp.f32 %v7773_v28  ;;  %v1035_v16 = vadd.f32 0.18741608, %v1034_v63  ;;  %v1162_v44 = vadd.f32 0.014752088, %v1161_v1  ;;  %vm1054_vm4 = vweird.f32 %v7753_v55 }
  0xce   : > { %2945 = vmatpush.bf16.msra.mxu2 %v6415_v38  ;;  %v1122_v58 = vadd.f32 0.014752088, %v1121_v45  ;;  %v1074_v56 = vmul.f32 %v1073_v17, %v7651_v6  ;;  %v6433_v45 = vld [vmem:[%s9430_s3 + $0x310] sm:$0xff]  ;;  %v1058_v24 = vand.u32 2147483647, %v7753_v55  ;;  %v1061_v51 = vor.u32 1.1754944e-38, %v1060_v37 }
  0xcf   : > { %v1036_v60 = vmul.f32 %v1035_v16, %v7649_v40  ;;  %v6446_v40 = vld [vmem:[%s9430_s3 + $0x378] sm:$0xff]  ;;  %vm1094_vm8 = vweird.f32 %v7773_v28  ;;  %v7856_v17 = vmul.f32 0.70710677, %v7821_v26  ;;  %3171 = vmatpush.bf16.msrb.mxu0 %v6433_v45  ;;  %v1108_v63 = vmul.f32 2.1237322e-06, %v7730_v33 }
  0xd0   : > { %v1123_v22 = vmul.f32 %v1122_v58, %v7730_v33  ;;  %v1075_v62 = vadd.f32 0.18741608, %v1074_v56  ;;  %3280 = vmatpush.bf16.msrb.mxu1 %v6446_v40  ;;  %vm1059_vm7 = vcmp.eq.f32.partialorder %v1058_v24, 8.507059e+37  ;;  %v1163_v1 = vmul.f32 %v1162_v44, %v7738_v13 }
  0xd1   : > { %v1850_v5 = vpop.f32.mrf.mxu0  ;;  %v971_v18 = vmul.f32 0.5, %v7629_v20  ;;  %v7881_v37 = vmul.f32 0.70710677, %v7824_v32  ;;  %v2861_v20 = vld [vmem:[#allocation2 + $0xa1] sm:$0xff]  ;;  %v972_v45 = vmul.f32 0.5, %v7632_v25 }
  0xd2   : > { %v7782_v15 = vpop.eup %6641  ;;  %v1164_v14 = vadd.f32 0.112945676, %v1163_v1 }
  0xd3   : > { %v1050_v4 = vmul.f32 %v7782_v15, %v7753_v55  ;;  %v7810_v59 = vpop.eup %6643  ;;  %vm1055_vm5 = vweird.f32 %v7782_v15 }
  0xd4   : > { %2722 = vmatmul.bf16.gmra.mxu0 %v7461_v36  ;;  %v7795_v36 = vmul.f32 %v1306_v34, %v970_v48  ;;  %v1090_v23 = vmul.f32 %v7810_v59, %v7773_v28  ;;  %v1037_v48 = vadd.f32 1.1283791, %v1036_v60  ;;  %vm1056_vm6 = vmor %vm1054_vm4, %vm1055_vm5  ;;  %v1124_v34 = vadd.f32 0.112945676, %v1123_v22 }
  0xd5   : > { %v1051_v38 = vsub.f32 1.0, %v1050_v4  ;;  %vm1095_vm9 = vweird.f32 %v7810_v59  ;;  %v1109_v22 = vadd.f32 0.00028619796, %v1108_v63 }
  0xd6   : > { %1323 = vst [vmem:[#allocation2 + $0xb1] sm:$0xff] %v7795_v36  ;;  %2603 = vmatmul.bf16.vlgmr.msra.gmra.mxu3 %v7360_v39  ;;  %v6454_v39 = vld [vmem:[%s9430_s3 + $0x3b8] sm:$0xff]  ;;  %v1091_v55 = vsub.f32 1.0, %v1090_v23  ;;  %vm7861_vm10 = vmor %vm1094_vm8, %vm1095_vm9  ;;  %v1125_v56 = vmul.f32 %v1124_v34, %v7730_v33 }
  0xd7   : > { %v1052_v53 = vmul.f32 %v7782_v15, %v1051_v38  ;;  %3394 = vmatpush.bf16.msrb.mxu2 %v6454_v39  ;;  %v1110_v60 = vmul.f32 %v1109_v22, %v7730_v33 }
  0xd8   : > { %v1092_v41 = vmul.f32 %v7810_v59, %v1091_v55 }
  0xd9   : > { %v1927_v11 = vpop.f32.mrf.mxu1  ;;  %v1053_v43 = vadd.f32 %v7782_v15, %v1052_v53  ;;  %v1126_v53 = vadd.f32 0.4994258, %v1125_v56 }
  0xda   : > { %v1928_v7 = vadd.f32 %v1927_v11, %v1850_v5  ;;  %v1076_v5 = vmul.f32 %v1075_v62, %v7651_v6  ;;  %v1038_v11 = vmul.f32 %v1037_v48, %v7635_v49  ;;  %v1100_v49 = vand.u32 2147483648, %v7773_v28  ;;  %v6452_v6 = vld [vmem:[%s9430_s3 + $0x3a8] sm:$0xff] }
  0xdb   : > { %v1057_v58 = vsel %vm1056_vm6, %v7782_v15, %v1053_v43  ;;  %v1098_v15 = vand.u32 2147483647, %v7773_v28  ;;  %3395 = vmatpush.bf16.msrb.mxu2 %v6453_v57  ;;  %v1093_v38 = vadd.f32 %v7810_v59, %v1092_v41  ;;  %v7889_v43 = vpop.f32.mrf.mxu0 }
  0xdc   : > { %2389 = vmatmul.bf16.gmra.mxu1 %v2300_v12  ;;  %v1062_v4 = vsel %vm1059_vm7, %v1061_v51, %v1057_v58  ;;  %v1077_v30 = vadd.f32 1.1283791, %v1076_v5  ;;  %v1101_v16 = vor.u32 1.1754944e-38, %v1100_v49  ;;  %v2869_v58 = vpack.c.bf16 %v7795_v36, %v2861_v20  ;;  %v6424_v49 = vld [vmem:[%s9430_s3 + $0x2c8] sm:$0xff] }
  0xdd   : > { %2504 = vmatmul.bf16.gmra.mxu2 %v2415_v42  ;;  %vm1099_vm11 = vcmp.eq.f32.partialorder %v1098_v15, 8.507059e+37  ;;  %v1097_v28 = vsel %vm7861_vm10, %v7810_v59, %v1093_v38  ;;  %v7883_v23 = vld [vmem:[#allocation2 + $0xb0] sm:$0xff]  ;;  %v1149_v59 = vadd.f32 0.00028619796, %v1148_v27  ;;  %v1165_v5 = vmul.f32 %v1164_v14, %v7738_v13  ;;  %v6431_v38 = vld [vmem:[%s9430_s3 + $0x300] sm:$0xff] }
  0xde   : > { %v1078_v12 = vmul.f32 %v1077_v30, %v7638_v35  ;;  %v1186_v35 = vmul.f32 %v7856_v17, %v7856_v17  ;;  %v1102_v62 = vsel %vm1099_vm11, %v1101_v16, %v1097_v28  ;;  %v2755_v57 = vpack.c.bf16 %v7883_v23, %v7802_v0  ;;  %v6432_v0 = vld [vmem:[%s9430_s3 + $0x308] sm:$0xff]  ;;  %v2639_v15 = vld [vmem:[#allocation2 + $0x92] sm:$0xff] }
  0xdf   : > { %v1150_v51 = vmul.f32 %v1149_v59, %v7738_v13  ;;  %v1166_v41 = vadd.f32 0.4994258, %v1165_v5  ;;  %3172 = vmatpush.bf16.msrb.mxu0 %v6432_v0  ;;  %3396 = vmatpush.bf16.msrb.mxu2 %v6452_v6  ;;  %v6451_v0 = vld [vmem:[%s9430_s3 + $0x3a0] sm:$0xff] }
  0xe0   : > { %v2033_v50 = vpop.f32.mrf.mxu2  ;;  %v1103_v44 = vmul.f32 %v1102_v62, %v1078_v12  ;;  %v7894_v34 = vmin.f32 %v1186_v35, 16.0  ;;  %v2643_v35 = vpack.c.bf16 %v2639_v15, %v7784_v52 }
  0xe1   : > { %v7846_v19 = vadd.f32 %v2033_v50, %v1928_v7  ;;  %v1063_v7 = vmul.f32 %v1062_v4, %v1038_v11  ;;  %v1127_v50 = vmul.f32 %v1126_v53, %v7730_v33  ;;  %v6425_v11 = vld [vmem:[%s9430_s3 + $0x2d0] sm:$0xff]  ;;  %v1151_v36 = vadd.f32 0.0036580483, %v1150_v51  ;;  %v7941_v53 = vpop.f32.mrf.mxu1 }
  0xe2   : > { %v5035_v24 = vclamps-f32 %v1103_v44, 1.0  ;;  %v1226_v4 = vmul.f32 %v7881_v37, %v7881_v37  ;;  %3057 = vmatpush.bf16.msrb.mxu3 %v6425_v11  ;;  %v1167_v1 = vmul.f32 %v1166_v41, %v7738_v13  ;;  %v1188_v12 = vmul.f32 2.1237322e-06, %v7894_v34  ;;  %v6444_v11 = vld [vmem:[%s9430_s3 + $0x368] sm:$0xff]  ;;  %v6423_v41 = vld [vmem:[%s9430_s3 + $0x2c0] sm:$0xff] }
  0xe3   : > { %v5034_v42 = vclamps-f32 %v1063_v7, 1.0  ;;  %v7891_v48 = vadd.f32 1.0, %v1127_v50  ;;  %v1152_v29 = vmul.f32 %v1151_v36, %v7738_v13  ;;  %v6445_v7 = vld [vmem:[%s9430_s3 + $0x370] sm:$0xff]  ;;  %3173 = vmatpush.bf16.msrb.mxu0 %v6431_v38  ;;  %3397 = vmatpush.bf16.msrb.mxu2 %v6451_v0  ;;  %v973_v38 = vmul.f32 0.5, %v7694_v47  ;;  %v6462_v0 = vld [vmem:[%s9430_s3 + $0x3f8] sm:$0xff] }
  0xe4   : > { %2727 = vmatmul.bf16.gmra.mxu0 %v7525_v61  ;;  %v1111_v61 = vadd.f32 0.0036580483, %v1110_v60  ;;  %v1308_v55 = vadd.f32 1.0, %v5035_v24  ;;  %3281 = vmatpush.bf16.msrb.mxu1 %v6445_v7  ;;  %v7936_v22 = vadd.f32 1.0, %v1167_v1  ;;  %v1189_v27 = vadd.f32 0.00028619796, %v1188_v12 }
  0xe5   : > { %v1307_v39 = vadd.f32 1.0, %v5034_v42  ;;  %6645 = vrcp.f32 %v7891_v48  ;;  %v1153_v56 = vadd.f32 0.05243302, %v1152_v29  ;;  %v7934_v42 = vmin.f32 %v1226_v4, 16.0 }
  0xe6   : > { %v1112_v25 = vmul.f32 %v1111_v61, %v7730_v33  ;;  %2608 = vmatmul.bf16.gmra.mxu3 %v2527_v3  ;;  %v7914_v10 = vmul.f32 %v1308_v55, %v972_v45  ;;  %v1199_v3 = vmul.f32 3.8918573e-05, %v7894_v34  ;;  %v1140_v62 = vand.u32 2147483648, %v7891_v48 }
  0xe7   : > { %v7887_v40 = vmul.f32 %v1307_v39, %v971_v18  ;;  %v945_v18 = vld [vmem:[%s7554_s20 + $0x38] sm:$0xff]  ;;  %3058 = vmatpush.bf16.msrb.mxu3 %v6424_v49  ;;  %v1154_v39 = vmul.f32 %v1153_v56, %v7738_v13  ;;  %v1138_v50 = vand.u32 2147483647, %v7891_v48  ;;  %6647 = vrcp.f32 %v7936_v22 }
  0xe8   : > { %v1113_v30 = vadd.f32 0.05243302, %v1112_v25  ;;  %1325 = vst [vmem:[#allocation2 + $0xd1] sm:$0xff] %v7914_v10  ;;  %v1200_v60 = vadd.f32 0.001143296, %v1199_v3  ;;  %vm1134_vm12 = vweird.f32 %v7891_v48  ;;  %v957_v14 = vmul.f32 %v7562_v46, %v945_v18  ;;  %3282 = vmatpush.bf16.msrb.mxu1 %v6444_v11  ;;  %v6443_v11 = vld [vmem:[%s9430_s3 + $0x360] sm:$0xff] }
  0xe9   : > { %1324 = vst [vmem:[#allocation2 + $0xc1] sm:$0xff] %v7887_v40  ;;  %v1155_v52 = vadd.f32 0.18741608, %v1154_v39  ;;  %v1190_v24 = vmul.f32 %v1189_v27, %v7894_v34  ;;  %v1228_v25 = vmul.f32 2.1237322e-06, %v7934_v42  ;;  %v2870_v46 = vpack.c.bf16 %v7914_v10, %v7887_v40 }
  0xea   : > { %v1114_v63 = vmul.f32 %v1113_v30, %v7730_v33  ;;  %v1239_v5 = vmul.f32 3.8918573e-05, %v7934_v42  ;;  %vm7972_vm14 = vcmp.eq.f32.partialorder %v1138_v50, 8.507059e+37  ;;  %v7976_v30 = vpop.f32.mrf.mxu2  ;;  %vm1174_vm0 = vweird.f32 %v7936_v22 }
  0xeb   : > { %v7939_v28 = vpop.eup %6645  ;;  %v1191_v4 = vadd.f32 0.0036580483, %v1190_v24  ;;  %v1178_v29 = vand.u32 2147483647, %v7936_v22  ;;  %v1180_v3 = vand.u32 2147483648, %v7936_v22  ;;  %v7993_v7 = vadd.f32 %v7574_v9, %v957_v14  ;;  %3059 = vmatpush.bf16.msrb.mxu3 %v6423_v41 }
  0xec   : > { %2832 = vmatmul.bf16.vlgmr.msra.gmra.mxu1 %v2755_v57  ;;  %v1115_v16 = vadd.f32 0.18741608, %v1114_v63  ;;  %v1130_v44 = vmul.f32 %v7939_v28, %v7891_v48  ;;  %vm1135_vm13 = vweird.f32 %v7939_v28  ;;  %v1141_v57 = vor.u32 1.1754944e-38, %v1140_v62 }
  0xed   : > { %2946 = vmatmul.bf16.vlgmr.msra.gmra.mxu2 %v2869_v58  ;;  %v1156_v58 = vmul.f32 %v1155_v52, %v7738_v13  ;;  %vm7985_vm15 = vmor %vm1134_vm12, %vm1135_vm13  ;;  %v7995_v6 = vpop.eup %6647  ;;  %v1192_v63 = vmul.f32 %v1191_v4, %v7894_v34  ;;  %v1229_v18 = vadd.f32 0.00028619796, %v1228_v25  ;;  %vm8036_vm3 = vcmp.eq.f32.partialorder %v1178_v29, 8.507059e+37  ;;  %3283 = vmatpush.bf16.msrb.mxu1 %v6443_v11 }
  0xee   : > { %v1116_v20 = vmul.f32 %v1115_v16, %v7730_v33  ;;  %v1131_v61 = vsub.f32 1.0, %v1130_v44  ;;  %v1201_v33 = vmul.f32 %v1200_v60, %v7894_v34  ;;  %v1170_v9 = vmul.f32 %v7995_v6, %v7936_v22  ;;  %v8005_v16 = vpop.f32.mrf.mxu3  ;;  %v6470_v60 = vld [vmem:[%s9430_s3 + $0x438] sm:$0xff] }
  0xef   : > { %v7961_v55 = vld [vmem:[#allocation2 + $0xd0] sm:$0xff]  ;;  %v1157_v56 = vadd.f32 1.1283791, %v1156_v58  ;;  %vm1175_vm1 = vweird.f32 %v7995_v6  ;;  %v1193_v52 = vadd.f32 0.05243302, %v1192_v63  ;;  %3623 = vmatpush.bf16.msra.mxu0 %v6470_v60  ;;  %v1181_v58 = vor.u32 1.1754944e-38, %v1180_v3  ;;  %3509 = vmatpush.bf16.msra.mxu3 %v6462_v0 }
  0xf0   : > { %v1117_v45 = vadd.f32 1.1283791, %v1116_v20  ;;  %v7956_v51 = vld [vmem:[#allocation2 + $0xc0] sm:$0xff]  ;;  %v1132_v13 = vmul.f32 %v7939_v28, %v1131_v61  ;;  %v1202_v1 = vadd.f32 0.014752088, %v1201_v33  ;;  %v1171_v39 = vsub.f32 1.0, %v1170_v9  ;;  %vm8032_vm2 = vmor %vm1174_vm0, %vm1175_vm1 }
  0xf1   : > { %v1855_v59 = vpop.f32.mrf.mxu0  ;;  %v2756_v12 = vpack.c.bf16 %v7961_v55, %v7956_v51  ;;  %v1240_v20 = vadd.f32 0.001143296, %v1239_v5  ;;  %v1158_v5 = vmul.f32 %v1157_v56, %v7705_v2  ;;  %v6450_v22 = vld [vmem:[%s9430_s3 + $0x398] sm:$0xff]  ;;  %v6469_v2 = vld [vmem:[%s9430_s3 + $0x430] sm:$0xff] }
  0xf2   : > { %v1118_v49 = vmul.f32 %v1117_v45, %v7702_v31  ;;  %v1133_v48 = vadd.f32 %v7939_v28, %v1132_v13  ;;  %v1203_v27 = vmul.f32 %v1202_v1, %v7894_v34  ;;  %v1230_v45 = vmul.f32 %v1229_v18, %v7934_v42  ;;  %3398 = vmatpush.bf16.msrb.mxu2 %v6450_v22  ;;  %v2525_v18 = vld [vmem:[#allocation2 + $0x91] sm:$0xff] }
  0xf3   : > { %v1241_v61 = vmul.f32 %v1240_v20, %v7934_v42  ;;  %3624 = vmatpush.bf16.msra.mxu0 %v6469_v2 }
  0xf4   : > { %2732 = vmatmul.bf16.gmra.mxu0 %v2643_v35  ;;  %v1137_v31 = vsel %vm7985_vm15, %v7939_v28, %v1133_v48  ;;  %v8021_v28 = vmul.f32 0.70710677, %v7993_v7  ;;  %v1204_v14 = vadd.f32 0.112945676, %v1203_v27  ;;  %v1231_v13 = vadd.f32 0.0036580483, %v1230_v45 }
  0xf5   : > { %v1142_v47 = vsel %vm7972_vm14, %v1141_v57, %v1137_v31  ;;  %v1242_v15 = vadd.f32 0.014752088, %v1241_v61  ;;  %v1194_v48 = vmul.f32 %v1193_v52, %v7894_v34  ;;  %v6442_v61 = vld [vmem:[%s9430_s3 + $0x358] sm:$0xff] }
  0xf6   : > { %2613 = vmatmul.bf16.gmra.mxu3 %v7452_v8  ;;  %v1143_v50 = vmul.f32 %v1142_v47, %v1118_v49  ;;  %v1172_v8 = vmul.f32 %v7995_v6, %v1171_v39  ;;  %v1266_v24 = vmul.f32 %v8021_v28, %v8021_v28  ;;  %v1205_v25 = vmul.f32 %v1204_v14, %v7894_v34  ;;  %v8077_v27 = vpop.f32.mrf.mxu3 }
  0xf7   : > { %v3097_v49 = vpack.c.bf16 %v7956_v51, %v7883_v23  ;;  %v1243_v31 = vmul.f32 %v1242_v15, %v7934_v42  ;;  %v974_v39 = vmul.f32 0.5, %v7697_v21  ;;  %v6449_v21 = vld [vmem:[%s9430_s3 + $0x390] sm:$0xff]  ;;  %3284 = vmatpush.bf16.msrb.mxu1 %v6442_v61 }
  0xf8   : > { %v5036_v33 = vclamps-f32 %v1143_v50, 1.0  ;;  %v8052_v36 = vmin.f32 %v1266_v24, 16.0  ;;  %v1206_v41 = vadd.f32 0.4994258, %v1205_v25  ;;  %3399 = vmatpush.bf16.msrb.mxu2 %v6449_v21 }
  0xf9   : > { %v1932_v35 = vpop.f32.mrf.mxu1  ;;  %v8013_v62 = vpop.f32.mrf.mxu0  ;;  %v1244_v50 = vadd.f32 0.112945676, %v1243_v31 }
  0xfa   : > { %v1933_v44 = vadd.f32 %v1932_v35, %v1855_v59  ;;  %v1309_v4 = vadd.f32 1.0, %v5036_v33  ;;  %v1279_v63 = vmul.f32 3.8918573e-05, %v8052_v36  ;;  %v1207_v9 = vmul.f32 %v1206_v41, %v7894_v34 }
  0xfb   : > { %v1232_v35 = vmul.f32 %v1231_v13, %v7934_v42  ;;  %v1245_v33 = vmul.f32 %v1244_v50, %v7934_v42  ;;  %v6439_v50 = vld [vmem:[%s9430_s3 + $0x340] sm:$0xff] }
  0xfc   : > { %2837 = vmatmul.bf16.gmra.mxu1 %v2756_v12  ;;  %v8069_v56 = vmul.f32 %v1309_v4, %v973_v38  ;;  %v1268_v38 = vmul.f32 2.1237322e-06, %v8052_v36  ;;  %v1280_v47 = vadd.f32 0.001143296, %v1279_v63  ;;  %v8089_v20 = vadd.f32 1.0, %v1207_v9 }
  0xfd   : > { %2951 = vmatmul.bf16.gmra.mxu2 %v2870_v46  ;;  %v1173_v46 = vadd.f32 %v7995_v6, %v1172_v8  ;;  %v2529_v8 = vpack.c.bf16 %v2525_v18, %v7565_v54  ;;  %v1233_v24 = vadd.f32 0.05243302, %v1232_v35 }
  0xfe   : > { %1326 = vst [vmem:[#allocation2 + $0xe1] sm:$0xff] %v8069_v56  ;;  %v1269_v52 = vadd.f32 0.00028619796, %v1268_v38  ;;  %v1281_v14 = vmul.f32 %v1280_v47, %v8052_v36  ;;  %6649 = vrcp.f32 %v8089_v20  ;;  %vm1214_vm4 = vweird.f32 %v8089_v20 }
  0xff   : > { %v1177_v3 = vsel %vm8032_vm2, %v7995_v6, %v1173_v46  ;;  %v1234_v2 = vmul.f32 %v1233_v24, %v7934_v42  ;;  %v1220_v63 = vand.u32 2147483648, %v8089_v20  ;;  %v1218_v18 = vand.u32 2147483647, %v8089_v20  ;;  %v6441_v24 = vld [vmem:[%s9430_s3 + $0x350] sm:$0xff] }
 0x100   : > { %v2038_v29 = vpop.f32.mrf.mxu2  ;;  %v1182_v12 = vsel %vm8036_vm3, %v1181_v58, %v1177_v3  ;;  %v1270_v59 = vmul.f32 %v1269_v52, %v8052_v36  ;;  %v1282_v54 = vadd.f32 0.014752088, %v1281_v14  ;;  %3285 = vmatpush.bf16.msrb.mxu1 %v6441_v24 }
 0x101   : > { %v8065_v1 = vadd.f32 %v2038_v29, %v1933_v44  ;;  %v8071_v6 = vpop.f32.mrf.mxu1  ;;  %v8073_v23 = vpop.f32.mrf.mxu0  ;;  %v1183_v51 = vmul.f32 %v1182_v12, %v1158_v5  ;;  %v1195_v44 = vadd.f32 0.18741608, %v1194_v48  ;;  %v1246_v5 = vadd.f32 0.4994258, %v1245_v33 }
 0x102   : > { %v1271_v0 = vadd.f32 0.0036580483, %v1270_v59  ;;  %v1283_v13 = vmul.f32 %v1282_v54, %v8052_v36  ;;  %v1235_v35 = vadd.f32 0.18741608, %v1234_v2  ;;  %v1221_v21 = vor.u32 1.1754944e-38, %v1220_v63  ;;  %v2975_v59 = vld [vmem:[#allocation2 + $0xa2] sm:$0xff] }
 0x103   : > { %v5037_v60 = vclamps-f32 %v1183_v51, 1.0  ;;  %v1196_v25 = vmul.f32 %v1195_v44, %v7894_v34  ;;  %v1247_v34 = vmul.f32 %v1246_v5, %v7934_v42  ;;  %v8168_v54 = vld [vmem:[#allocation2 + $0xb2] sm:$0xff]  ;;  %vm8171_vm7 = vcmp.eq.f32.partialorder %v1218_v18, 8.507059e+37 }
 0x104   : > { %3174 = vmatmul.bf16.vlgmr.msrb.gmra.mxu0 %v3097_v49  ;;  %v6650_v41 = vpop.eup %6649  ;;  %v1272_v15 = vmul.f32 %v1271_v0, %v8052_v36  ;;  %v1284_v29 = vadd.f32 0.112945676, %v1283_v13  ;;  %v1236_v0 = vmul.f32 %v1235_v35, %v7934_v42  ;;  %v6448_v13 = vld [vmem:[%s9430_s3 + $0x388] sm:$0xff] }
 0x105   : > { %v1310_v45 = vadd.f32 1.0, %v5037_v60  ;;  %v1197_v49 = vadd.f32 1.1283791, %v1196_v25  ;;  %v1210_v48 = vmul.f32 %v6650_v41, %v8089_v20  ;;  %vm1215_vm5 = vweird.f32 %v6650_v41  ;;  %v2751_v9 = vld [vmem:[#allocation2 + $0xe0] sm:$0xff]  ;;  %v6461_v20 = vld [vmem:[%s9430_s3 + $0x3f0] sm:$0xff]  ;;  %3400 = vmatpush.bf16.msrb.mxu2 %v6448_v13 }
 0x106   : > { %2618 = vmatmul.bf16.gmra.mxu3 %v2529_v8  ;;  %v1273_v12 = vadd.f32 0.05243302, %v1272_v15  ;;  %v1285_v51 = vmul.f32 %v1284_v29, %v8052_v36  ;;  %vm8145_vm6 = vmor %vm1214_vm4, %vm1215_vm5  ;;  %v3098_v52 = vpack.c.bf16 %v2751_v9, %v7961_v55  ;;  %v6468_v55 = vld [vmem:[%s9430_s3 + $0x428] sm:$0xff] }
 0x107   : > { %v8104_v58 = vmul.f32 %v1310_v45, %v974_v39  ;;  %v1211_v31 = vsub.f32 1.0, %v1210_v48  ;;  %v1198_v25 = vmul.f32 %v1197_v49, %v7856_v17  ;;  %3510 = vmatpush.bf16.msra.mxu3 %v6461_v20  ;;  %v6460_v17 = vld [vmem:[%s9430_s3 + $0x3e8] sm:$0xff]  ;;  %v2983_v49 = vpack.c.bf16 %v8168_v54, %v2975_v59  ;;  %3625 = vmatpush.bf16.msra.mxu0 %v6468_v55 }
 0x108   : > { %v8102_v57 = vpop.f32.mrf.mxu2  ;;  %v1286_v47 = vadd.f32 0.4994258, %v1285_v51  ;;  %v1274_v14 = vmul.f32 %v1273_v12, %v8052_v36  ;;  %v6440_v15 = vld [vmem:[%s9430_s3 + $0x348] sm:$0xff]  ;;  %v1237_v51 = vadd.f32 1.1283791, %v1236_v0 }
 0x109   : > { %v1937_v46 = vpop.f32.mrf.mxu1  ;;  %1327 = vst [vmem:[#allocation2 + $0xf1] sm:$0xff] %v8104_v58  ;;  %v8114_v11 = vpack.c.bf16 %v8104_v58, %v8069_v56  ;;  %v8116_v22 = vpop.f32.mrf.mxu0  ;;  %v1212_v44 = vmul.f32 %v6650_v41, %v1211_v31  ;;  %v6447_v31 = vld [vmem:[%s9430_s3 + $0x380] sm:$0xff]  ;;  %3286 = vmatpush.bf16.msrb.mxu1 %v6440_v15 }
 0x10a   : > { %v1938_v4 = vadd.f32 %v1937_v46, %v8005_v16  ;;  %v8126_v3 = vpop.f32.mrf.mxu3  ;;  %v8131_v16 = vadd.f32 1.0, %v1247_v34  ;;  %v1287_v33 = vmul.f32 %v1286_v47, %v8052_v36  ;;  %v1275_v29 = vadd.f32 0.18741608, %v1274_v14  ;;  %3401 = vmatpush.bf16.msrb.mxu2 %v6447_v31 }
 0x10b   : > { %v1213_v5 = vadd.f32 %v6650_v41, %v1212_v44  ;;  %3511 = vmatpush.bf16.msra.mxu3 %v6460_v17  ;;  %v975_v47 = vmul.f32 0.5, %v7821_v26  ;;  %v1331_v17 = vld [vmem:[%s8224_s22] sm:$0xff]  ;;  %v976_v31 = vmul.f32 0.5, %v7824_v32 }
 0x10c   : > { %6651 = vrcp.f32 %v8131_v16  ;;  %vm1254_vm8 = vweird.f32 %v8131_v16 }
 0x10d   : > { %2956 = vmatmul.bf16.gmra.mxu2 %v8114_v11  ;;  %v1217_v42 = vsel %vm8145_vm6, %v6650_v41, %v1213_v5  ;;  %v6467_v41 = vld [vmem:[%s9430_s3 + $0x420] sm:$0xff]  ;;  %3287 = vmatpush.bf16.msrb.mxu1 %v6439_v50 }
 0x10e   : > { %v1222_v48 = vsel %vm8171_vm7, %v1221_v21, %v1217_v42  ;;  %3626 = vmatpush.bf16.msra.mxu0 %v6467_v41  ;;  %v8280_v50 = vld [vmem:[#allocation2 + $0xc2] sm:$0xff] }
 0x10f   : > { %v1223_v12 = vmul.f32 %v1222_v48, %v1198_v25 }
 0x110   : > { %v2043_v38 = vpop.f32.mrf.mxu2  ;;  %v8138_v39 = vld [vmem:[#allocation2 + $0xf0] sm:$0xff] }
 0x111   : > { %v8140_v60 = vadd.f32 %v2043_v38, %v1938_v4  ;;  %v8152_v8 = vpack.c.bf16 %v8138_v39, %v2751_v9  ;;  %v8154_v45 = vpop.f32.mrf.mxu1  ;;  %v8156_v61 = vpop.f32.mrf.mxu0  ;;  %v8188_v4 = vadd.f32 1.0, %v1287_v33  ;;  %v1260_v9 = vand.u32 2147483648, %v8131_v16 }
 0x112   : > { %v6652_v2 = vpop.eup %6651  ;;  %v8190_v34 = vpop.f32.mrf.mxu3  ;;  %v1258_v38 = vand.u32 2147483647, %v8131_v16  ;;  %v5038_v44 = vclamps-f32 %v1223_v12, 1.0  ;;  %v1238_v33 = vmul.f32 %v1237_v51, %v7881_v37  ;;  %v1930_v12 = vadd.f32 %v7941_v53, %v7889_v43  ;;  %v6466_v43 = vld [vmem:[%s9430_s3 + $0x418] sm:$0xff] }
 0x113   : > { %2842 = vmatmul.bf16.gmra.mxu1 %v8152_v8  ;;  %v1250_v63 = vmul.f32 %v6652_v2, %v8131_v16  ;;  %6653 = vrcp.f32 %v8188_v4  ;;  %vm1255_vm9 = vweird.f32 %v6652_v2  ;;  %v8240_v16 = vld [vmem:[%s9432_s5] ss:$0 sm:$0xff]  ;;  %vm1294_vm12 = vweird.f32 %v8188_v4  ;;  %v6486_v53 = vld [vmem:[%s9430_s3 + $0x4b8] sm:$0xff]  ;;  %3627 = vmatpush.bf16.msra.mxu0 %v6466_v43 }
 0x114   : > { %3179 = vmatmul.bf16.gmra.mxu0 %v3098_v52  ;;  %v1276_v52 = vmul.f32 %v1275_v29, %v8052_v36  ;;  %vm8230_vm10 = vmor %vm1254_vm8, %vm1255_vm9  ;;  %v1261_v36 = vor.u32 1.1754944e-38, %v1260_v9  ;;  %v1311_v24 = vadd.f32 1.0, %v5038_v44  ;;  %vm1259_vm11 = vcmp.eq.f32.partialorder %v1258_v38, 8.507059e+37  ;;  %3852 = vmatpush.bf16.msra.mxu2 %v6486_v53 }
 0x115   : > { %v1251_v35 = vsub.f32 1.0, %v1250_v63  ;;  %v1298_v15 = vand.u32 2147483647, %v8188_v4  ;;  %v1300_v29 = vand.u32 2147483648, %v8188_v4  ;;  %v2054_v32 = vadd.f32 %v7976_v30, %v1930_v12  ;;  %v6458_v30 = vld [vmem:[%s9430_s3 + $0x3d8] sm:$0xff] }
 0x116   : > { %3060 = vmatmul.bf16.vlgmr.msrb.gmra.mxu3 %v2983_v49  ;;  %v8235_v46 = vmul.f32 %v1311_v24, %v975_v47  ;;  %v1343_v49 = vmul.f32 %v8240_v16, %v1331_v17  ;;  %v6478_v17 = vld [vmem:[%s9430_s3 + $0x478] sm:$0xff] }
 0x117   : > { %v1252_v21 = vmul.f32 %v6652_v2, %v1251_v35  ;;  %vm1299_vm15 = vcmp.eq.f32.partialorder %v1298_v15, 8.507059e+37  ;;  %3737 = vmatpush.bf16.msra.mxu1 %v6478_v17  ;;  %v8358_v17 = vld [vmem:[#allocation2 + $0xf2] sm:$0xff] }
 0x118   : > { %v8210_v18 = vpop.f32.mrf.mxu2  ;;  %1328 = vst [vmem:[#allocation2 + $0x101] sm:$0xff] %v8235_v46 }
 0x119   : > { %v1942_v14 = vpop.f32.mrf.mxu1  ;;  %v8219_v20 = vpop.f32.mrf.mxu0  ;;  %v1253_v59 = vadd.f32 %v6652_v2, %v1252_v21  ;;  %v1301_v21 = vor.u32 1.1754944e-38, %v1300_v29 }
 0x11a   : > { %v1943_v26 = vadd.f32 %v1942_v14, %v8126_v3  ;;  %v6654_v25 = vpop.eup %6653  ;;  %v2147_v5 = vpop.f32.mrf.mxu3  ;;  %v1277_v3 = vadd.f32 1.1283791, %v1276_v52  ;;  %v8282_v52 = vld [vmem:[#allocation2 + $0xd2] sm:$0xff] }
 0x11b   : > { %v2167_v0 = vadd.f32 %v2147_v5, %v7846_v19  ;;  %v1257_v13 = vsel %vm8230_vm10, %v6652_v2, %v1253_v59  ;;  %v1290_v37 = vmul.f32 %v6654_v25, %v8188_v4  ;;  %v8255_v19 = vld [vmem:[%s9433_s6] ss:$0 sm:$0xff]  ;;  %vm1295_vm13 = vweird.f32 %v6654_v25 }
 0x11c   : > { %v1262_v42 = vsel %vm1259_vm11, %v1261_v36, %v1257_v13  ;;  %v8263_v9 = vadd.f32 %v8255_v19, %v1343_v49  ;;  %vm8287_vm14 = vmor %vm1294_vm12, %vm1295_vm13  ;;  %v6465_v36 = vld [vmem:[%s9430_s3 + $0x410] sm:$0xff]  ;;  %v1278_v4 = vmul.f32 %v1277_v3, %v8021_v28 }
 0x11d   : > { %v1263_v2 = vmul.f32 %v1262_v42, %v1238_v33  ;;  %v2281_v63 = vadd.f32 %v8073_v23, %v2167_v0  ;;  %v1291_v41 = vsub.f32 1.0, %v1290_v37  ;;  %v6459_v23 = vld [vmem:[%s9430_s3 + $0x3e0] sm:$0xff]  ;;  %v8307_v37 = vpack.c.bf16 %v8282_v52, %v8280_v50  ;;  %v6485_v42 = vld [vmem:[%s9430_s3 + $0x4b0] sm:$0xff]  ;;  %3628 = vmatpush.bf16.msra.mxu0 %v6465_v36 }
 0x11e   : > { %3512 = vmatpush.bf16.msra.mxu3 %v6459_v23  ;;  %3853 = vmatpush.bf16.msra.mxu2 %v6485_v42 }
 0x11f   : > { %v5039_v35 = vclamps-f32 %v1263_v2, 1.0  ;;  %v1292_v44 = vmul.f32 %v6654_v25, %v1291_v41  ;;  %v2753_v13 = vld [vmem:[#allocation2 + $0x100] sm:$0xff]  ;;  %9485 = vst [vmem:[#allocation3_spill] sm:$0xff] %v8307_v37 }
 0x120   : > { %v2048_v48 = vpop.f32.mrf.mxu2  ;;  %v3099_v3 = vpack.c.bf16 %v2753_v13, %v8138_v39 }
 0x121   : > { %v8260_v51 = vadd.f32 %v2048_v48, %v1943_v26  ;;  %v8266_v38 = vpop.f32.mrf.mxu1  ;;  %v8268_v47 = vpop.f32.mrf.mxu0  ;;  %v8292_v26 = vmul.f32 0.70710677, %v8263_v9  ;;  %v1312_v55 = vadd.f32 1.0, %v5039_v35  ;;  %v1293_v24 = vadd.f32 %v6654_v25, %v1292_v44 }
 0x122   : > { %v2149_v33 = vpop.f32.mrf.mxu3  ;;  %3513 = vmatpush.bf16.msra.mxu3 %v6458_v30  ;;  %v1333_v30 = vld [vmem:[%s8224_s22 + $0x10] sm:$0xff] }
 0x123   : > { %v1379_v59 = vmul.f32 %v8292_v26, %v8292_v26  ;;  %v2168_v5 = vadd.f32 %v2149_v33, %v2054_v32  ;;  %v8303_v0 = vmul.f32 %v1312_v55, %v976_v31  ;;  %v1297_v28 = vsel %vm8287_vm14, %v6654_v25, %v1293_v24  ;;  %v6457_v32 = vld [vmem:[%s9430_s3 + $0x3d0] sm:$0xff] }
 0x124   : > { %v1302_v15 = vsel %vm1299_vm15, %v1301_v21, %v1297_v28  ;;  %3184 = vmatmul.bf16.gmra.mxu0 %v3099_v3  ;;  %v977_v31 = vmul.f32 0.5, %v7993_v7  ;;  %v1332_v7 = vld [vmem:[%s8224_s22 + $0x8] sm:$0xff]  ;;  %v1345_v24 = vmul.f32 %v8240_v16, %v1333_v30 }
 0x125   : > { %v8318_v29 = vmin.f32 %v1379_v59, 16.0  ;;  %1329 = vst [vmem:[#allocation2 + $0x111] sm:$0xff] %v8303_v0  ;;  %v8323_v49 = vpack.c.bf16 %v8303_v0, %v8235_v46  ;;  %v8328_v48 = vadd.f32 %v8116_v22, %v2168_v5  ;;  %v1303_v39 = vmul.f32 %v1302_v15, %v1278_v4  ;;  %v8354_v59 = vld [vmem:[#allocation2 + $0xe2] sm:$0xff] }
 0x126   : > { %3065 = vmatmul.bf16.gmra.mxu3 %v8307_v37  ;;  %v1344_v4 = vmul.f32 %v8240_v16, %v1332_v7  ;;  %v6464_v3 = vld [vmem:[%s9430_s3 + $0x408] sm:$0xff] }
 0x127   : > { %v1392_v25 = vmul.f32 3.8918573e-05, %v8318_v29  ;;  %2961 = vmatmul.bf16.gmra.mxu2 %v8323_v49  ;;  %v5040_v22 = vclamps-f32 %v1303_v39, 1.0  ;;  %3514 = vmatpush.bf16.msra.mxu3 %v6457_v32  ;;  %v1935_v39 = vadd.f32 %v8071_v6, %v8013_v62  ;;  %v8400_v32 = vpack.c.bf16 %v8358_v17, %v8354_v59 }
 0x128   : > { %v8325_v2 = vpop.f32.mrf.mxu2  ;;  %v8370_v15 = vadd.f32 %v8255_v19, %v1344_v4  ;;  %3629 = vmatpush.bf16.msra.mxu0 %v6464_v3  ;;  %v6483_v4 = vld [vmem:[%s9430_s3 + $0x4a0] sm:$0xff] }
 0x129   : > { %v2375_v41 = vpop.f32.mrf.mxu1  ;;  %v8333_v12 = vpop.f32.mrf.mxu0  ;;  %v1393_v43 = vadd.f32 0.001143296, %v1392_v25  ;;  %v1313_v53 = vadd.f32 1.0, %v5040_v22  ;;  %v6484_v22 = vld [vmem:[%s9430_s3 + $0x4a8] sm:$0xff]  ;;  %9487 = vst [vmem:[#allocation5_spill] sm:$0xff] %v8400_v32 }
 0x12a   : > { %v2395_v23 = vadd.f32 %v2375_v41, %v2281_v63  ;;  %v2152_v44 = vpop.f32.mrf.mxu3  ;;  %v8392_v6 = vmul.f32 0.70710677, %v8370_v15  ;;  %3854 = vmatpush.bf16.msra.mxu2 %v6484_v22 }
 0x12b   : > { %v1394_v14 = vmul.f32 %v1393_v43, %v8318_v29  ;;  %v2169_v21 = vadd.f32 %v2152_v44, %v8065_v1  ;;  %v8343_v55 = vmul.f32 %v1313_v53, %v977_v31  ;;  %v6477_v31 = vld [vmem:[%s9430_s3 + $0x470] sm:$0xff]  ;;  %v2056_v53 = vadd.f32 %v8102_v57, %v1935_v39 }
 0x12c   : > { %v8347_v36 = vld [vmem:[#allocation2 + $0x110] sm:$0xff]  ;;  %3738 = vmatpush.bf16.msra.mxu1 %v6477_v31  ;;  %v1419_v7 = vmul.f32 %v8392_v6, %v8392_v6  ;;  %v3325_v57 = vpack.c.bf16 %v8280_v50, %v8168_v54  ;;  %v1381_v31 = vmul.f32 2.1237322e-06, %v8318_v29 }
 0x12d   : > { %v1395_v63 = vadd.f32 0.014752088, %v1394_v14  ;;  %v8352_v33 = vpack.c.bf16 %v8347_v36, %v2753_v13  ;;  %v2283_v1 = vadd.f32 %v8156_v61, %v2169_v21  ;;  %1330 = vst [vmem:[#allocation2 + $0x121] sm:$0xff] %v8343_v55  ;;  %v6456_v13 = vld [vmem:[%s9430_s3 + $0x3c8] sm:$0xff]  ;;  %v8373_v61 = vadd.f32 %v8255_v19, %v1345_v24  ;;  %v6455_v14 = vld [vmem:[%s9430_s3 + $0x3c0] sm:$0xff] }
 0x12e   : > { %3515 = vmatpush.bf16.msra.mxu3 %v6456_v13  ;;  %v8422_v54 = vmin.f32 %v1419_v7, 16.0  ;;  %3855 = vmatpush.bf16.msra.mxu2 %v6483_v4 }
 0x12f   : > { %9486 = vst [vmem:[#allocation4_spill] sm:$0xff] %v8352_v33  ;;  %v1396_v42 = vmul.f32 %v1395_v63, %v8318_v29  ;;  %2847 = vmatmul.bf16.gmra.mxu1 %v8352_v33  ;;  %v8395_v43 = vmul.f32 0.70710677, %v8373_v61  ;;  %v6476_v63 = vld [vmem:[%s9430_s3 + $0x468] sm:$0xff]  ;;  %v6474_v33 = vld [vmem:[%s9430_s3 + $0x458] sm:$0xff] }
 0x130   : > { %v2490_v5 = vpop.f32.mrf.mxu2  ;;  %3739 = vmatpush.bf16.msra.mxu1 %v6476_v63 }
 0x131   : > { %v8360_v28 = vadd.f32 %v2490_v5, %v2395_v23  ;;  %v8378_v25 = vpop.f32.mrf.mxu1  ;;  %v8380_v41 = vpop.f32.mrf.mxu0  ;;  %v6463_v23 = vld [vmem:[%s9430_s3 + $0x400] sm:$0xff]  ;;  %v1397_v62 = vadd.f32 0.112945676, %v1396_v42  ;;  %v1459_v5 = vmul.f32 %v8395_v43, %v8395_v43 }
 0x132   : > { %v2154_v44 = vpop.f32.mrf.mxu3  ;;  %3630 = vmatpush.bf16.msra.mxu0 %v6463_v23  ;;  %3516 = vmatpush.bf16.msra.mxu3 %v6455_v14  ;;  %v1432_v23 = vmul.f32 3.8918573e-05, %v8422_v54 }
 0x133   : > { %v1398_v21 = vmul.f32 %v1397_v62, %v8318_v29  ;;  %v2170_v30 = vadd.f32 %v2154_v44, %v2056_v53  ;;  %v1382_v44 = vadd.f32 0.00028619796, %v1381_v31 }
 0x134   : > { %v8420_v3 = vld [vmem:[#allocation2 + $0x120] sm:$0xff]  ;;  %v1433_v7 = vadd.f32 0.001143296, %v1432_v23 }
 0x135   : > { %9488 = vst [vmem:[#allocation6_spill] sm:$0xff] %v8420_v3  ;;  %v1399_v13 = vadd.f32 0.4994258, %v1398_v21  ;;  %v3100_v42 = vpack.c.bf16 %v8420_v3, %v8347_v36  ;;  %v8429_v39 = vadd.f32 %v8219_v20, %v2170_v30  ;;  %v8437_v36 = vmin.f32 %v1459_v5, 16.0  ;;  %v3203_v20 = vld [vmem:[#allocation2 + $0xb1] sm:$0xff] }
 0x136   : > { %3070 = vmatmul.bf16.gmra.mxu3 %v8400_v32  ;;  %v1383_v30 = vmul.f32 %v1382_v44, %v8318_v29  ;;  %v1940_v44 = vadd.f32 %v8154_v45, %v8077_v27 }
 0x137   : > { %v1400_v22 = vmul.f32 %v1399_v13, %v8318_v29  ;;  %3402 = vmatmul.bf16.vlgmr.msrb.gmra.mxu2 %v3325_v57  ;;  %3189 = vmatmul.bf16.gmra.mxu0 %v3100_v42  ;;  %v1472_v63 = vmul.f32 3.8918573e-05, %v8437_v36  ;;  %v1434_v57 = vmul.f32 %v1433_v7, %v8422_v54  ;;  %v3211_v13 = vpack.c.bf16 %v7887_v40, %v3203_v20  ;;  %v1335_v42 = vld [vmem:[%s8224_s22 + $0x20] sm:$0xff]  ;;  %v8460_v7 = vld [vmem:[#allocation2 + $0x112] sm:$0xff] }
 0x138   : > { %v8424_v50 = vpop.f32.mrf.mxu2  ;;  %v1384_v31 = vadd.f32 0.0036580483, %v1383_v30  ;;  %v8458_v20 = vld [vmem:[#allocation2 + $0x102] sm:$0xff] }
 0x139   : > { %v2380_v62 = vpop.f32.mrf.mxu1  ;;  %v8435_v53 = vpop.f32.mrf.mxu0  ;;  %v8439_v21 = vadd.f32 1.0, %v1400_v22  ;;  %v1473_v24 = vadd.f32 0.001143296, %v1472_v63  ;;  %v1435_v22 = vadd.f32 0.014752088, %v1434_v57 }
 0x13a   : > { %v2397_v14 = vadd.f32 %v2380_v62, %v2283_v1  ;;  %v2157_v4 = vpop.f32.mrf.mxu3  ;;  %v1334_v1 = vld [vmem:[%s8224_s22 + $0x18] sm:$0xff]  ;;  %v1347_v62 = vmul.f32 %v8240_v16, %v1335_v42  ;;  %v1385_v40 = vmul.f32 %v1384_v31, %v8318_v29 }
 0x13b   : > { %6655 = vrcp.f32 %v8439_v21  ;;  %v2171_v5 = vadd.f32 %v2157_v4, %v8140_v60  ;;  %v1346_v23 = vmul.f32 %v8240_v16, %v1334_v1  ;;  %v1474_v60 = vmul.f32 %v1473_v24, %v8437_v36  ;;  %v6502_v24 = vld [vmem:[%s9430_s3 + $0x538] sm:$0xff] }
 0x13c   : > { %v1436_v63 = vmul.f32 %v1435_v22, %v8422_v54  ;;  %v8469_v27 = vadd.f32 %v8255_v19, %v1347_v62  ;;  %v1386_v57 = vadd.f32 0.05243302, %v1385_v40  ;;  %v6494_v31 = vld [vmem:[%s9430_s3 + $0x4f8] sm:$0xff]  ;;  %v2986_v22 = vpack.c.bf16 %v8460_v7, %v8458_v20  ;;  %4080 = vmatpush.bf16.msrb.mxu0 %v6502_v24  ;;  %v6501_v40 = vld [vmem:[%s9430_s3 + $0x530] sm:$0xff] }
 0x13d   : > { %v8454_v32 = vadd.f32 %v8268_v47, %v2171_v5  ;;  %v8466_v4 = vadd.f32 %v8255_v19, %v1346_v23  ;;  %v1475_v42 = vadd.f32 0.014752088, %v1474_v60  ;;  %v3546_v23 = vld [vmem:[#allocation2 + $0xc1] sm:$0xff]  ;;  %v3547_v62 = vld [vmem:[#allocation2 + $0xd1] sm:$0xff]  ;;  %3966 = vmatpush.bf16.msrb.mxu3 %v6494_v31  ;;  %vm1407_vm0 = vweird.f32 %v8439_v21 }
 0x13e   : > { %9491 = vst [vmem:[#allocation9_spill] sm:$0xff] %v8469_v27  ;;  %v1437_v1 = vadd.f32 0.112945676, %v1436_v63  ;;  %v1387_v3 = vmul.f32 %v1386_v57, %v8318_v29  ;;  %v3326_v63 = vpack.c.bf16 %v8354_v59, %v8282_v52  ;;  %v8506_v37 = vmul.f32 0.70710677, %v8469_v27 }
 0x13f   : > { %9490 = vst [vmem:[#allocation8_spill] sm:$0xff] %v8466_v4  ;;  %3288 = vmatmul.bf16.vlgmr.msrb.gmra.mxu1 %v3211_v13  ;;  %v2058_v13 = vadd.f32 %v8210_v18, %v1940_v44  ;;  %v8499_v44 = vmul.f32 0.70710677, %v8466_v4  ;;  %v6481_v4 = vld [vmem:[%s9430_s3 + $0x490] sm:$0xff]  ;;  %v3554_v31 = vpack.c.bf16 %v3547_v62, %v3546_v23  ;;  %v1413_v23 = vand.u32 2147483648, %v8439_v21 }
 0x140   : > { %v2495_v35 = vpop.f32.mrf.mxu2  ;;  %v1438_v24 = vmul.f32 %v1437_v1, %v8422_v54  ;;  %v1388_v59 = vadd.f32 0.18741608, %v1387_v3  ;;  %4081 = vmatpush.bf16.msrb.mxu0 %v6501_v40  ;;  %v1421_v3 = vmul.f32 2.1237322e-06, %v8422_v54 }
 0x141   : > { %v8462_v30 = vadd.f32 %v2495_v35, %v2397_v14  ;;  %v8471_v45 = vpop.f32.mrf.mxu1  ;;  %v8473_v47 = vpop.f32.mrf.mxu0  ;;  %v6475_v35 = vld [vmem:[%s9430_s3 + $0x460] sm:$0xff]  ;;  %v6482_v14 = vld [vmem:[%s9430_s3 + $0x498] sm:$0xff] }
 0x142   : > { %v8484_v5 = vpop.eup %6655  ;;  %3740 = vmatpush.bf16.msra.mxu1 %v6475_v35  ;;  %v2159_v60 = vpop.f32.mrf.mxu3  ;;  %3856 = vmatpush.bf16.msra.mxu2 %v6482_v14  ;;  %v1476_v35 = vmul.f32 %v1475_v42, %v8437_v36  ;;  %v1439_v1 = vadd.f32 0.4994258, %v1438_v24 }
 0x143   : > { %9489 = vst [vmem:[#allocation7_spill] sm:$0xff] %v8462_v30  ;;  %v1403_v18 = vmul.f32 %v8484_v5, %v8439_v21  ;;  %v2172_v57 = vadd.f32 %v2159_v60, %v2058_v13  ;;  %v1499_v13 = vmul.f32 %v8499_v44, %v8499_v44  ;;  %v1389_v30 = vmul.f32 %v1388_v59, %v8318_v29 }
 0x144   : > { %v1477_v42 = vadd.f32 0.112945676, %v1476_v35  ;;  %v1440_v62 = vmul.f32 %v1439_v1, %v8422_v54  ;;  %vm1408_vm1 = vweird.f32 %v8484_v5 }
 0x145   : > { %v1404_v14 = vsub.f32 1.0, %v1403_v18  ;;  %v8521_v27 = vadd.f32 %v8333_v12, %v2172_v57  ;;  %v1461_v18 = vmul.f32 2.1237322e-06, %v8437_v36  ;;  %v1539_v12 = vmul.f32 %v8506_v37, %v8506_v37  ;;  %vm8538_vm2 = vmor %vm1407_vm0, %vm1408_vm1 }
 0x146   : > { %3741 = vmatpush.bf16.msra.mxu1 %v6474_v33  ;;  %3857 = vmatpush.bf16.msra.mxu2 %v6481_v4  ;;  %v1390_v29 = vadd.f32 1.1283791, %v1389_v30  ;;  %v1422_v57 = vadd.f32 0.00028619796, %v1421_v3  ;;  %v8547_v59 = vadd.f32 1.0, %v1440_v62  ;;  %v8562_v62 = vld [vmem:[#allocation2 + $0xc0] sm:$0xff] }
 0x147   : > { %v1405_v52 = vmul.f32 %v8484_v5, %v1404_v14  ;;  %3075 = vmatmul.bf16.gmra.mxu3 %v2986_v22  ;;  %3407 = vmatmul.bf16.gmra.mxu2 %v3326_v63  ;;  %v1411_v22 = vand.u32 2147483647, %v8439_v21  ;;  %v1414_v63 = vor.u32 1.1754944e-38, %v1413_v23  ;;  %v1462_v14 = vadd.f32 0.00028619796, %v1461_v18 }
 0x148   : > { %v8518_v60 = vpop.f32.mrf.mxu2  ;;  %3631 = vmatmul.bf16.vlgmr.msra.gmra.mxu0 %v3554_v31  ;;  %v1391_v30 = vmul.f32 %v1390_v29, %v8292_v26  ;;  %v1478_v21 = vmul.f32 %v1477_v42, %v8437_v36  ;;  %v8555_v31 = vmin.f32 %v1499_v13, 16.0  ;;  %6657 = vrcp.f32 %v8547_v59 }
 0x149   : > { %v2385_v33 = vpop.f32.mrf.mxu1  ;;  %v8532_v40 = vpop.f32.mrf.mxu0  ;;  %v1406_v24 = vadd.f32 %v8484_v5, %v1405_v52  ;;  %vm1412_vm3 = vcmp.eq.f32.partialorder %v1411_v22, 8.507059e+37  ;;  %v1945_v23 = vadd.f32 %v8266_v38, %v8190_v34  ;;  %v8570_v22 = vmin.f32 %v1539_v12, 16.0  ;;  %v6493_v12 = vld [vmem:[%s9430_s3 + $0x4f0] sm:$0xff] }
 0x14a   : > { %v2399_v4 = vadd.f32 %v2385_v33, %v8454_v32  ;;  %v2162_v1 = vpop.f32.mrf.mxu3  ;;  %v1423_v32 = vmul.f32 %v1422_v57, %v8422_v54  ;;  %v1479_v29 = vadd.f32 0.4994258, %v1478_v21  ;;  %v1512_v35 = vmul.f32 3.8918573e-05, %v8555_v31  ;;  %3967 = vmatpush.bf16.msrb.mxu3 %v6493_v12 }
 0x14b   : > { %v1410_v52 = vsel %vm8538_vm2, %v8484_v5, %v1406_v24  ;;  %v2173_v26 = vadd.f32 %v2162_v1, %v8260_v51  ;;  %v1463_v5 = vmul.f32 %v1462_v14, %v8437_v36  ;;  %v8564_v24 = vld [vmem:[#allocation2 + $0xd0] sm:$0xff]  ;;  %v1363_v1 = vmul.f32 0.5, %v8263_v9 }
 0x14c   : > { %v1415_v3 = vsel %vm1412_vm3, %v1414_v63, %v1410_v52  ;;  %v1424_v33 = vadd.f32 0.0036580483, %v1423_v32  ;;  %v1480_v38 = vmul.f32 %v1479_v29, %v8437_v36  ;;  %v9494_v52 = vpack.c.bf16 %v8069_v56, %v7914_v10 }
 0x14d   : > { %v1416_v18 = vmul.f32 %v1415_v3, %v1391_v30  ;;  %v8567_v13 = vadd.f32 %v8380_v41, %v2173_v26  ;;  %v1464_v51 = vadd.f32 0.0036580483, %v1463_v5  ;;  %v2060_v30 = vadd.f32 %v8325_v2, %v1945_v23  ;;  %v6473_v2 = vld [vmem:[%s9430_s3 + $0x450] sm:$0xff]  ;;  %v6480_v26 = vld [vmem:[%s9430_s3 + $0x488] sm:$0xff] }
 0x14e   : > { %v1425_v34 = vmul.f32 %v1424_v33, %v8422_v54  ;;  %v1513_v56 = vadd.f32 0.001143296, %v1512_v35  ;;  %v2396_v32 = vadd.f32 %v8378_v25, %v8328_v48  ;;  %v3440_v21 = vpack.c.bf16 %v8564_v24, %v8562_v62  ;;  %v6492_v3 = vld [vmem:[%s9430_s3 + $0x4e8] sm:$0xff]  ;;  %v8606_v23 = vpop.eup %6657  ;;  %v6499_v48 = vld [vmem:[%s9430_s3 + $0x520] sm:$0xff]  ;;  %3742 = vmatpush.bf16.msra.mxu1 %v6473_v2  ;;  %3858 = vmatpush.bf16.msra.mxu2 %v6480_v26 }
 0x14f   : > { %v5041_v57 = vclamps-f32 %v1416_v18, 1.0  ;;  %3293 = vmatmul.bf16.gmra.mxu1 %v9494_v52  ;;  %v1465_v10 = vmul.f32 %v1464_v51, %v8437_v36  ;;  %v8611_v62 = vadd.f32 1.0, %v1480_v38  ;;  %v1552_v33 = vmul.f32 3.8918573e-05, %v8570_v22  ;;  %v6472_v24 = vld [vmem:[%s9430_s3 + $0x448] sm:$0xff]  ;;  %v6479_v52 = vld [vmem:[%s9430_s3 + $0x480] sm:$0xff]  ;;  %3968 = vmatpush.bf16.msrb.mxu3 %v6492_v3 }
 0x150   : > { %v2500_v42 = vpop.f32.mrf.mxu2  ;;  %v1426_v9 = vadd.f32 0.05243302, %v1425_v34  ;;  %v1514_v18 = vmul.f32 %v1513_v56, %v8555_v31  ;;  %v8620_v51 = vstv %s1717_s27  ;;  %v3327_v38 = vpack.c.bf16 %v8458_v20, %v8358_v17  ;;  %v6471_v26 = vld [vmem:[%s9430_s3 + $0x440] sm:$0xff] }
 0x151   : > { %v8572_v63 = vadd.f32 %v2500_v42, %v2399_v4  ;;  %v8581_v41 = vpop.f32.mrf.mxu1  ;;  %v8583_v14 = vpop.f32.mrf.mxu0  ;;  %v6500_v4 = vld [vmem:[%s9430_s3 + $0x528] sm:$0xff]  ;;  %v1699_v5 = vadd.f32 1.0, %v5041_v57  ;;  %v1466_v25 = vadd.f32 0.05243302, %v1465_v10  ;;  %v1443_v57 = vmul.f32 %v8606_v23, %v8547_v59 }
 0x152   : > { %4082 = vmatpush.bf16.msrb.mxu0 %v6500_v4  ;;  %v2164_v29 = vpop.f32.mrf.mxu3  ;;  %v1427_v35 = vmul.f32 %v1426_v9, %v8422_v54  ;;  %6659 = vrcp.f32 %v8611_v62  ;;  %v8636_v10 = vadd.f32 %v8424_v50, %v2396_v32  ;;  %v1515_v56 = vadd.f32 0.014752088, %v1514_v18  ;;  %3743 = vmatpush.bf16.msra.mxu1 %v6472_v24 }
 0x153   : > { %v1707_v42 = vmul.f32 %v1699_v5, %v1363_v1  ;;  %v2174_v34 = vadd.f32 %v2164_v29, %v2060_v30  ;;  %v1467_v12 = vmul.f32 %v1466_v25, %v8437_v36  ;;  %v1444_v1 = vsub.f32 1.0, %v1443_v57  ;;  %3859 = vmatpush.bf16.msra.mxu2 %v6479_v52 }
 0x154   : > { %v1428_v2 = vadd.f32 0.18741608, %v1427_v35  ;;  %v1553_v5 = vadd.f32 0.001143296, %v1552_v33  ;;  %vm1447_vm4 = vweird.f32 %v8547_v59  ;;  %vm1448_vm5 = vweird.f32 %v8606_v23 }
 0x155   : > { %v8633_v4 = vmul.f32 %v8620_v51, %v1707_v42  ;;  %v8641_v17 = vadd.f32 %v8435_v53, %v2174_v34  ;;  %v1468_v20 = vadd.f32 0.18741608, %v1467_v12  ;;  %v1445_v32 = vmul.f32 %v8606_v23, %v1444_v1  ;;  %vm1449_vm6 = vmor %vm1447_vm4, %vm1448_vm5 }
 0x156   : > { %4083 = vmatpush.bf16.msrb.mxu0 %v6499_v48  ;;  %v1429_v50 = vmul.f32 %v1428_v2, %v8422_v54  ;;  %v1451_v9 = vand.u32 2147483647, %v8547_v59  ;;  %v1453_v48 = vand.u32 2147483648, %v8547_v59  ;;  %v1501_v24 = vmul.f32 2.1237322e-06, %v8555_v31  ;;  %3744 = vmatpush.bf16.msra.mxu1 %v6471_v26  ;;  %v8677_v26 = vld [vmem:[#allocation2 + $0x122] sm:$0xff] }
 0x157   : > { %1728 = vst [vmem:[#allocation2 + $0x151] sm:$0xff] %v8633_v4  ;;  %3412 = vmatmul.bf16.gmra.mxu2 %v3327_v38  ;;  %3517 = vmatmul.bf16.vlgmr.msra.gmra.mxu3 %v3440_v21  ;;  %v1446_v18 = vadd.f32 %v8606_v23, %v1445_v32  ;;  %v1469_v21 = vmul.f32 %v1468_v20, %v8437_v36  ;;  %vm1487_vm8 = vweird.f32 %v8611_v62  ;;  %v1491_v34 = vand.u32 2147483647, %v8611_v62  ;;  %v1336_v38 = vld [vmem:[%s8224_s22 + $0x28] sm:$0xff] }
 0x158   : > { %v8638_v30 = vpop.f32.mrf.mxu2  ;;  %3636 = vmatmul.bf16.gmra.mxu0 %v8114_v11  ;;  %v1430_v54 = vadd.f32 1.1283791, %v1429_v50  ;;  %v8659_v33 = vpop.eup %6659  ;;  %vm1452_vm7 = vcmp.eq.f32.partialorder %v1451_v9, 8.507059e+37  ;;  %v1454_v29 = vor.u32 1.1754944e-38, %v1453_v48  ;;  %v1516_v42 = vmul.f32 %v1515_v56, %v8555_v31 }
 0x159   : > { %v2390_v53 = vpop.f32.mrf.mxu1  ;;  %v8649_v3 = vpop.f32.mrf.mxu0  ;;  %v1450_v11 = vsel %vm1449_vm6, %v8606_v23, %v1446_v18  ;;  %v1483_v35 = vmul.f32 %v8659_v33, %v8611_v62  ;;  %vm1488_vm9 = vweird.f32 %v8659_v33  ;;  %v1470_v12 = vadd.f32 1.1283791, %v1469_v21  ;;  %v6491_v18 = vld [vmem:[%s9430_s3 + $0x4e0] sm:$0xff]  ;;  %v6518_v21 = vld [vmem:[%s9430_s3 + $0x5b8] sm:$0xff] }
 0x15a   : > { %v2401_v25 = vadd.f32 %v2390_v53, %v8567_v13  ;;  %v2604_v59 = vpop.f32.mrf.mxu3  ;;  %v1431_v13 = vmul.f32 %v1430_v54, %v8392_v6  ;;  %v1455_v57 = vsel %vm1452_vm7, %v1454_v29, %v1450_v11  ;;  %v1493_v6 = vand.u32 2147483648, %v8611_v62  ;;  %vm8686_vm10 = vmor %vm1487_vm8, %vm1488_vm9  ;;  %v6498_v62 = vld [vmem:[%s9430_s3 + $0x518] sm:$0xff]  ;;  %3969 = vmatpush.bf16.msrb.mxu3 %v6491_v18  ;;  %4308 = vmatpush.bf16.msrb.mxu2 %v6518_v21 }
 0x15b   : > { %v2624_v36 = vadd.f32 %v2604_v59, %v8360_v28  ;;  %v1484_v2 = vsub.f32 1.0, %v1483_v35  ;;  %v1502_v20 = vadd.f32 0.00028619796, %v1501_v24  ;;  %v1517_v56 = vadd.f32 0.112945676, %v1516_v42  ;;  %v6490_v42 = vld [vmem:[%s9430_s3 + $0x4d8] sm:$0xff]  ;;  %4084 = vmatpush.bf16.msrb.mxu0 %v6498_v62 }
 0x15c   : > { %v1456_v52 = vmul.f32 %v1455_v57, %v1431_v13  ;;  %v1554_v28 = vmul.f32 %v1553_v5, %v8570_v22  ;;  %v1348_v48 = vmul.f32 %v8240_v16, %v1336_v38  ;;  %v9497_v5 = vpack.c.bf16 %v8235_v46, %v8104_v58  ;;  %v6497_v59 = vld [vmem:[%s9430_s3 + $0x510] sm:$0xff] }
 0x15d   : > { %v8674_v1 = vadd.f32 %v8473_v47, %v2624_v36  ;;  %v1485_v53 = vmul.f32 %v8659_v33, %v1484_v2  ;;  %v1337_v47 = vld [vmem:[%s8224_s22 + $0x30] sm:$0xff]  ;;  %v1364_v29 = vmul.f32 0.5, %v8370_v15  ;;  %vm8709_vm11 = vcmp.eq.f32.partialorder %v1491_v34, 8.507059e+37 }
 0x15e   : > { %v5042_v32 = vclamps-f32 %v1456_v52, 1.0  ;;  %v1494_v46 = vor.u32 1.1754944e-38, %v1493_v6  ;;  %v1503_v24 = vmul.f32 %v1502_v20, %v8555_v31  ;;  %v1471_v13 = vmul.f32 %v1470_v12, %v8395_v43  ;;  %v6517_v20 = vld [vmem:[%s9430_s3 + $0x5b0] sm:$0xff]  ;;  %3970 = vmatpush.bf16.msrb.mxu3 %v6490_v42 }
 0x15f   : > { %3298 = vmatmul.bf16.gmra.mxu1 %v9497_v5  ;;  %v1486_v11 = vadd.f32 %v8659_v33, %v1485_v53  ;;  %v1518_v35 = vmul.f32 %v1517_v56, %v8555_v31  ;;  %v3328_v36 = vpack.c.bf16 %v8677_v26, %v8460_v7  ;;  %v1541_v34 = vmul.f32 2.1237322e-06, %v8570_v22  ;;  %v6510_v7 = vld [vmem:[%s9430_s3 + $0x578] sm:$0xff]  ;;  %4085 = vmatpush.bf16.msrb.mxu0 %v6497_v59 }
 0x160   : > { %v2505_v23 = vpop.f32.mrf.mxu2  ;;  %v1700_v15 = vadd.f32 1.0, %v5042_v32  ;;  %v1504_v57 = vadd.f32 0.0036580483, %v1503_v24  ;;  %v1555_v38 = vadd.f32 0.014752088, %v1554_v28  ;;  %v1349_v6 = vmul.f32 %v8240_v16, %v1337_v47  ;;  %4194 = vmatpush.bf16.msrb.mxu1 %v6510_v7  ;;  %4309 = vmatpush.bf16.msrb.mxu2 %v6517_v20 }
 0x161   : > { %v8679_v50 = vadd.f32 %v2505_v23, %v2401_v25  ;;  %v8695_v25 = vpop.f32.mrf.mxu1  ;;  %v8697_v54 = vpop.f32.mrf.mxu0  ;;  %v1490_v43 = vsel %vm8686_vm10, %v8659_v33, %v1486_v11  ;;  %v1519_v2 = vadd.f32 0.4994258, %v1518_v35  ;;  %v8741_v33 = vadd.f32 %v8255_v19, %v1348_v48 }
 0x162   : > { %v2606_v52 = vpop.f32.mrf.mxu3  ;;  %v1708_v12 = vmul.f32 %v1700_v15, %v1364_v29  ;;  %v1495_v56 = vsel %vm8709_vm11, %v1494_v46, %v1490_v43  ;;  %v1505_v28 = vmul.f32 %v1504_v57, %v8555_v31  ;;  %v1542_v53 = vadd.f32 0.00028619796, %v1541_v34 }
 0x163   : > { %v2625_v23 = vadd.f32 %v2606_v52, %v8636_v10  ;;  %v1496_v32 = vmul.f32 %v1495_v56, %v1471_v13  ;;  %v1520_v10 = vmul.f32 %v1519_v2, %v8555_v31  ;;  %v1556_v18 = vmul.f32 %v1555_v38, %v8570_v22  ;;  %v6488_v56 = vld [vmem:[%s9430_s3 + $0x4c8] sm:$0xff] }
 0x164   : > { %v8744_v16 = vmul.f32 %v8620_v51, %v1708_v12  ;;  %v1506_v5 = vadd.f32 0.05243302, %v1505_v28  ;;  %v1365_v48 = vmul.f32 0.5, %v8373_v61  ;;  %v1543_v29 = vmul.f32 %v1542_v53, %v8570_v22 }
 0x165   : > { %v8750_v47 = vadd.f32 %v8532_v40, %v2625_v23  ;;  %v5043_v62 = vclamps-f32 %v1496_v32, 1.0  ;;  %v8755_v21 = vadd.f32 1.0, %v1520_v10  ;;  %v1557_v24 = vadd.f32 0.112945676, %v1556_v18  ;;  %v6516_v18 = vld [vmem:[%s9430_s3 + $0x5a8] sm:$0xff] }
 0x166   : > { %1729 = vst [vmem:[#allocation2 + $0x161] sm:$0xff] %v8744_v16  ;;  %v1507_v46 = vmul.f32 %v1506_v5, %v8555_v31  ;;  %v8763_v42 = vadd.f32 %v8255_v19, %v1349_v6  ;;  %v8766_v61 = vmul.f32 0.70710677, %v8741_v33  ;;  %v6489_v19 = vld [vmem:[%s9430_s3 + $0x4d0] sm:$0xff]  ;;  %v9501_v32 = vpack.c.bf16 %v8343_v55, %v8303_v0  ;;  %4310 = vmatpush.bf16.msrb.mxu2 %v6516_v18  ;;  %v9506_v18 = vld [vmem:[#allocation8_spill] sm:$0xff] }
 0x167   : > { %3417 = vmatmul.bf16.gmra.mxu2 %v3328_v36  ;;  %3522 = vmatmul.bf16.gmra.mxu3 %v8152_v8  ;;  %v1701_v13 = vadd.f32 1.0, %v5043_v62  ;;  %6661 = vrcp.f32 %v8755_v21  ;;  %v1558_v11 = vmul.f32 %v1557_v24, %v8570_v22  ;;  %v1544_v36 = vadd.f32 0.0036580483, %v1543_v29  ;;  %v6509_v5 = vld [vmem:[%s9430_s3 + $0x570] sm:$0xff] }
 0x168   : > { %v8747_v9 = vpop.f32.mrf.mxu2  ;;  %3641 = vmatmul.bf16.gmra.mxu0 %v8323_v49  ;;  %v1508_v8 = vadd.f32 0.18741608, %v1507_v46  ;;  %v1579_v57 = vmul.f32 %v8766_v61, %v8766_v61  ;;  %v9500_v49 = vld [vmem:[#allocation7_spill] sm:$0xff]  ;;  %v8781_v38 = vmul.f32 0.70710677, %v8763_v42  ;;  %3971 = vmatpush.bf16.msrb.mxu3 %v6489_v19  ;;  %vm1527_vm12 = vweird.f32 %v8755_v21  ;;  %v3553_v29 = vld [vmem:[#allocation2 + $0x131] sm:$0xff] }
 0x169   : > { %v2833_v40 = vpop.f32.mrf.mxu1  ;;  %v8759_v58 = vpop.f32.mrf.mxu0  ;;  %v1709_v35 = vmul.f32 %v1701_v13, %v1365_v48  ;;  %v1545_v12 = vmul.f32 %v1544_v36, %v8570_v22  ;;  %v1559_v2 = vadd.f32 0.4994258, %v1558_v11  ;;  %v1531_v0 = vand.u32 2147483647, %v8755_v21  ;;  %4195 = vmatpush.bf16.msrb.mxu1 %v6509_v5  ;;  %v8835_v19 = vld [vmem:[#allocation2] sm:$0xff] }
 0x16a   : > { %v2853_v59 = vadd.f32 %v2833_v40, %v8674_v1  ;;  %v2609_v15 = vpop.f32.mrf.mxu3  ;;  %v2398_v1 = vadd.f32 %v8471_v45, %v8429_v39  ;;  %v1509_v43 = vmul.f32 %v1508_v8, %v8555_v31  ;;  %v8791_v7 = vmin.f32 %v1579_v57, 16.0  ;;  %v6496_v31 = vld [vmem:[%s9430_s3 + $0x508] sm:$0xff]  ;;  %v6495_v40 = vld [vmem:[%s9430_s3 + $0x500] sm:$0xff] }
 0x16b   : > { %v2626_v34 = vadd.f32 %v2609_v15, %v9500_v49  ;;  %v8784_v52 = vmul.f32 %v8620_v51, %v1709_v35  ;;  %v1560_v28 = vmul.f32 %v1559_v2, %v8570_v22  ;;  %v1533_v62 = vand.u32 2147483648, %v8755_v21  ;;  %4086 = vmatpush.bf16.msrb.mxu0 %v6496_v31  ;;  %v6487_v57 = vld [vmem:[%s9430_s3 + $0x4c0] sm:$0xff] }
 0x16c   : > { %v2513_v45 = vadd.f32 %v8518_v60, %v2398_v1  ;;  %v3776_v60 = vld [vmem:[#allocation2 + $0x150] sm:$0xff]  ;;  %3972 = vmatpush.bf16.msrb.mxu3 %v6488_v56  ;;  %v1510_v46 = vadd.f32 1.1283791, %v1509_v43  ;;  %v1619_v13 = vmul.f32 %v8781_v38, %v8781_v38  ;;  %v1581_v11 = vmul.f32 2.1237322e-06, %v8791_v7  ;;  %v6508_v43 = vld [vmem:[%s9430_s3 + $0x568] sm:$0xff] }
 0x16d   : > { %v8789_v23 = vadd.f32 %v8583_v14, %v2626_v34  ;;  %v8793_v39 = vpop.eup %6661  ;;  %1730 = vst [vmem:[#allocation2 + $0x171] sm:$0xff] %v8784_v52  ;;  %v1546_v14 = vadd.f32 0.05243302, %v1545_v12  ;;  %v1592_v15 = vmul.f32 3.8918573e-05, %v8791_v7  ;;  %v3783_v36 = vpack.c.bf16 %v3776_v60, %v8835_v19  ;;  %v6515_v12 = vld [vmem:[%s9430_s3 + $0x5a0] sm:$0xff]  ;;  %4196 = vmatpush.bf16.msrb.mxu1 %v6508_v43 }
 0x16e   : > { %v1523_v48 = vmul.f32 %v8793_v39, %v8755_v21  ;;  %vm1528_vm13 = vweird.f32 %v8793_v39  ;;  %v3557_v34 = vpack.c.bf16 %v3553_v29, %v8343_v55  ;;  %v1511_v31 = vmul.f32 %v1510_v46, %v8499_v44  ;;  %4311 = vmatpush.bf16.msrb.mxu2 %v6515_v12 }
 0x16f   : > { %3303 = vmatmul.bf16.gmra.mxu1 %v9501_v32  ;;  %v1547_v24 = vmul.f32 %v1546_v14, %v8570_v22  ;;  %4087 = vmatpush.bf16.msrb.mxu0 %v6495_v40  ;;  %vm8855_vm14 = vmor %vm1527_vm12, %vm1528_vm13  ;;  %vm8859_vm15 = vcmp.eq.f32.partialorder %v1531_v0, 8.507059e+37  ;;  %v1534_v56 = vor.u32 1.1754944e-38, %v1533_v62  ;;  %v1593_v14 = vadd.f32 0.001143296, %v1592_v15  ;;  %v9507_v0 = vld [vmem:[#allocation4_spill] sm:$0xff] }
 0x170   : > { %v2947_v6 = vpop.f32.mrf.mxu2  ;;  %v1524_v8 = vsub.f32 1.0, %v1523_v48  ;;  %3973 = vmatpush.bf16.msrb.mxu3 %v6487_v57  ;;  %v8870_v60 = vmin.f32 %v1619_v13, 16.0  ;;  %v2400_v5 = vadd.f32 %v8581_v41, %v8521_v27  ;;  %v1366_v48 = vmul.f32 0.5, %v9506_v18 }
 0x171   : > { %v8796_v20 = vadd.f32 %v2947_v6, %v2853_v59  ;;  %v8809_v10 = vpop.f32.mrf.mxu1  ;;  %v8811_v53 = vpop.f32.mrf.mxu0  ;;  %v8828_v59 = vadd.f32 1.0, %v1560_v28  ;;  %v1548_v1 = vadd.f32 0.18741608, %v1547_v24  ;;  %v1582_v6 = vadd.f32 0.00028619796, %v1581_v11 }
 0x172   : > { %v2611_v35 = vpop.f32.mrf.mxu3  ;;  %v1525_v2 = vmul.f32 %v8793_v39, %v1524_v8  ;;  %v1621_v46 = vmul.f32 2.1237322e-06, %v8870_v60  ;;  %v1594_v8 = vmul.f32 %v1593_v14, %v8791_v7 }
 0x173   : > { %6663 = vrcp.f32 %v8828_v59  ;;  %v2627_v49 = vadd.f32 %v2611_v35, %v2513_v45  ;;  %v1549_v21 = vmul.f32 %v1548_v1, %v8570_v22  ;;  %v1571_v40 = vand.u32 2147483647, %v8828_v59 }
 0x174   : > { %v1526_v44 = vadd.f32 %v8793_v39, %v1525_v2  ;;  %v1583_v22 = vmul.f32 %v1582_v6, %v8791_v7  ;;  %v1573_v13 = vand.u32 2147483648, %v8828_v59  ;;  %vm1567_vm0 = vweird.f32 %v8828_v59 }
 0x175   : > { %v8866_v32 = vadd.f32 %v8649_v3, %v2627_v49  ;;  %v1550_v15 = vadd.f32 1.1283791, %v1549_v21  ;;  %v1595_v57 = vadd.f32 0.014752088, %v1594_v8  ;;  %v1622_v1 = vadd.f32 0.00028619796, %v1621_v46 }
 0x176   : > { %v1530_v3 = vsel %vm8855_vm14, %v8793_v39, %v1526_v44  ;;  %v1584_v35 = vadd.f32 0.0036580483, %v1583_v22  ;;  %vm8899_vm2 = vcmp.eq.f32.partialorder %v1571_v40, 8.507059e+37  ;;  %v8903_v44 = vld [vmem:[#allocation2 + $0x160] sm:$0xff]  ;;  %v8905_v21 = vld [vmem:[#allocation2 + $0x170] sm:$0xff] }
 0x177   : > { %3527 = vmatmul.bf16.gmra.mxu3 %v9507_v0  ;;  %3860 = vmatmul.bf16.vlgmr.msra.gmra.mxu2 %v3783_v36  ;;  %v1535_v41 = vsel %vm8859_vm15, %v1534_v56, %v1530_v3  ;;  %v1596_v2 = vmul.f32 %v1595_v57, %v8791_v7  ;;  %v1623_v6 = vmul.f32 %v1622_v1, %v8870_v60  ;;  %v9512_v40 = vld [vmem:[#allocation3_spill] sm:$0xff]  ;;  %v8939_v1 = vld [vmem:[#allocation2 + $0x152] sm:$0xff] }
 0x178   : > { %v8863_v28 = vpop.f32.mrf.mxu2  ;;  %3646 = vmatmul.bf16.gmra.mxu0 %v3557_v34  ;;  %v1536_v11 = vmul.f32 %v1535_v41, %v1511_v31  ;;  %v1585_v12 = vmul.f32 %v1584_v35, %v8791_v7  ;;  %v1551_v46 = vmul.f32 %v1550_v15, %v8506_v37  ;;  %v2515_v15 = vadd.f32 %v8638_v30, %v2400_v5  ;;  %v4003_v57 = vld [vmem:[#allocation2 + $0x142] sm:$0xff] }
 0x179   : > { %v2838_v62 = vpop.f32.mrf.mxu1  ;;  %v8876_v29 = vpop.f32.mrf.mxu0  ;;  %v3784_v5 = vpack.c.bf16 %v8905_v21, %v8903_v44  ;;  %v4011_v0 = vpack.c.bf16 %v8939_v1, %v4003_v57 }
 0x17a   : > { %v6664_v24 = vpop.eup %6663  ;;  %v2855_v27 = vadd.f32 %v2838_v62, %v8789_v23  ;;  %v2614_v36 = vpop.f32.mrf.mxu3  ;;  %v1632_v23 = vmul.f32 3.8918573e-05, %v8870_v60  ;;  %v5044_v34 = vclamps-f32 %v1536_v11, 1.0  ;;  %v1597_v62 = vadd.f32 0.112945676, %v1596_v2 }
 0x17b   : > { %v1563_v39 = vmul.f32 %v6664_v24, %v8828_v59  ;;  %v2628_v49 = vadd.f32 %v2614_v36, %v8572_v63  ;;  %vm1568_vm1 = vweird.f32 %v6664_v24  ;;  %v6534_v59 = vld [vmem:[%s9430_s3 + $0x638] sm:$0xff]  ;;  %v1624_v11 = vadd.f32 0.0036580483, %v1623_v6 }
 0x17c   : > { %v1633_v31 = vadd.f32 0.001143296, %v1632_v23  ;;  %v1702_v63 = vadd.f32 1.0, %v5044_v34  ;;  %vm8911_vm3 = vmor %vm1567_vm0, %vm1568_vm1  ;;  %v1586_v37 = vadd.f32 0.05243302, %v1585_v12  ;;  %4537 = vmatpush.bf16.msra.mxu0 %v6534_v59  ;;  %v6533_v23 = vld [vmem:[%s9430_s3 + $0x630] sm:$0xff] }
 0x17d   : > { %v1564_v43 = vsub.f32 1.0, %v1563_v39  ;;  %v8897_v45 = vadd.f32 %v8697_v54, %v2628_v49  ;;  %v1574_v54 = vor.u32 1.1754944e-38, %v1573_v13  ;;  %v6514_v13 = vld [vmem:[%s9430_s3 + $0x598] sm:$0xff]  ;;  %vm4856_vm0 = vcmask 1040384  }
 0x17e   : > { %v1634_v3 = vmul.f32 %v1633_v31, %v8870_v60  ;;  %v1710_v8 = vmul.f32 %v1702_v63, %v1366_v48  ;;  %v6526_v39 = vld [vmem:[%s9430_s3 + $0x5f8] sm:$0xff]  ;;  %v1598_v48 = vmul.f32 %v1597_v62, %v8791_v7  ;;  %4312 = vmatpush.bf16.msrb.mxu2 %v6514_v13 }
 0x17f   : > { %v1565_v56 = vmul.f32 %v6664_v24, %v1564_v43  ;;  %3745 = vmatmul.bf16.vlgmr.msra.gmra.mxu1 %v9512_v40  ;;  %v9513_v43 = vld [vmem:[#allocation6_spill] sm:$0xff]  ;;  %4422 = vmatpush.bf16.msra.mxu3 %v6526_v39  ;;  %v9514_v40 = vld [vmem:[#allocation9_spill] sm:$0xff] }
 0x180   : > { %v2952_v55 = vpop.f32.mrf.mxu2  ;;  %v8937_v36 = vmul.f32 %v8620_v51, %v1710_v8  ;;  %v1635_v49 = vadd.f32 0.014752088, %v1634_v3  ;;  %v3443_v30 = vpack.c.bf16 %v8835_v19, %v9513_v43  ;;  %v1599_v12 = vadd.f32 0.4994258, %v1598_v48  ;;  %v6506_v31 = vld [vmem:[%s9430_s3 + $0x558] sm:$0xff]  ;;  %4538 = vmatpush.bf16.msra.mxu0 %v6533_v23 }
 0x181   : > { %v8907_v18 = vadd.f32 %v2952_v55, %v2855_v27  ;;  %v8917_v22 = vpop.f32.mrf.mxu0  ;;  %v1566_v41 = vadd.f32 %v6664_v24, %v1565_v56  ;;  %v6507_v27 = vld [vmem:[%s9430_s3 + $0x560] sm:$0xff]  ;;  %v6513_v55 = vld [vmem:[%s9430_s3 + $0x590] sm:$0xff]  ;;  %v1625_v56 = vmul.f32 %v1624_v11, %v8870_v60  ;;  %v8959_v63 = vpop.f32.mrf.mxu1 }
 0x182   : > { %4197 = vmatpush.bf16.msrb.mxu1 %v6507_v27  ;;  %v2616_v34 = vpop.f32.mrf.mxu3  ;;  %1731 = vst [vmem:[#allocation2 + $0x181] sm:$0xff] %v8937_v36  ;;  %v1636_v14 = vmul.f32 %v1635_v49, %v8870_v60  ;;  %v1600_v62 = vmul.f32 %v1599_v12, %v8791_v7  ;;  %4313 = vmatpush.bf16.msrb.mxu2 %v6513_v55 }
 0x183   : > { %v1570_v35 = vsel %vm8911_vm3, %v6664_v24, %v1566_v41  ;;  %v2629_v2 = vadd.f32 %v2616_v34, %v2515_v15  ;;  %v1626_v39 = vadd.f32 0.05243302, %v1625_v56  ;;  %v3889_v56 = vld [vmem:[#allocation2 + $0x141] sm:$0xff] }
 0x184   : > { %v1575_v24 = vsel %vm8899_vm2, %v1574_v54, %v1570_v35  ;;  %v1587_v54 = vmul.f32 %v1586_v37, %v8791_v7  ;;  %v1637_v59 = vadd.f32 0.112945676, %v1636_v14  ;;  %v1601_v27 = vadd.f32 1.0, %v1600_v62  ;;  %v8996_v62 = vld [vmem:[#allocation2 + $0x162] sm:$0xff] }
 0x185   : > { %v1576_v6 = vmul.f32 %v1575_v24, %v1551_v46  ;;  %v1367_v46 = vmul.f32 0.5, %v9514_v40  ;;  %v8968_v8 = vadd.f32 %v8759_v58, %v2629_v2  ;;  %v1627_v49 = vmul.f32 %v1626_v39, %v8870_v60  ;;  %v8998_v40 = vld [vmem:[#allocation2 + $0x172] sm:$0xff] }
 0x186   : > { %4198 = vmatpush.bf16.msrb.mxu1 %v6506_v31  ;;  %v1638_v37 = vmul.f32 %v1637_v59, %v8870_v60  ;;  %v1588_v48 = vadd.f32 0.18741608, %v1587_v54  ;;  %6665 = vrcp.f32 %v1601_v27  ;;  %v9515_v31 = vld [vmem:[#allocation5_spill] sm:$0xff]  ;;  %vm1607_vm4 = vweird.f32 %v1601_v27  ;;  %v6673_v59 = vld [vmem:[%s9432_s5] ss:$0 sm:$0xff] }
 0x187   : > { %v5045_v41 = vclamps-f32 %v1576_v6, 1.0  ;;  %3532 = vmatmul.bf16.gmra.mxu3 %v3443_v30  ;;  %3865 = vmatmul.bf16.gmra.mxu2 %v3784_v5  ;;  %v2402_v30 = vadd.f32 %v8695_v25, %v8641_v17  ;;  %v1628_v25 = vadd.f32 0.18741608, %v1627_v49 }
 0x188   : > { %v8964_v3 = vpop.f32.mrf.mxu2  ;;  %4088 = vmatmul.bf16.vlgmr.msrb.gmra.mxu0 %v4011_v0  ;;  %v1639_v35 = vadd.f32 0.4994258, %v1638_v37  ;;  %v1589_v34 = vmul.f32 %v1588_v48, %v8791_v7  ;;  %v3897_v37 = vpack.c.bf16 %v8633_v4, %v3889_v56  ;;  %v6674_v4 = vld [vmem:[%s9433_s6] ss:$0 sm:$0xff] }
 0x189   : > { %v1703_v13 = vadd.f32 1.0, %v5045_v41  ;;  %v8970_v11 = vpop.f32.mrf.mxu0  ;;  %v2517_v6 = vadd.f32 %v8747_v9, %v2402_v30  ;;  %v1611_v9 = vand.u32 2147483647, %v1601_v27  ;;  %v9001_v41 = vld [vmem:[#allocation2 + $0x180] sm:$0xff]  ;;  %v6532_v30 = vld [vmem:[%s9430_s3 + $0x628] sm:$0xff] }
 0x18a   : > { %v2619_v58 = vpop.f32.mrf.mxu3  ;;  %v1640_v43 = vmul.f32 %v1639_v35, %v8870_v60  ;;  %v1590_v14 = vadd.f32 1.1283791, %v1589_v34  ;;  %v9019_v34 = vpack.c.bf16 %v8998_v40, %v8996_v62  ;;  %4539 = vmatpush.bf16.msra.mxu0 %v6532_v30 }
 0x18b   : > { %v1711_v15 = vmul.f32 %v1703_v13, %v1367_v46  ;;  %v2630_v57 = vadd.f32 %v2619_v58, %v8679_v50  ;;  %vm1612_vm7 = vcmp.eq.f32.partialorder %v1611_v9, 8.507059e+37  ;;  %v6524_v9 = vld [vmem:[%s9430_s3 + $0x5e8] sm:$0xff] }
 0x18c   : > { %v6666_v24 = vpop.eup %6665  ;;  %v8986_v2 = vadd.f32 1.0, %v1640_v43  ;;  %v1591_v58 = vmul.f32 %v1590_v14, %v8766_v61  ;;  %v6525_v43 = vld [vmem:[%s9430_s3 + $0x5f0] sm:$0xff] }
 0x18d   : > { %v8975_v23 = vmul.f32 %v8620_v51, %v1711_v15  ;;  %v8984_v5 = vadd.f32 %v8811_v53, %v2630_v57  ;;  %v1603_v17 = vmul.f32 %v6666_v24, %v1601_v27  ;;  %v1613_v53 = vand.u32 2147483648, %v1601_v27  ;;  %4423 = vmatpush.bf16.msra.mxu3 %v6525_v43 }
 0x18e   : > { %6667 = vrcp.f32 %v8986_v2  ;;  %vm1608_vm5 = vweird.f32 %v6666_v24  ;;  %v1629_v15 = vmul.f32 %v1628_v25, %v8870_v60  ;;  %v3665_v25 = vld [vmem:[#allocation2 + $0x112] sm:$0xff]  ;;  %vm1647_vm8 = vweird.f32 %v8986_v2 }
 0x18f   : > { %1732 = vst [vmem:[#allocation2 + $0x191] sm:$0xff] %v8975_v23  ;;  %3750 = vmatmul.bf16.gmra.mxu1 %v9515_v31  ;;  %v1604_v54 = vsub.f32 1.0, %v1603_v17  ;;  %vm9013_vm6 = vmor %vm1607_vm4, %vm1608_vm5  ;;  %v1614_v49 = vor.u32 1.1754944e-38, %v1613_v53  ;;  %v6512_v31 = vld [vmem:[%s9430_s3 + $0x588] sm:$0xff] }
 0x190   : > { %v2843_v12 = vpop.f32.mrf.mxu1  ;;  %v2957_v50 = vpop.f32.mrf.mxu2  ;;  %v3664_v17 = vld [vmem:[#allocation2 + $0x102] sm:$0xff]  ;;  %v1630_v14 = vadd.f32 1.1283791, %v1629_v15  ;;  %4314 = vmatpush.bf16.msrb.mxu2 %v6512_v31 }
 0x191   : > { %v2857_v7 = vadd.f32 %v2843_v12, %v8897_v45  ;;  %v8991_v55 = vpop.f32.mrf.mxu0  ;;  %v1338_v45 = vld [vmem:[%s8224_s22 + $0x38] sm:$0xff]  ;;  %v1605_v48 = vmul.f32 %v6666_v24, %v1604_v54  ;;  %v6505_v12 = vld [vmem:[%s9430_s3 + $0x550] sm:$0xff]  ;;  %v1653_v54 = vand.u32 2147483648, %v8986_v2  ;;  %4424 = vmatpush.bf16.msra.mxu3 %v6524_v9 }
 0x192   : > { %v2621_v46 = vpop.f32.mrf.mxu3  ;;  %v1350_v13 = vmul.f32 %v6673_v59, %v1338_v45  ;;  %v1651_v59 = vand.u32 2147483647, %v8986_v2  ;;  %4199 = vmatpush.bf16.msrb.mxu1 %v6505_v12  ;;  %v1631_v30 = vmul.f32 %v1630_v14, %v8781_v38  ;;  %v6503_v38 = vld [vmem:[%s9430_s3 + $0x540] sm:$0xff] }
 0x193   : > { %v8994_v0 = vadd.f32 %v2957_v50, %v2857_v7  ;;  %v2631_v39 = vadd.f32 %v2621_v46, %v2517_v6  ;;  %v1606_v27 = vadd.f32 %v6666_v24, %v1605_v48  ;;  %v3670_v48 = vpack.c.bf16 %v3665_v25, %v3664_v17 }
 0x194   : > { %v9024_v60 = vadd.f32 %v6674_v4, %v1350_v13  ;;  %v6668_v6 = vpop.eup %6667  ;;  %v1368_v4 = vmul.f32 0.5, %v8741_v33  ;;  %v1654_v31 = vor.u32 1.1754944e-38, %v1653_v54  ;;  %vm1652_vm11 = vcmp.eq.f32.partialorder %v1651_v59, 8.507059e+37 }
 0x195   : > { %v9040_v50 = vadd.f32 %v8876_v29, %v2631_v39  ;;  %v1610_v56 = vsel %vm9013_vm6, %v6666_v24, %v1606_v27  ;;  %v1643_v29 = vmul.f32 %v6668_v6, %v8986_v2  ;;  %vm1648_vm9 = vweird.f32 %v6668_v6  ;;  %v6531_v39 = vld [vmem:[%s9430_s3 + $0x620] sm:$0xff] }
 0x196   : > { %v9008_v35 = vld [vmem:[#allocation2 + $0x190] sm:$0xff]  ;;  %v9046_v7 = vmul.f32 0.70710677, %v9024_v60  ;;  %v1615_v53 = vsel %vm1612_vm7, %v1614_v49, %v1610_v56  ;;  %vm9080_vm10 = vmor %vm1647_vm8, %vm1648_vm9  ;;  %4540 = vmatpush.bf16.msra.mxu0 %v6531_v39  ;;  %v2854_v56 = vadd.f32 %v8809_v10, %v8750_v47 }
 0x197   : > { %v9028_v61 = vpack.c.bf16 %v9008_v35, %v9001_v41  ;;  %3974 = vmatmul.bf16.vlgmr.msrb.gmra.mxu3 %v3897_v37  ;;  %v1616_v46 = vmul.f32 %v1615_v53, %v1591_v58  ;;  %v1644_v24 = vsub.f32 1.0, %v1643_v29  ;;  %v6504_v37 = vld [vmem:[%s9430_s3 + $0x548] sm:$0xff]  ;;  %v6511_v58 = vld [vmem:[%s9430_s3 + $0x580] sm:$0xff]  ;;  %v9104_v47 = vld [vmem:[#allocation2 + $0x192] sm:$0xff] }
 0x198   : > { %4093 = vmatmul.bf16.gmra.mxu0 %v9019_v34  ;;  %v1659_v45 = vmul.f32 %v9046_v7, %v9046_v7  ;;  %4200 = vmatpush.bf16.msrb.mxu1 %v6504_v37  ;;  %v9095_v53 = vpop.f32.mrf.mxu2  ;;  %v2968_v9 = vadd.f32 %v8863_v28, %v2854_v56  ;;  %v9106_v10 = vpop.f32.mrf.mxu1  ;;  %v1369_v37 = vmul.f32 0.5, %v8763_v42  ;;  %v3898_v28 = vpack.c.bf16 %v8784_v52, %v8744_v16  ;;  %v6530_v42 = vld [vmem:[%s9430_s3 + $0x618] sm:$0xff]  ;;  %v9154_v56 = vld [vmem:[%s9430_s3 + $0x6b0] sm:$0xff] }
 0x199   : > { %3870 = vmatmul.bf16.gmra.mxu2 %v9028_v61  ;;  %v9061_v13 = vpop.f32.mrf.mxu0  ;;  %v5046_v27 = vclamps-f32 %v1616_v46, 1.0  ;;  %v1645_v43 = vmul.f32 %v6668_v6, %v1644_v24  ;;  %v9102_v24 = vld [vmem:[#allocation2 + $0x182] sm:$0xff] }
 0x19a   : > { %v3061_v15 = vpop.f32.mrf.mxu3  ;;  %v9072_v57 = vmin.f32 %v1659_v45, 16.0  ;;  %4315 = vmatpush.bf16.msrb.mxu2 %v6511_v58  ;;  %v9116_v58 = vpack.c.bf16 %v9104_v47, %v9102_v24  ;;  %4541 = vmatpush.bf16.msra.mxu0 %v6530_v42 }
 0x19b   : > { %v3081_v49 = vadd.f32 %v3061_v15, %v8796_v20  ;;  %v1646_v25 = vadd.f32 %v6668_v6, %v1645_v43  ;;  %v1704_v20 = vadd.f32 1.0, %v5046_v27  ;;  %v6523_v27 = vld [vmem:[%s9430_s3 + $0x5e0] sm:$0xff]  ;;  %v9128_v43 = vld [vmem:[%s9430_s3 + $0x6b8] sm:$0xff] }
 0x19c   : > { %v1672_v17 = vmul.f32 3.8918573e-05, %v9072_v57  ;;  %4201 = vmatpush.bf16.msrb.mxu1 %v6503_v38  ;;  %4425 = vmatpush.bf16.msra.mxu3 %v6523_v27 }
 0x19d   : > { %v9086_v33 = vadd.f32 %v8917_v22, %v3081_v49  ;;  %v1650_v14 = vsel %vm9080_vm10, %v6668_v6, %v1646_v25  ;;  %v1712_v29 = vmul.f32 %v1704_v20, %v1368_v4  ;;  %v9139_v25 = vld [vmem:[%s9430_s3 + $0x678] sm:$0xff] }
 0x19e   : > { %v1673_v2 = vadd.f32 0.001143296, %v1672_v17  ;;  %v1655_v54 = vsel %vm1652_vm11, %v1654_v31, %v1650_v14  ;;  %v6529_v17 = vld [vmem:[%s9430_s3 + $0x610] sm:$0xff]  ;;  %4765 = vmatpush.bf16.msra.mxu2 %v9128_v43 }
 0x19f   : > { %3755 = vmatmul.bf16.gmra.mxu1 %v3670_v48  ;;  %v1656_v45 = vmul.f32 %v1655_v54, %v1631_v30  ;;  %v9100_v46 = vmul.f32 %v8620_v51, %v1712_v29  ;;  %v3667_v20 = vld [vmem:[#allocation2 + $0x132] sm:$0xff]  ;;  %4542 = vmatpush.bf16.msra.mxu0 %v6529_v17 }
 0x1a0   : > { %v1674_v22 = vmul.f32 %v1673_v2, %v9072_v57  ;;  %6559 = vmatpush.bf16.msra.mxu1 %v9139_v25 }
 0x1a1   : > { %v5047_v48 = vclamps-f32 %v1656_v45, 1.0  ;;  %1733 = vst [vmem:[#allocation2 + $0x1a1] sm:$0xff] %v9100_v46  ;;  %v9112_v15 = vpop.f32.mrf.mxu0 }
 0x1a2   : > { %v3063_v6 = vpop.f32.mrf.mxu3  ;;  %v1675_v59 = vadd.f32 0.014752088, %v1674_v22  ;;  %v3671_v22 = vpack.c.bf16 %v3667_v20, %v8677_v26  ;;  %4766 = vmatpush.bf16.msra.mxu2 %v9154_v56 }
 0x1a3   : > { %v3082_v39 = vadd.f32 %v3063_v6, %v2968_v9  ;;  %v1705_v4 = vadd.f32 1.0, %v5047_v48  ;;  %v1661_v6 = vmul.f32 2.1237322e-06, %v9072_v57 }
 0x1a4   : > { %v1676_v49 = vmul.f32 %v1675_v59, %v9072_v57 }
 0x1a5   : > { %v9131_v30 = vadd.f32 %v8970_v11, %v3082_v39  ;;  %v1713_v31 = vmul.f32 %v1705_v4, %v1369_v37  ;;  %v6522_v11 = vld [vmem:[%s9430_s3 + $0x5d8] sm:$0xff]  ;;  %v1662_v26 = vadd.f32 0.00028619796, %v1661_v6 }
 0x1a6   : > { %v1677_v12 = vadd.f32 0.112945676, %v1676_v49  ;;  %4426 = vmatpush.bf16.msra.mxu3 %v6522_v11 }
 0x1a7   : > { %3979 = vmatmul.bf16.gmra.mxu3 %v3898_v28  ;;  %v9147_v2 = vmul.f32 %v8620_v51, %v1713_v31  ;;  %v1663_v4 = vmul.f32 %v1662_v26, %v9072_v57 }
 0x1a8   : > { %4098 = vmatmul.bf16.gmra.mxu0 %v9116_v58  ;;  %v1678_v38 = vmul.f32 %v1677_v12, %v9072_v57  ;;  %v9175_v27 = vld [vmem:[#allocation2 + $0x1a0] sm:$0xff] }
 0x1a9   : > { %1734 = vst [vmem:[#allocation2 + $0x1b1] sm:$0xff] %v9147_v2  ;;  %v9159_v45 = vpop.f32.mrf.mxu0  ;;  %v9182_v42 = vld [vmem:[#allocation2 + $0x1a2] sm:$0xff]  ;;  %v1664_v12 = vadd.f32 0.0036580483, %v1663_v4 }
 0x1aa   : > { %v2962_v14 = vpop.f32.mrf.mxu2  ;;  %v3066_v29 = vpop.f32.mrf.mxu3  ;;  %v1679_v54 = vadd.f32 0.4994258, %v1678_v38  ;;  %v3899_v38 = vpack.c.bf16 %v8975_v23, %v8937_v36 }
 0x1ab   : > { %v3083_v9 = vadd.f32 %v3066_v29, %v8907_v18  ;;  %v2856_v18 = vadd.f32 %v8959_v63, %v8866_v32 }
 0x1ac   : > { %v2848_v59 = vpop.f32.mrf.mxu1  ;;  %v1680_v39 = vmul.f32 %v1679_v54, %v9072_v57  ;;  %v6528_v54 = vld [vmem:[%s9430_s3 + $0x608] sm:$0xff] }
 0x1ad   : > { %v2859_v37 = vadd.f32 %v2848_v59, %v8984_v5  ;;  %v9166_v48 = vadd.f32 %v8991_v55, %v3083_v9  ;;  %v6521_v5 = vld [vmem:[%s9430_s3 + $0x5d0] sm:$0xff]  ;;  %v2970_v55 = vadd.f32 %v8964_v3, %v2856_v18  ;;  %v1665_v3 = vmul.f32 %v1664_v12, %v9072_v57  ;;  %4543 = vmatpush.bf16.msra.mxu0 %v6528_v54 }
 0x1ae   : > { %v9168_v28 = vadd.f32 1.0, %v1680_v39  ;;  %4427 = vmatpush.bf16.msra.mxu3 %v6521_v5  ;;  %v6541_v59 = vld [vmem:[%s9430_s3 + $0x670] sm:$0xff]  ;;  %v9215_v39 = vld [vmem:[%s9430_s3 + $0x6a8] sm:$0xff] }
 0x1af   : > { %3760 = vmatmul.bf16.gmra.mxu1 %v3671_v22  ;;  %v9172_v49 = vadd.f32 %v2962_v14, %v2859_v37  ;;  %v6520_v22 = vld [vmem:[%s9430_s3 + $0x5c8] sm:$0xff]  ;;  %v1666_v26 = vadd.f32 0.05243302, %v1665_v3  ;;  %v4117_v12 = vld [vmem:[#allocation2 + $0x150] sm:$0xff]  ;;  %4767 = vmatpush.bf16.msra.mxu2 %v9215_v39 }
 0x1b0   : > { %6669 = vrcp.f32 %v9168_v28  ;;  %v9184_v31 = vld [vmem:[#allocation2 + $0x1b0] sm:$0xff]  ;;  %6560 = vmatpush.bf16.msra.mxu1 %v6541_v59  ;;  %v6540_v5 = vld [vmem:[%s9430_s3 + $0x668] sm:$0xff]  ;;  %v4125_v54 = vpack.c.bf16 %v8903_v44, %v4117_v12  ;;  %vm1687_vm12 = vweird.f32 %v9168_v28 }
 0x1b1   : > { %v9186_v17 = vld [vmem:[#allocation2 + $0x1b2] sm:$0xff]  ;;  %v9190_v20 = vpack.c.bf16 %v9184_v31, %v9175_v27 }
 0x1b2   : > { %v2964_v32 = vpop.f32.mrf.mxu2  ;;  %v3068_v63 = vpop.f32.mrf.mxu3  ;;  %v9197_v29 = vpack.c.bf16 %v9186_v17, %v9182_v42  ;;  %4428 = vmatpush.bf16.msra.mxu3 %v6520_v22 }
 0x1b3   : > { %v3084_v11 = vadd.f32 %v3068_v63, %v2970_v55  ;;  %3875 = vmatmul.bf16.gmra.mxu2 %v9190_v20  ;;  %v1667_v55 = vmul.f32 %v1666_v26, %v9072_v57  ;;  %v6519_v63 = vld [vmem:[%s9430_s3 + $0x5c0] sm:$0xff] }
 0x1b4   : > { %v2850_v14 = vpop.f32.mrf.mxu1  ;;  %v9207_v6 = vpop.f32.mrf.mxu0  ;;  %6561 = vmatpush.bf16.msra.mxu1 %v6540_v5 }
 0x1b5   : > { %v2860_v9 = vadd.f32 %v2850_v14, %v9040_v50  ;;  %v9218_v37 = vadd.f32 %v9061_v13, %v3084_v11  ;;  %v6527_v50 = vld [vmem:[%s9430_s3 + $0x600] sm:$0xff]  ;;  %v1668_v11 = vadd.f32 0.18741608, %v1667_v55 }
 0x1b6   : > { %v6670_v18 = vpop.eup %6669  ;;  %4544 = vmatpush.bf16.msra.mxu0 %v6527_v50  ;;  %4429 = vmatpush.bf16.msra.mxu3 %v6519_v63 }
 0x1b7   : > { %v9223_v4 = vadd.f32 %v2964_v32, %v2860_v9  ;;  %3984 = vmatmul.bf16.gmra.mxu3 %v3899_v38  ;;  %v1683_v13 = vmul.f32 %v6670_v18, %v9168_v28  ;;  %v9235_v32 = vld [vmem:[%s9430_s3 + $0x6a0] sm:$0xff]  ;;  %v1669_v26 = vmul.f32 %v1668_v11, %v9072_v57  ;;  %vm1688_vm13 = vweird.f32 %v6670_v18 }
 0x1b8   : > { %4103 = vmatmul.bf16.gmra.mxu0 %v9197_v29  ;;  %4768 = vmatpush.bf16.msra.mxu2 %v9235_v32  ;;  %v2858_v57 = vadd.f32 %v9106_v10, %v8968_v8  ;;  %vm1689_vm14 = vmor %vm1687_vm12, %vm1688_vm13  ;;  %v4460_v8 = vld [vmem:[#allocation2 + $0x160] sm:$0xff]  ;;  %v4461_v10 = vld [vmem:[#allocation2 + $0x170] sm:$0xff] }
 0x1b9   : > { %v1684_v38 = vsub.f32 1.0, %v1683_v13  ;;  %v1693_v13 = vand.u32 2147483648, %v9168_v28 }
 0x1ba   : > { %v3071_v3 = vpop.f32.mrf.mxu3  ;;  %v3403_v14 = vpop.f32.mrf.mxu2  ;;  %4651 = vmatpush.bf16.msrb.mxu0 %v9139_v25  ;;  %6567 = vmatpush.bf16.msrb.mxu3 %v9128_v43  ;;  %v1670_v25 = vadd.f32 1.1283791, %v1669_v26  ;;  %v1691_v43 = vand.u32 2147483647, %v9168_v28  ;;  %v2972_v28 = vadd.f32 %v9095_v53, %v2858_v57 }
 0x1bb   : > { %v3085_v22 = vadd.f32 %v3071_v3, %v8994_v0  ;;  %v1685_v55 = vmul.f32 %v6670_v18, %v1684_v38  ;;  %v4231_v0 = vld [vmem:[#allocation2 + $0x151] sm:$0xff] }
 0x1bc   : > { %v3289_v9 = vpop.f32.mrf.mxu1  ;;  %v9248_v63 = vpop.f32.mrf.mxu0  ;;  %v1671_v38 = vmul.f32 %v1670_v25, %v9046_v7  ;;  %vm1692_vm15 = vcmp.eq.f32.partialorder %v1691_v43, 8.507059e+37 }
 0x1bd   : > { %v3309_v50 = vadd.f32 %v3289_v9, %v9086_v33  ;;  %v9251_v44 = vadd.f32 %v9112_v15, %v3085_v22  ;;  %v1686_v12 = vadd.f32 %v6670_v18, %v1685_v55  ;;  %v4241_v33 = vpack.c.bf16 %v9100_v46, %v8975_v23 }
 0x1be   : > { %4652 = vmatpush.bf16.msrb.mxu0 %v6541_v59  ;;  %v1694_v15 = vor.u32 1.1754944e-38, %v1693_v13  ;;  %6568 = vmatpush.bf16.msrb.mxu3 %v9154_v56  ;;  %v4239_v22 = vpack.c.bf16 %v8744_v16, %v4231_v0  ;;  %v9267_v59 = vpack.c.bf16 %v9147_v2, %v9100_v46  ;;  %v6539_v56 = vld [vmem:[%s9430_s3 + $0x660] sm:$0xff]  ;;  %v1370_v0 = vmul.f32 0.5, %v9024_v60 }
 0x1bf   : > { %4202 = vmatmul.bf16.vlgmr.msrb.gmra.mxu1 %v4125_v54  ;;  %v9257_v11 = vadd.f32 %v3403_v14, %v3309_v50  ;;  %v1690_v3 = vsel %vm1689_vm14, %v6670_v18, %v1686_v12  ;;  %v4468_v18 = vpack.c.bf16 %v4461_v10, %v4460_v8  ;;  %v6546_v50 = vld [vmem:[%s9430_s3 + $0x698] sm:$0xff]  ;;  %v6545_v12 = vld [vmem:[%s9430_s3 + $0x690] sm:$0xff]  ;;  %v4240_v8 = vpack.c.bf16 %v8937_v36, %v8784_v52  ;;  %v6544_v52 = vld [vmem:[%s9430_s3 + $0x688] sm:$0xff] }
 0x1c0   : > { %v1695_v14 = vsel %vm1692_vm15, %v1694_v15, %v1690_v3  ;;  %6562 = vmatpush.bf16.msra.mxu1 %v6539_v56  ;;  %4769 = vmatpush.bf16.msra.mxu2 %v6546_v50  ;;  %v4126_v15 = vpack.c.bf16 %v9001_v41, %v8905_v21  ;;  %v4353_v10 = vpack.c.bf16 %v8996_v62, %v8939_v1  ;;  %v6536_v1 = vld [vmem:[%s9430_s3 + $0x648] sm:$0xff]  ;;  %v6543_v62 = vld [vmem:[%s9430_s3 + $0x680] sm:$0xff] }
 0x1c1   : > { %v1696_v26 = vmul.f32 %v1695_v14, %v1671_v38 }
 0x1c2   : > { %v3073_v54 = vpop.f32.mrf.mxu3  ;;  %v3405_v9 = vpop.f32.mrf.mxu2  ;;  %4653 = vmatpush.bf16.msrb.mxu0 %v6540_v5  ;;  %6569 = vmatpush.bf16.msrb.mxu3 %v9215_v39 }
 0x1c3   : > { %v3086_v55 = vadd.f32 %v3073_v54, %v2972_v28  ;;  %v5048_v13 = vclamps-f32 %v1696_v26, 1.0  ;;  %4316 = vmatmul.bf16.vlgmr.msrb.gmra.mxu2 %v4239_v22  ;;  %v6537_v54 = vld [vmem:[%s9430_s3 + $0x650] sm:$0xff] }
 0x1c4   : > { %v3291_v7 = vpop.f32.mrf.mxu1  ;;  %4770 = vmatpush.bf16.msra.mxu2 %v6545_v12 }
 0x1c5   : > { %v3310_v16 = vadd.f32 %v3291_v7, %v9131_v30  ;;  %v9271_v53 = vpop.f32.mrf.mxu0  ;;  %v9280_v5 = vadd.f32 %v9159_v45, %v3086_v55  ;;  %v1706_v25 = vadd.f32 1.0, %v5048_v13  ;;  %v6538_v30 = vld [vmem:[%s9430_s3 + $0x658] sm:$0xff]  ;;  %v6535_v13 = vld [vmem:[%s9430_s3 + $0x640] sm:$0xff] }
 0x1c6   : > { %4654 = vmatpush.bf16.msrb.mxu0 %v6539_v56  ;;  %6570 = vmatpush.bf16.msrb.mxu3 %v9235_v32 }
 0x1c7   : > { %v9283_v39 = vadd.f32 %v3405_v9, %v3310_v16  ;;  %3989 = vmatmul.bf16.gmra.mxu3 %v9267_v59  ;;  %v1714_v45 = vmul.f32 %v1706_v25, %v1370_v0  ;;  %6563 = vmatpush.bf16.msra.mxu1 %v6538_v30 }
 0x1c8   : > { %4545 = vmatmul.bf16.vlgmr.msra.gmra.mxu0 %v4468_v18  ;;  %4771 = vmatpush.bf16.msra.mxu2 %v6544_v52 }
 0x1c9   : > { %v9294_v57 = vmul.f32 %v8620_v51, %v1714_v45 }
 0x1ca   : > { %v3076_v60 = vpop.f32.mrf.mxu3  ;;  %v3408_v43 = vpop.f32.mrf.mxu2  ;;  %4655 = vmatpush.bf16.msrb.mxu0 %v6538_v30  ;;  %6571 = vmatpush.bf16.msrb.mxu3 %v6546_v50 }
 0x1cb   : > { %v3087_v38 = vadd.f32 %v3076_v60, %v9172_v49  ;;  %1735 = vst [vmem:[#allocation2 + $0x1c1] sm:$0xff] %v9294_v57  ;;  %6564 = vmatpush.bf16.msra.mxu1 %v6537_v54  ;;  %v4242_v46 = vpack.c.bf16 %v9294_v57, %v9147_v2 }
 0x1cc   : > { %v3294_v3 = vpop.f32.mrf.mxu1  ;;  %4772 = vmatpush.bf16.msra.mxu2 %v6543_v62 }
 0x1cd   : > { %v3311_v28 = vadd.f32 %v3294_v3, %v9166_v48  ;;  %v3634_v22 = vpop.f32.mrf.mxu0  ;;  %v3201_v32 = vadd.f32 %v9207_v6, %v3087_v38 }
 0x1ce   : > { %6572 = vmatpush.bf16.msrb.mxu3 %v6545_v12  ;;  %4656 = vmatpush.bf16.msrb.mxu0 %v6537_v54  ;;  %v4574_v54 = vld [vmem:[#allocation2 + $0x161] sm:$0xff] }
 0x1cf   : > { %4207 = vmatmul.bf16.gmra.mxu1 %v4126_v15  ;;  %v3425_v51 = vadd.f32 %v3408_v43, %v3311_v28 }
 0x1d0   : > { %6565 = vmatpush.bf16.msra.mxu1 %v6536_v1 }
 0x1d2   : > { %v3078_v21 = vpop.f32.mrf.mxu3  ;;  %v3410_v41 = vpop.f32.mrf.mxu2  ;;  %6573 = vmatpush.bf16.msrb.mxu3 %v6544_v52  ;;  %4657 = vmatpush.bf16.msrb.mxu0 %v6536_v1  ;;  %v4124_v30 = vld [vmem:[#allocation2 + $0x1c0] sm:$0xff]  ;;  %v4575_v52 = vld [vmem:[#allocation2 + $0x171] sm:$0xff] }
 0x1d3   : > { %v3088_v49 = vadd.f32 %v3078_v21, %v9223_v4  ;;  %4321 = vmatmul.bf16.gmra.mxu2 %v4240_v8  ;;  %v4471_v28 = vpack.c.bf16 %v8835_v19, %v4124_v30  ;;  %v4576_v8 = vld [vmem:[#allocation2 + $0x181] sm:$0xff]  ;;  %v4577_v21 = vld [vmem:[#allocation2 + $0x191] sm:$0xff] }
 0x1d4   : > { %v3296_v14 = vpop.f32.mrf.mxu1  ;;  %6566 = vmatpush.bf16.msra.mxu1 %v6535_v13  ;;  %v4352_v19 = vld [vmem:[#allocation2 + $0x1c2] sm:$0xff] }
 0x1d5   : > { %v3312_v48 = vadd.f32 %v3296_v14, %v9218_v37  ;;  %v3637_v6 = vpop.f32.mrf.mxu0  ;;  %v3202_v36 = vadd.f32 %v9248_v63, %v3088_v49  ;;  %v4127_v63 = vpack.c.bf16 %v9175_v27, %v9008_v35  ;;  %v4583_v49 = vpack.c.bf16 %v4577_v21, %v4576_v8 }
 0x1d6   : > { %6574 = vmatpush.bf16.msrb.mxu3 %v6543_v62  ;;  %4658 = vmatpush.bf16.msrb.mxu0 %v6535_v13  ;;  %v4356_v62 = vpack.c.bf16 %v4352_v19, %v9186_v17 }
 0x1d7   : > { %v3426_v9 = vadd.f32 %v3410_v41, %v3312_v48  ;;  %4430 = vmatmul.bf16.vlgmr.msra.gmra.mxu3 %v4353_v10 }
 0x1d8   : > { %4550 = vmatmul.bf16.gmra.mxu0 %v9028_v61 }
 0x1da   : > { %v3413_v37 = vpop.f32.mrf.mxu2  ;;  %v3518_v4 = vpop.f32.mrf.mxu3 }
 0x1db   : > { %v3538_v26 = vadd.f32 %v3518_v4, %v9257_v11  ;;  %v4582_v4 = vpack.c.bf16 %v4575_v52, %v4574_v54 }
 0x1dc   : > { %v3299_v55 = vpop.f32.mrf.mxu1 }
 0x1dd   : > { %v3313_v7 = vadd.f32 %v3299_v55, %v9251_v44  ;;  %v3639_v61 = vpop.f32.mrf.mxu0  ;;  %v3652_v18 = vadd.f32 %v9271_v53, %v3538_v26  ;;  %v4354_v44 = vpack.c.bf16 %v9102_v24, %v8998_v40 }
 0x1df   : > { %4212 = vmatmul.bf16.gmra.mxu1 %v4127_v63  ;;  %v3427_v16 = vadd.f32 %v3413_v37, %v3313_v7 }
 0x1e2   : > { %v3415_v35 = vpop.f32.mrf.mxu2  ;;  %v3520_v27 = vpop.f32.mrf.mxu3 }
 0x1e3   : > { %v3539_v11 = vadd.f32 %v3520_v27, %v9283_v39  ;;  %4326 = vmatmul.bf16.gmra.mxu2 %v4241_v33  ;;  %v4128_v39 = vpack.c.bf16 %v4124_v30, %v9184_v31 }
 0x1e4   : > { %v3301_v56 = vpop.f32.mrf.mxu1 }
 0x1e5   : > { %v3314_v53 = vadd.f32 %v3301_v56, %v9280_v5  ;;  %v3642_v50 = vpop.f32.mrf.mxu0  ;;  %v3653_v0 = vadd.f32 %v3634_v22, %v3539_v11 }
 0x1e7   : > { %v3428_v25 = vadd.f32 %v3415_v35, %v3314_v53  ;;  %4435 = vmatmul.bf16.gmra.mxu3 %v4354_v44  ;;  %v4695_v44 = vld [vmem:[#allocation2 + $0x1d2] sm:$0xff] }
 0x1e8   : > { %4555 = vmatmul.bf16.gmra.mxu0 %v9190_v20  ;;  %v4355_v20 = vpack.c.bf16 %v9182_v42, %v9104_v47 }
 0x1ea   : > { %v3418_v12 = vpop.f32.mrf.mxu2  ;;  %v3523_v45 = vpop.f32.mrf.mxu3 }
 0x1eb   : > { %v3540_v60 = vadd.f32 %v3523_v45, %v3425_v51 }
 0x1ec   : > { %v3304_v40 = vpop.f32.mrf.mxu1 }
 0x1ed   : > { %v3315_v24 = vadd.f32 %v3304_v40, %v3201_v32  ;;  %v3644_v43 = vpop.f32.mrf.mxu0  ;;  %v3654_v15 = vadd.f32 %v3637_v6, %v3540_v60 }
 0x1ef   : > { %4217 = vmatmul.bf16.gmra.mxu1 %v4128_v39  ;;  %v3429_v23 = vadd.f32 %v3418_v12, %v3315_v24  ;;  %v4581_v39 = vld [vmem:[#allocation2 + $0x1d1] sm:$0xff] }
 0x1f0   : > { %v4585_v24 = vpack.c.bf16 %v4581_v39, %v9294_v57 }
 0x1f2   : > { %v3420_v33 = vpop.f32.mrf.mxu2  ;;  %v3525_v5 = vpop.f32.mrf.mxu3 }
 0x1f3   : > { %v3541_v38 = vadd.f32 %v3525_v5, %v3426_v9  ;;  %4331 = vmatmul.bf16.gmra.mxu2 %v4242_v46 }
 0x1f4   : > { %v3306_v3 = vpop.f32.mrf.mxu1 }
 0x1f5   : > { %v3316_v31 = vadd.f32 %v3306_v3, %v3202_v36  ;;  %v3647_v22 = vpop.f32.mrf.mxu0  ;;  %v3655_v32 = vadd.f32 %v3639_v61, %v3541_v38 }
 0x1f7   : > { %v3430_v51 = vadd.f32 %v3420_v33, %v3316_v31  ;;  %4440 = vmatmul.bf16.gmra.mxu3 %v4355_v20 }
 0x1f8   : > { %4560 = vmatmul.bf16.gmra.mxu0 %v4471_v28 }
 0x1fa   : > { %v3528_v41 = vpop.f32.mrf.mxu3  ;;  %v3861_v2 = vpop.f32.mrf.mxu2 }
 0x1fb   : > { %v3542_v10 = vadd.f32 %v3528_v41, %v3427_v16 }
 0x1fc   : > { %v3746_v14 = vpop.f32.mrf.mxu1 }
 0x1fd   : > { %v3766_v48 = vadd.f32 %v3746_v14, %v3652_v18  ;;  %v3649_v6 = vpop.f32.mrf.mxu0  ;;  %v3656_v47 = vadd.f32 %v3642_v50, %v3542_v10  ;;  %v4699_v50 = vpack.c.bf16 %v4695_v44, %v4352_v19 }
 0x1ff   : > { %4664 = vmatmul.bf16.vlgmr.msra.gmra.mxu1 %v4583_v49  ;;  %v3881_v42 = vadd.f32 %v3861_v2, %v3766_v48 }
 0x202   : > { %v3530_v36 = vpop.f32.mrf.mxu3  ;;  %v3863_v9 = vpop.f32.mrf.mxu2 }
 0x203   : > { %v3543_v1 = vadd.f32 %v3530_v36, %v3428_v25  ;;  %4773 = vmatmul.bf16.vlgmr.msra.gmra.mxu2 %v9019_v34 }
 0x204   : > { %v3748_v37 = vpop.f32.mrf.mxu1 }
 0x205   : > { %v3767_v63 = vadd.f32 %v3748_v37, %v3653_v0  ;;  %v4089_v26 = vpop.f32.mrf.mxu0  ;;  %v3657_v55 = vadd.f32 %v3644_v43, %v3543_v1 }
 0x207   : > { %v3882_v7 = vadd.f32 %v3863_v9, %v3767_v63  ;;  %4445 = vmatmul.bf16.gmra.mxu3 %v4356_v62 }
 0x208   : > { %4659 = vmatmul.bf16.vlgmr.msrb.gmra.mxu0 %v4582_v4 }
 0x20a   : > { %v3533_v61 = vpop.f32.mrf.mxu3  ;;  %v3866_v18 = vpop.f32.mrf.mxu2 }
 0x20b   : > { %v3544_v13 = vadd.f32 %v3533_v61, %v3429_v23 }
 0x20c   : > { %v3751_v16 = vpop.f32.mrf.mxu1 }
 0x20d   : > { %v3768_v35 = vadd.f32 %v3751_v16, %v3654_v15  ;;  %v4091_v27 = vpop.f32.mrf.mxu0  ;;  %v3658_v11 = vadd.f32 %v3647_v22, %v3544_v13 }
 0x20f   : > { %4669 = vmatmul.bf16.gmra.mxu1 %v9267_v59  ;;  %v3883_v17 = vadd.f32 %v3866_v18, %v3768_v35 }
 0x212   : > { %v3535_v56 = vpop.f32.mrf.mxu3  ;;  %v3868_v53 = vpop.f32.mrf.mxu2 }
 0x213   : > { %v3545_v34 = vadd.f32 %v3535_v56, %v3430_v51  ;;  %4778 = vmatmul.bf16.gmra.mxu2 %v9116_v58 }
 0x214   : > { %v3753_v0 = vpop.f32.mrf.mxu1 }
 0x215   : > { %v3769_v25 = vadd.f32 %v3753_v0, %v3655_v32  ;;  %v4094_v30 = vpop.f32.mrf.mxu0  ;;  %v3659_v12 = vadd.f32 %v3649_v6, %v3545_v34 }
 0x217   : > { %v3884_v45 = vadd.f32 %v3868_v53, %v3769_v25  ;;  %4788 = vmatmul.bf16.vlgmr.msrb.gmra.mxu3 %v4699_v50 }
 0x21a   : > { %v3975_v40 = vpop.f32.mrf.mxu3 }
 0x21b   : > { %v3995_v59 = vadd.f32 %v3975_v40, %v3881_v42 }
 0x21c   : > { %v3871_v60 = vpop.f32.mrf.mxu2  ;;  %v3756_v43 = vpop.f32.mrf.mxu1 }
 0x21d   : > { %v3770_v15 = vadd.f32 %v3756_v43, %v3656_v47  ;;  %v4096_v23 = vpop.f32.mrf.mxu0  ;;  %v4109_v46 = vadd.f32 %v4089_v26, %v3995_v59 }
 0x21f   : > { %4674 = vmatmul.bf16.gmra.mxu1 %v4585_v24  ;;  %v3885_v33 = vadd.f32 %v3871_v60, %v3770_v15 }
 0x222   : > { %v3977_v5 = vpop.f32.mrf.mxu3 }
 0x223   : > { %v3996_v38 = vadd.f32 %v3977_v5, %v3882_v7  ;;  %4783 = vmatmul.bf16.gmra.mxu2 %v9197_v29 }
 0x224   : > { %v3758_v58 = vpop.f32.mrf.mxu1  ;;  %v3873_v20 = vpop.f32.mrf.mxu2 }
 0x225   : > { %v3771_v3 = vadd.f32 %v3758_v58, %v3657_v55  ;;  %v4099_v28 = vpop.f32.mrf.mxu0  ;;  %v4110_v31 = vadd.f32 %v4091_v27, %v3996_v38 }
 0x227   : > { %v3886_v22 = vadd.f32 %v3873_v20, %v3771_v3 }
 0x22a   : > { %v3980_v32 = vpop.f32.mrf.mxu3 }
 0x22b   : > { %v3997_v51 = vadd.f32 %v3980_v32, %v3883_v17 }
 0x22c   : > { %v3761_v57 = vpop.f32.mrf.mxu1 }
 0x22d   : > { %v3772_v8 = vadd.f32 %v3761_v57, %v3658_v11  ;;  %v4101_v21 = vpop.f32.mrf.mxu0  ;;  %v4111_v41 = vadd.f32 %v4094_v30, %v3997_v51 }
 0x232   : > { %v3982_v2 = vpop.f32.mrf.mxu3 }
 0x233   : > { %v3998_v49 = vadd.f32 %v3982_v2, %v3884_v45 }
 0x234   : > { %v3763_v10 = vpop.f32.mrf.mxu1 }
 0x235   : > { %v3773_v14 = vadd.f32 %v3763_v10, %v3659_v12  ;;  %v4104_v48 = vpop.f32.mrf.mxu0  ;;  %v4112_v6 = vadd.f32 %v4096_v23, %v3998_v49 }
 0x236   : > { %v3876_v47 = vpop.f32.mrf.mxu2 }
 0x237   : > { %v3887_v42 = vadd.f32 %v3876_v47, %v3772_v8 }
 0x23a   : > { %v3985_v19 = vpop.f32.mrf.mxu3 }
 0x23b   : > { %v3999_v29 = vadd.f32 %v3985_v19, %v3885_v33 }
 0x23c   : > { %v4203_v54 = vpop.f32.mrf.mxu1 }
 0x23d   : > { %v4223_v52 = vadd.f32 %v4203_v54, %v4109_v46  ;;  %v4106_v36 = vpop.f32.mrf.mxu0  ;;  %v4113_v9 = vadd.f32 %v4099_v28, %v3999_v29 }
 0x23e   : > { %v3878_v1 = vpop.f32.mrf.mxu2 }
 0x23f   : > { %v3888_v62 = vadd.f32 %v3878_v1, %v3773_v14 }
 0x242   : > { %v3987_v37 = vpop.f32.mrf.mxu3 }
 0x243   : > { %v4000_v4 = vadd.f32 %v3987_v37, %v3886_v22 }
 0x244   : > { %v4205_v63 = vpop.f32.mrf.mxu1 }
 0x245   : > { %v4224_v26 = vadd.f32 %v4205_v63, %v4110_v31  ;;  %v4546_v55 = vpop.f32.mrf.mxu0  ;;  %v4114_v7 = vadd.f32 %v4101_v21, %v4000_v4 }
 0x246   : > { %v4317_v61 = vpop.f32.mrf.mxu2 }
 0x247   : > { %v4337_v32 = vadd.f32 %v4317_v61, %v4223_v52 }
 0x24a   : > { %v3990_v18 = vpop.f32.mrf.mxu3 }
 0x24b   : > { %v4001_v13 = vadd.f32 %v3990_v18, %v3887_v42 }
 0x24c   : > { %v4208_v16 = vpop.f32.mrf.mxu1 }
 0x24d   : > { %v4225_v35 = vadd.f32 %v4208_v16, %v4111_v41  ;;  %v4548_v27 = vpop.f32.mrf.mxu0  ;;  %v4115_v11 = vadd.f32 %v4104_v48, %v4001_v13 }
 0x24e   : > { %v4319_v17 = vpop.f32.mrf.mxu2 }
 0x24f   : > { %v4338_v49 = vadd.f32 %v4319_v17, %v4224_v26 }
 0x252   : > { %v3992_v44 = vpop.f32.mrf.mxu3 }
 0x253   : > { %v4002_v56 = vadd.f32 %v3992_v44, %v3888_v62 }
 0x254   : > { %v4210_v53 = vpop.f32.mrf.mxu1 }
 0x255   : > { %v4226_v34 = vadd.f32 %v4210_v53, %v4112_v6  ;;  %v4551_v50 = vpop.f32.mrf.mxu0  ;;  %v9350_v0 = vadd.f32 %v4106_v36, %v4002_v56  ;;  %v9373_v6 = vld [vmem:[%s9431_s4] ss:$0 sm:$0xff] }
 0x256   : > { %v4322_v25 = vpop.f32.mrf.mxu2 }
 0x257   : > { %v4339_v36 = vadd.f32 %v4322_v25, %v4225_v35 }
 0x25a   : > { %v4431_v30 = vpop.f32.mrf.mxu3 }
 0x25b   : > { %v4451_v51 = vadd.f32 %v4431_v30, %v4337_v32 }
 0x25c   : > { %v4213_v12 = vpop.f32.mrf.mxu1 }
 0x25d   : > { %v9352_v45 = vadd.f32 %v4213_v12, %v4113_v9  ;;  %v9354_v39 = vpop.f32.mrf.mxu0  ;;  %v4566_v41 = vadd.f32 %v4546_v55, %v4451_v51 }
 0x25e   : > { %v4324_v60 = vpop.f32.mrf.mxu2 }
 0x262   : > { %v4433_v40 = vpop.f32.mrf.mxu3 }
 0x263   : > { %v4452_v14 = vadd.f32 %v4433_v40, %v4338_v49 }
 0x264   : > { %v4215_v24 = vpop.f32.mrf.mxu1 }
 0x265   : > { %v9356_v59 = vadd.f32 %v4215_v24, %v4114_v7  ;;  %v9358_v43 = vpop.f32.mrf.mxu0  ;;  %v4567_v54 = vadd.f32 %v4548_v27, %v4452_v14  ;;  %v4340_v27 = vadd.f32 %v4324_v60, %v4226_v34 }
 0x266   : > { %v9360_v15 = vpop.f32.mrf.mxu2 }
 0x26a   : > { %v4436_v23 = vpop.f32.mrf.mxu3 }
 0x26b   : > { %v4453_v1 = vadd.f32 %v4436_v23, %v4339_v36 }
 0x26c   : > { %v4218_v46 = vpop.f32.mrf.mxu1 }
 0x26d   : > { %v9362_v33 = vpop.f32.mrf.mxu0  ;;  %v4229_v63 = vadd.f32 %v4218_v46, %v4115_v11  ;;  %v4568_v55 = vadd.f32 %v4551_v50, %v4453_v1 }
 0x26e   : > { %v9364_v5 = vpop.f32.mrf.mxu2 }
 0x272   : > { %v4438_v38 = vpop.f32.mrf.mxu3 }
 0x273   : > { %v4454_v56 = vadd.f32 %v4438_v38, %v4340_v27  ;;  %v4341_v38 = vadd.f32 %v9360_v15, %v9352_v45 }
 0x274   : > { %v4220_v58 = vpop.f32.mrf.mxu1 }
 0x275   : > { %v4561_v20 = vpop.f32.mrf.mxu0  ;;  %v4230_v11 = vadd.f32 %v4220_v58, %v9350_v0  ;;  %v4569_v40 = vadd.f32 %v9354_v39, %v4454_v56 }
 0x276   : > { %v4332_v3 = vpop.f32.mrf.mxu2 }
 0x277   : > { %v4343_v61 = vadd.f32 %v4332_v3, %v4229_v63 }
 0x27a   : > { %v4441_v28 = vpop.f32.mrf.mxu3 }
 0x27b   : > { %v4455_v51 = vadd.f32 %v4441_v28, %v4341_v38  ;;  %v4342_v28 = vadd.f32 %v9364_v5, %v9356_v59 }
 0x27c   : > { %v4665_v31 = vpop.f32.mrf.mxu1 }
 0x27d   : > { %v9366_v22 = vpop.f32.mrf.mxu0  ;;  %v4682_v17 = vadd.f32 %v4665_v31, %v4568_v55 }
 0x27e   : > { %v4334_v57 = vpop.f32.mrf.mxu2 }
 0x27f   : > { %v4344_v23 = vadd.f32 %v4334_v57, %v4230_v11 }
 0x282   : > { %v9368_v8 = vpop.f32.mrf.mxu3 }
 0x284   : > { %v4667_v21 = vpop.f32.mrf.mxu1 }
 0x285   : > { %v4660_v2 = vpop.f32.mrf.mxu0  ;;  %v4683_v3 = vadd.f32 %v4667_v21, %v4569_v40 }
 0x286   : > { %v4680_v10 = vadd.f32 %v4660_v2, %v4566_v41  ;;  %v4774_v48 = vpop.f32.mrf.mxu2 }
 0x288   : > { %v4794_v47 = vadd.f32 %v4774_v48, %v4680_v10  ;;  %v4570_v10 = vadd.f32 %v9358_v43, %v4455_v51 }
 0x28a   : > { %v4446_v42 = vpop.f32.mrf.mxu3  ;;  %v4806_v19 = vadd.f32 %v9373_v6, %v4794_v47 }
 0x28b   : > { %v4457_v44 = vadd.f32 %v4446_v42, %v4343_v61 }
 0x28c   : > { %v4670_v29 = vpop.f32.mrf.mxu1  ;;  %4814 = vst [vmem:[%s9381_s17] sm:$0xff] %v4806_v19  ;;  %v4835_v18 = vmul.f32 %v4806_v19, %v4806_v19 }
 0x28d   : > { %v4662_v52 = vpop.f32.mrf.mxu0  ;;  %v4572_v50 = vadd.f32 %v4561_v20, %v4457_v44  ;;  %v4684_v14 = vadd.f32 %v4670_v29, %v4570_v10 }
 0x28e   : > { %v4681_v9 = vadd.f32 %v4662_v52, %v4567_v54  ;;  %v4776_v62 = vpop.f32.mrf.mxu2 }
 0x290   : > { %v4795_v37 = vadd.f32 %v4776_v62, %v4681_v9 }
 0x292   : > { %v4448_v4 = vpop.f32.mrf.mxu3  ;;  %v4807_v26 = vadd.f32 %v9373_v6, %v4795_v37 }
 0x293   : > { %v4458_v31 = vadd.f32 %v4448_v4, %v4344_v23 }
 0x294   : > { %v4672_v7 = vpop.f32.mrf.mxu1  ;;  %4815 = vst [vmem:[%s9381_s17 + $0x8] sm:$0xff] %v4807_v26  ;;  %v4822_v13 = vadd.f32 %v4807_v26, %v4806_v19  ;;  %v4836_v16 = vmul.f32 %v4807_v26, %v4807_v26 }
 0x295   : > { %v4573_v57 = vadd.f32 %v9366_v22, %v4458_v31  ;;  %v4456_v22 = vadd.f32 %v9368_v8, %v4342_v28 }
 0x296   : > { %v4843_v35 = vadd.f32 %v4836_v16, %v4835_v18  ;;  %v4779_v53 = vpop.f32.mrf.mxu2 }
 0x297   : > { %v4796_v25 = vadd.f32 %v4779_v53, %v4682_v17  ;;  %v4571_v52 = vadd.f32 %v9362_v33, %v4456_v22 }
 0x299   : > { %v4808_v12 = vadd.f32 %v9373_v6, %v4796_v25  ;;  %v4685_v1 = vadd.f32 %v4672_v7, %v4571_v52 }
 0x29a   : > { %v4789_v30 = vpop.f32.mrf.mxu3 }
 0x29b   : > { %4816 = vst [vmem:[%s9381_s17 + $0x10] sm:$0xff] %v4808_v12  ;;  %v4837_v46 = vmul.f32 %v4808_v12, %v4808_v12  ;;  %v4823_v60 = vadd.f32 %v4822_v13, %v4808_v12 }
 0x29c   : > { %v4675_v24 = vpop.f32.mrf.mxu1 }
 0x29d   : > { %v4686_v34 = vadd.f32 %v4675_v24, %v4572_v50  ;;  %v4844_v0 = vadd.f32 %v4843_v35, %v4837_v46 }
 0x29e   : > { %v4781_v58 = vpop.f32.mrf.mxu2 }
 0x29f   : > { %v4800_v32 = vadd.f32 %v4789_v30, %v4686_v34  ;;  %v4797_v20 = vadd.f32 %v4781_v58, %v4683_v3 }
 0x2a1   : > { %v4812_v39 = vadd.f32 %v9373_v6, %v4800_v32  ;;  %v4809_v41 = vadd.f32 %v9373_v6, %v4797_v20 }
 0x2a2   : > { %v4791_v49 = vpop.f32.mrf.mxu3 }
 0x2a3   : > { %4820 = vst [vmem:[%s9381_s17 + $0x30] sm:$0xff] %v4812_v39  ;;  %v4838_v45 = vmul.f32 %v4809_v41, %v4809_v41  ;;  %v4824_v21 = vadd.f32 %v4823_v60, %v4809_v41  ;;  %v4841_v4 = vmul.f32 %v4812_v39, %v4812_v39 }
 0x2a4   : > { %v4677_v2 = vpop.f32.mrf.mxu1  ;;  %4817 = vst [vmem:[%s9381_s17 + $0x18] sm:$0xff] %v4809_v41 }
 0x2a5   : > { %v4687_v15 = vadd.f32 %v4677_v2, %v4573_v57  ;;  %v4845_v48 = vadd.f32 %v4844_v0, %v4838_v45 }
 0x2a6   : > { %v4784_v42 = vpop.f32.mrf.mxu2 }
 0x2a7   : > { %v4801_v47 = vadd.f32 %v4791_v49, %v4687_v15  ;;  %v4798_v19 = vadd.f32 %v4784_v42, %v4684_v14 }
 0x2a9   : > { %v4813_v54 = vadd.f32 %v9373_v6, %v4801_v47  ;;  %v4810_v43 = vadd.f32 %v9373_v6, %v4798_v19 }
 0x2ab   : > { %4821 = vst [vmem:[%s9381_s17 + $0x38] sm:$0xff] %v4813_v54  ;;  %v4839_v36 = vmul.f32 %v4810_v43, %v4810_v43  ;;  %v4825_v9 = vadd.f32 %v4824_v21, %v4810_v43  ;;  %v4842_v61 = vmul.f32 %v4813_v54, %v4813_v54 }
 0x2ac   : > { %4818 = vst [vmem:[%s9381_s17 + $0x20] sm:$0xff] %v4810_v43 }
 0x2ad   : > { %v4846_v59 = vadd.f32 %v4845_v48, %v4839_v36 }
 0x2ae   : > { %v4786_v5 = vpop.f32.mrf.mxu2 }
 0x2af   : > { %v4799_v29 = vadd.f32 %v4786_v5, %v4685_v1 }
 0x2b1   : > { %v4811_v62 = vadd.f32 %v9373_v6, %v4799_v29 }
 0x2b3   : > { %4819 = vst [vmem:[%s9381_s17 + $0x28] sm:$0xff] %v4811_v62  ;;  %v4826_v37 = vadd.f32 %v4825_v9, %v4811_v62  ;;  %v4840_v8 = vmul.f32 %v4811_v62, %v4811_v62 }
 0x2b5   : > { %v4847_v63 = vadd.f32 %v4846_v59, %v4840_v8  ;;  %v4827_v26 = vadd.f32 %v4826_v37, %v4812_v39 }
 0x2b7   : > { %v4828_v55 = vadd.f32 %v4827_v26, %v4813_v54  ;;  %v4848_v18 = vadd.f32 %v4847_v63, %v4841_v4 }
 0x2b9   : > { %v4829_v33 = vrot.slane %v4828_v55, 4  ;;  %v4849_v13 = vadd.f32 %v4848_v18, %v4842_v61 }
 0x2bb   : > { %v4830_v16 = vadd.f32 %v4829_v33, %v4828_v55  ;;  %v4850_v27 = vrot.slane %v4849_v13, 4 }
 0x2bd   : > { %v4831_v7 = vrot.slane %v4830_v16, 2  ;;  %v4851_v17 = vadd.f32 %v4850_v27, %v4849_v13 }
 0x2bf   : > { %v4832_v44 = vadd.f32 %v4831_v7, %v4830_v16  ;;  %v4852_v35 = vrot.slane %v4851_v17, 2 }
 0x2c1   : > { %v4833_v56 = vrot.slane %v4832_v44, 1  ;;  %v4853_v6 = vadd.f32 %v4852_v35, %v4851_v17 }
 0x2c3   : > { %v4854_v53 = vrot.slane %v4853_v6, 1  ;;  %v4834_v25 = vadd.f32 %v4833_v56, %v4832_v44 }
 0x2c5   : > { %v4855_v30 = vadd.f32 %v4854_v53, %v4853_v6 }
 0x2c7   : > { %v4857_v11 = vsel %vm4856_vm0, %v4834_v25, %v4855_v30 }
 0x2c8   : > { %4858 = vst [vmem:[%s470_s18] sm:$0x3] %v4857_v11 }
 0x2c9 PF: > { %s19_s9 = sadd.s32 1, %s6713_s9   ;;  %s9520_s27 = smov %s6705_s29 }
 0x2ca   : > { %p16_p12 = scmp.ge.s32.totalorder %s19_s9, 18   ;;  %s9521_s28 = smov %s6709_s30 }
 0x2cb   : > { %s9522_s29 = smov %s9525_s10  ;;  %s9523_s30 = smov %s9529_s11 }
 0x2cc   :  { %18 = sbr.rel (!%p16_p12) target bundleno = 3 (0x3), region = 130 }

// kernel: unet_down_forward.3
= control target key start
LH: loop header
LB: loop body
LE: loop exit
PB: predicated region body
PF: predicated region fallthrough
CT: control target
= control target key end

     0   :  { %s5552_s27 = smov 0   ;;  %s5554_s28 = smov 0   ;;  %s6945_s0 = inlined_call_operand.vmem [shape: f32[16,8,8,128], index: 0, kind: input, shape index: {}, may-alias: {0,1,2}]   ;;  %s6946_s1 = inlined_call_operand.vmem [shape: f32[16,8,8,128], index: 1, kind: input, shape index: {}, may-alias: {0,1,2}]   ;;  %s6947_s2 = inlined_call_operand.vmem [shape: f32[16,8,8,128], index: 2, kind: input, shape index: {}, may-alias: {0,1,2}]   ;;  %s6948_s3 = inlined_call_operand.vmem [shape: bf16[27,128,128], index: 3, kind: input, shape index: {}]   ;;  %s6949_s4 = inlined_call_operand.vmem [shape: f32[1,128], index: 4, kind: input, shape index: {}]   ;;  %s6950_s5 = inlined_call_operand.vmem [shape: f32[1,1,128], index: 5, kind: input, shape index: {}, may-alias: {5,6}]   ;;  %s6951_s6 = inlined_call_operand.vmem [shape: f32[1,1,128], index: 6, kind: input, shape index: {}, may-alias: {5,6}]   ;;  %s6952_s7 = inlined_call_operand.vmem [shape: f32[16,8,8,128], index: 7, kind: output, shape index: {0}]   ;;  %s6953_s8 = inlined_call_operand.vmem [shape: f32[16,2,128], index: 8, kind: output, shape index: {1}]  }
   0x1   :  { %s5556_s29 = smov 0   ;;  %s5558_s30 = smov 0  }
   0x2   :  { %s5560_s9 = smov 0  }
   0x3 LB: > { %s28_s5 = sadd.s32 1, %s5496_s29  ;;  %s31_s6 = sadd.s32 1, %s5500_s30  ;;  %s5504_s9 = sphi %s5560_s9, %s19_s9   ;;  %s5500_s30 = sphi %s5558_s30, %s6958_s30   ;;  %s5496_s29 = sphi %s5556_s29, %s6957_s29   ;;  %s5492_s28 = sphi %s5554_s28, %s6956_s28   ;;  %s5488_s27 = sphi %s5552_s27, %s6955_s27  }
   0x4   : > { %p29_p0 = scmp.ge.s32.totalorder %s28_s5, 8  ;;  %p3881_p1 = scmp.ge.s32.totalorder %s5504_s9, 1 }
   0x5   : > { %p353_p2 = scmp.lt.s32.totalorder %s5504_s9, 17 }
   0x6   : > { %s6960_s5 = smov (%p29_p0, %s28_s5), 0  ;;  %s6962_s6 = smov (!%p29_p0, %s31_s6), %s5500_s30 }
   0x7   : > { %p354_p3 = pnand %p3881_p1, %p353_p2  ;;  %p33_p4 = scmp.ge.s32.totalorder %s6962_s6, 2 }
   0x8   : > { %s3883_s16 = sadd.s32 (!%p354_p3), 4294967295, %s5488_s27  ;;  %s5598_s19 = sshll.u32 (!%p354_p3), %s5492_s28, 3 }
   0x9   : > { %s6964_s6 = smov (%p33_p4, %s6962_s6), 0  ;;  %357 = sbr.rel (%p354_p3) target bundleno = 656 (0x290), region = 48 }
   0xa   : > { %p419_p5 = scmp.gt.s32.totalorder (!%p354_p3), %s3883_s16, 0  ;;  %p541_p7 = scmp.gt.s32.totalorder (!%p354_p3), %s5488_s27, 0 }
   0xb   : > { %s433_s21 = sadd.s32 (!%p354_p3), %s5488_s27, %s5598_s19  ;;  %s442_s25 = sadd.s32 (!%p354_p3), 1, %s5488_s27 }
   0xc   : > { %p434_p8 = scmp.lt.s32.totalorder (!%p354_p3), %s433_s21, 15  ;;  %p6340_p9 = scmp.lt.s32.totalorder (!%p354_p3), %s442_s25, 7 }
   0xd   : > { %p587_p11 = scmp.lt.s32.totalorder (!%p354_p3), %s5488_s27, 7 }
   0xe   : > { %v5198_v0 = vld [vmem:[%s6948_s3 + $0x78] sm:$0xff]  ;;  %v5506_v3 = vmov 0.0   ;;  %v5197_v4 = vld [vmem:[%s6948_s3 + $0x70] sm:$0xff]  ;;  %s6966_s16 = smov (!%p419_p5, %s3883_s16), 0  ;;  %v5196_v7 = vld [vmem:[%s6948_s3 + $0x68] sm:$0xff]  ;;  %s6970_s21 = smov (!%p434_p8, %s433_s21), 15 }
   0xf   : > { %v5190_v1 = vld [vmem:[%s6948_s3 + $0x38] sm:$0xff]  ;;  %473 = vst [vmem:[#allocation2] sm:$0xff] %v5506_v3  ;;  %713 = vmatpush.bf16.msra.mxu0 %v5198_v0  ;;  %5399 = vmatpush.bf16.msra.mxu3 %v5198_v0  ;;  %v5189_v5 = vld [vmem:[%s6948_s3 + $0x30] sm:$0xff]  ;;  %s421_s24 = sadd.s32 %s5598_s19, %s6966_s16  ;;  %v5188_v8 = vld [vmem:[%s6948_s3 + $0x28] sm:$0xff]  ;;  %s5180_s11 = sshll.u32 %s6970_s21, 6  ;;  %vm3728_vm0 = vcmask 1040384  }
  0x10   : > { %v5206_v2 = vld [vmem:[%s6948_s3 + $0xb8] sm:$0xff]  ;;  %475 = vst [vmem:[#allocation2 + $0x10] sm:$0xff] %v5506_v3  ;;  %790 = vmatpush.bf16.msra.mxu1 %v5190_v1  ;;  %v5205_v6 = vld [vmem:[%s6948_s3 + $0xb0] sm:$0xff]  ;;  %p422_p6 = scmp.lt.s32.totalorder %s421_s24, 15  ;;  %v5204_v9 = vld [vmem:[%s6948_s3 + $0xa8] sm:$0xff]  ;;  %s6054_s20 = scalar_lea.vmem %s6946_s1, %s5180_s11 }
  0x11   : > { %896 = vmatpush.bf16.msra.mxu2 %v5206_v2  ;;  %474 = vst [vmem:[#allocation2 + $0x8] sm:$0x3] %v5506_v3  ;;  %v5195_v10 = vld [vmem:[%s6948_s3 + $0x60] sm:$0xff]  ;;  %v5194_v13 = vld [vmem:[%s6948_s3 + $0x58] sm:$0xff]  ;;  %v5193_v18 = vld [vmem:[%s6948_s3 + $0x50] sm:$0xff]  ;;  %s6972_s25 = smov (!%p6340_p9, %s442_s25), 7  ;;  %s6894_s28 = scalar_lea.vmem %s6952_s7, %s5180_s11 }
  0x12   : > { %476 = vst [vmem:[#allocation2 + $0x18] sm:$0x3] %v5506_v3  ;;  %s6968_s24 = smov (!%p422_p6, %s421_s24), 15  ;;  %v5187_v11 = vld [vmem:[%s6948_s3 + $0x20] sm:$0xff]  ;;  %v5186_v14 = vld [vmem:[%s6948_s3 + $0x18] sm:$0xff]  ;;  %v5185_v20 = vld [vmem:[%s6948_s3 + $0x10] sm:$0xff]  ;;  %s445_s17 = sadd.s32 %s5598_s19, %s6972_s25 }
  0x13   : > { %477 = vst [vmem:[#allocation2 + $0x20] sm:$0xff] %v5506_v3  ;;  %714 = vmatpush.bf16.msra.mxu0 %v5197_v4  ;;  %5400 = vmatpush.bf16.msra.mxu3 %v5197_v4  ;;  %s5179_s15 = sshll.u32 %s6968_s24, 6  ;;  %v5203_v12 = vld [vmem:[%s6948_s3 + $0xa0] sm:$0xff]  ;;  %v5202_v15 = vld [vmem:[%s6948_s3 + $0x98] sm:$0xff]  ;;  %v5201_v21 = vld [vmem:[%s6948_s3 + $0x90] sm:$0xff]  ;;  %p446_p10 = scmp.lt.s32.totalorder %s445_s17, 15 }
  0x14   : > { %478 = vst [vmem:[#allocation2 + $0x28] sm:$0x3] %v5506_v3  ;;  %791 = vmatpush.bf16.msra.mxu1 %v5189_v5  ;;  %s5639_s23 = scalar_lea.vmem %s6945_s0, %s5179_s15  ;;  %v5192_v22 = vld [vmem:[%s6948_s3 + $0x48] sm:$0xff]  ;;  %v5191_v27 = vld [vmem:[%s6948_s3 + $0x40] sm:$0xff]  ;;  %v5222_v36 = vld [vmem:[%s6948_s3 + $0x138] sm:$0xff]  ;;  %s3896_s11 = sshll.u32 %s6970_s21, 1 }
  0x15   : > { %897 = vmatpush.bf16.msra.mxu2 %v5205_v6  ;;  %479 = vst [vmem:[#allocation2 + $0x30] sm:$0xff] %v5506_v3  ;;  %s542_s24 = scalar_select %p541_p7, 1, 0  ;;  %v533_v16 = vld [vmem:[%s5639_s23] sm:$0xff]  ;;  %v536_v23 = vld [vmem:[%s5639_s23 + $0x18] sm:$0xff]  ;;  %v5184_v25 = vld [vmem:[%s6948_s3 + $0x8] sm:$0xff] }
  0x16   : > { %480 = vst [vmem:[#allocation2 + $0x38] sm:$0x3] %v5506_v3  ;;  %v537_v24 = vld [vmem:[%s5639_s23 + $0x20] sm:$0xff]  ;;  %v5200_v26 = vld [vmem:[%s6948_s3 + $0x88] sm:$0xff]  ;;  %v5214_v37 = vld [vmem:[%s6948_s3 + $0xf8] sm:$0xff]  ;;  %s6974_s17 = smov (!%p446_p10, %s445_s17), 15  ;;  %s470_s12 = scalar_lea.vmem %s6953_s8, %s3896_s11 }
  0x17   : > { %481 = vst [vmem:[#allocation2 + $0x40] sm:$0xff] %v5506_v3  ;;  %715 = vmatpush.bf16.msra.mxu0 %v5196_v7  ;;  %5401 = vmatpush.bf16.msra.mxu3 %v5196_v7  ;;  %s543_s13 = scvt.s32.f32 %s542_s24  ;;  %v5183_v30 = vld [vmem:[%s6948_s3] sm:$0xff]  ;;  %v5238_v42 = vld [vmem:[%s6948_s3 + $0x1b8] sm:$0xff]  ;;  %v5221_v44 = vld [vmem:[%s6948_s3 + $0x130] sm:$0xff]  ;;  %s5181_s14 = sshll.u32 %s6974_s17, 6 }
  0x18   : > { %482 = vst [vmem:[#allocation2 + $0x48] sm:$0x3] %v5506_v3  ;;  %792 = vmatpush.bf16.msra.mxu1 %v5188_v8  ;;  %v5199_v31 = vld [vmem:[%s6948_s3 + $0x80] sm:$0xff]  ;;  %v5230_v43 = vld [vmem:[%s6948_s3 + $0x178] sm:$0xff]  ;;  %v5213_v45 = vld [vmem:[%s6948_s3 + $0xf0] sm:$0xff]  ;;  %s6405_s22 = scalar_lea.vmem %s6947_s2, %s5181_s14 }
  0x19   : > { %898 = vmatpush.bf16.msra.mxu2 %v5204_v9  ;;  %483 = vst [vmem:[#allocation2 + $0x50] sm:$0xff] %v5506_v3  ;;  %v5658_v17 = vstv %s543_s13  ;;  %v636_v32 = vld [vmem:[#allocation2 + $0x1] sm:$0xff]  ;;  %v5237_v46 = vld [vmem:[%s6948_s3 + $0x1b0] sm:$0xff]  ;;  %v5218_v61 = vld [vmem:[%s6948_s3 + $0x118] sm:$0xff]  ;;  %s588_s10 = scalar_select %p587_p11, 1, 0 }
  0x1a   : > { %484 = vst [vmem:[#allocation2 + $0x58] sm:$0x3] %v5506_v3  ;;  %v5665_v19 = vmul.f32 %v5658_v17, %v533_v16  ;;  %v5696_v28 = vmul.f32 %v5658_v17, %v536_v23  ;;  %v5699_v29 = vmul.f32 %v5658_v17, %v537_v24  ;;  %v819_v34 = vld [vmem:[#allocation2 + $0x2] sm:$0xff]  ;;  %v539_v50 = vld [vmem:[%s5639_s23 + $0x30] sm:$0xff]  ;;  %v5210_v62 = vld [vmem:[%s6948_s3 + $0xd8] sm:$0xff] }
  0x1b   : > { %485 = vst [vmem:[#allocation2 + $0x60] sm:$0xff] %v5506_v3  ;;  %716 = vmatpush.bf16.msra.mxu0 %v5195_v10  ;;  %5402 = vmatpush.bf16.msra.mxu3 %v5195_v10  ;;  %v5220_v47 = vld [vmem:[%s6948_s3 + $0x128] sm:$0xff]  ;;  %v5219_v52 = vld [vmem:[%s6948_s3 + $0x120] sm:$0xff]  ;;  %v535_v54 = vld [vmem:[%s5639_s23 + $0x10] sm:$0xff]  ;;  %v5777_v56 = vmul.f32 %v5658_v17, %v539_v50  ;;  %s589_s15 = scvt.s32.f32 %s588_s10 }
  0x1c   : > { %486 = vst [vmem:[#allocation2 + $0x68] sm:$0x3] %v5506_v3  ;;  %793 = vmatpush.bf16.msra.mxu1 %v5187_v11  ;;  %v644_v38 = vpack.c.bf16 %v5665_v19, %v636_v32  ;;  %v5724_v39 = vpack.c.bf16 %v5699_v29, %v5696_v28  ;;  %v5212_v48 = vld [vmem:[%s6948_s3 + $0xe8] sm:$0xff]  ;;  %v5211_v53 = vld [vmem:[%s6948_s3 + $0xe0] sm:$0xff]  ;;  %v5785_v58 = vmul.f32 %v5658_v17, %v535_v54  ;;  %v5229_v59 = vld [vmem:[%s6948_s3 + $0x170] sm:$0xff] }
  0x1d   : > { %899 = vmatpush.bf16.msra.mxu2 %v5203_v12  ;;  %487 = vst [vmem:[#allocation2 + $0x70] sm:$0xff] %v5506_v3  ;;  %v538_v49 = vld [vmem:[%s5639_s23 + $0x28] sm:$0xff]  ;;  %v5235_v2 = vld [vmem:[%s6948_s3 + $0x1a0] sm:$0xff]  ;;  %v5217_v4 = vld [vmem:[%s6948_s3 + $0x110] sm:$0xff] }
  0x1e   : > { %488 = vst [vmem:[#allocation2 + $0x78] sm:$0x3] %v5506_v3  ;;  %v534_v51 = vld [vmem:[%s5639_s23 + $0x8] sm:$0xff]  ;;  %v5774_v55 = vmul.f32 %v5658_v17, %v538_v49  ;;  %v5209_v5 = vld [vmem:[%s6948_s3 + $0xd0] sm:$0xff]  ;;  %v5215_v8 = vld [vmem:[%s6948_s3 + $0x100] sm:$0xff]  ;;  %v1056_v32 = vpack.c.bf16 %v5696_v28, %v5785_v58 }
  0x1f   : > { %489 = vst [vmem:[#allocation2 + $0x80] sm:$0xff] %v5506_v3  ;;  %717 = vmatpush.bf16.msra.mxu0 %v5194_v13  ;;  %5403 = vmatpush.bf16.msra.mxu3 %v5194_v13  ;;  %v5782_v57 = vmul.f32 %v5658_v17, %v534_v51  ;;  %v5236_v60 = vld [vmem:[%s6948_s3 + $0x1a8] sm:$0xff]  ;;  %v5207_v9 = vld [vmem:[%s6948_s3 + $0xc0] sm:$0xff]  ;;  %v5254_v10 = vld [vmem:[%s6948_s3 + $0x238] sm:$0xff] }
  0x20   : > { %490 = vst [vmem:[#allocation2 + $0x88] sm:$0x3] %v5506_v3  ;;  %794 = vmatpush.bf16.msra.mxu1 %v5186_v14  ;;  %v5807_v0 = vpack.c.bf16 %v5777_v56, %v5774_v55  ;;  %v5228_v1 = vld [vmem:[%s6948_s3 + $0x168] sm:$0xff]  ;;  %v5227_v11 = vld [vmem:[%s6948_s3 + $0x160] sm:$0xff]  ;;  %v5234_v12 = vld [vmem:[%s6948_s3 + $0x198] sm:$0xff]  ;;  %v1057_v50 = vpack.c.bf16 %v5774_v55, %v5699_v29 }
  0x21   : > { %900 = vmatpush.bf16.msra.mxu2 %v5202_v15  ;;  %491 = vst [vmem:[#allocation2 + $0x90] sm:$0xff] %v5506_v3  ;;  %v5803_v63 = vpack.c.bf16 %v5785_v58, %v5782_v57  ;;  %v5216_v6 = vld [vmem:[%s6948_s3 + $0x108] sm:$0xff]  ;;  %v5246_v13 = vld [vmem:[%s6948_s3 + $0x1f8] sm:$0xff]  ;;  %v1055_v14 = vpack.c.bf16 %v5782_v57, %v5665_v19  ;;  %v5253_v16 = vld [vmem:[%s6948_s3 + $0x230] sm:$0xff] }
  0x22   : > { %554 = vst [vmem:[#allocation2 + $0x11] sm:$0xff] %v5665_v19  ;;  %v5208_v7 = vld [vmem:[%s6948_s3 + $0xc8] sm:$0xff]  ;;  %v5226_v15 = vld [vmem:[%s6948_s3 + $0x158] sm:$0xff]  ;;  %v5269_v54 = vld [vmem:[%s6948_s3 + $0x2b0] sm:$0xff] }
  0x23   : > { %492 = vst [vmem:[#allocation2 + $0x98] sm:$0x3] %v5506_v3  ;;  %718 = vmatpush.bf16.msra.mxu0 %v5193_v18  ;;  %5404 = vmatpush.bf16.msra.mxu3 %v5193_v18  ;;  %v5233_v18 = vld [vmem:[%s6948_s3 + $0x190] sm:$0xff]  ;;  %v5262_v49 = vld [vmem:[%s6948_s3 + $0x278] sm:$0xff] }
  0x24   : > { %493 = vst [vmem:[#allocation2 + $0xa0] sm:$0xff] %v5506_v3  ;;  %795 = vmatpush.bf16.msra.mxu1 %v5185_v20  ;;  %v5242_v51 = vld [vmem:[%s6948_s3 + $0x1d8] sm:$0xff] }
  0x25   : > { %901 = vmatpush.bf16.msra.mxu2 %v5201_v21  ;;  %494 = vst [vmem:[#allocation2 + $0xa8] sm:$0x3] %v5506_v3 }
  0x26   : > { %495 = vst [vmem:[#allocation2 + $0xb0] sm:$0xff] %v5506_v3 }
  0x27   : > { %496 = vst [vmem:[#allocation2 + $0xb8] sm:$0x3] %v5506_v3  ;;  %719 = vmatpush.bf16.msra.mxu0 %v5192_v22  ;;  %5405 = vmatpush.bf16.msra.mxu3 %v5192_v22 }
  0x28   : > { %497 = vst [vmem:[#allocation2 + $0xc0] sm:$0xff] %v5506_v3  ;;  %796 = vmatpush.bf16.msra.mxu1 %v5184_v25 }
  0x29   : > { %902 = vmatpush.bf16.msra.mxu2 %v5200_v26  ;;  %498 = vst [vmem:[#allocation2 + $0xc8] sm:$0x3] %v5506_v3  ;;  %v5709_v33 = vld [vmem:[#allocation2 + $0x10] sm:$0xff] }
  0x2a   : > { %v5711_v35 = vld [vmem:[#allocation2 + $0x12] sm:$0xff]  ;;  %499 = vst [vmem:[#allocation2 + $0xd0] sm:$0xff] %v5506_v3  ;;  %v616_v40 = vpack.c.bf16 %v5709_v33, %v5506_v3 }
  0x2b   : > { %500 = vst [vmem:[#allocation2 + $0xd8] sm:$0x3] %v5506_v3  ;;  %720 = vmatpush.bf16.msra.mxu0 %v5191_v27  ;;  %5406 = vmatpush.bf16.msra.mxu3 %v5191_v27  ;;  %v827_v41 = vpack.c.bf16 %v5711_v35, %v819_v34  ;;  %v5245_v26 = vld [vmem:[%s6948_s3 + $0x1f0] sm:$0xff]  ;;  %v5252_v27 = vld [vmem:[%s6948_s3 + $0x228] sm:$0xff]  ;;  %v5251_v34 = vld [vmem:[%s6948_s3 + $0x220] sm:$0xff] }
  0x2c   : > { %501 = vst [vmem:[#allocation2 + $0xe0] sm:$0xff] %v5506_v3  ;;  %797 = vmatpush.bf16.msra.mxu1 %v5183_v30  ;;  %v5225_v30 = vld [vmem:[%s6948_s3 + $0x150] sm:$0xff] }
  0x2d   : > { %903 = vmatpush.bf16.msra.mxu2 %v5199_v31  ;;  %502 = vst [vmem:[#allocation2 + $0xe8] sm:$0x3] %v5506_v3  ;;  %v5232_v31 = vld [vmem:[%s6948_s3 + $0x188] sm:$0xff] }
  0x2e   : > { %503 = vst [vmem:[#allocation2 + $0xf0] sm:$0xff] %v5506_v3  ;;  %721 = vmatmul.bf16.vlgmr.msra.gmra.mxu0 %v644_v38  ;;  %731 = vmatmul.bf16.vlgmr.msra.gmra.mxu3 %v5724_v39 }
  0x2f   : > { %1124 = vmatpush.bf16.msrb.mxu0 %v5222_v36  ;;  %1010 = vmatpush.bf16.msrb.mxu3 %v5214_v37  ;;  %504 = vst [vmem:[#allocation2 + $0xf8] sm:$0x3] %v5506_v3  ;;  %v5224_v36 = vld [vmem:[%s6948_s3 + $0x148] sm:$0xff]  ;;  %v5223_v37 = vld [vmem:[%s6948_s3 + $0x140] sm:$0xff] }
  0x30   : > { %505 = vst [vmem:[#allocation2 + $0x100] sm:$0xff] %v5506_v3  ;;  %798 = vmatmul.bf16.vlgmr.msra.gmra.mxu1 %v616_v40  ;;  %904 = vmatmul.bf16.vlgmr.msra.gmra.mxu2 %v827_v41 }
  0x31   : > { %506 = vst [vmem:[#allocation2 + $0x108] sm:$0x3] %v5506_v3  ;;  %1353 = vmatpush.bf16.msrb.mxu2 %v5238_v42  ;;  %1238 = vmatpush.bf16.msrb.mxu1 %v5230_v43 }
  0x32   : > { %507 = vst [vmem:[#allocation2 + $0x110] sm:$0xff] %v5506_v3 }
  0x33   : > { %1125 = vmatpush.bf16.msrb.mxu0 %v5221_v44  ;;  %1011 = vmatpush.bf16.msrb.mxu3 %v5213_v45  ;;  %508 = vst [vmem:[#allocation2 + $0x118] sm:$0x3] %v5506_v3 }
  0x34   : > { %509 = vst [vmem:[#allocation2 + $0x120] sm:$0xff] %v5506_v3 }
  0x35   : > { %510 = vst [vmem:[#allocation2 + $0x128] sm:$0x3] %v5506_v3  ;;  %1354 = vmatpush.bf16.msrb.mxu2 %v5237_v46  ;;  %1239 = vmatpush.bf16.msrb.mxu1 %v5229_v59  ;;  %v5243_v46 = vld [vmem:[%s6948_s3 + $0x1e0] sm:$0xff] }
  0x36   : > { %511 = vst [vmem:[#allocation2 + $0x130] sm:$0xff] %v5506_v3 }
  0x37   : > { %1126 = vmatpush.bf16.msrb.mxu0 %v5220_v47  ;;  %1012 = vmatpush.bf16.msrb.mxu3 %v5212_v48  ;;  %512 = vst [vmem:[#allocation2 + $0x138] sm:$0x3] %v5506_v3  ;;  %v5250_v47 = vld [vmem:[%s6948_s3 + $0x218] sm:$0xff] }
  0x38   : > { %513 = vst [vmem:[#allocation2 + $0x140] sm:$0xff] %v5506_v3  ;;  %v5270_v48 = vld [vmem:[%s6948_s3 + $0x2b8] sm:$0xff] }
  0x39   : > { %514 = vst [vmem:[#allocation2 + $0x148] sm:$0x3] %v5506_v3  ;;  %1355 = vmatpush.bf16.msrb.mxu2 %v5236_v60  ;;  %1240 = vmatpush.bf16.msrb.mxu1 %v5228_v1  ;;  %v5248_v1 = vld [vmem:[%s6948_s3 + $0x208] sm:$0xff] }
  0x3a   : > { %515 = vst [vmem:[#allocation2 + $0x150] sm:$0xff] %v5506_v3 }
  0x3b   : > { %1127 = vmatpush.bf16.msrb.mxu0 %v5219_v52  ;;  %1013 = vmatpush.bf16.msrb.mxu3 %v5211_v53  ;;  %516 = vst [vmem:[#allocation2 + $0x158] sm:$0x3] %v5506_v3  ;;  %v540_v52 = vld [vmem:[%s5639_s23 + $0x38] sm:$0xff]  ;;  %v5249_v53 = vld [vmem:[%s6948_s3 + $0x210] sm:$0xff] }
  0x3c   : > { %517 = vst [vmem:[#allocation2 + $0x160] sm:$0xff] %v5506_v3 }
  0x3d   : > { %518 = vst [vmem:[#allocation2 + $0x168] sm:$0x3] %v5506_v3  ;;  %1356 = vmatpush.bf16.msrb.mxu2 %v5235_v2  ;;  %1241 = vmatpush.bf16.msrb.mxu1 %v5227_v11  ;;  %v5261_v2 = vld [vmem:[%s6948_s3 + $0x270] sm:$0xff] }
  0x3e   : > { %519 = vst [vmem:[#allocation2 + $0x170] sm:$0xff] %v5506_v3  ;;  %726 = vmatmul.bf16.gmra.mxu0 %v5803_v63  ;;  %736 = vmatmul.bf16.gmra.mxu3 %v5807_v0 }
  0x3f   : > { %1128 = vmatpush.bf16.msrb.mxu0 %v5218_v61  ;;  %1014 = vmatpush.bf16.msrb.mxu3 %v5210_v62  ;;  %520 = vst [vmem:[#allocation2 + $0x178] sm:$0x3] %v5506_v3 }
  0x40   : > { %521 = vst [vmem:[#allocation2 + $0x180] sm:$0xff] %v5506_v3 }
  0x41   : > { %522 = vst [vmem:[#allocation2 + $0x188] sm:$0x3] %v5506_v3  ;;  %1357 = vmatpush.bf16.msrb.mxu2 %v5234_v12  ;;  %1242 = vmatpush.bf16.msrb.mxu1 %v5226_v15  ;;  %v5266_v15 = vld [vmem:[%s6948_s3 + $0x298] sm:$0xff] }
  0x42   : > { %523 = vst [vmem:[#allocation2 + $0x190] sm:$0xff] %v5506_v3 }
  0x43   : > { %1129 = vmatpush.bf16.msrb.mxu0 %v5217_v4  ;;  %1015 = vmatpush.bf16.msrb.mxu3 %v5209_v5  ;;  %524 = vst [vmem:[#allocation2 + $0x198] sm:$0x3] %v5506_v3  ;;  %v5268_v4 = vld [vmem:[%s6948_s3 + $0x2a8] sm:$0xff] }
  0x44   : > { %525 = vst [vmem:[#allocation2 + $0x1a0] sm:$0xff] %v5506_v3 }
  0x45   : > { %526 = vst [vmem:[#allocation2 + $0x1a8] sm:$0x3] %v5506_v3  ;;  %1358 = vmatpush.bf16.msrb.mxu2 %v5233_v18  ;;  %1243 = vmatpush.bf16.msrb.mxu1 %v5225_v30  ;;  %v5285_v18 = vld [vmem:[%s6948_s3 + $0x330] sm:$0xff]  ;;  %v5263_v30 = vld [vmem:[%s6948_s3 + $0x280] sm:$0xff] }
  0x46   : > { %527 = vst [vmem:[#allocation2 + $0x1b0] sm:$0xff] %v5506_v3 }
  0x47   : > { %1130 = vmatpush.bf16.msrb.mxu0 %v5216_v6  ;;  %1016 = vmatpush.bf16.msrb.mxu3 %v5208_v7  ;;  %528 = vst [vmem:[#allocation2 + $0x1b8] sm:$0x3] %v5506_v3  ;;  %v5240_v6 = vld [vmem:[%s6948_s3 + $0x1c8] sm:$0xff]  ;;  %v5247_v7 = vld [vmem:[%s6948_s3 + $0x200] sm:$0xff] }
  0x48   : > { %529 = vst [vmem:[#allocation2 + $0x1c0] sm:$0xff] %v5506_v3 }
  0x49   : > { %530 = vst [vmem:[#allocation2 + $0x1c8] sm:$0x3] %v5506_v3  ;;  %1359 = vmatpush.bf16.msrb.mxu2 %v5232_v31  ;;  %1244 = vmatpush.bf16.msrb.mxu1 %v5224_v36  ;;  %v5255_v31 = vld [vmem:[%s6948_s3 + $0x240] sm:$0xff]  ;;  %v5302_v36 = vld [vmem:[%s6948_s3 + $0x3b8] sm:$0xff] }
  0x4a   : > { %531 = vst [vmem:[#allocation2 + $0x1d0] sm:$0xff] %v5506_v3 }
  0x4b   : > { %1131 = vmatpush.bf16.msrb.mxu0 %v5215_v8  ;;  %1017 = vmatpush.bf16.msrb.mxu3 %v5207_v9  ;;  %532 = vst [vmem:[#allocation2 + $0x1d8] sm:$0x3] %v5506_v3  ;;  %v5260_v8 = vld [vmem:[%s6948_s3 + $0x268] sm:$0xff]  ;;  %v5239_v9 = vld [vmem:[%s6948_s3 + $0x1c0] sm:$0xff] }
  0x4c   : > { %557 = vst [vmem:[#allocation2 + $0x41] sm:$0xff] %v5696_v28  ;;  %v5231_v28 = vld [vmem:[%s6948_s3 + $0x180] sm:$0xff] }
  0x4d   : > { %558 = vst [vmem:[#allocation2 + $0x51] sm:$0xff] %v5699_v29  ;;  %1360 = vmatpush.bf16.msrb.mxu2 %v5231_v28  ;;  %1245 = vmatpush.bf16.msrb.mxu1 %v5223_v37  ;;  %v5274_v28 = vld [vmem:[%s6948_s3 + $0x2d8] sm:$0xff] }
  0x4e   : > { %555 = vst [vmem:[#allocation2 + $0x21] sm:$0xff] %v5782_v57  ;;  %1132 = vmatmul.bf16.vlgmr.msrb.gmra.mxu0 %v1055_v14  ;;  %v5959_v57 = vmul.f32 %v5658_v17, %v540_v52  ;;  %v5241_v17 = vld [vmem:[%s6948_s3 + $0x1d0] sm:$0xff]  ;;  %v5259_v14 = vld [vmem:[%s6948_s3 + $0x260] sm:$0xff] }
  0x4f   : > { %1581 = vmatpush.bf16.msra.mxu0 %v5254_v10  ;;  %1467 = vmatpush.bf16.msra.mxu3 %v5246_v13  ;;  %556 = vst [vmem:[#allocation2 + $0x31] sm:$0xff] %v5785_v58  ;;  %v5286_v13 = vld [vmem:[%s6948_s3 + $0x338] sm:$0xff] }
  0x50   : > { %559 = vst [vmem:[#allocation2 + $0x61] sm:$0xff] %v5774_v55  ;;  %v1058_v5 = vpack.c.bf16 %v5959_v57, %v5777_v56  ;;  %v1511_v52 = vld [vmem:[#allocation2 + $0x92] sm:$0xff] }
  0x51   : > { %560 = vst [vmem:[#allocation2 + $0x71] sm:$0xff] %v5777_v56  ;;  %1810 = vmatpush.bf16.msra.mxu2 %v5270_v48  ;;  %1696 = vmatpush.bf16.msra.mxu1 %v5262_v49  ;;  %v5267_v56 = vld [vmem:[%s6948_s3 + $0x2a0] sm:$0xff] }
  0x52   : > { %561 = vst [vmem:[#allocation2 + $0x81] sm:$0xff] %v5959_v57 }
  0x53   : > { %1582 = vmatpush.bf16.msra.mxu0 %v5253_v16  ;;  %1468 = vmatpush.bf16.msra.mxu3 %v5245_v26  ;;  %v612_v38 = vld [vmem:[#allocation2 + $0x40] sm:$0xff]  ;;  %v5258_v16 = vld [vmem:[%s6948_s3 + $0x258] sm:$0xff]  ;;  %v5256_v26 = vld [vmem:[%s6948_s3 + $0x248] sm:$0xff] }
  0x54   : > { %v613_v40 = vld [vmem:[#allocation2 + $0x50] sm:$0xff]  ;;  %v5922_v41 = vld [vmem:[#allocation2 + $0x42] sm:$0xff] }
  0x55   : > { %v610_v19 = vld [vmem:[#allocation2 + $0x20] sm:$0xff]  ;;  %v5924_v42 = vld [vmem:[#allocation2 + $0x52] sm:$0xff]  ;;  %v5926_v44 = vpack.c.bf16 %v613_v40, %v612_v38  ;;  %1811 = vmatpush.bf16.msra.mxu2 %v5269_v54  ;;  %1697 = vmatpush.bf16.msra.mxu1 %v5261_v2  ;;  %v5280_v54 = vld [vmem:[%s6948_s3 + $0x308] sm:$0xff] }
  0x56   : > { %v5880_v20 = vld [vmem:[#allocation2 + $0x22] sm:$0xff]  ;;  %v611_v21 = vld [vmem:[#allocation2 + $0x30] sm:$0xff]  ;;  %v941_v23 = vpack.c.bf16 %v610_v19, %v5709_v33  ;;  %v5930_v45 = vpack.c.bf16 %v5924_v42, %v5922_v41 }
  0x57   : > { %v5882_v22 = vld [vmem:[#allocation2 + $0x32] sm:$0xff]  ;;  %v5885_v24 = vpack.c.bf16 %v611_v21, %v610_v19  ;;  %1583 = vmatpush.bf16.msra.mxu0 %v5252_v27  ;;  %v5244_v33 = vld [vmem:[%s6948_s3 + $0x1e8] sm:$0xff]  ;;  %v942_v43 = vpack.c.bf16 %v612_v38, %v611_v21  ;;  %v614_v29 = vld [vmem:[#allocation2 + $0x60] sm:$0xff]  ;;  %v1169_v12 = vpack.c.bf16 %v5880_v20, %v5711_v35 }
  0x58   : > { %v5889_v25 = vpack.c.bf16 %v5882_v22, %v5880_v20  ;;  %1018 = vmatmul.bf16.vlgmr.msrb.gmra.mxu3 %v941_v23  ;;  %v615_v55 = vld [vmem:[#allocation2 + $0x70] sm:$0xff]  ;;  %v5962_v58 = vld [vmem:[#allocation2 + $0x62] sm:$0xff]  ;;  %v943_v60 = vpack.c.bf16 %v614_v29, %v613_v40  ;;  %v5278_v35 = vld [vmem:[%s6948_s3 + $0x2f8] sm:$0xff]  ;;  %v1170_v20 = vpack.c.bf16 %v5922_v41, %v5882_v22 }
  0x59   : > { %803 = vmatmul.bf16.gmra.mxu1 %v5885_v24  ;;  %1469 = vmatpush.bf16.msra.mxu3 %v5244_v33  ;;  %v5964_v59 = vld [vmem:[#allocation2 + $0x72] sm:$0xff]  ;;  %v5966_v61 = vpack.c.bf16 %v615_v55, %v614_v29  ;;  %v6003_v10 = vld [vmem:[#allocation2 + $0x80] sm:$0xff]  ;;  %v5284_v23 = vld [vmem:[%s6948_s3 + $0x328] sm:$0xff] }
  0x5a   : > { %909 = vmatmul.bf16.gmra.mxu2 %v5889_v25  ;;  %v5970_v62 = vpack.c.bf16 %v5964_v59, %v5962_v58  ;;  %1698 = vmatpush.bf16.msra.mxu1 %v5260_v8  ;;  %v944_v11 = vpack.c.bf16 %v6003_v10, %v615_v55  ;;  %v5265_v19 = vld [vmem:[%s6948_s3 + $0x290] sm:$0xff]  ;;  %v5276_v22 = vld [vmem:[%s6948_s3 + $0x2e8] sm:$0xff]  ;;  %v6069_v27 = vld [vmem:[%s6054_s20] sm:$0xff] }
  0x5b   : > { %1584 = vmatpush.bf16.msra.mxu0 %v5251_v34  ;;  %1812 = vmatpush.bf16.msra.mxu2 %v5268_v4  ;;  %v5277_v21 = vld [vmem:[%s6948_s3 + $0x2f0] sm:$0xff]  ;;  %571 = vst [vmem:[#allocation2 + $0xb1] sm:$0xff] %v6069_v27  ;;  %v5275_v33 = vld [vmem:[%s6948_s3 + $0x2e0] sm:$0xff]  ;;  %v5282_v34 = vld [vmem:[%s6948_s3 + $0x318] sm:$0xff] }
  0x5c   : > { %v5281_v38 = vld [vmem:[%s6948_s3 + $0x310] sm:$0xff]  ;;  %v1733_v4 = vld [vmem:[#allocation2 + $0xa1] sm:$0xff] }
  0x5d   : > { %1470 = vmatpush.bf16.msra.mxu3 %v5243_v46  ;;  %v5301_v40 = vld [vmem:[%s6948_s3 + $0x3b0] sm:$0xff] }
  0x5e   : > { %1137 = vmatmul.bf16.gmra.mxu0 %v1056_v32  ;;  %1699 = vmatpush.bf16.msra.mxu1 %v5259_v14  ;;  %v1171_v32 = vpack.c.bf16 %v5962_v58, %v5924_v42 }
  0x5f   : > { %1585 = vmatpush.bf16.msra.mxu0 %v5250_v47  ;;  %1813 = vmatpush.bf16.msra.mxu2 %v5267_v56  ;;  %v1741_v56 = vpack.c.bf16 %v6069_v27, %v1733_v4 }
  0x61   : > { %1471 = vmatpush.bf16.msra.mxu3 %v5242_v51  ;;  %v1287_v51 = vpack.c.bf16 0.0, %v6003_v10  ;;  %v5299_v10 = vld [vmem:[%s6948_s3 + $0x3a0] sm:$0xff] }
  0x62   : > { %1700 = vmatpush.bf16.msra.mxu1 %v5258_v16  ;;  %v1620_v2 = vld [vmem:[#allocation2 + $0xb0] sm:$0xff]  ;;  %v6178_v16 = vld [vmem:[%s6054_s20 + $0x28] sm:$0xff] }
  0x63   : > { %1586 = vmatpush.bf16.msra.mxu0 %v5249_v53  ;;  %1814 = vmatpush.bf16.msra.mxu2 %v5266_v15  ;;  %v5273_v53 = vld [vmem:[%s6948_s3 + $0x2d0] sm:$0xff]  ;;  %v1627_v8 = vpack.c.bf16 %v1620_v2, %v5506_v3  ;;  %v5318_v3 = vld [vmem:[%s6948_s3 + $0x438] sm:$0xff]  ;;  %v5291_v15 = vld [vmem:[%s6948_s3 + $0x360] sm:$0xff]  ;;  %576 = vst [vmem:[#allocation2 + $0x101] sm:$0xff] %v6178_v16 }
  0x65   : > { %1472 = vmatpush.bf16.msra.mxu3 %v5241_v17  ;;  %v5279_v17 = vld [vmem:[%s6948_s3 + $0x300] sm:$0xff] }
  0x67   : > { %1587 = vmatpush.bf16.msra.mxu0 %v5248_v1  ;;  %1815 = vmatpush.bf16.msra.mxu2 %v5265_v19  ;;  %v1397_v1 = vld [vmem:[#allocation2 + $0x91] sm:$0xff] }
  0x68   : > { %1023 = vmatmul.bf16.gmra.mxu3 %v942_v43  ;;  %v6105_v43 = vld [vmem:[%s6054_s20 + $0x8] sm:$0xff]  ;;  %v5310_v19 = vld [vmem:[%s6948_s3 + $0x3f8] sm:$0xff] }
  0x69   : > { %808 = vmatmul.bf16.gmra.mxu1 %v5926_v44  ;;  %1473 = vmatpush.bf16.msra.mxu3 %v5240_v6  ;;  %572 = vst [vmem:[#allocation2 + $0xc1] sm:$0xff] %v6105_v43 }
  0x6a   : > { %914 = vmatmul.bf16.gmra.mxu2 %v5930_v45 }
  0x6b   : > { %1588 = vmatpush.bf16.msra.mxu0 %v5247_v7  ;;  %v5271_v7 = vld [vmem:[%s6948_s3 + $0x2c0] sm:$0xff] }
  0x6d   : > { %1474 = vmatpush.bf16.msra.mxu3 %v5239_v9  ;;  %v5292_v9 = vld [vmem:[%s6948_s3 + $0x368] sm:$0xff] }
  0x6e   : > { %1142 = vmatmul.bf16.gmra.mxu0 %v1057_v50 }
  0x6f   : > { %2038 = vmatpush.bf16.msrb.mxu0 %v5286_v13 }
  0x71   : > { %1924 = vmatpush.bf16.msrb.mxu3 %v5278_v35  ;;  %v5298_v35 = vld [vmem:[%s6948_s3 + $0x398] sm:$0xff] }
  0x73   : > { %2039 = vmatpush.bf16.msrb.mxu0 %v5285_v18  ;;  %v6181_v18 = vld [vmem:[%s6054_s20 + $0x30] sm:$0xff] }
  0x74   : > { %577 = vst [vmem:[#allocation2 + $0x111] sm:$0xff] %v6181_v18 }
  0x75   : > { %1925 = vmatpush.bf16.msrb.mxu3 %v5277_v21 }
  0x77   : > { %2040 = vmatpush.bf16.msrb.mxu0 %v5284_v23  ;;  %v1847_v23 = vld [vmem:[#allocation2 + $0xa2] sm:$0xff] }
  0x78   : > { %1028 = vmatmul.bf16.gmra.mxu3 %v943_v60  ;;  %v6139_v60 = vld [vmem:[%s6054_s20 + $0x18] sm:$0xff] }
  0x79   : > { %813 = vmatmul.bf16.gmra.mxu1 %v5966_v61  ;;  %1926 = vmatpush.bf16.msrb.mxu3 %v5276_v22  ;;  %574 = vst [vmem:[#allocation2 + $0xe1] sm:$0xff] %v6139_v60 }
  0x7a   : > { %919 = vmatmul.bf16.gmra.mxu2 %v5970_v62 }
  0x7d   : > { %1927 = vmatpush.bf16.msrb.mxu3 %v5275_v33  ;;  %v5297_v33 = vld [vmem:[%s6948_s3 + $0x390] sm:$0xff] }
  0x7e   : > { %1147 = vmatmul.bf16.gmra.mxu0 %v1058_v5  ;;  %v1401_v5 = vpack.c.bf16 %v1397_v1, %v5959_v57 }
  0x81   : > { %1928 = vmatpush.bf16.msrb.mxu3 %v5274_v28  ;;  %v5316_v28 = vld [vmem:[%s6948_s3 + $0x428] sm:$0xff] }
  0x85   : > { %1929 = vmatpush.bf16.msrb.mxu3 %v5273_v53 }
  0x88   : > { %1033 = vmatmul.bf16.gmra.mxu3 %v944_v11  ;;  %v1621_v11 = vld [vmem:[#allocation2 + $0xc0] sm:$0xff] }
  0x89   : > { %1246 = vmatmul.bf16.vlgmr.msrb.gmra.mxu1 %v1169_v12  ;;  %v1969_v12 = vpack.c.bf16 %v1621_v11, %v1620_v2 }
  0x8a   : > { %1361 = vmatmul.bf16.vlgmr.msrb.gmra.mxu2 %v5885_v24  ;;  %v5257_v24 = vld [vmem:[%s6948_s3 + $0x250] sm:$0xff] }
  0x8b   : > { %1701 = vmatpush.bf16.msra.mxu1 %v5257_v24  ;;  %v6193_v24 = vld [vmem:[#allocation2 + $0xb2] sm:$0xff] }
  0x8e   : > { %1589 = vmatmul.bf16.vlgmr.msra.gmra.mxu0 %v5889_v25  ;;  %v5283_v25 = vld [vmem:[%s6948_s3 + $0x320] sm:$0xff] }
  0x8f   : > { %2041 = vmatpush.bf16.msrb.mxu0 %v5283_v25  ;;  %1702 = vmatpush.bf16.msra.mxu1 %v5256_v26  ;;  %v1855_v25 = vpack.c.bf16 %v6193_v24, %v1847_v23 }
  0x93   : > { %1703 = vmatpush.bf16.msra.mxu1 %v5255_v31  ;;  %2042 = vmatpush.bf16.msrb.mxu0 %v5282_v34 }
  0x97   : > { %2043 = vmatpush.bf16.msrb.mxu0 %v5281_v38 }
  0x98   : > { %1475 = vmatmul.bf16.vlgmr.msra.gmra.mxu3 %v5803_v63  ;;  %v5264_v63 = vld [vmem:[%s6948_s3 + $0x288] sm:$0xff] }
  0x99   : > { %1251 = vmatmul.bf16.gmra.mxu1 %v1170_v20  ;;  %1816 = vmatpush.bf16.msra.mxu2 %v5264_v63  ;;  %v5317_v20 = vld [vmem:[%s6948_s3 + $0x430] sm:$0xff] }
  0x9a   : > { %1366 = vmatmul.bf16.gmra.mxu2 %v5926_v44  ;;  %v6108_v44 = vld [vmem:[%s6054_s20 + $0x10] sm:$0xff] }
  0x9b   : > { %573 = vst [vmem:[#allocation2 + $0xd1] sm:$0xff] %v6108_v44  ;;  %2044 = vmatpush.bf16.msrb.mxu0 %v5280_v54  ;;  %v6200_v31 = vpack.c.bf16 %v6108_v44, %v6105_v43 }
  0x9d   : > { %1817 = vmatpush.bf16.msra.mxu2 %v5263_v30 }
  0x9e   : > { %1594 = vmatmul.bf16.gmra.mxu0 %v5930_v45  ;;  %v1168_v45 = vld [vmem:[#allocation2 + $0x82] sm:$0xff] }
  0x9f   : > { %v1172_v50 = vpack.c.bf16 %v1168_v45, %v5964_v59  ;;  %v1515_v29 = vpack.c.bf16 %v1511_v52, %v1168_v45  ;;  %v5300_v59 = vld [vmem:[%s6948_s3 + $0x3a8] sm:$0xff]  ;;  %2045 = vmatpush.bf16.msrb.mxu0 %v5279_v17 }
  0xa1   : > { %2266 = vmatpush.bf16.msrb.mxu2 %v5302_v36 }
  0xa2   : > { %v1622_v22 = vld [vmem:[#allocation2 + $0xd0] sm:$0xff] }
  0xa3   : > { %2495 = vmatpush.bf16.msra.mxu0 %v5318_v3  ;;  %v6196_v30 = vpack.c.bf16 %v1622_v22, %v1621_v11 }
  0xa5   : > { %2267 = vmatpush.bf16.msrb.mxu2 %v5301_v40 }
  0xa7   : > { %2496 = vmatpush.bf16.msra.mxu0 %v5317_v20 }
  0xa8   : > { %1480 = vmatmul.bf16.gmra.mxu3 %v5724_v39  ;;  %v5294_v39 = vld [vmem:[%s6948_s3 + $0x378] sm:$0xff] }
  0xa9   : > { %1256 = vmatmul.bf16.gmra.mxu1 %v1171_v32  ;;  %2268 = vmatpush.bf16.msrb.mxu2 %v5300_v59  ;;  %v5290_v32 = vld [vmem:[%s6948_s3 + $0x358] sm:$0xff]  ;;  %v6237_v59 = vld [vmem:[#allocation2 + $0xc2] sm:$0xff] }
  0xaa   : > { %1371 = vmatmul.bf16.gmra.mxu2 %v5966_v61  ;;  %2152 = vmatpush.bf16.msrb.mxu1 %v5294_v39  ;;  %v6142_v61 = vld [vmem:[%s6054_s20 + $0x20] sm:$0xff]  ;;  %v5309_v39 = vld [vmem:[%s6948_s3 + $0x3f0] sm:$0xff] }
  0xab   : > { %v722_v37 = vpop.f32.mrf.mxu0  ;;  %575 = vst [vmem:[#allocation2 + $0xf1] sm:$0xff] %v6142_v61  ;;  %2497 = vmatpush.bf16.msra.mxu0 %v5316_v28 }
  0xad   : > { %v799_v41 = vpop.f32.mrf.mxu1  ;;  %2269 = vmatpush.bf16.msrb.mxu2 %v5299_v10  ;;  %v6255_v10 = vpack.c.bf16 %v6142_v61, %v6139_v60 }
  0xae   : > { %v800_v42 = vadd.f32 %v799_v41, %v722_v37  ;;  %1599 = vmatmul.bf16.gmra.mxu0 %v5970_v62  ;;  %v5272_v62 = vld [vmem:[%s6948_s3 + $0x2c8] sm:$0xff]  ;;  %v1623_v37 = vld [vmem:[#allocation2 + $0xe0] sm:$0xff] }
  0xaf   : > { %1930 = vmatpush.bf16.msrb.mxu3 %v5272_v62  ;;  %v1970_v40 = vpack.c.bf16 %v1623_v37, %v1622_v22  ;;  %v6239_v62 = vld [vmem:[#allocation2 + $0xd2] sm:$0xff] }
  0xb0   : > { %v5334_v22 = vld [vmem:[%s6948_s3 + $0x4b8] sm:$0xff] }
  0xb1   : > { %v6113_v46 = vpop.f32.mrf.mxu3  ;;  %2270 = vmatpush.bf16.msrb.mxu2 %v5298_v35 }
  0xb2   : > { %v1624_v1 = vld [vmem:[#allocation2 + $0xf0] sm:$0xff] }
  0xb3   : > { %v905_v47 = vpop.f32.mrf.mxu2  ;;  %v6117_v49 = vpop.f32.mrf.mxu0  ;;  %1931 = vmatpush.bf16.msrb.mxu3 %v5271_v7  ;;  %v6287_v28 = vld [vmem:[#allocation2 + $0xf2] sm:$0xff] }
  0xb4   : > { %v6115_v48 = vadd.f32 %v905_v47, %v800_v42  ;;  %v5289_v47 = vld [vmem:[%s6948_s3 + $0x350] sm:$0xff] }
  0xb5   : > { %v801_v13 = vpop.f32.mrf.mxu1  ;;  %2271 = vmatpush.bf16.msrb.mxu2 %v5297_v33 }
  0xb7   : > { %2381 = vmatpush.bf16.msra.mxu3 %v5310_v19 }
  0xb8   : > { %1485 = vmatmul.bf16.gmra.mxu3 %v5807_v0  ;;  %v5293_v0 = vld [vmem:[%s6948_s3 + $0x370] sm:$0xff] }
  0xb9   : > { %1261 = vmatmul.bf16.gmra.mxu1 %v1172_v50  ;;  %v6130_v58 = vpop.f32.mrf.mxu3 }
  0xba   : > { %1376 = vmatmul.bf16.gmra.mxu2 %v1287_v51  ;;  %2153 = vmatpush.bf16.msrb.mxu1 %v5293_v0  ;;  %v5296_v51 = vld [vmem:[%s6948_s3 + $0x388] sm:$0xff]  ;;  %v802_v0 = vadd.f32 %v801_v13, %v6117_v49  ;;  %v5295_v49 = vld [vmem:[%s6948_s3 + $0x380] sm:$0xff] }
  0xbb   : > { %v6128_v55 = vpop.f32.mrf.mxu0  ;;  %v907_v63 = vpop.f32.mrf.mxu2  ;;  %2382 = vmatpush.bf16.msra.mxu3 %v5309_v39  ;;  %2272 = vmatpush.bf16.msrb.mxu2 %v5296_v51  ;;  %v5307_v13 = vld [vmem:[%s6948_s3 + $0x3e0] sm:$0xff]  ;;  %v5326_v51 = vld [vmem:[%s6948_s3 + $0x478] sm:$0xff] }
  0xbc   : > { %v926_v17 = vadd.f32 %v907_v63, %v802_v0  ;;  %v6285_v39 = vld [vmem:[#allocation2 + $0xe2] sm:$0xff]  ;;  %v5305_v0 = vld [vmem:[%s6948_s3 + $0x3d0] sm:$0xff] }
  0xbe   : > { %1604 = vmatmul.bf16.gmra.mxu0 %v1515_v29  ;;  %2154 = vmatpush.bf16.msrb.mxu1 %v5292_v9  ;;  %v5315_v29 = vld [vmem:[%s6948_s3 + $0x420] sm:$0xff]  ;;  %v6251_v9 = vpack.c.bf16 %v1624_v1, %v1623_v37  ;;  %v1626_v37 = vld [vmem:[#allocation2 + $0x110] sm:$0xff] }
  0xbf   : > { %2498 = vmatpush.bf16.msra.mxu0 %v5315_v29  ;;  %2273 = vmatpush.bf16.msrb.mxu2 %v5295_v49  ;;  %v5325_v49 = vld [vmem:[%s6948_s3 + $0x470] sm:$0xff] }
  0xc1   : > { %v6166_v57 = vpop.f32.mrf.mxu3 }
  0xc2   : > { %2155 = vmatpush.bf16.msrb.mxu1 %v5291_v15  ;;  %v1625_v15 = vld [vmem:[#allocation2 + $0x100] sm:$0xff] }
  0xc3   : > { %v6153_v6 = vpop.f32.mrf.mxu0  ;;  %v1971_v19 = vpack.c.bf16 %v1625_v15, %v1624_v1 }
  0xc6   : > { %2156 = vmatpush.bf16.msrb.mxu1 %v5290_v32  ;;  %v6275_v32 = vld [vmem:[%s6054_s20 + $0x38] sm:$0xff] }
  0xc7   : > { %578 = vst [vmem:[#allocation2 + $0x121] sm:$0xff] %v6275_v32 }
  0xc8   : > { %1490 = vmatmul.bf16.gmra.mxu3 %v1401_v5 }
  0xc9   : > { %1704 = vmatmul.bf16.vlgmr.msra.gmra.mxu1 %v1627_v8  ;;  %v6191_v21 = vpop.f32.mrf.mxu3  ;;  %v5287_v8 = vld [vmem:[%s6948_s3 + $0x340] sm:$0xff] }
  0xca   : > { %1818 = vmatmul.bf16.vlgmr.msra.gmra.mxu2 %v1741_v56  ;;  %2157 = vmatpush.bf16.msrb.mxu1 %v5289_v47  ;;  %v6293_v47 = vpack.c.bf16 %v1626_v37, %v1625_v15  ;;  %v6336_v15 = vld [vmem:[#allocation2 + $0x102] sm:$0xff] }
  0xcb   : > { %v1133_v14 = vpop.f32.mrf.mxu0  ;;  %2724 = vmatpush.bf16.msra.mxu2 %v5334_v22 }
  0xce   : > { %2046 = vmatmul.bf16.vlgmr.msrb.gmra.mxu0 %v1969_v12 }
  0xd3   : > { %v1135_v26 = vpop.f32.mrf.mxu0 }
  0xd6   : > { %v804_v34 = vpop.f32.mrf.mxu1 }
  0xd7   : > { %v805_v36 = vadd.f32 %v804_v34, %v6128_v55  ;;  %v5288_v55 = vld [vmem:[%s6948_s3 + $0x348] sm:$0xff]  ;;  %v5306_v34 = vld [vmem:[%s6948_s3 + $0x3d8] sm:$0xff] }
  0xd8   : > { %1932 = vmatmul.bf16.vlgmr.msrb.gmra.mxu3 %v1855_v25  ;;  %2158 = vmatpush.bf16.msrb.mxu1 %v5288_v55  ;;  %v6309_v55 = vld [vmem:[#allocation2 + $0x120] sm:$0xff] }
  0xd9   : > { %1709 = vmatmul.bf16.gmra.mxu1 %v6196_v30 }
  0xda   : > { %1823 = vmatmul.bf16.gmra.mxu2 %v6200_v31 }
  0xdb   : > { %v1019_v38 = vpop.f32.mrf.mxu3  ;;  %v1138_v45 = vpop.f32.mrf.mxu0 }
  0xdc   : > { %v1039_v42 = vadd.f32 %v1019_v38, %v6115_v48  ;;  %v5308_v48 = vld [vmem:[%s6948_s3 + $0x3e8] sm:$0xff]  ;;  %2159 = vmatpush.bf16.msrb.mxu1 %v5287_v8 }
  0xdd   : > { %v910_v41 = vpop.f32.mrf.mxu2  ;;  %2383 = vmatpush.bf16.msra.mxu3 %v5308_v48  ;;  %v5332_v8 = vld [vmem:[%s6948_s3 + $0x4a8] sm:$0xff] }
  0xde   : > { %v927_v50 = vadd.f32 %v910_v41, %v805_v36  ;;  %v806_v52 = vpop.f32.mrf.mxu1  ;;  %v6224_v53 = vadd.f32 %v1133_v14, %v1039_v42  ;;  %2051 = vmatmul.bf16.gmra.mxu0 %v1970_v40  ;;  %v5314_v14 = vld [vmem:[%s6948_s3 + $0x418] sm:$0xff]  ;;  %v5313_v36 = vld [vmem:[%s6948_s3 + $0x410] sm:$0xff]  ;;  %v6291_v41 = vpack.c.bf16 %v6287_v28, %v6285_v39 }
  0xdf   : > { %v807_v54 = vadd.f32 %v806_v52, %v6153_v6  ;;  %v6243_v6 = vpack.c.bf16 %v6239_v62, %v6237_v59  ;;  %2499 = vmatpush.bf16.msra.mxu0 %v5314_v14  ;;  %v5333_v52 = vld [vmem:[%s6948_s3 + $0x4b0] sm:$0xff]  ;;  %v5311_v14 = vld [vmem:[%s6948_s3 + $0x400] sm:$0xff] }
  0xe0   : > { %2609 = vmatpush.bf16.msra.mxu1 %v5326_v51  ;;  %2725 = vmatpush.bf16.msra.mxu2 %v5333_v52 }
  0xe1   : > { %2384 = vmatpush.bf16.msra.mxu3 %v5307_v13  ;;  %v5304_v13 = vld [vmem:[%s6948_s3 + $0x3c8] sm:$0xff] }
  0xe3   : > { %v1021_v2 = vpop.f32.mrf.mxu3  ;;  %v1140_v7 = vpop.f32.mrf.mxu0  ;;  %2500 = vmatpush.bf16.msra.mxu0 %v5313_v36  ;;  %v5331_v36 = vld [vmem:[%s6948_s3 + $0x4a0] sm:$0xff] }
  0xe4   : > { %v1040_v5 = vadd.f32 %v1021_v2, %v926_v17  ;;  %v5312_v17 = vld [vmem:[%s6948_s3 + $0x408] sm:$0xff]  ;;  %2610 = vmatpush.bf16.msra.mxu1 %v5325_v49  ;;  %2726 = vmatpush.bf16.msra.mxu2 %v5332_v8 }
  0xe5   : > { %v912_v4 = vpop.f32.mrf.mxu2  ;;  %2385 = vmatpush.bf16.msra.mxu3 %v5306_v34  ;;  %v5324_v34 = vld [vmem:[%s6948_s3 + $0x468] sm:$0xff] }
  0xe6   : > { %v928_v56 = vadd.f32 %v912_v4, %v807_v54  ;;  %v809_v3 = vpop.f32.mrf.mxu1  ;;  %v6257_v11 = vadd.f32 %v1135_v26, %v1040_v5 }
  0xe7   : > { %v810_v12 = vadd.f32 %v809_v3, %v6113_v46  ;;  %2501 = vmatpush.bf16.msra.mxu0 %v5312_v17 }
  0xe8   : > { %1937 = vmatmul.bf16.gmra.mxu3 %v6243_v6  ;;  %2611 = vmatpush.bf16.msra.mxu1 %v5324_v34  ;;  %v5320_v34 = vld [vmem:[%s6948_s3 + $0x448] sm:$0xff] }
  0xe9   : > { %1714 = vmatmul.bf16.gmra.mxu1 %v6251_v9  ;;  %2386 = vmatpush.bf16.msra.mxu3 %v5305_v0  ;;  %v5349_v0 = vld [vmem:[%s6948_s3 + $0x530] sm:$0xff] }
  0xea   : > { %1828 = vmatmul.bf16.gmra.mxu2 %v6255_v10 }
  0xeb   : > { %v1024_v35 = vpop.f32.mrf.mxu3  ;;  %v1143_v23 = vpop.f32.mrf.mxu0  ;;  %2502 = vmatpush.bf16.msra.mxu0 %v5311_v14  ;;  %2727 = vmatpush.bf16.msra.mxu2 %v5331_v36  ;;  %v6417_v14 = vstv %s589_s15 }
  0xec   : > { %v1041_v20 = vadd.f32 %v1024_v35, %v927_v50  ;;  %v6297_v50 = vpack.c.bf16 %v6181_v18, %v6178_v16  ;;  %v6338_v35 = vld [vmem:[#allocation2 + $0x112] sm:$0xff] }
  0xed   : > { %v915_v46 = vpop.f32.mrf.mxu2  ;;  %2387 = vmatpush.bf16.msra.mxu3 %v5304_v13  ;;  %v579_v13 = vld [vmem:[%s6405_s22] sm:$0xff] }
  0xee   : > { %v929_v63 = vadd.f32 %v915_v46, %v810_v12  ;;  %v811_v25 = vpop.f32.mrf.mxu1  ;;  %v6272_v26 = vadd.f32 %v1138_v45, %v1041_v20  ;;  %2056 = vmatmul.bf16.gmra.mxu0 %v1971_v19  ;;  %v6346_v20 = vpack.c.bf16 %v6338_v35, %v6336_v15 }
  0xef   : > { %v812_v33 = vadd.f32 %v811_v25, %v6130_v58  ;;  %v2083_v25 = vpack.c.bf16 %v6105_v43, %v6069_v27  ;;  %v5350_v27 = vld [vmem:[%s6948_s3 + $0x538] sm:$0xff] }
  0xf0   : > { %2952 = vmatpush.bf16.msrb.mxu0 %v5350_v27  ;;  %v5319_v27 = vld [vmem:[%s6948_s3 + $0x440] sm:$0xff] }
  0xf3   : > { %v1026_v58 = vpop.f32.mrf.mxu3  ;;  %v1145_v42 = vpop.f32.mrf.mxu0 }
  0xf4   : > { %v1042_v40 = vadd.f32 %v1026_v58, %v928_v56  ;;  %2953 = vmatpush.bf16.msrb.mxu0 %v5349_v0 }
  0xf5   : > { %v917_v38 = vpop.f32.mrf.mxu2 }
  0xf6   : > { %v930_v45 = vadd.f32 %v917_v38, %v812_v33  ;;  %v814_v54 = vpop.f32.mrf.mxu1  ;;  %v6305_v48 = vadd.f32 %v1140_v7, %v1042_v40  ;;  %v2197_v33 = vpack.c.bf16 %v6237_v59, %v6193_v24 }
  0xf7   : > { %v815_v29 = vadd.f32 %v814_v54, %v6166_v57  ;;  %v1972_v57 = vpack.c.bf16 %v6309_v55, %v1626_v37 }
  0xf8   : > { %1942 = vmatmul.bf16.gmra.mxu3 %v6291_v41 }
  0xf9   : > { %1719 = vmatmul.bf16.gmra.mxu1 %v6293_v47 }
  0xfa   : > { %1833 = vmatmul.bf16.gmra.mxu2 %v6297_v50 }
  0xfb   : > { %v1029_v1 = vpop.f32.mrf.mxu3  ;;  %v1148_v5 = vpop.f32.mrf.mxu0 }
  0xfc   : > { %v1043_v4 = vadd.f32 %v1029_v1, %v929_v63  ;;  %v5303_v63 = vld [vmem:[%s6948_s3 + $0x3c0] sm:$0xff] }
  0xfd   : > { %v920_v2 = vpop.f32.mrf.mxu2  ;;  %2388 = vmatpush.bf16.msra.mxu3 %v5303_v63 }
  0xfe   : > { %v931_v7 = vadd.f32 %v920_v2, %v815_v29  ;;  %v816_v56 = vpop.f32.mrf.mxu1  ;;  %v6326_v3 = vadd.f32 %v1143_v23, %v1043_v4  ;;  %2061 = vmatmul.bf16.gmra.mxu0 %v1972_v57  ;;  %v5342_v29 = vld [vmem:[%s6948_s3 + $0x4f8] sm:$0xff]  ;;  %v2084_v2 = vpack.c.bf16 %v6139_v60, %v6108_v44  ;;  %v2198_v4 = vpack.c.bf16 %v6285_v39, %v6239_v62  ;;  %v5341_v44 = vld [vmem:[%s6948_s3 + $0x4f0] sm:$0xff]  ;;  %v5348_v60 = vld [vmem:[%s6948_s3 + $0x528] sm:$0xff] }
  0xff   : > { %v817_v12 = vadd.f32 %v816_v56, %v6191_v21  ;;  %2954 = vmatpush.bf16.msrb.mxu0 %v5348_v60  ;;  %v5358_v60 = vld [vmem:[%s6948_s3 + $0x578] sm:$0xff] }
 0x101   : > { %2838 = vmatpush.bf16.msrb.mxu3 %v5342_v29 }
 0x103   : > { %v1031_v21 = vpop.f32.mrf.mxu3  ;;  %v1150_v23 = vpop.f32.mrf.mxu0 }
 0x104   : > { %v1044_v46 = vadd.f32 %v1031_v21, %v930_v45  ;;  %v5330_v45 = vld [vmem:[%s6948_s3 + $0x498] sm:$0xff] }
 0x105   : > { %v922_v19 = vpop.f32.mrf.mxu2  ;;  %2728 = vmatpush.bf16.msra.mxu2 %v5330_v45  ;;  %2839 = vmatpush.bf16.msrb.mxu3 %v5341_v44 }
 0x106   : > { %v932_v22 = vadd.f32 %v922_v19, %v817_v12  ;;  %v1247_v37 = vpop.f32.mrf.mxu1  ;;  %v6361_v58 = vadd.f32 %v1145_v42, %v1044_v46  ;;  %v5321_v12 = vld [vmem:[%s6948_s3 + $0x450] sm:$0xff]  ;;  %v5328_v19 = vld [vmem:[%s6948_s3 + $0x488] sm:$0xff]  ;;  %v6423_v46 = vmul.f32 %v6417_v14, %v579_v13 }
 0x107   : > { %v1267_v38 = vadd.f32 %v1247_v37, %v6224_v53  ;;  %v5323_v53 = vld [vmem:[%s6948_s3 + $0x460] sm:$0xff] }
 0x108   : > { %1947 = vmatmul.bf16.gmra.mxu3 %v6346_v20  ;;  %2612 = vmatpush.bf16.msra.mxu1 %v5323_v53  ;;  %600 = vst [vmem:[#allocation2 + $0x151] sm:$0xff] %v6423_v46 }
 0x109   : > { %2160 = vmatmul.bf16.vlgmr.msrb.gmra.mxu1 %v2083_v25  ;;  %v5340_v25 = vld [vmem:[%s6948_s3 + $0x4e8] sm:$0xff] }
 0x10a   : > { %2274 = vmatmul.bf16.vlgmr.msrb.gmra.mxu2 %v2197_v33  ;;  %v5347_v33 = vld [vmem:[%s6948_s3 + $0x520] sm:$0xff]  ;;  %2840 = vmatpush.bf16.msrb.mxu3 %v5340_v25 }
 0x10b   : > { %v1034_v43 = vpop.f32.mrf.mxu3  ;;  %v1590_v40 = vpop.f32.mrf.mxu0  ;;  %2955 = vmatpush.bf16.msrb.mxu0 %v5347_v33  ;;  %v5357_v33 = vld [vmem:[%s6948_s3 + $0x570] sm:$0xff] }
 0x10c   : > { %v1045_v59 = vadd.f32 %v1034_v43, %v931_v7  ;;  %v5329_v7 = vld [vmem:[%s6948_s3 + $0x490] sm:$0xff] }
 0x10d   : > { %v1362_v24 = vpop.f32.mrf.mxu2  ;;  %2729 = vmatpush.bf16.msra.mxu2 %v5329_v7 }
 0x10e   : > { %v1382_v42 = vadd.f32 %v1362_v24, %v1267_v38  ;;  %v1249_v51 = vpop.f32.mrf.mxu1  ;;  %v6377_v52 = vadd.f32 %v1148_v5, %v1045_v59  ;;  %2503 = vmatmul.bf16.vlgmr.msra.gmra.mxu0 %v6200_v31  ;;  %v5322_v5 = vld [vmem:[%s6948_s3 + $0x458] sm:$0xff]  ;;  %v5327_v38 = vld [vmem:[%s6948_s3 + $0x480] sm:$0xff]  ;;  %v2085_v24 = vpack.c.bf16 %v6178_v16, %v6142_v61  ;;  %v2199_v59 = vpack.c.bf16 %v6336_v15, %v6287_v28 }
 0x10f   : > { %v1268_v54 = vadd.f32 %v1249_v51, %v6257_v11  ;;  %2613 = vmatpush.bf16.msra.mxu1 %v5322_v5  ;;  %v5339_v61 = vld [vmem:[%s6948_s3 + $0x4e0] sm:$0xff]  ;;  %v5346_v16 = vld [vmem:[%s6948_s3 + $0x518] sm:$0xff] }
 0x110   : > { %2841 = vmatpush.bf16.msrb.mxu3 %v5339_v61  ;;  %2956 = vmatpush.bf16.msrb.mxu0 %v5346_v16  ;;  %v5335_v16 = vld [vmem:[%s6948_s3 + $0x4c0] sm:$0xff] }
 0x111   : > { %2730 = vmatpush.bf16.msra.mxu2 %v5328_v19 }
 0x113   : > { %v1036_v17 = vpop.f32.mrf.mxu3  ;;  %v1592_v11 = vpop.f32.mrf.mxu0  ;;  %2614 = vmatpush.bf16.msra.mxu1 %v5321_v12  ;;  %v5344_v12 = vld [vmem:[%s6948_s3 + $0x508] sm:$0xff] }
 0x114   : > { %v1046_v57 = vadd.f32 %v1036_v17, %v932_v22 }
 0x115   : > { %v1364_v1 = vpop.f32.mrf.mxu2  ;;  %2731 = vmatpush.bf16.msra.mxu2 %v5327_v38  ;;  %v5336_v38 = vld [vmem:[%s6948_s3 + $0x4c8] sm:$0xff] }
 0x116   : > { %v1383_v31 = vadd.f32 %v1364_v1, %v1268_v54  ;;  %v1252_v49 = vpop.f32.mrf.mxu1  ;;  %v6398_v8 = vadd.f32 %v1150_v23, %v1046_v57  ;;  %v580_v54 = vld [vmem:[%s6405_s22 + $0x8] sm:$0xff] }
 0x117   : > { %v1269_v56 = vadd.f32 %v1252_v49, %v6272_v26  ;;  %2615 = vmatpush.bf16.msra.mxu1 %v5320_v34  ;;  %v6465_v0 = vmul.f32 %v6417_v14, %v580_v54  ;;  %v5364_v34 = vld [vmem:[%s6948_s3 + $0x5a8] sm:$0xff] }
 0x118   : > { %2389 = vmatmul.bf16.vlgmr.msra.gmra.mxu3 %v6196_v30 }
 0x119   : > { %2165 = vmatmul.bf16.gmra.mxu1 %v2084_v2  ;;  %v5345_v2 = vld [vmem:[%s6948_s3 + $0x510] sm:$0xff]  ;;  %601 = vst [vmem:[#allocation2 + $0x161] sm:$0xff] %v6465_v0 }
 0x11a   : > { %2279 = vmatmul.bf16.gmra.mxu2 %v2198_v4  ;;  %2957 = vmatpush.bf16.msrb.mxu0 %v5345_v2  ;;  %v6482_v4 = vld [vmem:[#allocation2 + $0x122] sm:$0xff] }
 0x11b   : > { %v1476_v62 = vpop.f32.mrf.mxu3  ;;  %v1595_v39 = vpop.f32.mrf.mxu0  ;;  %2616 = vmatpush.bf16.msra.mxu1 %v5319_v27  ;;  %v2200_v44 = vpack.c.bf16 %v6482_v4, %v6338_v35  ;;  %v5337_v35 = vld [vmem:[%s6948_s3 + $0x4d0] sm:$0xff]  ;;  %v5343_v27 = vld [vmem:[%s6948_s3 + $0x500] sm:$0xff] }
 0x11c   : > { %v1496_v26 = vadd.f32 %v1476_v62, %v1382_v42  ;;  %v5365_v62 = vld [vmem:[%s6948_s3 + $0x5b0] sm:$0xff] }
 0x11d   : > { %v1367_v30 = vpop.f32.mrf.mxu2 }
 0x11e   : > { %v1384_v21 = vadd.f32 %v1367_v30, %v1269_v56  ;;  %v1254_v23 = vpop.f32.mrf.mxu1  ;;  %v6425_v63 = vadd.f32 %v1590_v40, %v1496_v26  ;;  %2508 = vmatmul.bf16.gmra.mxu0 %v6255_v10  ;;  %v2086_v56 = vpack.c.bf16 %v6275_v32, %v6181_v18  ;;  %v2425_v18 = vld [vmem:[#allocation2 + $0x131] sm:$0xff] }
 0x11f   : > { %v1270_v22 = vadd.f32 %v1254_v23, %v6305_v48  ;;  %3066 = vmatpush.bf16.msrb.mxu1 %v5358_v60  ;;  %2958 = vmatpush.bf16.msrb.mxu0 %v5344_v12 }
 0x120   : > { %v6582_v12 = vld [vmem:[#allocation2 + $0x160] sm:$0xff] }
 0x123   : > { %v1478_v48 = vpop.f32.mrf.mxu3  ;;  %v1597_v37 = vpop.f32.mrf.mxu0  ;;  %3067 = vmatpush.bf16.msrb.mxu1 %v5357_v33  ;;  %2959 = vmatpush.bf16.msrb.mxu0 %v5343_v27  ;;  %v5361_v33 = vld [vmem:[%s6948_s3 + $0x590] sm:$0xff] }
 0x124   : > { %v1497_v36 = vadd.f32 %v1478_v48, %v1383_v31  ;;  %v5338_v31 = vld [vmem:[%s6948_s3 + $0x4d8] sm:$0xff] }
 0x125   : > { %v1369_v10 = vpop.f32.mrf.mxu2  ;;  %2842 = vmatpush.bf16.msrb.mxu3 %v5338_v31 }
 0x126   : > { %v1385_v43 = vadd.f32 %v1369_v10, %v1270_v22  ;;  %v1257_v40 = vpop.f32.mrf.mxu1  ;;  %v6449_v42 = vadd.f32 %v1592_v11, %v1497_v36  ;;  %v583_v22 = vld [vmem:[%s6405_s22 + $0x20] sm:$0xff] }
 0x127   : > { %v1271_v53 = vadd.f32 %v1257_v40, %v6326_v3  ;;  %v581_v3 = vld [vmem:[%s6405_s22 + $0x10] sm:$0xff]  ;;  %v6532_v40 = vld [vmem:[#allocation2] sm:$0xff] }
 0x128   : > { %2394 = vmatmul.bf16.gmra.mxu3 %v6251_v9  ;;  %v5366_v9 = vld [vmem:[%s6948_s3 + $0x5b8] sm:$0xff]  ;;  %v6468_v17 = vmul.f32 %v6417_v14, %v581_v3 }
 0x129   : > { %2170 = vmatmul.bf16.gmra.mxu1 %v2085_v24  ;;  %3180 = vmatpush.bf16.msrb.mxu2 %v5366_v9  ;;  %v6550_v9 = vld [vmem:[#allocation2 + $0x152] sm:$0xff] }
 0x12a   : > { %2284 = vmatmul.bf16.gmra.mxu2 %v2199_v59  ;;  %602 = vst [vmem:[#allocation2 + $0x171] sm:$0xff] %v6468_v17  ;;  %2843 = vmatpush.bf16.msrb.mxu3 %v5337_v35  ;;  %v2761_v35 = vld [vmem:[#allocation2 + $0x141] sm:$0xff] }
 0x12b   : > { %v1481_v28 = vpop.f32.mrf.mxu3  ;;  %v1600_v51 = vpop.f32.mrf.mxu0 }
 0x12c   : > { %v1498_v45 = vadd.f32 %v1481_v28, %v1384_v21 }
 0x12d   : > { %v1372_v15 = vpop.f32.mrf.mxu2  ;;  %3181 = vmatpush.bf16.msrb.mxu2 %v5365_v62 }
 0x12e   : > { %v1386_v29 = vadd.f32 %v1372_v15, %v1271_v53  ;;  %v1259_v1 = vpop.f32.mrf.mxu1  ;;  %v6470_v57 = vadd.f32 %v1595_v39, %v1498_v45  ;;  %2513 = vmatmul.bf16.gmra.mxu0 %v6297_v50  ;;  %2844 = vmatpush.bf16.msrb.mxu3 %v5336_v38  ;;  %v2315_v53 = vpack.c.bf16 %v6532_v40, %v6309_v55  ;;  %v5356_v45 = vld [vmem:[%s6948_s3 + $0x568] sm:$0xff] }
 0x12f   : > { %v1272_v11 = vadd.f32 %v1259_v1, %v6361_v58  ;;  %3068 = vmatpush.bf16.msrb.mxu1 %v5356_v45  ;;  %v5382_v1 = vld [vmem:[%s6948_s3 + $0x638] sm:$0xff]  ;;  %v6600_v38 = vld [vmem:[#allocation2 + $0x162] sm:$0xff] }
 0x130   : > { %3409 = vmatpush.bf16.msra.mxu0 %v5382_v1  ;;  %v5352_v1 = vld [vmem:[%s6948_s3 + $0x548] sm:$0xff] }
 0x131   : > { %3182 = vmatpush.bf16.msrb.mxu2 %v5364_v34  ;;  %v6602_v27 = vld [vmem:[#allocation2 + $0x172] sm:$0xff] }
 0x132   : > { %2845 = vmatpush.bf16.msrb.mxu3 %v5335_v16  ;;  %v5353_v16 = vld [vmem:[%s6948_s3 + $0x550] sm:$0xff] }
 0x133   : > { %v1483_v58 = vpop.f32.mrf.mxu3  ;;  %v1602_v7 = vpop.f32.mrf.mxu0 }
 0x134   : > { %v1499_v50 = vadd.f32 %v1483_v58, %v1385_v43  ;;  %v6530_v43 = vld [vmem:[#allocation2 + $0x150] sm:$0xff] }
 0x135   : > { %v1374_v5 = vpop.f32.mrf.mxu2  ;;  %v2655_v15 = vpack.c.bf16 %v6530_v43, %v6532_v40 }
 0x136   : > { %v1387_v49 = vadd.f32 %v1374_v5, %v1272_v11  ;;  %v1262_v30 = vpop.f32.mrf.mxu1  ;;  %v6494_v26 = vadd.f32 %v1597_v37, %v1499_v50  ;;  %v584_v5 = vld [vmem:[%s6405_s22 + $0x28] sm:$0xff]  ;;  %v585_v50 = vld [vmem:[%s6405_s22 + $0x30] sm:$0xff] }
 0x137   : > { %v1273_v39 = vadd.f32 %v1262_v30, %v6377_v52  ;;  %v2429_v52 = vpack.c.bf16 %v2425_v18, %v6275_v32  ;;  %v6517_v32 = vmul.f32 %v6417_v14, %v583_v22  ;;  %v5381_v18 = vld [vmem:[%s6948_s3 + $0x630] sm:$0xff] }
 0x138   : > { %2399 = vmatmul.bf16.gmra.mxu3 %v6293_v47  ;;  %v582_v47 = vld [vmem:[%s6405_s22 + $0x18] sm:$0xff]  ;;  %3410 = vmatpush.bf16.msra.mxu0 %v5381_v18 }
 0x139   : > { %2175 = vmatmul.bf16.gmra.mxu1 %v2086_v56  ;;  %v6514_v48 = vmul.f32 %v6417_v14, %v582_v47  ;;  %604 = vst [vmem:[#allocation2 + $0x191] sm:$0xff] %v6517_v32  ;;  %v6566_v56 = vmul.f32 %v6417_v14, %v584_v5 }
 0x13a   : > { %2289 = vmatmul.bf16.gmra.mxu2 %v2200_v44  ;;  %v6569_v44 = vmul.f32 %v6417_v14, %v585_v50  ;;  %v5359_v50 = vld [vmem:[%s6948_s3 + $0x580] sm:$0xff] }
 0x13b   : > { %v1486_v13 = vpop.f32.mrf.mxu3  ;;  %v1605_v23 = vpop.f32.mrf.mxu0  ;;  %603 = vst [vmem:[#allocation2 + $0x181] sm:$0xff] %v6514_v48 }
 0x13c   : > { %v1500_v19 = vadd.f32 %v1486_v13, %v1386_v29  ;;  %v2875_v29 = vld [vmem:[#allocation2 + $0x142] sm:$0xff]  ;;  %605 = vst [vmem:[#allocation2 + $0x1a1] sm:$0xff] %v6566_v56 }
 0x13d   : > { %v1377_v21 = vpop.f32.mrf.mxu2  ;;  %v2883_v31 = vpack.c.bf16 %v6550_v9, %v2875_v29  ;;  %606 = vst [vmem:[#allocation2 + $0x1b1] sm:$0xff] %v6569_v44  ;;  %v5379_v29 = vld [vmem:[%s6948_s3 + $0x620] sm:$0xff] }
 0x13e   : > { %v1388_v25 = vadd.f32 %v1377_v21, %v1273_v39  ;;  %v1264_v10 = vpop.f32.mrf.mxu1  ;;  %v6519_v36 = vadd.f32 %v1600_v51, %v1500_v19  ;;  %2518 = vmatmul.bf16.gmra.mxu0 %v2429_v52  ;;  %v5363_v51 = vld [vmem:[%s6948_s3 + $0x5a0] sm:$0xff]  ;;  %v5374_v39 = vld [vmem:[%s6948_s3 + $0x5f8] sm:$0xff]  ;;  %v2769_v19 = vpack.c.bf16 %v6423_v46, %v2761_v35 }
 0x13f   : > { %v1274_v37 = vadd.f32 %v1264_v10, %v6398_v8  ;;  %3183 = vmatpush.bf16.msrb.mxu2 %v5363_v51  ;;  %3294 = vmatpush.bf16.msra.mxu3 %v5374_v39 }
 0x140   : > { %v6659_v35 = vld [vmem:[#allocation2 + $0x192] sm:$0xff] }
 0x142   : > { %v6657_v18 = vld [vmem:[#allocation2 + $0x182] sm:$0xff] }
 0x143   : > { %v1488_v8 = vpop.f32.mrf.mxu3  ;;  %v1607_v61 = vpop.f32.mrf.mxu0 }
 0x144   : > { %v1501_v59 = vadd.f32 %v1488_v8, %v1387_v49  ;;  %v5355_v49 = vld [vmem:[%s6948_s3 + $0x560] sm:$0xff]  ;;  %v5373_v8 = vld [vmem:[%s6948_s3 + $0x5f0] sm:$0xff] }
 0x145   : > { %v1379_v24 = vpop.f32.mrf.mxu2  ;;  %3069 = vmatpush.bf16.msrb.mxu1 %v5355_v49  ;;  %3295 = vmatpush.bf16.msra.mxu3 %v5373_v8  ;;  %v5370_v8 = vld [vmem:[%s6948_s3 + $0x5d8] sm:$0xff] }
 0x146   : > { %v1389_v28 = vadd.f32 %v1379_v24, %v1274_v37  ;;  %v1705_v54 = vpop.f32.mrf.mxu1  ;;  %v6547_v55 = vadd.f32 %v1602_v7, %v1501_v59  ;;  %v5380_v24 = vld [vmem:[%s6948_s3 + $0x628] sm:$0xff]  ;;  %v6614_v59 = vpack.c.bf16 %v6602_v27, %v6600_v38 }
 0x147   : > { %v1725_v3 = vadd.f32 %v1705_v54, %v6425_v63  ;;  %3411 = vmatpush.bf16.msra.mxu0 %v5380_v24  ;;  %v5377_v24 = vld [vmem:[%s6948_s3 + $0x610] sm:$0xff] }
 0x148   : > { %2404 = vmatmul.bf16.gmra.mxu3 %v2315_v53 }
 0x149   : > { %2617 = vmatmul.bf16.vlgmr.msra.gmra.mxu1 %v6243_v6  ;;  %v5362_v6 = vld [vmem:[%s6948_s3 + $0x598] sm:$0xff] }
 0x14a   : > { %2732 = vmatmul.bf16.vlgmr.msra.gmra.mxu2 %v2655_v15  ;;  %v5360_v15 = vld [vmem:[%s6948_s3 + $0x588] sm:$0xff] }
 0x14b   : > { %v1491_v11 = vpop.f32.mrf.mxu3  ;;  %v2047_v58 = vpop.f32.mrf.mxu0  ;;  %3184 = vmatpush.bf16.msrb.mxu2 %v5362_v6  ;;  %3412 = vmatpush.bf16.msra.mxu0 %v5379_v29  ;;  %v5390_v29 = vld [vmem:[%s6948_s3 + $0x678] sm:$0xff] }
 0x14c   : > { %v1502_v63 = vadd.f32 %v1491_v11, %v1388_v25  ;;  %v5354_v25 = vld [vmem:[%s6948_s3 + $0x558] sm:$0xff]  ;;  %v6635_v11 = vld [vmem:[#allocation2 + $0x180] sm:$0xff] }
 0x14d   : > { %v1819_v2 = vpop.f32.mrf.mxu2  ;;  %3070 = vmatpush.bf16.msrb.mxu1 %v5354_v25  ;;  %v6676_v25 = vld [vmem:[%s6948_s3 + $0x6b8] sm:$0xff] }
 0x14e   : > { %v1839_v7 = vadd.f32 %v1819_v2, %v1725_v3  ;;  %v1707_v60 = vpop.f32.mrf.mxu1  ;;  %v6571_v62 = vadd.f32 %v1605_v23, %v1502_v63  ;;  %2960 = vmatmul.bf16.vlgmr.msrb.gmra.mxu0 %v2883_v31  ;;  %v5372_v3 = vld [vmem:[%s6948_s3 + $0x5e8] sm:$0xff] }
 0x14f   : > { %v1726_v30 = vadd.f32 %v1707_v60, %v6449_v42  ;;  %v6584_v42 = vld [vmem:[#allocation2 + $0x170] sm:$0xff]  ;;  %3185 = vmatpush.bf16.msrb.mxu2 %v5361_v33  ;;  %3296 = vmatpush.bf16.msra.mxu3 %v5372_v3 }
 0x150   : > { %v6589_v22 = vpack.c.bf16 %v6584_v42, %v6582_v12 }
 0x151   : > { %3071 = vmatpush.bf16.msrb.mxu1 %v5353_v16 }
 0x153   : > { %v1493_v13 = vpop.f32.mrf.mxu3  ;;  %v2049_v23 = vpop.f32.mrf.mxu0  ;;  %3186 = vmatpush.bf16.msrb.mxu2 %v5360_v15 }
 0x154   : > { %v1503_v21 = vadd.f32 %v1493_v13, %v1389_v28  ;;  %v5371_v13 = vld [vmem:[%s6948_s3 + $0x5e0] sm:$0xff] }
 0x155   : > { %v1821_v52 = vpop.f32.mrf.mxu2  ;;  %3072 = vmatpush.bf16.msrb.mxu1 %v5352_v1  ;;  %3297 = vmatpush.bf16.msra.mxu3 %v5371_v13  ;;  %v6708_v1 = vld [vmem:[%s6948_s3 + $0x6b0] sm:$0xff] }
 0x156   : > { %v1840_v47 = vadd.f32 %v1821_v52, %v1726_v30  ;;  %v1710_v34 = vpop.f32.mrf.mxu1  ;;  %v6597_v10 = vadd.f32 %v1607_v61, %v1503_v21  ;;  %v5378_v52 = vld [vmem:[%s6948_s3 + $0x618] sm:$0xff] }
 0x157   : > { %v1727_v37 = vadd.f32 %v1710_v34, %v6470_v57  ;;  %3187 = vmatpush.bf16.msrb.mxu2 %v5359_v50  ;;  %3413 = vmatpush.bf16.msra.mxu0 %v5378_v52  ;;  %v6717_v50 = vld [vmem:[#allocation2 + $0x1b2] sm:$0xff] }
 0x158   : > { %2846 = vmatmul.bf16.vlgmr.msrb.gmra.mxu3 %v2769_v19 }
 0x159   : > { %2622 = vmatmul.bf16.gmra.mxu1 %v6291_v41  ;;  %3298 = vmatpush.bf16.msra.mxu3 %v5370_v8  ;;  %v5375_v8 = vld [vmem:[%s6948_s3 + $0x600] sm:$0xff] }
 0x15a   : > { %2737 = vmatmul.bf16.gmra.mxu2 %v6589_v22 }
 0x15b   : > { %v1933_v57 = vpop.f32.mrf.mxu3  ;;  %v2052_v41 = vpop.f32.mrf.mxu0  ;;  %3637 = vmatpush.bf16.msra.mxu2 %v6676_v25  ;;  %3414 = vmatpush.bf16.msra.mxu0 %v5377_v24 }
 0x15c   : > { %v1953_v61 = vadd.f32 %v1933_v57, %v1839_v7  ;;  %v5351_v7 = vld [vmem:[%s6948_s3 + $0x540] sm:$0xff]  ;;  %v2539_v57 = vld [vmem:[#allocation2 + $0x132] sm:$0xff] }
 0x15d   : > { %v1824_v53 = vpop.f32.mrf.mxu2  ;;  %3073 = vmatpush.bf16.msrb.mxu1 %v5351_v7  ;;  %v5369_v7 = vld [vmem:[%s6948_s3 + $0x5d0] sm:$0xff] }
 0x15e   : > { %v1841_v28 = vadd.f32 %v1824_v53, %v1727_v37  ;;  %v1712_v45 = vpop.f32.mrf.mxu1  ;;  %v6622_v51 = vadd.f32 %v2047_v58, %v1953_v61  ;;  %2965 = vmatmul.bf16.gmra.mxu0 %v6614_v59  ;;  %v6641_v58 = vpack.c.bf16 %v6468_v17, %v6465_v0  ;;  %v6689_v53 = vld [vmem:[#allocation2 + $0x1a0] sm:$0xff]  ;;  %v6691_v61 = vld [vmem:[#allocation2 + $0x1b0] sm:$0xff]  ;;  %3299 = vmatpush.bf16.msra.mxu3 %v5369_v7 }
 0x15f   : > { %v1728_v54 = vadd.f32 %v1712_v45, %v6494_v26  ;;  %v6637_v26 = vld [vmem:[#allocation2 + $0x190] sm:$0xff]  ;;  %v6700_v3 = vpack.c.bf16 %v6691_v61, %v6689_v53  ;;  %3638 = vmatpush.bf16.msra.mxu2 %v6708_v1 }
 0x160   : > { %v6651_v6 = vpack.c.bf16 %v6637_v26, %v6635_v11 }
 0x161   : > { %5407 = vmatpush.bf16.msra.mxu1 %v5390_v29 }
 0x163   : > { %v1935_v31 = vpop.f32.mrf.mxu3  ;;  %v2054_v5 = vpop.f32.mrf.mxu0 }
 0x164   : > { %v1954_v63 = vadd.f32 %v1935_v31, %v1840_v47 }
 0x165   : > { %v1826_v2 = vpop.f32.mrf.mxu2 }
 0x166   : > { %v1842_v49 = vadd.f32 %v1826_v2, %v1728_v54  ;;  %v1715_v60 = vpop.f32.mrf.mxu1  ;;  %v6653_v30 = vadd.f32 %v2049_v23, %v1954_v63  ;;  %v2543_v54 = vpack.c.bf16 %v2539_v57, %v6482_v4  ;;  %v6715_v4 = vld [vmem:[#allocation2 + $0x1a2] sm:$0xff] }
 0x167   : > { %v1729_v39 = vadd.f32 %v1715_v60, %v6519_v36  ;;  %v6671_v36 = vpack.c.bf16 %v6659_v35, %v6657_v18 }
 0x168   : > { %2851 = vmatmul.bf16.gmra.mxu3 %v6641_v58 }
 0x169   : > { %2627 = vmatmul.bf16.gmra.mxu1 %v6346_v20 }
 0x16a   : > { %2742 = vmatmul.bf16.gmra.mxu2 %v6651_v6 }
 0x16b   : > { %v1938_v21 = vpop.f32.mrf.mxu3  ;;  %v2057_v20 = vpop.f32.mrf.mxu0 }
 0x16c   : > { %v1955_v23 = vadd.f32 %v1938_v21, %v1841_v28  ;;  %v6695_v28 = vpack.c.bf16 %v6517_v32, %v6514_v48  ;;  %v5389_v21 = vld [vmem:[%s6948_s3 + $0x670] sm:$0xff] }
 0x16d   : > { %v1829_v19 = vpop.f32.mrf.mxu2  ;;  %5408 = vmatpush.bf16.msra.mxu1 %v5389_v21 }
 0x16e   : > { %v1843_v47 = vadd.f32 %v1829_v19, %v1729_v39  ;;  %v1717_v33 = vpop.f32.mrf.mxu1  ;;  %v6678_v34 = vadd.f32 %v2052_v41, %v1955_v23  ;;  %2970 = vmatmul.bf16.gmra.mxu0 %v6671_v36  ;;  %v5396_v19 = vld [vmem:[%s6948_s3 + $0x6a8] sm:$0xff] }
 0x16f   : > { %v1730_v37 = vadd.f32 %v1717_v33, %v6547_v55  ;;  %3639 = vmatpush.bf16.msra.mxu2 %v5396_v19 }
 0x173   : > { %v1940_v55 = vpop.f32.mrf.mxu3  ;;  %v2059_v15 = vpop.f32.mrf.mxu0 }
 0x174   : > { %v1956_v16 = vadd.f32 %v1940_v55, %v1842_v49  ;;  %v6728_v49 = vpack.c.bf16 %v6717_v50, %v6715_v4 }
 0x175   : > { %v1831_v41 = vpop.f32.mrf.mxu2 }
 0x176   : > { %v1844_v45 = vadd.f32 %v1831_v41, %v1730_v37  ;;  %v1720_v31 = vpop.f32.mrf.mxu1  ;;  %v6710_v2 = vadd.f32 %v2054_v5, %v1956_v16  ;;  %v5367_v41 = vld [vmem:[%s6948_s3 + $0x5c0] sm:$0xff] }
 0x177   : > { %v1731_v63 = vadd.f32 %v1720_v31, %v6571_v62  ;;  %v5376_v62 = vld [vmem:[%s6948_s3 + $0x608] sm:$0xff]  ;;  %v3111_v31 = vpack.c.bf16 %v6465_v0, %v6423_v46 }
 0x178   : > { %2856 = vmatmul.bf16.gmra.mxu3 %v6695_v28  ;;  %3415 = vmatpush.bf16.msra.mxu0 %v5376_v62 }
 0x179   : > { %2632 = vmatmul.bf16.gmra.mxu1 %v2543_v54  ;;  %v2997_v54 = vpack.c.bf16 %v6582_v12, %v6530_v43 }
 0x17a   : > { %2747 = vmatmul.bf16.gmra.mxu2 %v6700_v3 }
 0x17b   : > { %v1943_v5 = vpop.f32.mrf.mxu3  ;;  %v2062_v13 = vpop.f32.mrf.mxu0 }
 0x17c   : > { %v1957_v39 = vadd.f32 %v1943_v5, %v1843_v47  ;;  %v5368_v47 = vld [vmem:[%s6948_s3 + $0x5c8] sm:$0xff]  ;;  %3416 = vmatpush.bf16.msra.mxu0 %v5375_v8  ;;  %v586_v5 = vld [vmem:[%s6405_s22 + $0x38] sm:$0xff] }
 0x17d   : > { %v1834_v60 = vpop.f32.mrf.mxu2  ;;  %3300 = vmatpush.bf16.msra.mxu3 %v5368_v47 }
 0x17e   : > { %v1845_v52 = vadd.f32 %v1834_v60, %v1731_v63  ;;  %v1722_v23 = vpop.f32.mrf.mxu1  ;;  %v6736_v33 = vadd.f32 %v2057_v20, %v1957_v39  ;;  %2975 = vmatmul.bf16.gmra.mxu0 %v6728_v49  ;;  %v6776_v39 = vmul.f32 %v6417_v14, %v586_v5  ;;  %v3225_v14 = vpack.c.bf16 %v6600_v38, %v6550_v9 }
 0x17f   : > { %v1732_v37 = vadd.f32 %v1722_v23, %v6597_v10  ;;  %v6748_v10 = vpack.c.bf16 %v6569_v44, %v6566_v56 }
 0x180   : > { %3523 = vmatpush.bf16.msrb.mxu0 %v5390_v29  ;;  %v5395_v29 = vld [vmem:[%s6948_s3 + $0x6a0] sm:$0xff]  ;;  %607 = vst [vmem:[#allocation2 + $0x1c1] sm:$0xff] %v6776_v39 }
 0x181   : > { %3301 = vmatpush.bf16.msra.mxu3 %v5367_v41  ;;  %3640 = vmatpush.bf16.msra.mxu2 %v5395_v29 }
 0x183   : > { %v1945_v24 = vpop.f32.mrf.mxu3  ;;  %v2064_v55 = vpop.f32.mrf.mxu0 }
 0x184   : > { %v1958_v57 = vadd.f32 %v1945_v24, %v1844_v45  ;;  %v5388_v45 = vld [vmem:[%s6948_s3 + $0x668] sm:$0xff]  ;;  %3524 = vmatpush.bf16.msrb.mxu0 %v5389_v21 }
 0x185   : > { %v1836_v20 = vpop.f32.mrf.mxu2  ;;  %5409 = vmatpush.bf16.msra.mxu1 %v5388_v45  ;;  %5415 = vmatpush.bf16.msrb.mxu3 %v6676_v25 }
 0x186   : > { %v1846_v16 = vadd.f32 %v1836_v20, %v1732_v37  ;;  %v2161_v63 = vpop.f32.mrf.mxu1  ;;  %v6763_v7 = vadd.f32 %v2059_v15, %v1958_v57  ;;  %v5387_v15 = vld [vmem:[%s6948_s3 + $0x660] sm:$0xff] }
 0x187   : > { %v2181_v62 = vadd.f32 %v2161_v63, %v6622_v51  ;;  %v5394_v51 = vld [vmem:[%s6948_s3 + $0x698] sm:$0xff]  ;;  %v3226_v63 = vpack.c.bf16 %v6657_v18, %v6602_v27 }
 0x188   : > { %2861 = vmatmul.bf16.gmra.mxu3 %v6748_v10  ;;  %3525 = vmatpush.bf16.msrb.mxu0 %v5388_v45 }
 0x189   : > { %3074 = vmatmul.bf16.vlgmr.msrb.gmra.mxu1 %v2997_v54  ;;  %5416 = vmatpush.bf16.msrb.mxu3 %v6708_v1  ;;  %v2998_v1 = vpack.c.bf16 %v6635_v11, %v6584_v42  ;;  %v5385_v11 = vld [vmem:[%s6948_s3 + $0x650] sm:$0xff]  ;;  %v5384_v54 = vld [vmem:[%s6948_s3 + $0x648] sm:$0xff] }
 0x18a   : > { %3188 = vmatmul.bf16.vlgmr.msrb.gmra.mxu2 %v3111_v31  ;;  %5410 = vmatpush.bf16.msra.mxu1 %v5387_v15 }
 0x18b   : > { %v1948_v46 = vpop.f32.mrf.mxu3  ;;  %v2504_v12 = vpop.f32.mrf.mxu0  ;;  %3641 = vmatpush.bf16.msra.mxu2 %v5394_v51 }
 0x18c   : > { %v1959_v43 = vadd.f32 %v1948_v46, %v1845_v52  ;;  %3526 = vmatpush.bf16.msrb.mxu0 %v5387_v15 }
 0x18d   : > { %v2275_v0 = vpop.f32.mrf.mxu2  ;;  %5417 = vmatpush.bf16.msrb.mxu3 %v5396_v19  ;;  %v5393_v19 = vld [vmem:[%s6948_s3 + $0x690] sm:$0xff] }
 0x18e   : > { %v2295_v60 = vadd.f32 %v2275_v0, %v2181_v62  ;;  %v2163_v21 = vpop.f32.mrf.mxu1  ;;  %v6778_v25 = vadd.f32 %v2062_v13, %v1959_v43  ;;  %3417 = vmatmul.bf16.vlgmr.msra.gmra.mxu0 %v6589_v22  ;;  %v3112_v22 = vpack.c.bf16 %v6514_v48, %v6468_v17  ;;  %v2999_v0 = vpack.c.bf16 %v6689_v53, %v6637_v26 }
 0x18f   : > { %v2182_v52 = vadd.f32 %v2163_v21, %v6653_v30  ;;  %v5386_v30 = vld [vmem:[%s6948_s3 + $0x658] sm:$0xff]  ;;  %3642 = vmatpush.bf16.msra.mxu2 %v5393_v19  ;;  %v3113_v43 = vpack.c.bf16 %v6566_v56, %v6517_v32  ;;  %v2996_v56 = vld [vmem:[#allocation2 + $0x1c0] sm:$0xff] }
 0x190   : > { %5411 = vmatpush.bf16.msra.mxu1 %v5386_v30  ;;  %3527 = vmatpush.bf16.msrb.mxu0 %v5386_v30  ;;  %v3343_v30 = vpack.c.bf16 %v6532_v40, %v2996_v56 }
 0x191   : > { %5418 = vmatpush.bf16.msrb.mxu3 %v5395_v29 }
 0x193   : > { %v1950_v23 = vpop.f32.mrf.mxu3  ;;  %v2506_v13 = vpop.f32.mrf.mxu0 }
 0x194   : > { %v1960_v47 = vadd.f32 %v1950_v23, %v1846_v16  ;;  %5412 = vmatpush.bf16.msra.mxu1 %v5385_v11  ;;  %3528 = vmatpush.bf16.msrb.mxu0 %v5385_v11 }
 0x195   : > { %v2277_v37 = vpop.f32.mrf.mxu2  ;;  %5419 = vmatpush.bf16.msrb.mxu3 %v5394_v51 }
 0x196   : > { %v2296_v8 = vadd.f32 %v2277_v37, %v2182_v52  ;;  %v2166_v24 = vpop.f32.mrf.mxu1  ;;  %v6796_v20 = vadd.f32 %v2064_v55, %v1960_v47  ;;  %v3227_v37 = vpack.c.bf16 %v6715_v4, %v6659_v35 }
 0x197   : > { %v2183_v9 = vadd.f32 %v2166_v24, %v6678_v34  ;;  %v5392_v34 = vld [vmem:[%s6948_s3 + $0x688] sm:$0xff] }
 0x198   : > { %3302 = vmatmul.bf16.vlgmr.msra.gmra.mxu3 %v3225_v14  ;;  %3643 = vmatpush.bf16.msra.mxu2 %v5392_v34 }
 0x199   : > { %3079 = vmatmul.bf16.gmra.mxu1 %v2998_v1  ;;  %5420 = vmatpush.bf16.msrb.mxu3 %v5393_v19 }
 0x19a   : > { %3193 = vmatmul.bf16.gmra.mxu2 %v3112_v22  ;;  %5413 = vmatpush.bf16.msra.mxu1 %v5384_v54 }
 0x19b   : > { %v2390_v17 = vpop.f32.mrf.mxu3  ;;  %v2509_v38 = vpop.f32.mrf.mxu0  ;;  %3529 = vmatpush.bf16.msrb.mxu0 %v5384_v54 }
 0x19c   : > { %v2410_v42 = vadd.f32 %v2390_v17, %v2295_v60 }
 0x19d   : > { %v2280_v48 = vpop.f32.mrf.mxu2  ;;  %5421 = vmatpush.bf16.msrb.mxu3 %v5392_v34 }
 0x19e   : > { %v2297_v57 = vadd.f32 %v2280_v48, %v2183_v9  ;;  %v2168_v55 = vpop.f32.mrf.mxu1  ;;  %v6805_v41 = vadd.f32 %v2504_v12, %v2410_v42  ;;  %3422 = vmatmul.bf16.gmra.mxu0 %v6651_v6  ;;  %v5383_v6 = vld [vmem:[%s6948_s3 + $0x640] sm:$0xff] }
 0x19f   : > { %v2184_v16 = vadd.f32 %v2168_v55, %v6710_v2  ;;  %v5391_v2 = vld [vmem:[%s6948_s3 + $0x680] sm:$0xff]  ;;  %5414 = vmatpush.bf16.msra.mxu1 %v5383_v6  ;;  %3530 = vmatpush.bf16.msrb.mxu0 %v5383_v6 }
 0x1a0   : > { %3644 = vmatpush.bf16.msra.mxu2 %v5391_v2 }
 0x1a1   : > { %5422 = vmatpush.bf16.msrb.mxu3 %v5391_v2 }
 0x1a3   : > { %v2392_v31 = vpop.f32.mrf.mxu3  ;;  %v2511_v62 = vpop.f32.mrf.mxu0 }
 0x1a4   : > { %v2411_v29 = vadd.f32 %v2392_v31, %v2296_v8  ;;  %v3114_v8 = vpack.c.bf16 %v6776_v39, %v6569_v44  ;;  %v3224_v44 = vld [vmem:[#allocation2 + $0x1c2] sm:$0xff] }
 0x1a5   : > { %v2282_v45 = vpop.f32.mrf.mxu2 }
 0x1a6   : > { %v2298_v46 = vadd.f32 %v2282_v45, %v2184_v16  ;;  %v2171_v12 = vpop.f32.mrf.mxu1  ;;  %v2525_v27 = vadd.f32 %v2506_v13, %v2411_v29  ;;  %v3000_v13 = vpack.c.bf16 %v2996_v56, %v6691_v61 }
 0x1a7   : > { %v2185_v18 = vadd.f32 %v2171_v12, %v6736_v33 }
 0x1a8   : > { %3307 = vmatmul.bf16.gmra.mxu3 %v3226_v63 }
 0x1a9   : > { %3084 = vmatmul.bf16.gmra.mxu1 %v2999_v0 }
 0x1aa   : > { %3198 = vmatmul.bf16.gmra.mxu2 %v3113_v43 }
 0x1ab   : > { %v2395_v5 = vpop.f32.mrf.mxu3  ;;  %v2514_v51 = vpop.f32.mrf.mxu0 }
 0x1ac   : > { %v2412_v15 = vadd.f32 %v2395_v5, %v2297_v57 }
 0x1ad   : > { %v2285_v60 = vpop.f32.mrf.mxu2 }
 0x1ae   : > { %v2299_v21 = vadd.f32 %v2285_v60, %v2185_v18  ;;  %v2173_v26 = vpop.f32.mrf.mxu1  ;;  %v2526_v53 = vadd.f32 %v2509_v38, %v2412_v15  ;;  %3427 = vmatmul.bf16.gmra.mxu0 %v6700_v3 }
 0x1af   : > { %v2186_v32 = vadd.f32 %v2173_v26, %v6763_v7  ;;  %v3453_v26 = vld [vmem:[#allocation2 + $0x1d1] sm:$0xff] }
 0x1b3   : > { %v2397_v52 = vpop.f32.mrf.mxu3  ;;  %v2516_v47 = vpop.f32.mrf.mxu0 }
 0x1b4   : > { %v2413_v33 = vadd.f32 %v2397_v52, %v2298_v46 }
 0x1b5   : > { %v2287_v23 = vpop.f32.mrf.mxu2 }
 0x1b6   : > { %v2300_v14 = vadd.f32 %v2287_v23, %v2186_v32  ;;  %v2176_v1 = vpop.f32.mrf.mxu1  ;;  %v2527_v22 = vadd.f32 %v2511_v62, %v2413_v33  ;;  %v3457_v33 = vpack.c.bf16 %v3453_v26, %v6776_v39 }
 0x1b7   : > { %v2187_v7 = vadd.f32 %v2176_v1, %v6778_v25  ;;  %v3228_v25 = vpack.c.bf16 %v3224_v44, %v6717_v50  ;;  %v3567_v50 = vld [vmem:[#allocation2 + $0x1d2] sm:$0xff] }
 0x1b8   : > { %3312 = vmatmul.bf16.gmra.mxu3 %v3227_v37 }
 0x1b9   : > { %3089 = vmatmul.bf16.gmra.mxu1 %v3000_v13 }
 0x1ba   : > { %3203 = vmatmul.bf16.gmra.mxu2 %v3114_v8 }
 0x1bb   : > { %v2400_v3 = vpop.f32.mrf.mxu3  ;;  %v2519_v35 = vpop.f32.mrf.mxu0 }
 0x1bc   : > { %v2414_v24 = vadd.f32 %v2400_v3, %v2299_v21 }
 0x1bd   : > { %v2290_v19 = vpop.f32.mrf.mxu2 }
 0x1be   : > { %v2301_v4 = vadd.f32 %v2290_v19, %v2187_v7  ;;  %v2178_v9 = vpop.f32.mrf.mxu1  ;;  %v2528_v17 = vadd.f32 %v2514_v51, %v2414_v24  ;;  %3432 = vmatmul.bf16.gmra.mxu0 %v3343_v30 }
 0x1bf   : > { %v2188_v61 = vadd.f32 %v2178_v9, %v6796_v20 }
 0x1c3   : > { %v2402_v48 = vpop.f32.mrf.mxu3  ;;  %v2521_v11 = vpop.f32.mrf.mxu0 }
 0x1c4   : > { %v2415_v38 = vadd.f32 %v2402_v48, %v2300_v14 }
 0x1c5   : > { %v2292_v42 = vpop.f32.mrf.mxu2 }
 0x1c6   : > { %v2302_v57 = vadd.f32 %v2292_v42, %v2188_v61  ;;  %v2618_v34 = vpop.f32.mrf.mxu1  ;;  %v2529_v55 = vadd.f32 %v2516_v47, %v2415_v38 }
 0x1c7   : > { %v2638_v40 = vadd.f32 %v2618_v34, %v6805_v41  ;;  %v3571_v41 = vpack.c.bf16 %v3567_v50, %v3224_v44 }
 0x1c8   : > { %3317 = vmatmul.bf16.gmra.mxu3 %v3228_v25 }
 0x1c9   : > { %3536 = vmatmul.bf16.vlgmr.msra.gmra.mxu1 %v6695_v28 }
 0x1ca   : > { %3645 = vmatmul.bf16.vlgmr.msra.gmra.mxu2 %v6614_v59 }
 0x1cb   : > { %v2405_v16 = vpop.f32.mrf.mxu3  ;;  %v2961_v31 = vpop.f32.mrf.mxu0 }
 0x1cc   : > { %v2416_v54 = vadd.f32 %v2405_v16, %v2301_v4 }
 0x1cd   : > { %v2733_v20 = vpop.f32.mrf.mxu2 }
 0x1ce   : > { %v2753_v45 = vadd.f32 %v2733_v20, %v2638_v40  ;;  %v2620_v29 = vpop.f32.mrf.mxu1  ;;  %v2530_v63 = vadd.f32 %v2519_v35, %v2416_v54  ;;  %3531 = vmatmul.bf16.vlgmr.msrb.gmra.mxu0 %v6641_v58 }
 0x1cf   : > { %v2639_v62 = vadd.f32 %v2620_v29, %v2525_v27 }
 0x1d3   : > { %v2407_v2 = vpop.f32.mrf.mxu3  ;;  %v2963_v0 = vpop.f32.mrf.mxu0 }
 0x1d4   : > { %v2417_v46 = vadd.f32 %v2407_v2, %v2302_v57 }
 0x1d5   : > { %v2735_v6 = vpop.f32.mrf.mxu2 }
 0x1d6   : > { %v2754_v43 = vadd.f32 %v2735_v6, %v2639_v62  ;;  %v2623_v28 = vpop.f32.mrf.mxu1  ;;  %v2531_v12 = vadd.f32 %v2521_v11, %v2417_v46 }
 0x1d7   : > { %v2640_v59 = vadd.f32 %v2623_v28, %v2526_v53 }
 0x1d8   : > { %3660 = vmatmul.bf16.vlgmr.msrb.gmra.mxu3 %v3571_v41 }
 0x1d9   : > { %3541 = vmatmul.bf16.gmra.mxu1 %v6748_v10 }
 0x1da   : > { %3650 = vmatmul.bf16.gmra.mxu2 %v6671_v36 }
 0x1db   : > { %v2847_v18 = vpop.f32.mrf.mxu3  ;;  %v2966_v60 = vpop.f32.mrf.mxu0 }
 0x1dc   : > { %v2867_v27 = vadd.f32 %v2847_v18, %v2753_v45 }
 0x1dd   : > { %v2738_v5 = vpop.f32.mrf.mxu2 }
 0x1de   : > { %v2755_v58 = vadd.f32 %v2738_v5, %v2640_v59  ;;  %v2625_v15 = vpop.f32.mrf.mxu1  ;;  %v6842_v51 = vadd.f32 %v2961_v31, %v2867_v27 }
 0x1df   : > { %v2641_v21 = vadd.f32 %v2625_v15, %v2527_v22 }
 0x1e3   : > { %v2849_v32 = vpop.f32.mrf.mxu3  ;;  %v2968_v23 = vpop.f32.mrf.mxu0 }
 0x1e4   : > { %v2868_v52 = vadd.f32 %v2849_v32, %v2754_v43 }
 0x1e5   : > { %v2740_v56 = vpop.f32.mrf.mxu2 }
 0x1e6   : > { %v2756_v53 = vadd.f32 %v2740_v56, %v2641_v21  ;;  %v2628_v10 = vpop.f32.mrf.mxu1  ;;  %v6845_v37 = vadd.f32 %v2963_v0, %v2868_v52 }
 0x1e7   : > { %v2642_v36 = vadd.f32 %v2628_v10, %v2528_v17 }
 0x1e9   : > { %3546 = vmatmul.bf16.gmra.mxu1 %v3457_v33 }
 0x1ea   : > { %3655 = vmatmul.bf16.gmra.mxu2 %v6728_v49 }
 0x1eb   : > { %v2852_v47 = vpop.f32.mrf.mxu3  ;;  %v2971_v8 = vpop.f32.mrf.mxu0 }
 0x1ec   : > { %v2869_v13 = vadd.f32 %v2852_v47, %v2755_v58 }
 0x1ed   : > { %v2743_v14 = vpop.f32.mrf.mxu2 }
 0x1ee   : > { %v2757_v1 = vadd.f32 %v2743_v14, %v2642_v36  ;;  %v2630_v22 = vpop.f32.mrf.mxu1  ;;  %v6848_v7 = vadd.f32 %v2966_v60, %v2869_v13 }
 0x1ef   : > { %v2643_v3 = vadd.f32 %v2630_v22, %v2529_v55 }
 0x1f3   : > { %v2854_v30 = vpop.f32.mrf.mxu3  ;;  %v2973_v39 = vpop.f32.mrf.mxu0 }
 0x1f4   : > { %v2870_v24 = vadd.f32 %v2854_v30, %v2756_v53 }
 0x1f5   : > { %v2745_v19 = vpop.f32.mrf.mxu2 }
 0x1f6   : > { %v2758_v35 = vadd.f32 %v2745_v19, %v2643_v3  ;;  %v2633_v4 = vpop.f32.mrf.mxu1  ;;  %v6850_v9 = vadd.f32 %v2968_v23, %v2870_v24 }
 0x1f7   : > { %v2644_v17 = vadd.f32 %v2633_v4, %v2530_v63 }
 0x1fb   : > { %v2857_v61 = vpop.f32.mrf.mxu3  ;;  %v2976_v48 = vpop.f32.mrf.mxu0 }
 0x1fc   : > { %v2871_v44 = vadd.f32 %v2857_v61, %v2757_v1 }
 0x1fd   : > { %v2748_v49 = vpop.f32.mrf.mxu2 }
 0x1fe   : > { %v2759_v42 = vadd.f32 %v2748_v49, %v2644_v17  ;;  %v2635_v38 = vpop.f32.mrf.mxu1  ;;  %v6852_v25 = vadd.f32 %v2971_v8, %v2871_v44 }
 0x1ff   : > { %v2645_v11 = vadd.f32 %v2635_v38, %v2531_v12 }
 0x203   : > { %v2859_v57 = vpop.f32.mrf.mxu3  ;;  %v2978_v40 = vpop.f32.mrf.mxu0 }
 0x204   : > { %v2872_v55 = vadd.f32 %v2859_v57, %v2758_v35 }
 0x205   : > { %v2750_v34 = vpop.f32.mrf.mxu2 }
 0x206   : > { %v2760_v16 = vadd.f32 %v2750_v34, %v2645_v11  ;;  %v3075_v20 = vpop.f32.mrf.mxu1  ;;  %v6854_v54 = vadd.f32 %v2973_v39, %v2872_v55 }
 0x207   : > { %v3095_v14 = vadd.f32 %v3075_v20, %v6842_v51  ;;  %v6885_v51 = vld [vmem:[%s6949_s4] ss:$0 sm:$0xff] }
 0x20b   : > { %v2862_v31 = vpop.f32.mrf.mxu3  ;;  %v3418_v63 = vpop.f32.mrf.mxu0 }
 0x20c   : > { %v2873_v29 = vadd.f32 %v2862_v31, %v2759_v42 }
 0x20d   : > { %v3189_v45 = vpop.f32.mrf.mxu2 }
 0x20e   : > { %v3077_v62 = vpop.f32.mrf.mxu1  ;;  %v6856_v50 = vadd.f32 %v2976_v48, %v2873_v29  ;;  %v3209_v1 = vadd.f32 %v3189_v45, %v3095_v14 }
 0x20f   : > { %v3096_v19 = vadd.f32 %v3077_v62, %v6845_v37 }
 0x213   : > { %v2864_v2 = vpop.f32.mrf.mxu3  ;;  %v3420_v41 = vpop.f32.mrf.mxu0 }
 0x214   : > { %v2874_v46 = vadd.f32 %v2864_v2, %v2760_v16 }
 0x215   : > { %v3191_v6 = vpop.f32.mrf.mxu2 }
 0x216   : > { %v3080_v0 = vpop.f32.mrf.mxu1  ;;  %v6858_v43 = vadd.f32 %v2978_v40, %v2874_v46  ;;  %v3210_v4 = vadd.f32 %v3191_v6, %v3096_v19 }
 0x217   : > { %v3097_v42 = vadd.f32 %v3080_v0, %v6848_v7 }
 0x21b   : > { %v3303_v28 = vpop.f32.mrf.mxu3  ;;  %v3423_v59 = vpop.f32.mrf.mxu0 }
 0x21c   : > { %v3323_v30 = vadd.f32 %v3303_v28, %v3209_v1 }
 0x21d   : > { %v3194_v12 = vpop.f32.mrf.mxu2 }
 0x21e   : > { %v3082_v18 = vpop.f32.mrf.mxu1  ;;  %v3438_v24 = vadd.f32 %v3418_v63, %v3323_v30  ;;  %v3211_v37 = vadd.f32 %v3194_v12, %v3097_v42 }
 0x21f   : > { %v3098_v7 = vadd.f32 %v3082_v18, %v6850_v9 }
 0x223   : > { %v3305_v5 = vpop.f32.mrf.mxu3  ;;  %v6860_v60 = vpop.f32.mrf.mxu0 }
 0x224   : > { %v3324_v49 = vadd.f32 %v3305_v5, %v3210_v4 }
 0x225   : > { %v3196_v27 = vpop.f32.mrf.mxu2 }
 0x226   : > { %v3085_v58 = vpop.f32.mrf.mxu1  ;;  %v3439_v11 = vadd.f32 %v3420_v41, %v3324_v49  ;;  %v3212_v29 = vadd.f32 %v3196_v27, %v3098_v7 }
 0x22b   : > { %v3308_v15 = vpop.f32.mrf.mxu3  ;;  %v6864_v26 = vpop.f32.mrf.mxu0 }
 0x22c   : > { %v3325_v55 = vadd.f32 %v3308_v15, %v3211_v37 }
 0x22d   : > { %v6862_v21 = vpop.f32.mrf.mxu2 }
 0x22e   : > { %v6866_v32 = vpop.f32.mrf.mxu1  ;;  %v3440_v31 = vadd.f32 %v3423_v59, %v3325_v55  ;;  %v3099_v59 = vadd.f32 %v3085_v58, %v6852_v25 }
 0x230   : > { %v3213_v30 = vadd.f32 %v6862_v21, %v3099_v59  ;;  %v3100_v21 = vadd.f32 %v6866_v32, %v6854_v54 }
 0x233   : > { %v3310_v56 = vpop.f32.mrf.mxu3  ;;  %v6870_v23 = vpop.f32.mrf.mxu0 }
 0x234   : > { %v3326_v28 = vadd.f32 %v3310_v56, %v3212_v29 }
 0x235   : > { %v6868_v52 = vpop.f32.mrf.mxu2 }
 0x236   : > { %v3090_v53 = vpop.f32.mrf.mxu1  ;;  %v3441_v18 = vadd.f32 %v6860_v60, %v3326_v28 }
 0x237   : > { %v3101_v0 = vadd.f32 %v3090_v53, %v6856_v50 }
 0x23b   : > { %v3313_v33 = vpop.f32.mrf.mxu3  ;;  %v6872_v36 = vpop.f32.mrf.mxu0 }
 0x23c   : > { %v3327_v56 = vadd.f32 %v3313_v33, %v3213_v30 }
 0x23d   : > { %v3204_v10 = vpop.f32.mrf.mxu2 }
 0x23e   : > { %v3092_v47 = vpop.f32.mrf.mxu1  ;;  %v3215_v14 = vadd.f32 %v3204_v10, %v3101_v0 }
 0x23f   : > { %v3102_v10 = vadd.f32 %v3092_v47, %v6858_v43 }
 0x243   : > { %v6877_v8 = vpop.f32.mrf.mxu0  ;;  %v6879_v3 = vpop.f32.mrf.mxu3 }
 0x245   : > { %v6875_v13 = vpop.f32.mrf.mxu2 }
 0x246   : > { %v3537_v22 = vpop.f32.mrf.mxu1  ;;  %v3216_v60 = vadd.f32 %v6875_v13, %v3102_v10 }
 0x247   : > { %v3554_v62 = vadd.f32 %v3537_v22, %v3440_v31 }
 0x24b   : > { %v3532_v35 = vpop.f32.mrf.mxu0  ;;  %v3318_v48 = vpop.f32.mrf.mxu3 }
 0x24c   : > { %v3552_v17 = vadd.f32 %v3532_v35, %v3438_v24  ;;  %v3329_v27 = vadd.f32 %v3318_v48, %v3215_v14 }
 0x24d   : > { %v3646_v39 = vpop.f32.mrf.mxu2 }
 0x24e   : > { %v3539_v61 = vpop.f32.mrf.mxu1  ;;  %v3666_v44 = vadd.f32 %v3646_v39, %v3552_v17  ;;  %v3444_v35 = vadd.f32 %v6872_v36, %v3329_v27  ;;  %v3442_v17 = vadd.f32 %v6864_v26, %v3327_v56  ;;  %v3214_v36 = vadd.f32 %v6868_v52, %v3100_v21 }
 0x24f   : > { %v3555_v19 = vadd.f32 %v3539_v61, %v3441_v18 }
 0x250   : > { %v3678_v38 = vadd.f32 %v6885_v51, %v3666_v44  ;;  %v3328_v42 = vadd.f32 %v6879_v3, %v3214_v36 }
 0x252   : > { %3686 = vst [vmem:[%s6894_s28] sm:$0xff] %v3678_v38  ;;  %v3707_v2 = vmul.f32 %v3678_v38, %v3678_v38  ;;  %v3443_v52 = vadd.f32 %v6870_v23, %v3328_v42 }
 0x253   : > { %v3534_v34 = vpop.f32.mrf.mxu0  ;;  %v3320_v63 = vpop.f32.mrf.mxu3 }
 0x254   : > { %v3553_v40 = vadd.f32 %v3534_v34, %v3439_v11  ;;  %v3330_v33 = vadd.f32 %v3320_v63, %v3216_v60 }
 0x255   : > { %v3648_v57 = vpop.f32.mrf.mxu2 }
 0x256   : > { %v3542_v16 = vpop.f32.mrf.mxu1  ;;  %v3667_v20 = vadd.f32 %v3648_v57, %v3553_v40  ;;  %v3445_v54 = vadd.f32 %v6877_v8, %v3330_v33 }
 0x257   : > { %v3556_v47 = vadd.f32 %v3542_v16, %v3442_v17 }
 0x258   : > { %v3679_v45 = vadd.f32 %v6885_v51, %v3667_v20 }
 0x25a   : > { %3687 = vst [vmem:[%s6894_s28 + $0x8] sm:$0xff] %v3679_v45  ;;  %v3694_v6 = vadd.f32 %v3679_v45, %v3678_v38  ;;  %v3708_v46 = vmul.f32 %v3679_v45, %v3679_v45 }
 0x25b   : > { %v3661_v24 = vpop.f32.mrf.mxu3 }
 0x25c   : > { %v3715_v5 = vadd.f32 %v3708_v46, %v3707_v2 }
 0x25d   : > { %v3651_v41 = vpop.f32.mrf.mxu2 }
 0x25e   : > { %v3668_v12 = vadd.f32 %v3651_v41, %v3554_v62  ;;  %v3544_v15 = vpop.f32.mrf.mxu1 }
 0x25f   : > { %v3557_v40 = vadd.f32 %v3544_v15, %v3443_v52 }
 0x260   : > { %v3680_v9 = vadd.f32 %v6885_v51, %v3668_v12 }
 0x262   : > { %3688 = vst [vmem:[%s6894_s28 + $0x10] sm:$0xff] %v3680_v9  ;;  %v3709_v1 = vmul.f32 %v3680_v9, %v3680_v9  ;;  %v3695_v22 = vadd.f32 %v3694_v6, %v3680_v9 }
 0x263   : > { %v3663_v32 = vpop.f32.mrf.mxu3 }
 0x264   : > { %v3716_v50 = vadd.f32 %v3715_v5, %v3709_v1 }
 0x265   : > { %v3653_v53 = vpop.f32.mrf.mxu2 }
 0x266   : > { %v3669_v39 = vadd.f32 %v3653_v53, %v3555_v19  ;;  %v3547_v25 = vpop.f32.mrf.mxu1 }
 0x267   : > { %v3558_v4 = vadd.f32 %v3547_v25, %v3444_v35 }
 0x268   : > { %v3681_v58 = vadd.f32 %v6885_v51, %v3669_v39 }
 0x269   : > { %v3672_v49 = vadd.f32 %v3661_v24, %v3558_v4 }
 0x26a   : > { %3689 = vst [vmem:[%s6894_s28 + $0x18] sm:$0xff] %v3681_v58  ;;  %v3710_v61 = vmul.f32 %v3681_v58, %v3681_v58  ;;  %v3696_v43 = vadd.f32 %v3695_v22, %v3681_v58 }
 0x26b   : > { %v3684_v13 = vadd.f32 %v6885_v51, %v3672_v49 }
 0x26c   : > { %v3717_v44 = vadd.f32 %v3716_v50, %v3710_v61 }
 0x26d   : > { %v3656_v48 = vpop.f32.mrf.mxu2  ;;  %3692 = vst [vmem:[%s6894_s28 + $0x30] sm:$0xff] %v3684_v13  ;;  %v3713_v29 = vmul.f32 %v3684_v13, %v3684_v13 }
 0x26e   : > { %v3670_v38 = vadd.f32 %v3656_v48, %v3556_v47  ;;  %v3549_v26 = vpop.f32.mrf.mxu1 }
 0x26f   : > { %v3559_v11 = vadd.f32 %v3549_v26, %v3445_v54 }
 0x270   : > { %v3682_v37 = vadd.f32 %v6885_v51, %v3670_v38 }
 0x271   : > { %v3673_v55 = vadd.f32 %v3663_v32, %v3559_v11 }
 0x272   : > { %3690 = vst [vmem:[%s6894_s28 + $0x20] sm:$0xff] %v3682_v37  ;;  %v3711_v57 = vmul.f32 %v3682_v37, %v3682_v37  ;;  %v3697_v34 = vadd.f32 %v3696_v43, %v3682_v37 }
 0x273   : > { %v3685_v3 = vadd.f32 %v6885_v51, %v3673_v55 }
 0x274   : > { %v3718_v16 = vadd.f32 %v3717_v44, %v3711_v57 }
 0x275   : > { %v3658_v20 = vpop.f32.mrf.mxu2  ;;  %3693 = vst [vmem:[%s6894_s28 + $0x38] sm:$0xff] %v3685_v3  ;;  %v3714_v2 = vmul.f32 %v3685_v3, %v3685_v3 }
 0x276   : > { %v3671_v7 = vadd.f32 %v3658_v20, %v3557_v40 }
 0x278   : > { %v3683_v8 = vadd.f32 %v6885_v51, %v3671_v7 }
 0x27a   : > { %3691 = vst [vmem:[%s6894_s28 + $0x28] sm:$0xff] %v3683_v8  ;;  %v3698_v31 = vadd.f32 %v3697_v34, %v3683_v8  ;;  %v3712_v45 = vmul.f32 %v3683_v8, %v3683_v8 }
 0x27c   : > { %v3719_v63 = vadd.f32 %v3718_v16, %v3712_v45  ;;  %v3699_v23 = vadd.f32 %v3698_v31, %v3684_v13 }
 0x27e   : > { %v3700_v62 = vadd.f32 %v3699_v23, %v3685_v3  ;;  %v3720_v6 = vadd.f32 %v3719_v63, %v3713_v29 }
 0x280   : > { %v3701_v46 = vrot.slane %v3700_v62, 4  ;;  %v3721_v41 = vadd.f32 %v3720_v6, %v3714_v2 }
 0x282   : > { %v3702_v0 = vadd.f32 %v3701_v46, %v3700_v62  ;;  %v3722_v28 = vrot.slane %v3721_v41, 4 }
 0x284   : > { %v3703_v12 = vrot.slane %v3702_v0, 2  ;;  %v3723_v5 = vadd.f32 %v3722_v28, %v3721_v41 }
 0x286   : > { %v3704_v15 = vadd.f32 %v3703_v12, %v3702_v0  ;;  %v3724_v14 = vrot.slane %v3723_v5, 2 }
 0x288   : > { %v3705_v9 = vrot.slane %v3704_v15, 1  ;;  %v3725_v51 = vadd.f32 %v3724_v14, %v3723_v5 }
 0x28a   : > { %v3726_v59 = vrot.slane %v3725_v51, 1  ;;  %v3706_v18 = vadd.f32 %v3705_v9, %v3704_v15 }
 0x28c   : > { %v3727_v27 = vadd.f32 %v3726_v59, %v3725_v51 }
 0x28e   : > { %v3729_v1 = vsel %vm3728_vm0, %v3706_v18, %v3727_v27 }
 0x28f   : > { %3730 = vst [vmem:[%s470_s12] sm:$0x3] %v3729_v1 }
 0x290 PF: > { %s19_s9 = sadd.s32 1, %s5504_s9   ;;  %s6955_s27 = smov %s5496_s29 }
 0x291   : > { %p16_p12 = scmp.ge.s32.totalorder %s19_s9, 18   ;;  %s6956_s28 = smov %s5500_s30 }
 0x292   : > { %s6957_s29 = smov %s6960_s5  ;;  %s6958_s30 = smov %s6964_s6 }
 0x293   :  { %18 = sbr.rel (!%p16_p12) target bundleno = 3 (0x3), region = 130 }

</bundles_post_ra>
